<compile_context>
chip_gen: v7x
topology: tpu7x:2x2x1
jax: 0.10.0
libtpu: 0.0.40
codegen_flags: <defaults>
</compile_context>

<pallas_src>
import functools

import jax
import jax.numpy as jnp
from jax.experimental import pallas as pl
from jax.experimental.pallas import tpu as pltpu


_LANE = 128
_SUBLANE = 8
# >= largest per-call footprint (~24 MiB fused big-head layer step: 12 MiB
# double-buffered bf16 weight block + 12 MiB f32 upcast temp + small), well under
# v7x's 64 MiB physical VMEM per TensorCore (128 MiB on v5e/v6e).
_VMEM_LIMIT_BYTES = 40 << 20


def _round_up(x, m):
    return ((x + m - 1) // m) * m


def _nbytes(a):
    return int(a.size) * jnp.dtype(a.dtype).itemsize


# ---------------------------------------------------------------------------
# Kernel 1: one nn.Linear (+ optional ReLU), full-K reduction per grid step.
#   grid = (Mp // tm, Np // tn)  -- no K axis, no accumulator, no pl.when.
#   Weights may be bf16; they are upcast to f32 for the dot (f32 accumulation).
# ---------------------------------------------------------------------------
def _linear_kernel(x_ref, w_ref, b_ref, o_ref, *, apply_relu):
    w = w_ref[...].astype(jnp.float32)                 # bf16 stream -> f32 compute
    y = jnp.dot(x_ref[...], w, preferred_element_type=jnp.float32) + b_ref[...]
    if apply_relu:
        y = jnp.maximum(y, 0.0)
    o_ref[...] = y.astype(o_ref.dtype)


def pallas_linear_fullk(x_p, w_p, b_p, *, apply_relu, tm=_SUBLANE, tn=1280):
    """y_p = x_p @ w_p + b_p (optional ReLU), f32 activations.

    x_p: (Mp, Kx) f32 with Kx >= K; only the first K lanes are DMA'd (no host slice).
    w_p: (K, Np)  -- Np multiple of tn, pre-padded (zero columns) at init time.
    b_p: (1, Np)  f32.
    Returns the padded (Mp, Np) f32 result; callers slice.
    """
    Mp, Kx = x_p.shape
    K, Np = w_p.shape
    assert Kx >= K and b_p.shape == (1, Np)
    assert Mp % tm == 0 and Np % tn == 0
    assert Kx == K or K % _LANE == 0       # narrower-than-array block must be lane aligned

    cost = pl.CostEstimate(
        flops=int(2 * Mp * K * Np),
        transcendentals=0,
        bytes_accessed=int(K * Np * jnp.dtype(w_p.dtype).itemsize + Mp * K * 4 + Mp * Np * 4),
    )
    grid = (Mp // tm, Np // tn)
    return pl.pallas_call(
        functools.partial(_linear_kernel, apply_relu=apply_relu),
        out_shape=jax.ShapeDtypeStruct((Mp, Np), jnp.float32),
        grid_spec=pltpu.PrefetchScalarGridSpec(
            num_scalar_prefetch=0,
            grid=grid,
            in_specs=[
                pl.BlockSpec((tm, K), lambda i, j: (i, 0)),   # x: full reduction depth
                pl.BlockSpec((K, tn), lambda i, j: (0, j)),   # w: (K, tn) slab
                pl.BlockSpec((1, tn), lambda i, j: (0, j)),   # bias
            ],
            out_specs=pl.BlockSpec((tm, tn), lambda i, j: (i, j)),
        ),
        compiler_params=pltpu.CompilerParams(
            dimension_semantics=("parallel", "parallel"),     # >=2 N tiles -> both v7x TCs
            vmem_limit_bytes=_VMEM_LIMIT_BYTES,
        ),
        cost_estimate=cost,
    )(x_p, w_p, b_p)


# ---------------------------------------------------------------------------
# Kernel 2: fused classifier_2 layers 2-4 (the big weight stream).
#   grid = (n_stack, Np // tn); layer axis outermost.  The activation ping-pongs in a
#   (2, Mp, Np) VMEM scratch; o_ref is overwritten each layer, the last layer wins.
# ---------------------------------------------------------------------------
def _fused_big_head_kernel(x_ref, ws_ref, bs_ref, o_ref, act_ref, *, n_stack, k_pad, tn):
    l = pl.program_id(0)
    j = pl.program_id(1)

    # Layer 0 of the stack reads the kernel input; copy it once into ping-pong slot 0.
    @pl.when(jnp.logical_and(l == 0, j == 0))
    def _():
        act_ref[0, :, :k_pad] = x_ref[...]

    in_slot = l % 2
    out_slot = (l + 1) % 2

    x_in = act_ref[in_slot][:, :k_pad]                        # (Mp, k_pad) f32, VMEM read
    w = ws_ref[0].astype(jnp.float32)                         # (k_pad, tn) bf16 -> f32
    y = jnp.dot(x_in, w, preferred_element_type=jnp.float32) + bs_ref[0]
    y_relu = jnp.maximum(y, 0.0)

    # Feed the next layer (never read for the last layer; harmless).
    col = pl.multiple_of(j * tn, tn)
    act_ref[out_slot, :, pl.ds(col, tn)] = y_relu

    o_ref[...] = y_relu                                       # overwritten by later layers
    @pl.when(l == n_stack - 1)
    def _():
        o_ref[...] = y                                        # final layer: no ReLU


def pallas_fc_big_head_fused(x_p, w_stack, b_stack, *, tn=1280):
    """Runs the stacked (n_stack, k_pad, n_pad) Linear/ReLU layers in one pallas_call."""
    Mp, Kx = x_p.shape
    n_stack, k_pad, n_pad = w_stack.shape
    assert Kx >= k_pad and n_pad % tn == 0
    assert b_stack.shape == (n_stack, 1, n_pad)

    wbytes = jnp.dtype(w_stack.dtype).itemsize
    cost = pl.CostEstimate(
        flops=int(2 * n_stack * Mp * k_pad * n_pad),
        transcendentals=0,
        bytes_accessed=int(n_stack * k_pad * n_pad * wbytes + Mp * k_pad * 4 + Mp * n_pad * 4),
    )
    grid = (n_stack, n_pad // tn)
    kernel = functools.partial(_fused_big_head_kernel, n_stack=n_stack, k_pad=k_pad, tn=tn)
    return pl.pallas_call(
        kernel,
        out_shape=jax.ShapeDtypeStruct((Mp, n_pad), jnp.float32),
        grid_spec=pltpu.PrefetchScalarGridSpec(
            num_scalar_prefetch=0,
            grid=grid,
            in_specs=[
                pl.BlockSpec((Mp, k_pad), lambda l, j: (0, 0)),      # resident activation
                pl.BlockSpec((1, k_pad, tn), lambda l, j: (l, 0, j)),  # streamed weights
                pl.BlockSpec((1, 1, tn), lambda l, j: (l, 0, j)),      # streamed bias
            ],
            out_specs=pl.BlockSpec((Mp, tn), lambda l, j: (0, j)),
            scratch_shapes=[pltpu.VMEM((2, _SUBLANE, n_pad), jnp.float32)]
            if Mp == _SUBLANE else [pltpu.VMEM((2, Mp, n_pad), jnp.float32)],
        ),
        compiler_params=pltpu.CompilerParams(
            # The layer axis must run in order and the ping-pong activation lives in one
            # core's VMEM, so both axes are 'arbitrary' (single-TC on v7x).
            # TODO(synk): on v7x, benchmark this fused path against fuse_big_head=False
            #             (per-layer kernels with 2 'parallel' N tiles across both TCs).
            dimension_semantics=("arbitrary", "arbitrary"),
            vmem_limit_bytes=_VMEM_LIMIT_BYTES,
        ),
        cost_estimate=cost,
    )(x_p, w_stack, b_stack)


# ---------------------------------------------------------------------------
# Kernel 3: fused 4-layer FC head (small 704-wide head): all weights VMEM-resident,
# intermediates never leave the TensorCore.
# ---------------------------------------------------------------------------
def _fused_head_kernel(x_ref, w1_ref, b1_ref, w2_ref, b2_ref, w3_ref, b3_ref,
                       w4_ref, b4_ref, o_ref):
    def lin(h, w_ref, b_ref):
        return jnp.dot(h, w_ref[...].astype(jnp.float32),
                       preferred_element_type=jnp.float32) + b_ref[...]

    h = jnp.maximum(lin(x_ref[...], w1_ref, b1_ref), 0.0)
    h = jnp.maximum(lin(h, w2_ref, b2_ref), 0.0)
    h = jnp.maximum(lin(h, w3_ref, b3_ref), 0.0)
    o_ref[...] = lin(h, w4_ref, b4_ref).astype(o_ref.dtype)


def pallas_fc_head_fused(x_p, padded_layers):
    """Runs a 4-layer Linear/ReLU head in one pallas_call (weights fit in VMEM)."""
    assert len(padded_layers) == 4
    Mp, _ = x_p.shape
    Np = padded_layers[-1][0].shape[1]

    flat, flops, bytes_acc = [], 0, _nbytes(x_p) + Mp * Np * 4
    for (w_p, b_p) in padded_layers:
        flat.extend([w_p, b_p])
        flops += 2 * Mp * w_p.shape[0] * w_p.shape[1]
        bytes_acc += _nbytes(w_p) + _nbytes(b_p)

    def _full(a):
        return pl.BlockSpec(a.shape, lambda i: (0, 0))

    return pl.pallas_call(
        _fused_head_kernel,
        out_shape=jax.ShapeDtypeStruct((Mp, Np), jnp.float32),
        grid_spec=pltpu.PrefetchScalarGridSpec(
            num_scalar_prefetch=0,
            grid=(1,),
            in_specs=[_full(x_p)] + [_full(a) for a in flat],
            out_specs=pl.BlockSpec((Mp, Np), lambda i: (0, 0)),
        ),
        compiler_params=pltpu.CompilerParams(
            dimension_semantics=("arbitrary",),
            vmem_limit_bytes=_VMEM_LIMIT_BYTES,
        ),
        cost_estimate=pl.CostEstimate(flops=int(flops), transcendentals=0,
                                      bytes_accessed=int(bytes_acc)),
    )(x_p, *flat)


# ---------------------------------------------------------------------------
# Parameters: unpadded (PyTorch nn.Linear semantics) + one-time padding/cast pass.
# ---------------------------------------------------------------------------
def make_fc_params(key, dims):
    layers = []
    for (d_in, d_out) in dims:
        key, kw, kb = jax.random.split(key, 3)
        # PyTorch Linear init is U(-1/sqrt(in), 1/sqrt(in)); reproduce the distribution.
        bound = 1.0 / jnp.sqrt(d_in)
        w = jax.random.uniform(kw, (d_in, d_out), jnp.float32, -bound, bound)
        b = jax.random.uniform(kb, (d_out,), jnp.float32, -bound, bound)
        layers.append((w, b))
    return layers, key


def make_scenenet_params(key, z_dim_m=64, n_layers=4):
    dims1 = [[z_dim_m, 704]] + [[704, 704]] * (n_layers - 1)
    dims2 = [[z_dim_m, 2330]] + [[2330, 2330]] * (n_layers - 1)
    c1, key = make_fc_params(key, dims1)
    c2, key = make_fc_params(key, dims2)
    return {"classifier_1": c1, "classifier_2": c2}


def _pad_linear(w, b, k_pad, n_pad, weight_dtype):
    K, N = w.shape
    w_p = jnp.zeros((k_pad, n_pad), weight_dtype).at[:K, :N].set(w.astype(weight_dtype))
    b_p = jnp.zeros((1, n_pad), jnp.float32).at[0, :N].set(b.astype(jnp.float32))
    return w_p, b_p


def prepare_scenenet_params(params, *, tn_big=1280, weight_dtype=jnp.bfloat16):
    """Pad + cast weights ONCE (kept padded in HBM; no per-forward padding traffic).

    classifier_1 (704-wide, fused small head): width padded to 768.
    classifier_2 (2330-wide): N padded to a multiple of tn_big (2330 -> 2560), K of
      layers 2-4 padded to 2432 (19*128); layers 2-4 additionally stacked into
      (3, 2432, 2560) / (3, 1, 2560) tensors for the fused big-head kernel.
    Weights are stored in `weight_dtype` (bf16 halves the dominant HBM weight stream);
    biases stay f32 and all kernels compute/accumulate in f32.  Use
    weight_dtype=jnp.float32 for bit-faithful f32 nn.Linear semantics.
    """
    c1 = params["classifier_1"]
    n1_pad = _round_up(c1[-1][0].shape[1], _LANE)            # 704 -> 768
    padded1 = []
    for i, (w, b) in enumerate(c1):
        k_pad = w.shape[0] if i == 0 else n1_pad
        padded1.append(_pad_linear(w, b, k_pad, n1_pad, weight_dtype))

    c2 = params["classifier_2"]
    n2_pad = _round_up(c2[-1][0].shape[1], tn_big)            # 2330 -> 2560
    k2_pad = _round_up(c2[-1][0].shape[1], _LANE)             # 2330 -> 2432
    padded2 = []
    for i, (w, b) in enumerate(c2):
        k_pad = w.shape[0] if i == 0 else k2_pad
        padded2.append(_pad_linear(w, b, k_pad, n2_pad, weight_dtype))

    c2_w_stack = jnp.stack([w for (w, _) in padded2[1:]], axis=0)   # (3, 2432, 2560)
    c2_b_stack = jnp.stack([b for (_, b) in padded2[1:]], axis=0)   # (3, 1, 2560)

    return {
        "classifier_1": padded1,
        "classifier_2_first": padded2[0],
        "classifier_2_rest": padded2[1:],
        "c2_w_stack": c2_w_stack,
        "c2_b_stack": c2_b_stack,
    }


# ---------------------------------------------------------------------------
# forward_classification: fused small head + (tiny first layer -> fused layers 2-4).
# ---------------------------------------------------------------------------
def scenenet_forward_classification(z, kernel_params, *, n_out_1, n_out_2,
                                    tn_big=1280, fuse_big_head=True):
    B = z.shape[0]
    Mp = _round_up(B, _SUBLANE)
    c1 = kernel_params["classifier_1"]

    # Only the tiny (B, z_dim) latent is padded per call (weights are pre-padded).
    z_p = jnp.zeros((Mp, z.shape[1]), jnp.float32).at[:B].set(z.astype(jnp.float32))

    # Head 1 (704-wide): all 4 layers in one kernel, weights VMEM-resident.
    out1_p = pallas_fc_head_fused(z_p, c1)
    class_1 = out1_p[:B, :n_out_1]

    # Head 2 (2330-wide): tiny first layer (parallel N tiles), then layers 2-4 fused.
    w0, b0 = kernel_params["classifier_2_first"]
    h_p = pallas_linear_fullk(z_p, w0, b0, apply_relu=True, tn=tn_big)
    if fuse_big_head:
        out2_p = pallas_fc_big_head_fused(
            h_p, kernel_params["c2_w_stack"], kernel_params["c2_b_stack"], tn=tn_big)
    else:
        rest = kernel_params["classifier_2_rest"]
        x_p = h_p
        for i, (w_p, b_p) in enumerate(rest):
            x_p = pallas_linear_fullk(x_p, w_p, b_p,
                                      apply_relu=(i != len(rest) - 1), tn=tn_big)
        out2_p = x_p
    class_2 = out2_p[:B, :n_out_2]
    return class_1, class_2


# ---------------------------------------------------------------------------
# Pure-JAX references for correctness checking
# ---------------------------------------------------------------------------
def fc_ref(z, layers):
    x = z
    n = len(layers)
    for i, (w, b) in enumerate(layers):
        x = jnp.dot(x, w, precision=jax.lax.Precision.HIGHEST) + b
        if i != n - 1:
            x = jnp.maximum(x, 0.0)
    return x


def _quantize_ref_params(layers, weight_dtype):
    # Same weight rounding as the kernels (bf16 stream, f32 compute).
    return [(w.astype(weight_dtype).astype(jnp.float32), b) for (w, b) in layers]


if __name__ == "__main__":
    key = jax.random.PRNGKey(0)
    z_dim_m = 64
    batch = 2
    weight_dtype = jnp.bfloat16   # jnp.float32 => exact f32 nn.Linear semantics

    params = make_scenenet_params(key, z_dim_m=z_dim_m)
    kernel_params = prepare_scenenet_params(params, tn_big=1280, weight_dtype=weight_dtype)

    n_out_1 = params["classifier_1"][-1][1].shape[0]      # 704
    n_out_2 = params["classifier_2"][-1][1].shape[0]      # 2330

    # Latent z (output of the undefined EncoderFull) -- synthetic input.
    z = jax.random.normal(jax.random.PRNGKey(0), (batch, z_dim_m), jnp.float32)

    fwd = jax.jit(functools.partial(scenenet_forward_classification,
                                    n_out_1=n_out_1, n_out_2=n_out_2,
                                    tn_big=1280, fuse_big_head=True))
    class_1, class_2 = fwd(z, kernel_params)
    jax.block_until_ready((class_1, class_2))

    assert class_1.shape == (batch, n_out_1)
    assert class_2.shape == (batch, n_out_2)

    # Tight contract check: same (bf16-rounded) weights, f32 activations/accumulation.
    ref_1_q = fc_ref(z, _quantize_ref_params(params["classifier_1"], weight_dtype))
    ref_2_q = fc_ref(z, _quantize_ref_params(params["classifier_2"], weight_dtype))
    assert jnp.allclose(class_1, ref_1_q, atol=2e-3, rtol=2e-3)
    assert jnp.allclose(class_2, ref_2_q, atol=2e-3, rtol=2e-3)

    # Loose sanity check vs the full-f32 PyTorch-semantics reference
    # (difference is bf16 weight rounding only).
    ref_1_f32 = fc_ref(z, params["classifier_1"])
    ref_2_f32 = fc_ref(z, params["classifier_2"])
    assert jnp.allclose(class_1, ref_1_f32, atol=5e-2, rtol=5e-2)
    assert jnp.allclose(class_2, ref_2_f32, atol=5e-2, rtol=5e-2)

    print("KERNEL_OK")
</pallas_src>

<mosaic_0001>
module attributes {stable_mosaic.version = 11 : i64} {
  func.func @_fused_big_head_kernel(%arg0: i32, %arg1: i32, %arg2: memref<8x2432xf32, #tpu.memory_space<vmem>>, %arg3: memref<1x2432x1280xbf16, #tpu.memory_space<vmem>>, %arg4: memref<1x1x1280xf32, #tpu.memory_space<vmem>>, %arg5: memref<8x1280xf32, #tpu.memory_space<vmem>>, %arg6: memref<2x8x2560xf32, #tpu.memory_space<vmem>>) attributes {dimension_semantics = [#tpu.dimension_semantics<arbitrary>, #tpu.dimension_semantics<arbitrary>], iteration_bounds = array<i64: 3, 2>, scalar_prefetch = 0 : i64, scratch_operands = 1 : i64, tpu.core_type = #tpu.core_type<tc>, window_params = [{transform_indices = @transform_0, window_bounds = array<i64: 8, 2432>}, {transform_indices = @transform_1, window_bounds = array<i64: 1, 2432, 1280>}, {transform_indices = @transform_2, window_bounds = array<i64: 1, 1, 1280>}, {transform_indices = @transform_3, window_bounds = array<i64: 8, 1280>}]} {
    %c0_i32 = arith.constant 0 : i32
    %0 = arith.cmpi eq, %arg0, %c0_i32 : i32
    %c0_i32_0 = arith.constant 0 : i32
    %1 = arith.cmpi eq, %arg1, %c0_i32_0 : i32
    %2 = arith.andi %0, %1 : i1
    %3 = arith.extui %2 : i1 to i32
    %c0_i32_1 = arith.constant 0 : i32
    %4 = arith.cmpi ne, %3, %c0_i32_1 : i32
    scf.if %4 {
      %c0_26 = arith.constant 0 : index
      %c0_27 = arith.constant 0 : index
      %51 = vector.load %arg2[%c0_26, %c0_27] : memref<8x2432xf32, #tpu.memory_space<vmem>>, vector<8x2432xf32>
      %c0_28 = arith.constant 0 : index
      %c0_29 = arith.constant 0 : index
      %c0_30 = arith.constant 0 : index
      %52 = vector.load %arg6[%c0_28, %c0_29, %c0_30] : memref<2x8x2560xf32, #tpu.memory_space<vmem>>, vector<1x8x2432xf32>
      %53 = vector.shape_cast %52 : vector<1x8x2432xf32> to vector<8x2432xf32>
      %54 = vector.shape_cast %51 : vector<8x2432xf32> to vector<1x8x2432xf32>
      tpu.vector_store %arg6[%c0_28, %c0_29, %c0_30], %54 {strides = array<i32>} : memref<2x8x2560xf32, #tpu.memory_space<vmem>>, vector<1x8x2432xf32>,
    } else {
    }
    %c2_i32 = arith.constant 2 : i32
    %c0_i32_2 = arith.constant 0 : i32
    %5 = arith.cmpi eq, %c2_i32, %c0_i32_2 : i32
    %c1_i32 = arith.constant 1 : i32
    %6 = arith.select %5, %c1_i32, %c2_i32 : i32
    %7 = arith.remsi %arg0, %6 : i32
    %c0_i32_3 = arith.constant 0 : i32
    %8 = arith.cmpi ne, %7, %c0_i32_3 : i32
    %c0_i32_4 = arith.constant 0 : i32
    %9 = arith.cmpi slt, %7, %c0_i32_4 : i32
    %c0_i32_5 = arith.constant 0 : i32
    %10 = arith.cmpi slt, %6, %c0_i32_5 : i32
    %11 = arith.xori %9, %10 : i1
    %12 = arith.andi %11, %8 : i1
    %13 = arith.addi %7, %6 : i32
    %14 = arith.select %12, %13, %7 : i32
    %c1_i32_6 = arith.constant 1 : i32
    %15 = arith.addi %arg0, %c1_i32_6 : i32
    %c2_i32_7 = arith.constant 2 : i32
    %c0_i32_8 = arith.constant 0 : i32
    %16 = arith.cmpi eq, %c2_i32_7, %c0_i32_8 : i32
    %c1_i32_9 = arith.constant 1 : i32
    %17 = arith.select %16, %c1_i32_9, %c2_i32_7 : i32
    %18 = arith.remsi %15, %17 : i32
    %c0_i32_10 = arith.constant 0 : i32
    %19 = arith.cmpi ne, %18, %c0_i32_10 : i32
    %c0_i32_11 = arith.constant 0 : i32
    %20 = arith.cmpi slt, %18, %c0_i32_11 : i32
    %c0_i32_12 = arith.constant 0 : i32
    %21 = arith.cmpi slt, %17, %c0_i32_12 : i32
    %22 = arith.xori %20, %21 : i1
    %23 = arith.andi %22, %19 : i1
    %24 = arith.addi %18, %17 : i32
    %25 = arith.select %23, %24, %18 : i32
    %26 = arith.index_cast %14 : i32 to index
    %c0 = arith.constant 0 : index
    %c0_13 = arith.constant 0 : index
    %27 = vector.load %arg6[%26, %c0, %c0_13] : memref<2x8x2560xf32, #tpu.memory_space<vmem>>, vector<1x8x2560xf32>
    %28 = vector.shape_cast %27 : vector<1x8x2560xf32> to vector<8x2560xf32>
    %29 = vector.extract_strided_slice %28 {offsets = [0, 0], sizes = [8, 2432], strides = [1, 1]} : vector<8x2560xf32> to vector<8x2432xf32>
    %c0_14 = arith.constant 0 : index
    %c0_15 = arith.constant 0 : index
    %c0_16 = arith.constant 0 : index
    %30 = vector.load %arg3[%c0_14, %c0_15, %c0_16] : memref<1x2432x1280xbf16, #tpu.memory_space<vmem>>, vector<1x2432x1280xbf16>
    %31 = vector.shape_cast %30 : vector<1x2432x1280xbf16> to vector<2432x1280xbf16>
    %32 = arith.extf %31 : vector<2432x1280xbf16> to vector<2432x1280xf32>
    %cst = arith.constant dense<0.000000e+00> : vector<8x1280xf32>
    %33 = tpu.matmul %29, %32, %cst {dimension_numbers = #tpu.dot_dimension_numbers<[1], [0], [0], [1], [0, 0, 1, 1], [], []>} : vector<8x2432xf32>, vector<2432x1280xf32>, vector<8x1280xf32> -> vector<8x1280xf32>
    %c0_17 = arith.constant 0 : index
    %c0_18 = arith.constant 0 : index
    %c0_19 = arith.constant 0 : index
    %34 = vector.load %arg4[%c0_17, %c0_18, %c0_19] : memref<1x1x1280xf32, #tpu.memory_space<vmem>>, vector<1x1x1280xf32>
    %35 = vector.shape_cast %34 : vector<1x1x1280xf32> to vector<1x1280xf32>
    %36 = vector.broadcast %35 : vector<1x1280xf32> to vector<8x1280xf32>
    %37 = arith.addf %33, %36 : vector<8x1280xf32>
    %cst_20 = arith.constant 0.000000e+00 : f32
    %38 = vector.broadcast %cst_20 : f32 to vector<8x1280xf32>
    %39 = arith.maximumf %37, %38 : vector<8x1280xf32>
    %c1280_i32 = arith.constant 1280 : i32
    %40 = arith.muli %arg1, %c1280_i32 : i32
    %41 = tpu.assume_multiple %40, 1280 : i32
    %42 = arith.index_cast %25 : i32 to index
    %c0_21 = arith.constant 0 : index
    %43 = arith.index_cast %41 : i32 to index
    %44 = vector.load %arg6[%42, %c0_21, %43] : memref<2x8x2560xf32, #tpu.memory_space<vmem>>, vector<1x8x1280xf32>
    %45 = vector.shape_cast %44 : vector<1x8x1280xf32> to vector<8x1280xf32>
    %46 = vector.shape_cast %39 : vector<8x1280xf32> to vector<1x8x1280xf32>
    tpu.vector_store %arg6[%42, %c0_21, %43], %46 {strides = array<i32>} : memref<2x8x2560xf32, #tpu.memory_space<vmem>>, vector<1x8x1280xf32>,
    %c0_22 = arith.constant 0 : index
    %c0_23 = arith.constant 0 : index
    %47 = vector.load %arg5[%c0_22, %c0_23] : memref<8x1280xf32, #tpu.memory_space<vmem>>, vector<8x1280xf32>
    tpu.vector_store %arg5[%c0_22, %c0_23], %39 {strides = array<i32>} : memref<8x1280xf32, #tpu.memory_space<vmem>>, vector<8x1280xf32>,
    %c2_i32_24 = arith.constant 2 : i32
    %48 = arith.cmpi eq, %arg0, %c2_i32_24 : i32
    %49 = arith.extui %48 : i1 to i32
    %c0_i32_25 = arith.constant 0 : i32
    %50 = arith.cmpi ne, %49, %c0_i32_25 : i32
    scf.if %50 {
      %c0_26 = arith.constant 0 : index
      %c0_27 = arith.constant 0 : index
      %51 = vector.load %arg5[%c0_26, %c0_27] : memref<8x1280xf32, #tpu.memory_space<vmem>>, vector<8x1280xf32>
      tpu.vector_store %arg5[%c0_26, %c0_27], %37 {strides = array<i32>} : memref<8x1280xf32, #tpu.memory_space<vmem>>, vector<8x1280xf32>,
    } else {
    }
    return
  }
  func.func @transform_0(%arg0: i32, %arg1: i32) -> (i32, i32) {
    %c0_i32 = arith.constant 0 : i32
    %c0_i32_0 = arith.constant 0 : i32
    %c0_i32_1 = arith.constant 0 : i32
    return %c0_i32, %c0_i32_0 : i32, i32
  }
  func.func @transform_1(%arg0: i32, %arg1: i32) -> (i32, i32, i32) {
    %c0_i32 = arith.constant 0 : i32
    %c0_i32_0 = arith.constant 0 : i32
    return %arg0, %c0_i32, %arg1 : i32, i32, i32
  }
  func.func @transform_2(%arg0: i32, %arg1: i32) -> (i32, i32, i32) {
    %c0_i32 = arith.constant 0 : i32
    %c0_i32_0 = arith.constant 0 : i32
    return %arg0, %c0_i32, %arg1 : i32, i32, i32
  }
  func.func @transform_3(%arg0: i32, %arg1: i32) -> (i32, i32) {
    %c0_i32 = arith.constant 0 : i32
    %c0_i32_0 = arith.constant 0 : i32
    return %c0_i32, %arg1 : i32, i32
  }
}

module attributes {stable_mosaic.version = 11 : i64} {
  func.func @_linear_kernel(%arg0: i32, %arg1: i32, %arg2: memref<8x64xf32, #tpu.memory_space<vmem>>, %arg3: memref<64x1280xbf16, #tpu.memory_space<vmem>>, %arg4: memref<1x1280xf32, #tpu.memory_space<vmem>>, %arg5: memref<8x1280xf32, #tpu.memory_space<vmem>>) attributes {dimension_semantics = [#tpu.dimension_semantics<parallel>, #tpu.dimension_semantics<parallel>], iteration_bounds = array<i64: 1, 2>, scalar_prefetch = 0 : i64, scratch_operands = 0 : i64, tpu.core_type = #tpu.core_type<tc>, window_params = [{transform_indices = @transform_0, window_bounds = array<i64: 8, 64>}, {transform_indices = @transform_1, window_bounds = array<i64: 64, 1280>}, {transform_indices = @transform_2, window_bounds = array<i64: 1, 1280>}, {transform_indices = @transform_3, window_bounds = array<i64: 8, 1280>}]} {
    %c0 = arith.constant 0 : index
    %c0_0 = arith.constant 0 : index
    %0 = vector.load %arg3[%c0, %c0_0] : memref<64x1280xbf16, #tpu.memory_space<vmem>>, vector<64x1280xbf16>
    %1 = arith.extf %0 : vector<64x1280xbf16> to vector<64x1280xf32>
    %c0_1 = arith.constant 0 : index
    %c0_2 = arith.constant 0 : index
    %2 = vector.load %arg2[%c0_1, %c0_2] : memref<8x64xf32, #tpu.memory_space<vmem>>, vector<8x64xf32>
    %cst = arith.constant dense<0.000000e+00> : vector<8x1280xf32>
    %3 = tpu.matmul %2, %1, %cst {dimension_numbers = #tpu.dot_dimension_numbers<[1], [0], [0], [1], [0, 0, 1, 1], [], []>} : vector<8x64xf32>, vector<64x1280xf32>, vector<8x1280xf32> -> vector<8x1280xf32>
    %c0_3 = arith.constant 0 : index
    %c0_4 = arith.constant 0 : index
    %4 = vector.load %arg4[%c0_3, %c0_4] : memref<1x1280xf32, #tpu.memory_space<vmem>>, vector<1x1280xf32>
    %5 = vector.broadcast %4 : vector<1x1280xf32> to vector<8x1280xf32>
    %6 = arith.addf %3, %5 : vector<8x1280xf32>
    %cst_5 = arith.constant 0.000000e+00 : f32
    %7 = vector.broadcast %cst_5 : f32 to vector<8x1280xf32>
    %8 = arith.maximumf %6, %7 : vector<8x1280xf32>
    %c0_6 = arith.constant 0 : index
    %c0_7 = arith.constant 0 : index
    %9 = vector.load %arg5[%c0_6, %c0_7] : memref<8x1280xf32, #tpu.memory_space<vmem>>, vector<8x1280xf32>
    tpu.vector_store %arg5[%c0_6, %c0_7], %8 {strides = array<i32>} : memref<8x1280xf32, #tpu.memory_space<vmem>>, vector<8x1280xf32>,
    return
  }
  func.func @transform_0(%arg0: i32, %arg1: i32) -> (i32, i32) {
    %c0_i32 = arith.constant 0 : i32
    %c0_i32_0 = arith.constant 0 : i32
    return %arg0, %c0_i32 : i32, i32
  }
  func.func @transform_1(%arg0: i32, %arg1: i32) -> (i32, i32) {
    %c0_i32 = arith.constant 0 : i32
    %c0_i32_0 = arith.constant 0 : i32
    return %c0_i32, %arg1 : i32, i32
  }
  func.func @transform_2(%arg0: i32, %arg1: i32) -> (i32, i32) {
    %c0_i32 = arith.constant 0 : i32
    %c0_i32_0 = arith.constant 0 : i32
    return %c0_i32, %arg1 : i32, i32
  }
  func.func @transform_3(%arg0: i32, %arg1: i32) -> (i32, i32) {
    %c0_i32 = arith.constant 0 : i32
    return %arg0, %arg1 : i32, i32
  }
}

module attributes {stable_mosaic.version = 11 : i64} {
  func.func @_fused_head_kernel(%arg0: i32, %arg1: memref<8x64xf32, #tpu.memory_space<vmem>>, %arg2: memref<64x768xbf16, #tpu.memory_space<vmem>>, %arg3: memref<1x768xf32, #tpu.memory_space<vmem>>, %arg4: memref<768x768xbf16, #tpu.memory_space<vmem>>, %arg5: memref<1x768xf32, #tpu.memory_space<vmem>>, %arg6: memref<768x768xbf16, #tpu.memory_space<vmem>>, %arg7: memref<1x768xf32, #tpu.memory_space<vmem>>, %arg8: memref<768x768xbf16, #tpu.memory_space<vmem>>, %arg9: memref<1x768xf32, #tpu.memory_space<vmem>>, %arg10: memref<8x768xf32, #tpu.memory_space<vmem>>) attributes {dimension_semantics = [#tpu.dimension_semantics<arbitrary>], iteration_bounds = array<i64: 1>, scalar_prefetch = 0 : i64, scratch_operands = 0 : i64, tpu.core_type = #tpu.core_type<tc>, window_params = [{pipeline_mode = #tpu.pipeline_mode<synchronous>, transform_indices = @transform_0, window_bounds = array<i64: 8, 64>}, {pipeline_mode = #tpu.pipeline_mode<synchronous>, transform_indices = @transform_1, window_bounds = array<i64: 64, 768>}, {pipeline_mode = #tpu.pipeline_mode<synchronous>, transform_indices = @transform_2, window_bounds = array<i64: 1, 768>}, {pipeline_mode = #tpu.pipeline_mode<synchronous>, transform_indices = @transform_3, window_bounds = array<i64: 768, 768>}, {pipeline_mode = #tpu.pipeline_mode<synchronous>, transform_indices = @transform_4, window_bounds = array<i64: 1, 768>}, {pipeline_mode = #tpu.pipeline_mode<synchronous>, transform_indices = @transform_5, window_bounds = array<i64: 768, 768>}, {pipeline_mode = #tpu.pipeline_mode<synchronous>, transform_indices = @transform_6, window_bounds = array<i64: 1, 768>}, {pipeline_mode = #tpu.pipeline_mode<synchronous>, transform_indices = @transform_7, window_bounds = array<i64: 768, 768>}, {pipeline_mode = #tpu.pipeline_mode<synchronous>, transform_indices = @transform_8, window_bounds = array<i64: 1, 768>}, {pipeline_mode = #tpu.pipeline_mode<synchronous>, transform_indices = @transform_9, window_bounds = array<i64: 8, 768>}]} {
    %c0 = arith.constant 0 : index
    %c0_0 = arith.constant 0 : index
    %0 = vector.load %arg1[%c0, %c0_0] : memref<8x64xf32, #tpu.memory_space<vmem>>, vector<8x64xf32>
    %c0_1 = arith.constant 0 : index
    %c0_2 = arith.constant 0 : index
    %1 = vector.load %arg2[%c0_1, %c0_2] : memref<64x768xbf16, #tpu.memory_space<vmem>>, vector<64x768xbf16>
    %2 = arith.extf %1 : vector<64x768xbf16> to vector<64x768xf32>
    %cst = arith.constant dense<0.000000e+00> : vector<8x768xf32>
    %3 = tpu.matmul %0, %2, %cst {dimension_numbers = #tpu.dot_dimension_numbers<[1], [0], [0], [1], [0, 0, 1, 1], [], []>} : vector<8x64xf32>, vector<64x768xf32>, vector<8x768xf32> -> vector<8x768xf32>
    %c0_3 = arith.constant 0 : index
    %c0_4 = arith.constant 0 : index
    %4 = vector.load %arg3[%c0_3, %c0_4] : memref<1x768xf32, #tpu.memory_space<vmem>>, vector<1x768xf32>
    %5 = vector.broadcast %4 : vector<1x768xf32> to vector<8x768xf32>
    %6 = arith.addf %3, %5 : vector<8x768xf32>
    %cst_5 = arith.constant 0.000000e+00 : f32
    %7 = vector.broadcast %cst_5 : f32 to vector<8x768xf32>
    %8 = arith.maximumf %6, %7 : vector<8x768xf32>
    %c0_6 = arith.constant 0 : index
    %c0_7 = arith.constant 0 : index
    %9 = vector.load %arg4[%c0_6, %c0_7] : memref<768x768xbf16, #tpu.memory_space<vmem>>, vector<768x768xbf16>
    %10 = arith.extf %9 : vector<768x768xbf16> to vector<768x768xf32>
    %cst_8 = arith.constant dense<0.000000e+00> : vector<8x768xf32>
    %11 = tpu.matmul %8, %10, %cst_8 {dimension_numbers = #tpu.dot_dimension_numbers<[1], [0], [0], [1], [0, 0, 1, 1], [], []>} : vector<8x768xf32>, vector<768x768xf32>, vector<8x768xf32> -> vector<8x768xf32>
    %c0_9 = arith.constant 0 : index
    %c0_10 = arith.constant 0 : index
    %12 = vector.load %arg5[%c0_9, %c0_10] : memref<1x768xf32, #tpu.memory_space<vmem>>, vector<1x768xf32>
    %13 = vector.broadcast %12 : vector<1x768xf32> to vector<8x768xf32>
    %14 = arith.addf %11, %13 : vector<8x768xf32>
    %cst_11 = arith.constant 0.000000e+00 : f32
    %15 = vector.broadcast %cst_11 : f32 to vector<8x768xf32>
    %16 = arith.maximumf %14, %15 : vector<8x768xf32>
    %c0_12 = arith.constant 0 : index
    %c0_13 = arith.constant 0 : index
    %17 = vector.load %arg6[%c0_12, %c0_13] : memref<768x768xbf16, #tpu.memory_space<vmem>>, vector<768x768xbf16>
    %18 = arith.extf %17 : vector<768x768xbf16> to vector<768x768xf32>
    %cst_14 = arith.constant dense<0.000000e+00> : vector<8x768xf32>
    %19 = tpu.matmul %16, %18, %cst_14 {dimension_numbers = #tpu.dot_dimension_numbers<[1], [0], [0], [1], [0, 0, 1, 1], [], []>} : vector<8x768xf32>, vector<768x768xf32>, vector<8x768xf32> -> vector<8x768xf32>
    %c0_15 = arith.constant 0 : index
    %c0_16 = arith.constant 0 : index
    %20 = vector.load %arg7[%c0_15, %c0_16] : memref<1x768xf32, #tpu.memory_space<vmem>>, vector<1x768xf32>
    %21 = vector.broadcast %20 : vector<1x768xf32> to vector<8x768xf32>
    %22 = arith.addf %19, %21 : vector<8x768xf32>
    %cst_17 = arith.constant 0.000000e+00 : f32
    %23 = vector.broadcast %cst_17 : f32 to vector<8x768xf32>
    %24 = arith.maximumf %22, %23 : vector<8x768xf32>
    %c0_18 = arith.constant 0 : index
    %c0_19 = arith.constant 0 : index
    %25 = vector.load %arg8[%c0_18, %c0_19] : memref<768x768xbf16, #tpu.memory_space<vmem>>, vector<768x768xbf16>
    %26 = arith.extf %25 : vector<768x768xbf16> to vector<768x768xf32>
    %cst_20 = arith.constant dense<0.000000e+00> : vector<8x768xf32>
    %27 = tpu.matmul %24, %26, %cst_20 {dimension_numbers = #tpu.dot_dimension_numbers<[1], [0], [0], [1], [0, 0, 1, 1], [], []>} : vector<8x768xf32>, vector<768x768xf32>, vector<8x768xf32> -> vector<8x768xf32>
    %c0_21 = arith.constant 0 : index
    %c0_22 = arith.constant 0 : index
    %28 = vector.load %arg9[%c0_21, %c0_22] : memref<1x768xf32, #tpu.memory_space<vmem>>, vector<1x768xf32>
    %29 = vector.broadcast %28 : vector<1x768xf32> to vector<8x768xf32>
    %30 = arith.addf %27, %29 : vector<8x768xf32>
    %c0_23 = arith.constant 0 : index
    %c0_24 = arith.constant 0 : index
    %31 = vector.load %arg10[%c0_23, %c0_24] : memref<8x768xf32, #tpu.memory_space<vmem>>, vector<8x768xf32>
    tpu.vector_store %arg10[%c0_23, %c0_24], %30 {strides = array<i32>} : memref<8x768xf32, #tpu.memory_space<vmem>>, vector<8x768xf32>,
    return
  }
  func.func @transform_0(%arg0: i32) -> (i32, i32) {
    %c0_i32 = arith.constant 0 : i32
    %c0_i32_0 = arith.constant 0 : i32
    %c0_i32_1 = arith.constant 0 : i32
    return %c0_i32, %c0_i32_0 : i32, i32
  }
  func.func @transform_1(%arg0: i32) -> (i32, i32) {
    %c0_i32 = arith.constant 0 : i32
    %c0_i32_0 = arith.constant 0 : i32
    %c0_i32_1 = arith.constant 0 : i32
    return %c0_i32, %c0_i32_0 : i32, i32
  }
  func.func @transform_2(%arg0: i32) -> (i32, i32) {
    %c0_i32 = arith.constant 0 : i32
    %c0_i32_0 = arith.constant 0 : i32
    %c0_i32_1 = arith.constant 0 : i32
    return %c0_i32, %c0_i32_0 : i32, i32
  }
  func.func @transform_3(%arg0: i32) -> (i32, i32) {
    %c0_i32 = arith.constant 0 : i32
    %c0_i32_0 = arith.constant 0 : i32
    %c0_i32_1 = arith.constant 0 : i32
    return %c0_i32, %c0_i32_0 : i32, i32
  }
  func.func @transform_4(%arg0: i32) -> (i32, i32) {
    %c0_i32 = arith.constant 0 : i32
    %c0_i32_0 = arith.constant 0 : i32
    %c0_i32_1 = arith.constant 0 : i32
    return %c0_i32, %c0_i32_0 : i32, i32
  }
  func.func @transform_5(%arg0: i32) -> (i32, i32) {
    %c0_i32 = arith.constant 0 : i32
    %c0_i32_0 = arith.constant 0 : i32
    %c0_i32_1 = arith.constant 0 : i32
    return %c0_i32, %c0_i32_0 : i32, i32
  }
  func.func @transform_6(%arg0: i32) -> (i32, i32) {
    %c0_i32 = arith.constant 0 : i32
    %c0_i32_0 = arith.constant 0 : i32
    %c0_i32_1 = arith.constant 0 : i32
    return %c0_i32, %c0_i32_0 : i32, i32
  }
  func.func @transform_7(%arg0: i32) -> (i32, i32) {
    %c0_i32 = arith.constant 0 : i32
    %c0_i32_0 = arith.constant 0 : i32
    %c0_i32_1 = arith.constant 0 : i32
    return %c0_i32, %c0_i32_0 : i32, i32
  }
  func.func @transform_8(%arg0: i32) -> (i32, i32) {
    %c0_i32 = arith.constant 0 : i32
    %c0_i32_0 = arith.constant 0 : i32
    %c0_i32_1 = arith.constant 0 : i32
    return %c0_i32, %c0_i32_0 : i32, i32
  }
  func.func @transform_9(%arg0: i32) -> (i32, i32) {
    %c0_i32 = arith.constant 0 : i32
    %c0_i32_0 = arith.constant 0 : i32
    %c0_i32_1 = arith.constant 0 : i32
    return %c0_i32, %c0_i32_0 : i32, i32
  }
}

</mosaic_0001>

<bundles_post_ra>
// kernel: scenenet_forward_classification.4
= control target key start
LH: loop header
LB: loop body
LE: loop exit
PB: predicated region body
PF: predicated region fallthrough
CT: control target
= control target key end

     0   :  { %8 = vsyncpa [#allocation3], 0  ;;  %s1600_s0 = inlined_call_operand.vmem [shape: f32[8,64], index: 0, kind: input, shape index: {}]   ;;  %s1601_s1 = inlined_call_operand.hbm [shape: bf16[64,2560], index: 1, kind: input, shape index: {}]   ;;  %s1602_s2 = inlined_call_operand.hbm [shape: f32[1,2560], index: 2, kind: input, shape index: {}]   ;;  %s1603_s3 = inlined_call_operand.vmem [shape: f32[8,2560], index: 3, kind: output, shape index: {}]  }
   0x1   :  { %10 = vsyncpa [#allocation3 + $0x1], 0 }
   0x2   :  { %11 = vsyncpa [#allocation5], 0 }
   0x3   :  { %13 = vsyncpa [#allocation5 + $0x1], 0  ;;  %s1363_s12 = smov 0   ;;  %s1365_s13 = smov 0  }
   0x4   :  { %s1367_s14 = smov 0   ;;  %s1369_s15 = smov 0  }
   0x5   :  { %s1371_s16 = smov 0   ;;  %s1373_s17 = smov 0  }
   0x6 LB: > { %s955_s18 = sadd.s32 4294967295, %s1335_s17   ;;  %s28_s19 = sadd.s32 1, %s1331_s16  ;;  %s1335_s17 = sphi %s1373_s17, %s19_s17   ;;  %s1331_s16 = sphi %s1371_s16, %s1615_s16   ;;  %s1327_s15 = sphi %s1369_s15, %s1614_s15   ;;  %s1323_s14 = sphi %s1367_s14, %s1613_s14   ;;  %s1319_s13 = sphi %s1365_s13, %s1612_s13   ;;  %s1315_s12 = sphi %s1363_s12, %s1611_s12  }
   0x7   : > { %p29_p0 = scmp.ge.s32.totalorder %s28_s19, 2  ;;  %s64_s20 = sadd.s32 1, %s1323_s14 }
   0x8   : > { %p71_p1 = scmp.ne.s32.totalorder %s1323_s14, %s1319_s13  ;;  %p72_p2 = scmp.eq.s32.totalorder %s1335_s17, 0 }
   0x9   : > { %s1617_s19 = smov (%p29_p0, %s28_s19), 0  ;;  %p77_p4 = scmp.ne.s32.totalorder %s1319_s13, %s1315_s12 }
   0xa   : > { %p73_p3 = por %p72_p2, %p71_p1  ;;  %s61_s21 = ssub.s32 %s1331_s16, %s1617_s19 }
   0xb   : > { %p78_p5 = scmp.eq.s32.totalorder %s955_s18, 0  ;;  %p62_p6 = scmp.eq.s32.totalorder %s61_s21, 0 }
   0xc   : > { %p1108_p8 = scmp.lt.s32.totalorder %s1335_s17, 2  ;;  %s1411_s24 = sand.u32 1, %s1323_s14  }
   0xd   : > { %p1402_p7 = por %p78_p5, %p77_p4  ;;  %s971_s25 = smul.u32 640, %s1331_s16 }
   0xe   : > { %s1408_s23 = scalar_select %p62_p6, %s1323_s14, %s64_s20  }
   0xf   : > { %s1605_s22 = scalar_select %p1402_p7, 1, 0 }
  0x10   : > { %s1093_s26 = smul.u32 320, %s1411_s24  ;;  %s1418_s29 = scalar_lea.hbm %s1601_s1, %s971_s25 }
  0x11   : > { %p1420_p9 = pnand %p1108_p8, %p73_p3  ;;  %s163_s6 = scalar_lea.sflag [#allocation3], %s1411_s24 }
  0x12   : > { %s166_s4 = scalar_lea.vmem [#allocation2], %s1093_s26  ;;  %s1221_s7 = scalar_lea.hbm %s1418_s29, 5120 }
  0x13   : > { %s173_s5 = sshll.u32 %s166_s4, 4  ;;  %p1222_p11 = scmp.ne.s32.totalorder %s1418_s29, %s1221_s7  ;;  %s1424_s5 = int_to_ptr.vmem [resolvable:$true] %s173_s5 }
  0x14   : > { %p1223_p12 = pneg %p1420_p9  ;;  %s1226_s10 = scalar_lea.hbm %s1601_s1, 10240 }
  0x15   : > { %p1227_p1 = scmp.lt.u32.totalorder %s1418_s29, %s1601_s1  ;;  %p1228_p2 = scmp.lt.u32.totalorder %s1226_s10, %s1221_s7 }
  0x16   : > { %p1224_p13 = pnand %p1223_p12, %p1222_p11  ;;  %p1230_p4 = scmp.lt.u32.totalorder %s1221_s7, %s1418_s29 }
  0x17   : > { %p1229_p3 = por %p1228_p2, %p1227_p1 }
  0x18   : > { %p1225_p0 = pneg %p1224_p13 }
  0x19   : > { %p1231_p5 = por %p1230_p4, %p1229_p3 }
  0x1b   : > { %p1232_p6 = pnand %p1231_p5, %p1225_p0 }
  0x1d   : > { %1235 = shalt.err (!%p1232_p6)
}
  0x1e   : > { %s1236_s18 = scalar_lea.vmem %s1424_s5, 5120  ;;  %s1337_s20 = smov [#allocation2]  }
  0x1f   : > { %p1237_p8 = scmp.ne.s32.totalorder %s1424_s5, %s1236_s18  ;;  %s1241_s21 = sshll.u32 %s1337_s20, 4  ;;  %s1242_s21 = int_to_ptr.vmem [resolvable:$false] %s1241_s21 }
  0x20   : > { %s1243_s25 = scalar_lea.vmem %s1242_s21, 10240  ;;  %p1244_p10 = scmp.lt.s32.totalorder %s1424_s5, %s1242_s21 }
  0x21   : > { %p1239_p11 = pnand %p1237_p8, %p1223_p12  ;;  %p1245_p1 = scmp.lt.s32.totalorder %s1243_s25, %s1236_s18 }
  0x23   : > { %p1240_p13 = pneg %p1239_p11  ;;  %p1246_p2 = por %p1245_p1, %p1244_p10 }
  0x25   : > { %p1247_p3 = pnand %p1246_p2, %p1240_p13 }
  0x27   : > { %1250 = shalt.err (!%p1247_p3)
}
  0x28   : > { %s1338_s26 = smov 1280   ;;  %s1339_s27 = smov 640  }
  0x29   : > { %s1340_s28 = smov 40   ;;  %p200_p0 = scmp.lt.s32.totalorder %s1335_s17, 3 }
  0x2a   : > { %1104 = dma.hbm_to_vmem [thread:$0]  (!%p1420_p9), %s1418_s29, 5120, %s1424_s5, %s163_s6, %s1338_s26, %s1339_s27, %s1340_s28  }
  0x2b   : > { %s1094_s4 = smul.u32 10, %s1411_s24  ;;  %p1607_p10 = scmp.ge.s32.totalorder %s1335_s17, 1 }
  0x2c   : > { %s972_s8 = smul.u32 160, %s1331_s16  ;;  %s184_s29 = scalar_lea.sflag [#allocation5], %s1411_s24 }
  0x2d   : > { %p1459_p4 = pnand %p1607_p10, %p200_p0  ;;  %s187_s12 = scalar_lea.vmem [#allocation4], %s1094_s4 }
  0x2e   : > { %s1467_s11 = scalar_lea.hbm %s1602_s2, %s972_s8  ;;  %s195_s18 = sshll.u32 %s187_s12, 4  ;;  %s196_s18 = int_to_ptr.vmem [resolvable:$true] %s195_s18 }
  0x2f   : > { %s1608_s7 = scalar_select %p1459_p4, 1, 0 }
  0x30   : > { %s1251_s5 = scalar_lea.hbm %s1467_s11, 160  ;;  %s1256_s21 = scalar_lea.hbm %s1602_s2, 320 }
  0x31   : > { %p1252_p5 = scmp.ne.s32.totalorder %s1467_s11, %s1251_s5  ;;  %p1257_p11 = scmp.lt.u32.totalorder %s1467_s11, %s1602_s2 }
  0x32   : > { %p1258_p13 = scmp.lt.u32.totalorder %s1256_s21, %s1251_s5  ;;  %p1260_p2 = scmp.lt.u32.totalorder %s1251_s5, %s1467_s11 }
  0x33   : > { %p1254_p6 = pnand %p1252_p5, %p1223_p12 }
  0x34   : > { %p1259_p1 = por %p1258_p13, %p1257_p11 }
  0x35   : > { %p1255_p8 = pneg %p1254_p6 }
  0x36   : > { %p1261_p3 = por %p1260_p2, %p1259_p1 }
  0x38   : > { %p1262_p0 = pnand %p1261_p3, %p1255_p8 }
  0x3a   : > { %1265 = shalt.err (!%p1262_p0)
}
  0x3b   : > { %s1266_s24 = scalar_lea.vmem %s196_s18, 160  ;;  %s1341_s27 = smov [#allocation4]  }
  0x3c   : > { %p1267_p10 = scmp.ne.s32.totalorder %s196_s18, %s1266_s24  ;;  %s1271_s28 = sshll.u32 %s1341_s27, 4  ;;  %s1272_s28 = int_to_ptr.vmem [resolvable:$false] %s1271_s28 }
  0x3d   : > { %s1273_s4 = scalar_lea.vmem %s1272_s28, 320  ;;  %p1274_p7 = scmp.lt.s32.totalorder %s196_s18, %s1272_s28 }
  0x3e   : > { %p1269_p5 = pnand %p1267_p10, %p1223_p12  ;;  %p1275_p4 = scmp.lt.s32.totalorder %s1273_s4, %s1266_s24 }
  0x40   : > { %p1270_p6 = pneg %p1269_p5  ;;  %p1276_p11 = por %p1275_p4, %p1274_p7 }
  0x42   : > { %p1277_p13 = pnand %p1276_p11, %p1270_p6 }
  0x44   : > { %1280 = shalt.err (!%p1277_p13)
}
  0x45   : > { %1107 = dma.hbm_to_vmem [thread:$0]  (!%p1420_p9), %s1467_s11, 160, %s196_s18, %s184_s29  }
  0x46   : > { %p1609_p8 = scmp.ne.s32.totalorder %s1608_s7, 0 }
  0x47   : > { %s206_s8 = sand.u32 (!%p1609_p8), 1, %s1319_s13   ;;  %p1610_p12 = scmp.ne.s32.totalorder (!%p1609_p8), %s1605_s22, 0 }
  0x48   : > { %204 = sbr.rel (%p1609_p8) target bundleno = 352 (0x160), region = 32  ;;  %s207_s10 = scalar_lea.sflag (!%p1609_p8), [#allocation3], %s206_s8 }
  0x49   : > { %s1095_s9 = smul.u32 (!%p1609_p8), 320, %s206_s8 }
  0x4b   : > { %s1492_s12 = scalar_lea.vmem (!%p1609_p8), [#allocation2], %s1095_s9 }
  0x4f   : > { %1306 = dma.done.wait (%p1610_p12), %s207_s10, 5120  }
  0x50   : > { %1308 = vsyncadd (%p1610_p12), %s207_s10, 4294962176  ;;  %s1096_s5 = smul.u32 10, %s206_s8  ;;  %s216_s30 = scalar_lea.sflag [#allocation5], %s206_s8 }
  0x52   : > { %s1498_s6 = scalar_lea.vmem [#allocation4], %s1096_s5 }
  0x53   : > { %1310 = dma.done.wait (%p1610_p12), %s216_s30, 160  }
  0x54   : > { %1312 = vsyncadd (%p1610_p12), %s216_s30, 4294967136  ;;  %v1342_v0 = vmov 0.0   ;;  %v1161_v1 = vld [vmem:[%s1492_s12 + $0x4] ss:$40 sps:$4 sm:$0xff]   ;;  %v1163_v2 = vld [vmem:[%s1492_s12] ss:$40 sps:$4 sm:$0xff]   ;;  %v396_v42 = vlaneseq }
  0x55   : > { %514 = vmatprep.mubr.f32.mxu0 %v1342_v0  ;;  %585 = vmatprep.mubr.f32.mxu1 %v1342_v0  ;;  %v1164_v3 = vld [vmem:[%s1492_s12 + $0x54] ss:$40 sps:$4 sm:$0xff]   ;;  %v1166_v4 = vld [vmem:[%s1492_s12 + $0x50] ss:$40 sps:$4 sm:$0xff]   ;;  %v1167_v5 = vld [vmem:[%s1492_s12 + $0xa4] ss:$40 sps:$4 sm:$0xff]  }
  0x56   : > { %974 = vmatprep.subr.bf16.mxu0 %v1161_v1  ;;  %v1173_v6 = vld [vmem:[%s1492_s12 + $0xc] ss:$40 sps:$4 sm:$0xff]   ;;  %v1175_v7 = vld [vmem:[%s1492_s12 + $0x8] ss:$40 sps:$4 sm:$0xff]   ;;  %v1179_v10 = vld [vmem:[%s1492_s12 + $0x5c] ss:$40 sps:$4 sm:$0xff]  }
  0x57   : > { %976 = vmatpush1.bf16.msra.mxu0 %v1163_v2  ;;  %v1169_v8 = vld [vmem:[%s1492_s12 + $0xa0] ss:$40 sps:$4 sm:$0xff]   ;;  %v1170_v9 = vld [vmem:[%s1492_s12 + $0xf4] ss:$40 sps:$4 sm:$0xff]   ;;  %990 = vmatprep.subr.bf16.mxu1 %v1173_v6  ;;  %v1172_v12 = vld [vmem:[%s1492_s12 + $0xf0] ss:$40 sps:$4 sm:$0xff]  }
  0x58   : > { %978 = vmatprep.subr.bf16.mxu0 %v1164_v3  ;;  %992 = vmatpush1.bf16.msra.mxu1 %v1175_v7  ;;  %v1181_v11 = vld [vmem:[%s1492_s12 + $0x58] ss:$40 sps:$4 sm:$0xff]   ;;  %v1185_v13 = vld [vmem:[%s1492_s12 + $0xac] ss:$40 sps:$4 sm:$0xff]   ;;  %v1187_v15 = vld [vmem:[%s1492_s12 + $0xa8] ss:$40 sps:$4 sm:$0xff]  }
  0x59   : > { %994 = vmatprep.subr.bf16.mxu1 %v1179_v10  ;;  %v1176_v14 = vld [vmem:[%s1492_s12 + $0x14] ss:$40 sps:$4 sm:$0xff]   ;;  %v1524_v16 = vld [vmem:[%s1600_s0] sm:$0xff]  ;;  %vm446_vm0 = vcmask 523264   ;;  %v1178_v18 = vld [vmem:[%s1492_s12 + $0x10] ss:$40 sps:$4 sm:$0xff]  }
  0x5a   : > { %v1191_v17 = vld [vmem:[%s1492_s12 + $0xfc] ss:$40 sps:$4 sm:$0xff]   ;;  %v1193_v20 = vld [vmem:[%s1492_s12 + $0xf8] ss:$40 sps:$4 sm:$0xff]   ;;  %v1203_v25 = vld [vmem:[%s1492_s12 + $0x6c] ss:$40 sps:$4 sm:$0xff]  }
  0x5b   : > { %980 = vmatpush1.bf16.msra.mxu0 %v1166_v4  ;;  %v1182_v19 = vld [vmem:[%s1492_s12 + $0x64] ss:$40 sps:$4 sm:$0xff]   ;;  %v1184_v22 = vld [vmem:[%s1492_s12 + $0x60] ss:$40 sps:$4 sm:$0xff]   ;;  %v1188_v23 = vld [vmem:[%s1492_s12 + $0xb4] ss:$40 sps:$4 sm:$0xff]  }
  0x5c   : > { %982 = vmatprep.subr.bf16.mxu0 %v1167_v5  ;;  %996 = vmatpush1.bf16.msra.mxu1 %v1181_v11  ;;  %v1197_v21 = vld [vmem:[%s1492_s12 + $0x1c] ss:$40 sps:$4 sm:$0xff]   ;;  %v1199_v24 = vld [vmem:[%s1492_s12 + $0x18] ss:$40 sps:$4 sm:$0xff]   ;;  %v1205_v28 = vld [vmem:[%s1492_s12 + $0x68] ss:$40 sps:$4 sm:$0xff]  }
  0x5d   : > { %998 = vmatprep.subr.bf16.mxu1 %v1185_v13  ;;  %v1190_v26 = vld [vmem:[%s1492_s12 + $0xb0] ss:$40 sps:$4 sm:$0xff]   ;;  %v1194_v27 = vld [vmem:[%s1492_s12 + $0x104] ss:$40 sps:$4 sm:$0xff]   ;;  %v1196_v30 = vld [vmem:[%s1492_s12 + $0x100] ss:$40 sps:$4 sm:$0xff]  }
  0x5e   : > { %v1209_v29 = vld [vmem:[%s1492_s12 + $0xbc] ss:$40 sps:$4 sm:$0xff]   ;;  %v1211_v32 = vld [vmem:[%s1492_s12 + $0xb8] ss:$40 sps:$4 sm:$0xff]   ;;  %v1215_v33 = vld [vmem:[%s1492_s12 + $0x10c] ss:$40 sps:$4 sm:$0xff]  }
  0x5f   : > { %984 = vmatpush1.bf16.msra.mxu0 %v1169_v8  ;;  %v1200_v31 = vld [vmem:[%s1492_s12 + $0x24] ss:$40 sps:$4 sm:$0xff]   ;;  %v1202_v34 = vld [vmem:[%s1492_s12 + $0x20] ss:$40 sps:$4 sm:$0xff]   ;;  %v1206_v35 = vld [vmem:[%s1492_s12 + $0x74] ss:$40 sps:$4 sm:$0xff]  }
  0x60   : > { %986 = vmatprep.subr.bf16.mxu0 %v1170_v9  ;;  %1000 = vmatpush1.bf16.msra.mxu1 %v1187_v15  ;;  %v1217_v36 = vld [vmem:[%s1492_s12 + $0x108] ss:$40 sps:$4 sm:$0xff]   ;;  %v1212_v38 = vld [vmem:[%s1492_s12 + $0xc4] ss:$40 sps:$4 sm:$0xff]   ;;  %v1218_v40 = vld [vmem:[%s1492_s12 + $0x114] ss:$40 sps:$4 sm:$0xff]  }
  0x61   : > { %1002 = vmatprep.subr.bf16.mxu1 %v1191_v17  ;;  %v1208_v37 = vld [vmem:[%s1492_s12 + $0x70] ss:$40 sps:$4 sm:$0xff]   ;;  %v1214_v39 = vld [vmem:[%s1492_s12 + $0xc0] ss:$40 sps:$4 sm:$0xff]   ;;  %s261_s11 = smul.u32 10, %s1327_s15  ;;  %v397_v43 = vshrl.u32 %v396_v42, 7 }
  0x62   : > { %v1220_v41 = vld [vmem:[%s1492_s12 + $0x110] ss:$40 sps:$4 sm:$0xff]  }
  0x63   : > { %988 = vmatpush1.bf16.msra.mxu0 %v1172_v12  ;;  %p264_p7 = scmp.lt.s32.totalorder %s261_s11, 19  ;;  %v398_v44 = vsub.s32 0, %v397_v43  ;;  %v392_v45 = vld [vmem:[%s1498_s6] sm:$0xff]  ;;  %v402_v46 = vsub.s32 1, %v397_v43  ;;  %v406_v49 = vsub.s32 2, %v397_v43  ;;  %v410_v51 = vsub.s32 3, %v397_v43 }
  0x64   : > { %1006 = vmatprep.subr.bf16.mxu0 %v1176_v14  ;;  %1004 = vmatpush1.bf16.msra.mxu1 %v1193_v20  ;;  %v418_v2 = vsub.s32 5, %v397_v43  ;;  %v422_v5 = vsub.s32 6, %v397_v43  ;;  %v426_v7 = vsub.s32 7, %v397_v43 }
  0x65   : > { %1022 = vmatprep.subr.bf16.mxu1 %v1197_v21  ;;  %s1619_s11 = smov (!%p264_p7, %s261_s11), 19  ;;  %v399_v47 = vrot.slane %v392_v45, %v398_v44  ;;  %v403_v48 = vrot.slane %v392_v45, %v402_v46  ;;  %v407_v56 = vrot.slane %v392_v45, %v406_v49  ;;  %v411_v58 = vrot.slane %v392_v45, %v410_v51  ;;  %v393_v21 = vld [vmem:[%s1498_s6 + $0x8] sm:$0x3] }
  0x66   : > { %964 = vmatmul.mubr.msk.f32.vlgmr.msra.gmra.mrb[0].mxu0 %vm446_vm0, %v1524_v16  ;;  %s963_s18 = sshll.u32 %s1619_s11, 3  ;;  %v419_v4 = vrot.slane %v392_v45, %v418_v2  ;;  %v423_v12 = vrot.slane %v392_v45, %v422_v5  ;;  %v427_v14 = vrot.slane %v392_v45, %v426_v7 }
  0x67   : > { %1008 = vmatpush1.bf16.msra.mxu0 %v1178_v18  ;;  %656 = vmatprep.mubr.f32.mxu0 %v1342_v0  ;;  %s1569_s21 = scalar_lea.vmem %s1603_s3, %s963_s18 }
  0x68   : > { %1010 = vmatprep.subr.bf16.mxu0 %v1182_v19  ;;  %965 = vmatmul.mubr.msk.f32.vlgmr.msra.gmra.mrb[0].mxu1 %vm446_vm0, %v1524_v16 }
  0x69   : > { %1024 = vmatpush1.bf16.msra.mxu1 %v1199_v24  ;;  %727 = vmatprep.mubr.f32.mxu1 %v1342_v0 }
  0x6a   : > { %1026 = vmatprep.subr.bf16.mxu1 %v1203_v25 }
  0x6b   : > { %1012 = vmatpush1.bf16.msra.mxu0 %v1184_v22  ;;  %v431_v22 = vrot.slane %v393_v21, %v398_v44 }
  0x6c   : > { %1014 = vmatprep.subr.bf16.mxu0 %v1188_v23  ;;  %v435_v23 = vrot.slane %v393_v21, %v402_v46 }
  0x6d   : > { %1028 = vmatpush1.bf16.msra.mxu1 %v1205_v28 }
  0x6e   : > { %1030 = vmatprep.subr.bf16.mxu1 %v1209_v29 }
  0x6f   : > { %1016 = vmatpush1.bf16.msra.mxu0 %v1190_v26 }
  0x70   : > { %1018 = vmatprep.subr.bf16.mxu0 %v1194_v27 }
  0x71   : > { %1032 = vmatpush1.bf16.msra.mxu1 %v1211_v32 }
  0x72   : > { %1034 = vmatprep.subr.bf16.mxu1 %v1215_v33 }
  0x73   : > { %1020 = vmatpush1.bf16.msra.mxu0 %v1196_v30 }
  0x74   : > { %1038 = vmatprep.subr.bf16.mxu0 %v1200_v31 }
  0x75   : > { %1036 = vmatpush1.bf16.msra.mxu1 %v1217_v36 }
  0x76   : > { %966 = vmatmul.mubr.msk.f32.vlgmr.msra.gmra.mrb[2].mxu0 %vm446_vm0, %v1524_v16 }
  0x77   : > { %1040 = vmatpush1.bf16.msra.mxu0 %v1202_v34  ;;  %798 = vmatprep.mubr.f32.mxu0 %v1342_v0  ;;  %v414_v0 = vsub.s32 4, %v397_v43 }
  0x78   : > { %1042 = vmatprep.subr.bf16.mxu0 %v1206_v35  ;;  %967 = vmatmul.mubr.msk.f32.vlgmr.msra.gmra.mrb[2].mxu1 %vm446_vm0, %v1524_v16 }
  0x79   : > { %v415_v3 = vrot.slane %v392_v45, %v414_v0 }
  0x7b   : > { %1044 = vmatpush1.bf16.msra.mxu0 %v1208_v37 }
  0x7c   : > { %1046 = vmatprep.subr.bf16.mxu0 %v1212_v38 }
  0x7f   : > { %1048 = vmatpush1.bf16.msra.mxu0 %v1214_v39 }
  0x80   : > { %1050 = vmatprep.subr.bf16.mxu0 %v1218_v40 }
  0x83   : > { %1052 = vmatpush1.bf16.msra.mxu0 %v1220_v41 }
  0x86   : > { %968 = vmatmul.mubr.msk.f32.vlgmr.msra.gmra.mrb[4].mxu0 %vm446_vm0, %v1524_v16 }
 0x139   : > { %v516_v50 = vpop.f32.mrb[0].mxu0 }
 0x13a   : > { %v517_v52 = vadd.f32 %v516_v50, %v399_v47  ;;  %v518_v53 = vpop.f32.mrb[1].mxu0 }
 0x13b   : > { %v519_v54 = vadd.f32 %v518_v53, %v403_v48  ;;  %v587_v59 = vpop.f32.mrb[0].mxu1 }
 0x13c   : > { %v805_v55 = vmax.f32 %v517_v52, 0.0  ;;  %v588_v60 = vadd.f32 %v587_v59, %v407_v56  ;;  %v589_v61 = vpop.f32.mrb[1].mxu1 }
 0x13d   : > { %v806_v57 = vmax.f32 %v519_v54, 0.0  ;;  %v590_v62 = vadd.f32 %v589_v61, %v411_v58 }
 0x13e   : > { %815 = vst [vmem:[%s1569_s21] sm:$0xff] %v805_v55  ;;  %v807_v63 = vmax.f32 %v588_v60, 0.0 }
 0x13f   : > { %816 = vst [vmem:[%s1569_s21 + $0x8] sm:$0xff] %v806_v57  ;;  %v808_v1 = vmax.f32 %v590_v62, 0.0 }
 0x140   : > { %817 = vst [vmem:[%s1569_s21 + $0x10] sm:$0xff] %v807_v63 }
 0x141   : > { %818 = vst [vmem:[%s1569_s21 + $0x18] sm:$0xff] %v808_v1 }
 0x149   : > { %v658_v6 = vpop.f32.mrb[2].mxu0 }
 0x14a   : > { %v659_v8 = vadd.f32 %v658_v6, %v415_v3  ;;  %v660_v9 = vpop.f32.mrb[3].mxu0 }
 0x14b   : > { %v661_v10 = vadd.f32 %v660_v9, %v419_v4  ;;  %v729_v15 = vpop.f32.mrb[2].mxu1 }
 0x14c   : > { %v809_v11 = vmax.f32 %v659_v8, 0.0  ;;  %v730_v16 = vadd.f32 %v729_v15, %v423_v12  ;;  %v731_v17 = vpop.f32.mrb[3].mxu1 }
 0x14d   : > { %v810_v13 = vmax.f32 %v661_v10, 0.0  ;;  %v732_v18 = vadd.f32 %v731_v17, %v427_v14 }
 0x14e   : > { %819 = vst [vmem:[%s1569_s21 + $0x20] sm:$0xff] %v809_v11  ;;  %v811_v19 = vmax.f32 %v730_v16, 0.0 }
 0x14f   : > { %820 = vst [vmem:[%s1569_s21 + $0x28] sm:$0xff] %v810_v13  ;;  %v812_v20 = vmax.f32 %v732_v18, 0.0 }
 0x150   : > { %821 = vst [vmem:[%s1569_s21 + $0x30] sm:$0xff] %v811_v19 }
 0x151   : > { %822 = vst [vmem:[%s1569_s21 + $0x38] sm:$0xff] %v812_v20 }
 0x159   : > { %v800_v24 = vpop.f32.mrb[4].mxu0 }
 0x15a   : > { %v801_v25 = vadd.f32 %v800_v24, %v431_v22  ;;  %v802_v26 = vpop.f32.mrb[5].mxu0 }
 0x15b   : > { %v803_v27 = vadd.f32 %v802_v26, %v435_v23 }
 0x15c   : > { %v813_v28 = vmax.f32 %v801_v25, 0.0 }
 0x15d   : > { %v814_v29 = vmax.f32 %v803_v27, 0.0 }
 0x15e   : > { %823 = vst [vmem:[%s1569_s21 + $0x40] sm:$0xff] %v813_v28 }
 0x15f   : > { %824 = vst [vmem:[%s1569_s21 + $0x48] sm:$0xff] %v814_v29 }
 0x160 PF: > { %s19_s17 = sadd.s32 1, %s1335_s17   ;;  %s1611_s12 = smov %s1319_s13 }
 0x161   : > { %p16_p9 = scmp.ge.s32.totalorder %s19_s17, 4   ;;  %s1612_s13 = smov %s1323_s14 }
 0x162   : > { %s1613_s14 = smov %s1408_s23  ;;  %s1614_s15 = smov %s1331_s16 }
 0x163   : > { %s1615_s16 = smov %s1617_s19  ;;  %18 = sbr.rel (!%p16_p9) target bundleno = 6 (0x6), region = 88 }
 0x16a   :  { %855 = vsyncpa [#allocation3], 1 }
 0x16b   :  { %857 = vsyncpa [#allocation3 + $0x1], 1 }
 0x16c   :  { %858 = vsyncpa [#allocation5], 1 }
 0x16d   :  { %860 = vsyncpa [#allocation5 + $0x1], 1 }

// kernel: scenenet_forward_classification.3
= control target key start
LH: loop header
LB: loop body
LE: loop exit
PB: predicated region body
PF: predicated region fallthrough
CT: control target
= control target key end

     0   :  { %v9041_v1 = vmov 0.0   ;;  %vm137_vm0 = vcmask 523264   ;;  %s11967_s1 = inlined_call_operand.vmem [shape: bf16[64,768], index: 1, kind: input, shape index: {}]   ;;  %s11968_s0 = inlined_call_operand.vmem [shape: f32[8,64], index: 0, kind: input, shape index: {}]   ;;  %s11969_s3 = inlined_call_operand.vmem [shape: bf16[768,768], index: 3, kind: input, shape index: {}]   ;;  %s11970_s2 = inlined_call_operand.vmem [shape: f32[1,768], index: 2, kind: input, shape index: {}]   ;;  %s11971_s5 = inlined_call_operand.vmem [shape: bf16[768,768], index: 5, kind: input, shape index: {}]   ;;  %s11972_s4 = inlined_call_operand.vmem [shape: f32[1,768], index: 4, kind: input, shape index: {}]   ;;  %s11973_s7 = inlined_call_operand.vmem [shape: bf16[768,768], index: 7, kind: input, shape index: {}]   ;;  %s11974_s6 = inlined_call_operand.vmem [shape: f32[1,768], index: 6, kind: input, shape index: {}]   ;;  %s11975_s8 = inlined_call_operand.vmem [shape: f32[1,768], index: 8, kind: input, shape index: {}]   ;;  %s11976_s9 = inlined_call_operand.vmem [shape: f32[8,768], index: 9, kind: output, shape index: {}]  }
   0x1   :  { %v7709_v0 = vld [vmem:[%s11967_s1 + $0x4] ss:$24 sps:$4 sm:$0xff]   ;;  %205 = vmatprep.mubr.f32.mxu0 %v9041_v1  ;;  %v7711_v2 = vld [vmem:[%s11967_s1] ss:$24 sps:$4 sm:$0xff]   ;;  %v7712_v3 = vld [vmem:[%s11967_s1 + $0x34] ss:$24 sps:$4 sm:$0xff]  }
   0x2   :  { %4991 = vmatprep.subr.bf16.mxu0 %v7709_v0  ;;  %v7714_v4 = vld [vmem:[%s11967_s1 + $0x30] ss:$24 sps:$4 sm:$0xff]   ;;  %v7715_v5 = vld [vmem:[%s11967_s1 + $0x64] ss:$24 sps:$4 sm:$0xff]   ;;  %v7717_v6 = vld [vmem:[%s11967_s1 + $0x60] ss:$24 sps:$4 sm:$0xff]  }
   0x3   :  { %4993 = vmatpush1.bf16.msra.mxu0 %v7711_v2  ;;  %v7718_v7 = vld [vmem:[%s11967_s1 + $0x94] ss:$24 sps:$4 sm:$0xff]   ;;  %v7720_v8 = vld [vmem:[%s11967_s1 + $0x90] ss:$24 sps:$4 sm:$0xff]   ;;  %v9122_v10 = vld [vmem:[%s11968_s0] sm:$0xff] }
   0x4   :  { %4995 = vmatprep.subr.bf16.mxu0 %v7712_v3  ;;  %v7721_v9 = vld [vmem:[%s11967_s1 + $0xc] ss:$24 sps:$4 sm:$0xff]   ;;  %v7723_v11 = vld [vmem:[%s11967_s1 + $0x8] ss:$24 sps:$4 sm:$0xff]   ;;  %v7724_v12 = vld [vmem:[%s11967_s1 + $0x3c] ss:$24 sps:$4 sm:$0xff]  }
   0x5   :  { %v7726_v13 = vld [vmem:[%s11967_s1 + $0x38] ss:$24 sps:$4 sm:$0xff]   ;;  %v7727_v14 = vld [vmem:[%s11967_s1 + $0x6c] ss:$24 sps:$4 sm:$0xff]   ;;  %v7729_v15 = vld [vmem:[%s11967_s1 + $0x68] ss:$24 sps:$4 sm:$0xff]  }
   0x6   :  { %v7730_v16 = vld [vmem:[%s11967_s1 + $0x9c] ss:$24 sps:$4 sm:$0xff]   ;;  %v7762_v18 = vld [vmem:[%s11969_s3 + $0x300] ss:$24 sps:$4 sm:$0xff]   ;;  %v7768_v20 = vld [vmem:[%s11969_s3 + $0x330] ss:$24 sps:$4 sm:$0xff]  }
   0x7   :  { %4997 = vmatpush1.bf16.msra.mxu0 %v7714_v4  ;;  %v7760_v17 = vld [vmem:[%s11969_s3 + $0x304] ss:$24 sps:$4 sm:$0xff]   ;;  %v7766_v19 = vld [vmem:[%s11969_s3 + $0x334] ss:$24 sps:$4 sm:$0xff]   ;;  %v7732_v21 = vld [vmem:[%s11967_s1 + $0x98] ss:$24 sps:$4 sm:$0xff]  }
   0x8   :  { %4999 = vmatprep.subr.bf16.mxu0 %v7715_v5  ;;  %5103 = vmatprep.subr.bf16.mxu1 %v7760_v17  ;;  %v7733_v22 = vld [vmem:[%s11967_s1 + $0x14] ss:$24 sps:$4 sm:$0xff]   ;;  %v7772_v23 = vld [vmem:[%s11969_s3 + $0x364] ss:$24 sps:$4 sm:$0xff]   ;;  %v7735_v24 = vld [vmem:[%s11967_s1 + $0x10] ss:$24 sps:$4 sm:$0xff]  }
   0x9   :  { %5105 = vmatpush1.bf16.msra.mxu1 %v7762_v18  ;;  %v7774_v25 = vld [vmem:[%s11969_s3 + $0x360] ss:$24 sps:$4 sm:$0xff]   ;;  %v7736_v26 = vld [vmem:[%s11967_s1 + $0x44] ss:$24 sps:$4 sm:$0xff]   ;;  %v7778_v27 = vld [vmem:[%s11969_s3 + $0x394] ss:$24 sps:$4 sm:$0xff]  }
   0xa   :  { %5107 = vmatprep.subr.bf16.mxu1 %v7766_v19  ;;  %v7738_v28 = vld [vmem:[%s11967_s1 + $0x40] ss:$24 sps:$4 sm:$0xff]   ;;  %v7780_v29 = vld [vmem:[%s11969_s3 + $0x390] ss:$24 sps:$4 sm:$0xff]   ;;  %v7784_v30 = vld [vmem:[%s11969_s3 + $0x3c4] ss:$24 sps:$4 sm:$0xff]  }
   0xb   :  { %5001 = vmatpush1.bf16.msra.mxu0 %v7717_v6  ;;  %v7739_v31 = vld [vmem:[%s11967_s1 + $0x74] ss:$24 sps:$4 sm:$0xff]   ;;  %v7741_v32 = vld [vmem:[%s11967_s1 + $0x70] ss:$24 sps:$4 sm:$0xff]   ;;  %v7786_v33 = vld [vmem:[%s11969_s3 + $0x3c0] ss:$24 sps:$4 sm:$0xff]  }
   0xc   :  { %5003 = vmatprep.subr.bf16.mxu0 %v7718_v7  ;;  %v7790_v34 = vld [vmem:[%s11969_s3 + $0x3f4] ss:$24 sps:$4 sm:$0xff]   ;;  %v7742_v35 = vld [vmem:[%s11967_s1 + $0xa4] ss:$24 sps:$4 sm:$0xff]   ;;  %v7744_v36 = vld [vmem:[%s11967_s1 + $0xa0] ss:$24 sps:$4 sm:$0xff]  }
   0xd   :  { %5109 = vmatpush1.bf16.msra.mxu1 %v7768_v20  ;;  %v7792_v37 = vld [vmem:[%s11969_s3 + $0x3f0] ss:$24 sps:$4 sm:$0xff]   ;;  %v7796_v38 = vld [vmem:[%s11969_s3 + $0x424] ss:$24 sps:$4 sm:$0xff]   ;;  %v7747_v40 = vld [vmem:[%s11969_s3] ss:$24 sps:$4 sm:$0xff]  }
   0xe   :  { %5111 = vmatprep.subr.bf16.mxu1 %v7772_v23  ;;  %v7745_v39 = vld [vmem:[%s11969_s3 + $0x4] ss:$24 sps:$4 sm:$0xff]   ;;  %v7798_v41 = vld [vmem:[%s11969_s3 + $0x420] ss:$24 sps:$4 sm:$0xff]   ;;  %v7802_v42 = vld [vmem:[%s11969_s3 + $0x454] ss:$24 sps:$4 sm:$0xff]  }
   0xf   :  { %5005 = vmatpush1.bf16.msra.mxu0 %v7720_v8  ;;  %v7748_v43 = vld [vmem:[%s11969_s3 + $0x34] ss:$24 sps:$4 sm:$0xff]   ;;  %v7750_v44 = vld [vmem:[%s11969_s3 + $0x30] ss:$24 sps:$4 sm:$0xff]   ;;  %v7751_v45 = vld [vmem:[%s11969_s3 + $0x64] ss:$24 sps:$4 sm:$0xff]  }
  0x10   :  { %5007 = vmatprep.subr.bf16.mxu0 %v7721_v9  ;;  %v7804_v46 = vld [vmem:[%s11969_s3 + $0x450] ss:$24 sps:$4 sm:$0xff]   ;;  %v7808_v47 = vld [vmem:[%s11969_s3 + $0x484] ss:$24 sps:$4 sm:$0xff]   ;;  %v7810_v48 = vld [vmem:[%s11969_s3 + $0x480] ss:$24 sps:$4 sm:$0xff]  }
  0x11   :  { %5113 = vmatpush1.bf16.msra.mxu1 %v7774_v25  ;;  %v7753_v49 = vld [vmem:[%s11969_s3 + $0x60] ss:$24 sps:$4 sm:$0xff]   ;;  %v7814_v50 = vld [vmem:[%s11969_s3 + $0x4b4] ss:$24 sps:$4 sm:$0xff]   ;;  %v7816_v52 = vld [vmem:[%s11969_s3 + $0x4b0] ss:$24 sps:$4 sm:$0xff]  }
  0x12   :  { %4987 = vmatmul.mubr.msk.f32.vlgmr.msra.gmra.mrb[0].mxu0 %vm137_vm0, %v9122_v10  ;;  %5115 = vmatprep.subr.bf16.mxu1 %v7778_v27  ;;  %v7754_v51 = vld [vmem:[%s11969_s3 + $0x94] ss:$24 sps:$4 sm:$0xff]   ;;  %v7756_v53 = vld [vmem:[%s11969_s3 + $0x90] ss:$24 sps:$4 sm:$0xff]   ;;  %v7820_v54 = vld [vmem:[%s11969_s3 + $0x4e4] ss:$24 sps:$4 sm:$0xff]  }
  0x13   :  { %5009 = vmatpush1.bf16.msra.mxu0 %v7723_v11  ;;  %276 = vmatprep.mubr.f32.mxu0 %v9041_v1  ;;  %v7757_v55 = vld [vmem:[%s11969_s3 + $0xc4] ss:$24 sps:$4 sm:$0xff]   ;;  %v7822_v56 = vld [vmem:[%s11969_s3 + $0x4e0] ss:$24 sps:$4 sm:$0xff]   ;;  %v7763_v58 = vld [vmem:[%s11969_s3 + $0xf4] ss:$24 sps:$4 sm:$0xff]  }
  0x14   :  { %5011 = vmatprep.subr.bf16.mxu0 %v7724_v12  ;;  %v7759_v57 = vld [vmem:[%s11969_s3 + $0xc0] ss:$24 sps:$4 sm:$0xff]   ;;  %v7765_v59 = vld [vmem:[%s11969_s3 + $0xf0] ss:$24 sps:$4 sm:$0xff]   ;;  %v7769_v60 = vld [vmem:[%s11969_s3 + $0x124] ss:$24 sps:$4 sm:$0xff]  }
  0x15   :  { %5117 = vmatpush1.bf16.msra.mxu1 %v7780_v29  ;;  %v7771_v61 = vld [vmem:[%s11969_s3 + $0x120] ss:$24 sps:$4 sm:$0xff]   ;;  %v7775_v62 = vld [vmem:[%s11969_s3 + $0x154] ss:$24 sps:$4 sm:$0xff]   ;;  %v7777_v63 = vld [vmem:[%s11969_s3 + $0x150] ss:$24 sps:$4 sm:$0xff]  }
  0x16   :  { %5119 = vmatprep.subr.bf16.mxu1 %v7784_v30  ;;  %v7781_v0 = vld [vmem:[%s11969_s3 + $0x184] ss:$24 sps:$4 sm:$0xff]   ;;  %v7787_v2 = vld [vmem:[%s11969_s3 + $0x1b4] ss:$24 sps:$4 sm:$0xff]   ;;  %v7789_v3 = vld [vmem:[%s11969_s3 + $0x1b0] ss:$24 sps:$4 sm:$0xff]  }
  0x17   :  { %5013 = vmatpush1.bf16.msra.mxu0 %v7726_v13  ;;  %v7793_v4 = vld [vmem:[%s11969_s3 + $0x1e4] ss:$24 sps:$4 sm:$0xff]   ;;  %v7795_v5 = vld [vmem:[%s11969_s3 + $0x1e0] ss:$24 sps:$4 sm:$0xff]   ;;  %v7799_v6 = vld [vmem:[%s11969_s3 + $0x214] ss:$24 sps:$4 sm:$0xff]  }
  0x18   :  { %5015 = vmatprep.subr.bf16.mxu0 %v7727_v14  ;;  %v7801_v7 = vld [vmem:[%s11969_s3 + $0x210] ss:$24 sps:$4 sm:$0xff]   ;;  %v7805_v8 = vld [vmem:[%s11969_s3 + $0x244] ss:$24 sps:$4 sm:$0xff]   ;;  %v7807_v9 = vld [vmem:[%s11969_s3 + $0x240] ss:$24 sps:$4 sm:$0xff]  }
  0x19   :  { %5121 = vmatpush1.bf16.msra.mxu1 %v7786_v33  ;;  %v7813_v11 = vld [vmem:[%s11969_s3 + $0x270] ss:$24 sps:$4 sm:$0xff]   ;;  %v7817_v12 = vld [vmem:[%s11969_s3 + $0x2a4] ss:$24 sps:$4 sm:$0xff]   ;;  %v7819_v13 = vld [vmem:[%s11969_s3 + $0x2a0] ss:$24 sps:$4 sm:$0xff]  }
  0x1a   :  { %5123 = vmatprep.subr.bf16.mxu1 %v7790_v34  ;;  %v7826_v14 = vld [vmem:[%s11969_s3 + $0x514] ss:$24 sps:$4 sm:$0xff]   ;;  %v7825_v17 = vld [vmem:[%s11969_s3 + $0x2d0] ss:$24 sps:$4 sm:$0xff]   ;;  %v7829_v18 = vld [vmem:[%s11969_s3 + $0x544] ss:$24 sps:$4 sm:$0xff]  }
  0x1b   :  { %5017 = vmatpush1.bf16.msra.mxu0 %v7729_v15  ;;  %v7823_v15 = vld [vmem:[%s11969_s3 + $0x2d4] ss:$24 sps:$4 sm:$0xff]   ;;  %v7834_v20 = vld [vmem:[%s11969_s3 + $0x540] ss:$24 sps:$4 sm:$0xff]   ;;  %v7841_v23 = vld [vmem:[%s11969_s3 + $0x5a4] ss:$24 sps:$4 sm:$0xff]  }
  0x1c   :  { %5019 = vmatprep.subr.bf16.mxu0 %v7730_v16  ;;  %v7828_v16 = vld [vmem:[%s11969_s3 + $0x510] ss:$24 sps:$4 sm:$0xff]   ;;  %v7831_v19 = vld [vmem:[%s11969_s3 + $0xc] ss:$24 sps:$4 sm:$0xff]  }
  0x1d   :  { %5125 = vmatpush1.bf16.msra.mxu1 %v7792_v37  ;;  %v7847_v25 = vld [vmem:[%s11969_s3 + $0x5d4] ss:$24 sps:$4 sm:$0xff]   ;;  %v7853_v27 = vld [vmem:[%s11969_s3 + $0x604] ss:$24 sps:$4 sm:$0xff]  }
  0x1e   :  { %5127 = vmatprep.subr.bf16.mxu1 %v7796_v38 }
  0x1f   :  { %5021 = vmatpush1.bf16.msra.mxu0 %v7732_v21  ;;  %v7835_v21 = vld [vmem:[%s11969_s3 + $0x574] ss:$24 sps:$4 sm:$0xff]  }
  0x20   :  { %5023 = vmatprep.subr.bf16.mxu0 %v7733_v22  ;;  %v7840_v22 = vld [vmem:[%s11969_s3 + $0x570] ss:$24 sps:$4 sm:$0xff]  }
  0x21   :  { %5129 = vmatpush1.bf16.msra.mxu1 %v7798_v41  ;;  %v7833_v41 = vld [vmem:[%s11969_s3 + $0x8] ss:$24 sps:$4 sm:$0xff]  }
  0x22   :  { %4988 = vmatmul.mubr.msk.f32.vlgmr.msra.gmra.mrb[2].mxu0 %vm137_vm0, %v9122_v10  ;;  %5131 = vmatprep.subr.bf16.mxu1 %v7802_v42  ;;  %v7837_v42 = vld [vmem:[%s11969_s3 + $0x3c] ss:$24 sps:$4 sm:$0xff]  }
  0x23   :  { %5025 = vmatpush1.bf16.msra.mxu0 %v7735_v24  ;;  %347 = vmatprep.mubr.f32.mxu0 %v9041_v1  ;;  %v7783_v1 = vld [vmem:[%s11969_s3 + $0x180] ss:$24 sps:$4 sm:$0xff]  }
  0x24   :  { %5027 = vmatprep.subr.bf16.mxu0 %v7736_v26  ;;  %v7846_v24 = vld [vmem:[%s11969_s3 + $0x5a0] ss:$24 sps:$4 sm:$0xff]   ;;  %v7852_v26 = vld [vmem:[%s11969_s3 + $0x5d0] ss:$24 sps:$4 sm:$0xff]  }
  0x25   :  { %5133 = vmatpush1.bf16.msra.mxu1 %v7804_v46 }
  0x26   :  { %5135 = vmatprep.subr.bf16.mxu1 %v7808_v47  ;;  %v7845_v47 = vld [vmem:[%s11969_s3 + $0x68] ss:$24 sps:$4 sm:$0xff]  }
  0x27   :  { %5029 = vmatpush1.bf16.msra.mxu0 %v7738_v28  ;;  %v107_v28 = vlaneseq }
  0x28   :  { %5031 = vmatprep.subr.bf16.mxu0 %v7739_v31  ;;  %v9381_v31 = vld [vmem:[%s11970_s2] sm:$0x3f] }
  0x29   :  { %5137 = vmatpush1.bf16.msra.mxu1 %v7810_v48  ;;  %v9373_v29 = vshrl.u32 %v107_v28, 7  ;;  %v7898_v28 = vld [vmem:[%s11969_s3 + $0x21c] ss:$24 sps:$4 sm:$0xff]  }
  0x2a   :  { %5139 = vmatprep.subr.bf16.mxu1 %v7814_v50 }
  0x2b   :  { %5033 = vmatpush1.bf16.msra.mxu0 %v7741_v32  ;;  %v9376_v30 = vsub.s32 0, %v9373_v29  ;;  %v9384_v32 = vsub.s32 1, %v9373_v29  ;;  %v9413_v46 = vsub.s32 3, %v9373_v29 }
  0x2c   :  { %5035 = vmatprep.subr.bf16.mxu0 %v7742_v35 }
  0x2d   :  { %5141 = vmatpush1.bf16.msra.mxu1 %v7816_v52  ;;  %v110_v33 = vrot.slane %v9381_v31, %v9376_v30  ;;  %v114_v34 = vrot.slane %v9381_v31, %v9384_v32  ;;  %v122_v50 = vrot.slane %v9381_v31, %v9413_v46  ;;  %v7851_v52 = vld [vmem:[%s11969_s3 + $0x98] ss:$24 sps:$4 sm:$0xff]  }
  0x2e   :  { %5143 = vmatprep.subr.bf16.mxu1 %v7820_v54 }
  0x2f   :  { %5037 = vmatpush1.bf16.msra.mxu0 %v7744_v36 }
  0x30   :  { %5039 = vmatprep.subr.bf16.mxu0 %v7745_v39 }
  0x31   :  { %5145 = vmatpush1.bf16.msra.mxu1 %v7822_v56 }
  0x32   :  { %4989 = vmatmul.mubr.msk.f32.vlgmr.msra.gmra.mrb[4].mxu0 %vm137_vm0, %v9122_v10  ;;  %v7811_v10 = vld [vmem:[%s11969_s3 + $0x274] ss:$24 sps:$4 sm:$0xff]   ;;  %5147 = vmatprep.subr.bf16.mxu1 %v7826_v14 }
  0x33   :  { %5041 = vmatpush1.bf16.msra.mxu0 %v7747_v40 }
  0x34   :  { %5043 = vmatprep.subr.bf16.mxu0 %v7748_v43  ;;  %v7839_v43 = vld [vmem:[%s11969_s3 + $0x38] ss:$24 sps:$4 sm:$0xff]  }
  0x35   :  { %5149 = vmatpush1.bf16.msra.mxu1 %v7828_v16  ;;  %v7879_v16 = vld [vmem:[%s11969_s3 + $0x6c0] ss:$24 sps:$4 sm:$0xff]  }
  0x36   :  { %5151 = vmatprep.subr.bf16.mxu1 %v7829_v18 }
  0x37   :  { %5045 = vmatpush1.bf16.msra.mxu0 %v7750_v44  ;;  %v7843_v44 = vld [vmem:[%s11969_s3 + $0x6c] ss:$24 sps:$4 sm:$0xff]  }
  0x38   :  { %5047 = vmatprep.subr.bf16.mxu0 %v7751_v45  ;;  %v9410_v45 = vsub.s32 2, %v9373_v29 }
  0x39   :  { %5153 = vmatpush1.bf16.msra.mxu1 %v7834_v20  ;;  %v7886_v20 = vld [vmem:[%s11969_s3 + $0x1bc] ss:$24 sps:$4 sm:$0xff]  }
  0x3a   :  { %5155 = vmatprep.subr.bf16.mxu1 %v7835_v21  ;;  %v118_v48 = vrot.slane %v9381_v31, %v9410_v45  ;;  %v7885_v21 = vld [vmem:[%s11969_s3 + $0x6f0] ss:$24 sps:$4 sm:$0xff]  }
  0x3b   :  { %5049 = vmatpush1.bf16.msra.mxu0 %v7753_v49  ;;  %v7849_v49 = vld [vmem:[%s11969_s3 + $0x9c] ss:$24 sps:$4 sm:$0xff]  }
  0x3c   :  { %5051 = vmatprep.subr.bf16.mxu0 %v7754_v51 }
  0x3d   :  { %5157 = vmatpush1.bf16.msra.mxu1 %v7840_v22  ;;  %v7888_v22 = vld [vmem:[%s11969_s3 + $0x1b8] ss:$24 sps:$4 sm:$0xff]  }
  0x3e   :  { %5159 = vmatprep.subr.bf16.mxu1 %v7841_v23  ;;  %v7889_v23 = vld [vmem:[%s11969_s3 + $0x724] ss:$24 sps:$4 sm:$0xff]  }
  0x3f   :  { %5053 = vmatpush1.bf16.msra.mxu0 %v7756_v53 }
  0x40   :  { %5055 = vmatprep.subr.bf16.mxu0 %v7757_v55  ;;  %v7856_v55 = vld [vmem:[%s11969_s3 + $0xcc] ss:$24 sps:$4 sm:$0xff]  }
  0x41   :  { %5161 = vmatpush1.bf16.msra.mxu1 %v7846_v24  ;;  %v7892_v24 = vld [vmem:[%s11969_s3 + $0x1ec] ss:$24 sps:$4 sm:$0xff]  }
  0x42   :  { %5163 = vmatprep.subr.bf16.mxu1 %v7847_v25  ;;  %v7891_v25 = vld [vmem:[%s11969_s3 + $0x720] ss:$24 sps:$4 sm:$0xff]  }
  0x43   :  { %5057 = vmatpush1.bf16.msra.mxu0 %v7759_v57 }
  0x44   :  { %5059 = vmatprep.subr.bf16.mxu0 %v7763_v58  ;;  %v7855_v58 = vld [vmem:[%s11969_s3 + $0x600] ss:$24 sps:$4 sm:$0xff]  }
  0x45   :  { %5165 = vmatpush1.bf16.msra.mxu1 %v7852_v26  ;;  %v7894_v26 = vld [vmem:[%s11969_s3 + $0x1e8] ss:$24 sps:$4 sm:$0xff]  }
  0x46   :  { %5167 = vmatprep.subr.bf16.mxu1 %v7853_v27  ;;  %v7895_v27 = vld [vmem:[%s11969_s3 + $0x754] ss:$24 sps:$4 sm:$0xff]  }
  0x47   :  { %5061 = vmatpush1.bf16.msra.mxu0 %v7765_v59  ;;  %v7858_v59 = vld [vmem:[%s11969_s3 + $0xc8] ss:$24 sps:$4 sm:$0xff]  }
  0x48   :  { %5063 = vmatprep.subr.bf16.mxu0 %v7769_v60 }
  0x4b   :  { %5065 = vmatpush1.bf16.msra.mxu0 %v7771_v61  ;;  %v7859_v61 = vld [vmem:[%s11969_s3 + $0x634] ss:$24 sps:$4 sm:$0xff]  }
  0x4c   :  { %5067 = vmatprep.subr.bf16.mxu0 %v7775_v62  ;;  %v7862_v62 = vld [vmem:[%s11969_s3 + $0xfc] ss:$24 sps:$4 sm:$0xff]  }
  0x4f   :  { %5069 = vmatpush1.bf16.msra.mxu0 %v7777_v63  ;;  %v7861_v63 = vld [vmem:[%s11969_s3 + $0x630] ss:$24 sps:$4 sm:$0xff]  }
  0x50   :  { %5071 = vmatprep.subr.bf16.mxu0 %v7781_v0  ;;  %v7864_v0 = vld [vmem:[%s11969_s3 + $0xf8] ss:$24 sps:$4 sm:$0xff]  }
  0x53   :  { %5073 = vmatpush1.bf16.msra.mxu0 %v7783_v1  ;;  %v7865_v1 = vld [vmem:[%s11969_s3 + $0x664] ss:$24 sps:$4 sm:$0xff]  }
  0x54   :  { %5075 = vmatprep.subr.bf16.mxu0 %v7787_v2  ;;  %v7868_v2 = vld [vmem:[%s11969_s3 + $0x12c] ss:$24 sps:$4 sm:$0xff]  }
  0x57   :  { %5077 = vmatpush1.bf16.msra.mxu0 %v7789_v3  ;;  %v9462_v3 = vsub.s32 5, %v9373_v29 }
  0x58   :  { %5079 = vmatprep.subr.bf16.mxu0 %v7793_v4  ;;  %v7867_v4 = vld [vmem:[%s11969_s3 + $0x660] ss:$24 sps:$4 sm:$0xff]  }
  0x5b   :  { %5081 = vmatpush1.bf16.msra.mxu0 %v7795_v5  ;;  %v7870_v5 = vld [vmem:[%s11969_s3 + $0x128] ss:$24 sps:$4 sm:$0xff]  }
  0x5c   :  { %5083 = vmatprep.subr.bf16.mxu0 %v7799_v6  ;;  %v7871_v6 = vld [vmem:[%s11969_s3 + $0x694] ss:$24 sps:$4 sm:$0xff]  }
  0x5f   :  { %5085 = vmatpush1.bf16.msra.mxu0 %v7801_v7  ;;  %v7874_v7 = vld [vmem:[%s11969_s3 + $0x15c] ss:$24 sps:$4 sm:$0xff]  }
  0x60   :  { %5087 = vmatprep.subr.bf16.mxu0 %v7805_v8  ;;  %v130_v8 = vrot.slane %v9381_v31, %v9462_v3 }
  0x63   :  { %5089 = vmatpush1.bf16.msra.mxu0 %v7807_v9  ;;  %v7873_v9 = vld [vmem:[%s11969_s3 + $0x690] ss:$24 sps:$4 sm:$0xff]  }
  0x64   :  { %5091 = vmatprep.subr.bf16.mxu0 %v7811_v10  ;;  %v7876_v10 = vld [vmem:[%s11969_s3 + $0x158] ss:$24 sps:$4 sm:$0xff]  }
  0x67   :  { %5093 = vmatpush1.bf16.msra.mxu0 %v7813_v11 }
  0x68   :  { %5095 = vmatprep.subr.bf16.mxu0 %v7817_v12  ;;  %v7877_v12 = vld [vmem:[%s11969_s3 + $0x6c4] ss:$24 sps:$4 sm:$0xff]  }
  0x6b   :  { %5097 = vmatpush1.bf16.msra.mxu0 %v7819_v13  ;;  %v7880_v13 = vld [vmem:[%s11969_s3 + $0x18c] ss:$24 sps:$4 sm:$0xff]  }
  0x6c   :  { %5099 = vmatprep.subr.bf16.mxu0 %v7823_v15 }
  0x6f   :  { %5101 = vmatpush1.bf16.msra.mxu0 %v7825_v17  ;;  %v7882_v17 = vld [vmem:[%s11969_s3 + $0x188] ss:$24 sps:$4 sm:$0xff]  }
  0x70   :  { %5231 = vmatprep.subr.bf16.mxu0 %v7831_v19  ;;  %v7883_v19 = vld [vmem:[%s11969_s3 + $0x6f4] ss:$24 sps:$4 sm:$0xff]  }
  0xe5   :  { %v207_v35 = vpop.f32.mrb[0].mxu0 }
  0xe6   :  { %v208_v36 = vadd.f32 %v207_v35, %v110_v33  ;;  %v209_v37 = vpop.f32.mrb[1].mxu0  ;;  %v7897_v33 = vld [vmem:[%s11969_s3 + $0x750] ss:$24 sps:$4 sm:$0xff]   ;;  %v7901_v35 = vld [vmem:[%s11969_s3 + $0x784] ss:$24 sps:$4 sm:$0xff]  }
  0xe7   :  { %v210_v38 = vadd.f32 %v209_v37, %v114_v34  ;;  %v7900_v34 = vld [vmem:[%s11969_s3 + $0x218] ss:$24 sps:$4 sm:$0xff]  }
  0xe8   :  { %v9390_v39 = vmax.f32 %v208_v36, 0.0  ;;  %v7904_v36 = vld [vmem:[%s11969_s3 + $0x24c] ss:$24 sps:$4 sm:$0xff]   ;;  %v7903_v37 = vld [vmem:[%s11969_s3 + $0x780] ss:$24 sps:$4 sm:$0xff]  }
  0xe9   :  { %v9392_v40 = vmax.f32 %v210_v38, 0.0  ;;  %v7906_v38 = vld [vmem:[%s11969_s3 + $0x248] ss:$24 sps:$4 sm:$0xff]  }
  0xeb   :  { %1320 = vmatprep.mubr.f32.mxu0 %v9392_v40 }
  0xec   :  { %1321 = vmatmul.mubr.f32.vlgmr.msra.gmra.mrb[6].mxu0 %v9390_v39 }
  0xed   :  { %5233 = vmatpush1.bf16.msra.mxu0 %v7833_v41  ;;  %1533 = vmatprep.mubr.f32.mxu0 %v9392_v40  ;;  %v7907_v41 = vld [vmem:[%s11969_s3 + $0x7b4] ss:$24 sps:$4 sm:$0xff]  }
  0xee   :  { %5235 = vmatprep.subr.bf16.mxu0 %v7837_v42  ;;  %v7910_v42 = vld [vmem:[%s11969_s3 + $0x27c] ss:$24 sps:$4 sm:$0xff]  }
  0xf1   :  { %5237 = vmatpush1.bf16.msra.mxu0 %v7839_v43  ;;  %v7909_v43 = vld [vmem:[%s11969_s3 + $0x7b0] ss:$24 sps:$4 sm:$0xff]  }
  0xf2   :  { %5239 = vmatprep.subr.bf16.mxu0 %v7843_v44  ;;  %v7912_v44 = vld [vmem:[%s11969_s3 + $0x278] ss:$24 sps:$4 sm:$0xff]  }
  0xf5   :  { %5241 = vmatpush1.bf16.msra.mxu0 %v7845_v47  ;;  %v278_v51 = vpop.f32.mrb[2].mxu0  ;;  %v7913_v47 = vld [vmem:[%s11969_s3 + $0x7e4] ss:$24 sps:$4 sm:$0xff]  }
  0xf6   :  { %v279_v53 = vadd.f32 %v278_v51, %v118_v48  ;;  %v280_v54 = vpop.f32.mrb[3].mxu0  ;;  %5243 = vmatprep.subr.bf16.mxu0 %v7849_v49  ;;  %v7916_v48 = vld [vmem:[%s11969_s3 + $0x2ac] ss:$24 sps:$4 sm:$0xff]   ;;  %v7915_v49 = vld [vmem:[%s11969_s3 + $0x7e0] ss:$24 sps:$4 sm:$0xff]  }
  0xf7   :  { %v281_v56 = vadd.f32 %v280_v54, %v122_v50  ;;  %v7918_v50 = vld [vmem:[%s11969_s3 + $0x2a8] ss:$24 sps:$4 sm:$0xff]   ;;  %v7919_v51 = vld [vmem:[%s11969_s3 + $0x814] ss:$24 sps:$4 sm:$0xff]   ;;  %v7924_v54 = vld [vmem:[%s11969_s3 + $0x2d8] ss:$24 sps:$4 sm:$0xff]  }
  0xf8   :  { %v9439_v60 = vmax.f32 %v279_v53, 0.0  ;;  %v7921_v53 = vld [vmem:[%s11969_s3 + $0x810] ss:$24 sps:$4 sm:$0xff]  }
  0xf9   :  { %v9431_v57 = vmax.f32 %v281_v56, 0.0  ;;  %5245 = vmatpush1.bf16.msra.mxu0 %v7851_v52  ;;  %v7922_v52 = vld [vmem:[%s11969_s3 + $0x2dc] ss:$24 sps:$4 sm:$0xff]   ;;  %v7928_v56 = vld [vmem:[%s11969_s3 + $0x30c] ss:$24 sps:$4 sm:$0xff]  }
  0xfa   :  { %5247 = vmatprep.subr.bf16.mxu0 %v7856_v55  ;;  %v7925_v55 = vld [vmem:[%s11969_s3 + $0x844] ss:$24 sps:$4 sm:$0xff]  }
  0xfb   :  { %1391 = vmatprep.mubr.f32.mxu1 %v9431_v57 }
  0xfc   :  { %1392 = vmatmul.mubr.f32.vlgmr.msra.gmra.mrb[0].mxu1 %v9439_v60 }
  0xfd   :  { %5169 = vmatpush1.bf16.msra.mxu1 %v7855_v58  ;;  %5249 = vmatpush1.bf16.msra.mxu0 %v7858_v59  ;;  %v7927_v58 = vld [vmem:[%s11969_s3 + $0x840] ss:$24 sps:$4 sm:$0xff]  }
  0xfe   :  { %5171 = vmatprep.subr.bf16.mxu1 %v7859_v61  ;;  %5251 = vmatprep.subr.bf16.mxu0 %v7862_v62  ;;  %v7930_v59 = vld [vmem:[%s11969_s3 + $0x308] ss:$24 sps:$4 sm:$0xff]   ;;  %v7931_v61 = vld [vmem:[%s11969_s3 + $0x874] ss:$24 sps:$4 sm:$0xff]  }
  0xff   :  { %v7934_v62 = vld [vmem:[%s11969_s3 + $0x33c] ss:$24 sps:$4 sm:$0xff]  }
 0x101   :  { %5173 = vmatpush1.bf16.msra.mxu1 %v7861_v63  ;;  %5253 = vmatpush1.bf16.msra.mxu0 %v7864_v0  ;;  %v9605_v63 = vsub.s32 4, %v9373_v29  ;;  %v7933_v0 = vld [vmem:[%s11969_s3 + $0x870] ss:$24 sps:$4 sm:$0xff]   ;;  %v7940_v29 = vld [vmem:[%s11969_s3 + $0x36c] ss:$24 sps:$4 sm:$0xff]  }
 0x102   :  { %5175 = vmatprep.subr.bf16.mxu1 %v7865_v1  ;;  %5255 = vmatprep.subr.bf16.mxu0 %v7868_v2  ;;  %v7936_v1 = vld [vmem:[%s11969_s3 + $0x338] ss:$24 sps:$4 sm:$0xff]   ;;  %v7937_v2 = vld [vmem:[%s11969_s3 + $0x8a4] ss:$24 sps:$4 sm:$0xff]  }
 0x105   :  { %5177 = vmatpush1.bf16.msra.mxu1 %v7867_v4  ;;  %5257 = vmatpush1.bf16.msra.mxu0 %v7870_v5  ;;  %v9484_v11 = vpop.f32.mrb[4].mxu0  ;;  %v126_v4 = vrot.slane %v9381_v31, %v9605_v63  ;;  %v7939_v5 = vld [vmem:[%s11969_s3 + $0x8a0] ss:$24 sps:$4 sm:$0xff]   ;;  %v7946_v31 = vld [vmem:[%s11969_s3 + $0x39c] ss:$24 sps:$4 sm:$0xff]  }
 0x106   :  { %5179 = vmatprep.subr.bf16.mxu1 %v7871_v6  ;;  %5259 = vmatprep.subr.bf16.mxu0 %v7874_v7  ;;  %v351_v14 = vpop.f32.mrb[5].mxu0  ;;  %v7942_v6 = vld [vmem:[%s11969_s3 + $0x368] ss:$24 sps:$4 sm:$0xff]   ;;  %v7943_v7 = vld [vmem:[%s11969_s3 + $0x8d4] ss:$24 sps:$4 sm:$0xff]  }
 0x107   :  { %v352_v15 = vadd.f32 %v351_v14, %v130_v8  ;;  %v350_v8 = vadd.f32 %v9484_v11, %v126_v4  ;;  %v7952_v11 = vld [vmem:[%s11969_s3 + $0x14] ss:$24 sps:$4 sm:$0xff]   ;;  %v7951_v14 = vld [vmem:[%s11969_s3 + $0x3c8] ss:$24 sps:$4 sm:$0xff]   ;;  %v8018_v4 = vld [vmem:[%s11969_s3 + $0x224] ss:$24 sps:$4 sm:$0xff]  }
 0x109   :  { %5181 = vmatpush1.bf16.msra.mxu1 %v7873_v9  ;;  %5261 = vmatpush1.bf16.msra.mxu0 %v7876_v10  ;;  %v9498_v18 = vmax.f32 %v352_v15, 0.0  ;;  %v7945_v9 = vld [vmem:[%s11969_s3 + $0x8d0] ss:$24 sps:$4 sm:$0xff]  }
 0x10a   :  { %5183 = vmatprep.subr.bf16.mxu1 %v7877_v12  ;;  %5263 = vmatprep.subr.bf16.mxu0 %v7880_v13  ;;  %v7948_v10 = vld [vmem:[%s11969_s3 + $0x398] ss:$24 sps:$4 sm:$0xff]   ;;  %v7949_v12 = vld [vmem:[%s11969_s3 + $0x3cc] ss:$24 sps:$4 sm:$0xff]   ;;  %v9647_v13 = vmax.f32 %v350_v8, 0.0 }
 0x10b   :  { %1462 = vmatprep.mubr.f32.mxu1 %v9498_v18  ;;  %v7954_v15 = vld [vmem:[%s11969_s3 + $0x10] ss:$24 sps:$4 sm:$0xff]  }
 0x10c   :  { %v8023_v8 = vld [vmem:[%s11969_s3 + $0x608] ss:$24 sps:$4 sm:$0xff]  }
 0x10d   :  { %5185 = vmatpush1.bf16.msra.mxu1 %v7879_v16  ;;  %5265 = vmatpush1.bf16.msra.mxu0 %v7882_v17  ;;  %v7955_v16 = vld [vmem:[%s11969_s3 + $0x3fc] ss:$24 sps:$4 sm:$0xff]  }
 0x10e   :  { %5187 = vmatprep.subr.bf16.mxu1 %v7883_v19  ;;  %5267 = vmatprep.subr.bf16.mxu0 %v7886_v20  ;;  %v7958_v17 = vld [vmem:[%s11969_s3 + $0x44] ss:$24 sps:$4 sm:$0xff]   ;;  %v7957_v19 = vld [vmem:[%s11969_s3 + $0x3f8] ss:$24 sps:$4 sm:$0xff]  }
 0x10f   :  { %v7960_v20 = vld [vmem:[%s11969_s3 + $0x40] ss:$24 sps:$4 sm:$0xff]  }
 0x111   :  { %5189 = vmatpush1.bf16.msra.mxu1 %v7885_v21  ;;  %5269 = vmatpush1.bf16.msra.mxu0 %v7888_v22  ;;  %v7961_v21 = vld [vmem:[%s11969_s3 + $0x42c] ss:$24 sps:$4 sm:$0xff]  }
 0x112   :  { %5191 = vmatprep.subr.bf16.mxu1 %v7889_v23  ;;  %5271 = vmatprep.subr.bf16.mxu0 %v7892_v24  ;;  %v7964_v22 = vld [vmem:[%s11969_s3 + $0x74] ss:$24 sps:$4 sm:$0xff]   ;;  %v7963_v23 = vld [vmem:[%s11969_s3 + $0x428] ss:$24 sps:$4 sm:$0xff]  }
 0x113   :  { %v7967_v24 = vld [vmem:[%s11969_s3 + $0x45c] ss:$24 sps:$4 sm:$0xff]  }
 0x115   :  { %5193 = vmatpush1.bf16.msra.mxu1 %v7891_v25  ;;  %5273 = vmatpush1.bf16.msra.mxu0 %v7894_v26  ;;  %v7970_v25 = vld [vmem:[%s11969_s3 + $0xa4] ss:$24 sps:$4 sm:$0xff]   ;;  %v7969_v26 = vld [vmem:[%s11969_s3 + $0x458] ss:$24 sps:$4 sm:$0xff]  }
 0x116   :  { %5195 = vmatprep.subr.bf16.mxu1 %v7895_v27  ;;  %5275 = vmatprep.subr.bf16.mxu0 %v7898_v28  ;;  %v7972_v27 = vld [vmem:[%s11969_s3 + $0xa0] ss:$24 sps:$4 sm:$0xff]   ;;  %v7973_v28 = vld [vmem:[%s11969_s3 + $0x48c] ss:$24 sps:$4 sm:$0xff]  }
 0x119   :  { %5197 = vmatpush1.bf16.msra.mxu1 %v7897_v33  ;;  %5277 = vmatpush1.bf16.msra.mxu0 %v7900_v34  ;;  %v7976_v33 = vld [vmem:[%s11969_s3 + $0xd4] ss:$24 sps:$4 sm:$0xff]   ;;  %v7975_v34 = vld [vmem:[%s11969_s3 + $0x488] ss:$24 sps:$4 sm:$0xff]  }
 0x11a   :  { %5199 = vmatprep.subr.bf16.mxu1 %v7901_v35  ;;  %5279 = vmatprep.subr.bf16.mxu0 %v7904_v36  ;;  %v7978_v35 = vld [vmem:[%s11969_s3 + $0xd0] ss:$24 sps:$4 sm:$0xff]   ;;  %v7979_v36 = vld [vmem:[%s11969_s3 + $0x4bc] ss:$24 sps:$4 sm:$0xff]  }
 0x11d   :  { %5201 = vmatpush1.bf16.msra.mxu1 %v7903_v37  ;;  %5281 = vmatpush1.bf16.msra.mxu0 %v7906_v38  ;;  %v7982_v37 = vld [vmem:[%s11969_s3 + $0x104] ss:$24 sps:$4 sm:$0xff]   ;;  %v7981_v38 = vld [vmem:[%s11969_s3 + $0x4b8] ss:$24 sps:$4 sm:$0xff]  }
 0x11e   :  { %5203 = vmatprep.subr.bf16.mxu1 %v7907_v41  ;;  %5283 = vmatprep.subr.bf16.mxu0 %v7910_v42  ;;  %v7984_v41 = vld [vmem:[%s11969_s3 + $0x100] ss:$24 sps:$4 sm:$0xff]   ;;  %v7985_v42 = vld [vmem:[%s11969_s3 + $0x4ec] ss:$24 sps:$4 sm:$0xff]  }
 0x121   :  { %5205 = vmatpush1.bf16.msra.mxu1 %v7909_v43  ;;  %5285 = vmatpush1.bf16.msra.mxu0 %v7912_v44  ;;  %v7988_v43 = vld [vmem:[%s11969_s3 + $0x134] ss:$24 sps:$4 sm:$0xff]   ;;  %v7987_v44 = vld [vmem:[%s11969_s3 + $0x4e8] ss:$24 sps:$4 sm:$0xff]  }
 0x122   :  { %5207 = vmatprep.subr.bf16.mxu1 %v7913_v47  ;;  %5287 = vmatprep.subr.bf16.mxu0 %v7916_v48  ;;  %v7990_v47 = vld [vmem:[%s11969_s3 + $0x130] ss:$24 sps:$4 sm:$0xff]   ;;  %v7991_v48 = vld [vmem:[%s11969_s3 + $0x51c] ss:$24 sps:$4 sm:$0xff]  }
 0x125   :  { %5209 = vmatpush1.bf16.msra.mxu1 %v7915_v49  ;;  %5289 = vmatpush1.bf16.msra.mxu0 %v7918_v50  ;;  %v7994_v49 = vld [vmem:[%s11969_s3 + $0x164] ss:$24 sps:$4 sm:$0xff]   ;;  %v7993_v50 = vld [vmem:[%s11969_s3 + $0x518] ss:$24 sps:$4 sm:$0xff]  }
 0x126   :  { %5211 = vmatprep.subr.bf16.mxu1 %v7919_v51  ;;  %5291 = vmatprep.subr.bf16.mxu0 %v7922_v52  ;;  %v7996_v51 = vld [vmem:[%s11969_s3 + $0x160] ss:$24 sps:$4 sm:$0xff]   ;;  %v7997_v52 = vld [vmem:[%s11969_s3 + $0x54c] ss:$24 sps:$4 sm:$0xff]  }
 0x129   :  { %5213 = vmatpush1.bf16.msra.mxu1 %v7921_v53  ;;  %5293 = vmatpush1.bf16.msra.mxu0 %v7924_v54  ;;  %v8000_v53 = vld [vmem:[%s11969_s3 + $0x194] ss:$24 sps:$4 sm:$0xff]   ;;  %v7999_v54 = vld [vmem:[%s11969_s3 + $0x548] ss:$24 sps:$4 sm:$0xff]  }
 0x12a   :  { %5215 = vmatprep.subr.bf16.mxu1 %v7925_v55  ;;  %5295 = vmatprep.subr.bf16.mxu0 %v7928_v56  ;;  %v8002_v55 = vld [vmem:[%s11969_s3 + $0x190] ss:$24 sps:$4 sm:$0xff]   ;;  %v8003_v56 = vld [vmem:[%s11969_s3 + $0x57c] ss:$24 sps:$4 sm:$0xff]  }
 0x12c   :  { %1534 = vmatmul.mubr.f32.vlgmr.msra.gmra.mrb[8].mxu0 %v9390_v39 }
 0x12d   :  { %5217 = vmatpush1.bf16.msra.mxu1 %v7927_v58  ;;  %5297 = vmatpush1.bf16.msra.mxu0 %v7930_v59  ;;  %v8006_v58 = vld [vmem:[%s11969_s3 + $0x1c4] ss:$24 sps:$4 sm:$0xff]   ;;  %v8005_v59 = vld [vmem:[%s11969_s3 + $0x578] ss:$24 sps:$4 sm:$0xff]  }
 0x12e   :  { %1604 = vmatprep.mubr.f32.mxu0 %v9431_v57  ;;  %5219 = vmatprep.subr.bf16.mxu1 %v7931_v61  ;;  %v8008_v61 = vld [vmem:[%s11969_s3 + $0x1c0] ss:$24 sps:$4 sm:$0xff]  }
 0x12f   :  { %5299 = vmatprep.subr.bf16.mxu0 %v7934_v62  ;;  %v8009_v62 = vld [vmem:[%s11969_s3 + $0x5ac] ss:$24 sps:$4 sm:$0xff]  }
 0x131   :  { %5221 = vmatpush1.bf16.msra.mxu1 %v7933_v0  ;;  %5301 = vmatpush1.bf16.msra.mxu0 %v7936_v1  ;;  %v8012_v0 = vld [vmem:[%s11969_s3 + $0x1f4] ss:$24 sps:$4 sm:$0xff]   ;;  %v8011_v1 = vld [vmem:[%s11969_s3 + $0x5a8] ss:$24 sps:$4 sm:$0xff]  }
 0x132   :  { %5223 = vmatprep.subr.bf16.mxu1 %v7937_v2  ;;  %5303 = vmatprep.subr.bf16.mxu0 %v7940_v29  ;;  %v8014_v2 = vld [vmem:[%s11969_s3 + $0x1f0] ss:$24 sps:$4 sm:$0xff]   ;;  %v8015_v29 = vld [vmem:[%s11969_s3 + $0x5dc] ss:$24 sps:$4 sm:$0xff]  }
 0x135   :  { %5225 = vmatpush1.bf16.msra.mxu1 %v7939_v5  ;;  %5305 = vmatpush1.bf16.msra.mxu0 %v7942_v6  ;;  %v8017_v5 = vld [vmem:[%s11969_s3 + $0x5d8] ss:$24 sps:$4 sm:$0xff]  }
 0x136   :  { %5227 = vmatprep.subr.bf16.mxu1 %v7943_v7  ;;  %5307 = vmatprep.subr.bf16.mxu0 %v7946_v31  ;;  %v8020_v6 = vld [vmem:[%s11969_s3 + $0x220] ss:$24 sps:$4 sm:$0xff]   ;;  %v8021_v7 = vld [vmem:[%s11969_s3 + $0x60c] ss:$24 sps:$4 sm:$0xff]  }
 0x137   :  { %v8024_v31 = vld [vmem:[%s11969_s3 + $0x254] ss:$24 sps:$4 sm:$0xff]  }
 0x139   :  { %5229 = vmatpush1.bf16.msra.mxu1 %v7945_v9  ;;  %5309 = vmatpush1.bf16.msra.mxu0 %v7948_v10  ;;  %v8026_v9 = vld [vmem:[%s11969_s3 + $0x250] ss:$24 sps:$4 sm:$0xff]   ;;  %v8027_v10 = vld [vmem:[%s11969_s3 + $0x63c] ss:$24 sps:$4 sm:$0xff]  }
 0x13a   :  { %5311 = vmatprep.subr.bf16.mxu0 %v7949_v12  ;;  %5423 = vmatprep.subr.bf16.mxu1 %v7952_v11  ;;  %v8030_v12 = vld [vmem:[%s11969_s3 + $0x284] ss:$24 sps:$4 sm:$0xff]   ;;  %v8029_v11 = vld [vmem:[%s11969_s3 + $0x638] ss:$24 sps:$4 sm:$0xff]  }
 0x13c   :  { %1463 = vmatmul.mubr.f32.vlgmr.msra.gmra.mrb[0].mxu1 %v9647_v13 }
 0x13d   :  { %5313 = vmatpush1.bf16.msra.mxu0 %v7951_v14  ;;  %5425 = vmatpush1.bf16.msra.mxu1 %v7954_v15  ;;  %v8032_v14 = vld [vmem:[%s11969_s3 + $0x280] ss:$24 sps:$4 sm:$0xff]   ;;  %v8033_v15 = vld [vmem:[%s11969_s3 + $0x66c] ss:$24 sps:$4 sm:$0xff]  }
 0x13e   :  { %1746 = vmatprep.mubr.f32.mxu1 %v9392_v40  ;;  %5315 = vmatprep.subr.bf16.mxu0 %v7955_v16  ;;  %v7966_v40 = vld [vmem:[%s11969_s3 + $0x70] ss:$24 sps:$4 sm:$0xff]   ;;  %v8036_v16 = vld [vmem:[%s11969_s3 + $0x2b4] ss:$24 sps:$4 sm:$0xff]  }
 0x13f   :  { %5427 = vmatprep.subr.bf16.mxu1 %v7958_v17  ;;  %v8035_v17 = vld [vmem:[%s11969_s3 + $0x668] ss:$24 sps:$4 sm:$0xff]  }
 0x141   :  { %5317 = vmatpush1.bf16.msra.mxu0 %v7957_v19  ;;  %5429 = vmatpush1.bf16.msra.mxu1 %v7960_v20  ;;  %v8038_v19 = vld [vmem:[%s11969_s3 + $0x2b0] ss:$24 sps:$4 sm:$0xff]   ;;  %v8039_v20 = vld [vmem:[%s11969_s3 + $0x69c] ss:$24 sps:$4 sm:$0xff]  }
 0x142   :  { %5319 = vmatprep.subr.bf16.mxu0 %v7961_v21  ;;  %5431 = vmatprep.subr.bf16.mxu1 %v7964_v22  ;;  %v8042_v21 = vld [vmem:[%s11969_s3 + $0x2e4] ss:$24 sps:$4 sm:$0xff]   ;;  %v8041_v22 = vld [vmem:[%s11969_s3 + $0x698] ss:$24 sps:$4 sm:$0xff]  }
 0x145   :  { %5321 = vmatpush1.bf16.msra.mxu0 %v7963_v23  ;;  %5433 = vmatpush1.bf16.msra.mxu1 %v7966_v40  ;;  %v8044_v23 = vld [vmem:[%s11969_s3 + $0x2e0] ss:$24 sps:$4 sm:$0xff]   ;;  %v8045_v40 = vld [vmem:[%s11969_s3 + $0x6cc] ss:$24 sps:$4 sm:$0xff]  }
 0x146   :  { %5323 = vmatprep.subr.bf16.mxu0 %v7967_v24  ;;  %5435 = vmatprep.subr.bf16.mxu1 %v7970_v25  ;;  %v8047_v24 = vld [vmem:[%s11969_s3 + $0x6c8] ss:$24 sps:$4 sm:$0xff]   ;;  %v8048_v25 = vld [vmem:[%s11969_s3 + $0x314] ss:$24 sps:$4 sm:$0xff]  }
 0x149   :  { %5325 = vmatpush1.bf16.msra.mxu0 %v7969_v26  ;;  %5437 = vmatpush1.bf16.msra.mxu1 %v7972_v27  ;;  %v8050_v26 = vld [vmem:[%s11969_s3 + $0x310] ss:$24 sps:$4 sm:$0xff]   ;;  %v8051_v27 = vld [vmem:[%s11969_s3 + $0x6fc] ss:$24 sps:$4 sm:$0xff]  }
 0x14a   :  { %5327 = vmatprep.subr.bf16.mxu0 %v7973_v28  ;;  %5439 = vmatprep.subr.bf16.mxu1 %v7976_v33  ;;  %v8054_v28 = vld [vmem:[%s11969_s3 + $0x344] ss:$24 sps:$4 sm:$0xff]   ;;  %v8053_v33 = vld [vmem:[%s11969_s3 + $0x6f8] ss:$24 sps:$4 sm:$0xff]  }
 0x14d   :  { %5329 = vmatpush1.bf16.msra.mxu0 %v7975_v34  ;;  %5441 = vmatpush1.bf16.msra.mxu1 %v7978_v35  ;;  %v8056_v34 = vld [vmem:[%s11969_s3 + $0x340] ss:$24 sps:$4 sm:$0xff]   ;;  %v8057_v35 = vld [vmem:[%s11969_s3 + $0x72c] ss:$24 sps:$4 sm:$0xff]  }
 0x14e   :  { %5331 = vmatprep.subr.bf16.mxu0 %v7979_v36  ;;  %5443 = vmatprep.subr.bf16.mxu1 %v7982_v37  ;;  %v8059_v36 = vld [vmem:[%s11969_s3 + $0x728] ss:$24 sps:$4 sm:$0xff]   ;;  %v8063_v37 = vld [vmem:[%s11969_s3 + $0x75c] ss:$24 sps:$4 sm:$0xff]  }
 0x151   :  { %5333 = vmatpush1.bf16.msra.mxu0 %v7981_v38  ;;  %5445 = vmatpush1.bf16.msra.mxu1 %v7984_v41  ;;  %v8066_v38 = vld [vmem:[%s11969_s3 + $0x3a4] ss:$24 sps:$4 sm:$0xff]   ;;  %v8065_v41 = vld [vmem:[%s11969_s3 + $0x758] ss:$24 sps:$4 sm:$0xff]  }
 0x152   :  { %5335 = vmatprep.subr.bf16.mxu0 %v7985_v42  ;;  %5447 = vmatprep.subr.bf16.mxu1 %v7988_v43  ;;  %v8068_v42 = vld [vmem:[%s11969_s3 + $0x3a0] ss:$24 sps:$4 sm:$0xff]   ;;  %v8069_v43 = vld [vmem:[%s11969_s3 + $0x78c] ss:$24 sps:$4 sm:$0xff]  }
 0x155   :  { %5337 = vmatpush1.bf16.msra.mxu0 %v7987_v44  ;;  %5449 = vmatpush1.bf16.msra.mxu1 %v7990_v47  ;;  %v8072_v44 = vld [vmem:[%s11969_s3 + $0x3d4] ss:$24 sps:$4 sm:$0xff]   ;;  %v8071_v47 = vld [vmem:[%s11969_s3 + $0x788] ss:$24 sps:$4 sm:$0xff]  }
 0x156   :  { %5339 = vmatprep.subr.bf16.mxu0 %v7991_v48  ;;  %5451 = vmatprep.subr.bf16.mxu1 %v7994_v49  ;;  %v8074_v48 = vld [vmem:[%s11969_s3 + $0x3d0] ss:$24 sps:$4 sm:$0xff]   ;;  %v8075_v49 = vld [vmem:[%s11969_s3 + $0x7bc] ss:$24 sps:$4 sm:$0xff]  }
 0x159   :  { %5341 = vmatpush1.bf16.msra.mxu0 %v7993_v50  ;;  %5453 = vmatpush1.bf16.msra.mxu1 %v7996_v51  ;;  %v8077_v50 = vld [vmem:[%s11969_s3 + $0x7b8] ss:$24 sps:$4 sm:$0xff]   ;;  %v8078_v51 = vld [vmem:[%s11969_s3 + $0x404] ss:$24 sps:$4 sm:$0xff]  }
 0x15a   :  { %5343 = vmatprep.subr.bf16.mxu0 %v7997_v52  ;;  %5455 = vmatprep.subr.bf16.mxu1 %v8000_v53  ;;  %v8080_v52 = vld [vmem:[%s11969_s3 + $0x400] ss:$24 sps:$4 sm:$0xff]   ;;  %v8081_v53 = vld [vmem:[%s11969_s3 + $0x7ec] ss:$24 sps:$4 sm:$0xff]  }
 0x15d   :  { %5345 = vmatpush1.bf16.msra.mxu0 %v7999_v54  ;;  %5457 = vmatpush1.bf16.msra.mxu1 %v8002_v55  ;;  %v8084_v54 = vld [vmem:[%s11969_s3 + $0x434] ss:$24 sps:$4 sm:$0xff]   ;;  %v8083_v55 = vld [vmem:[%s11969_s3 + $0x7e8] ss:$24 sps:$4 sm:$0xff]  }
 0x15e   :  { %5347 = vmatprep.subr.bf16.mxu0 %v8003_v56  ;;  %5459 = vmatprep.subr.bf16.mxu1 %v8006_v58  ;;  %v8086_v56 = vld [vmem:[%s11969_s3 + $0x430] ss:$24 sps:$4 sm:$0xff]   ;;  %v8087_v58 = vld [vmem:[%s11969_s3 + $0x81c] ss:$24 sps:$4 sm:$0xff]  }
 0x161   :  { %5349 = vmatpush1.bf16.msra.mxu0 %v8005_v59  ;;  %5461 = vmatpush1.bf16.msra.mxu1 %v8008_v61  ;;  %v8089_v59 = vld [vmem:[%s11969_s3 + $0x818] ss:$24 sps:$4 sm:$0xff]   ;;  %v8090_v61 = vld [vmem:[%s11969_s3 + $0x464] ss:$24 sps:$4 sm:$0xff]  }
 0x162   :  { %5351 = vmatprep.subr.bf16.mxu0 %v8009_v62  ;;  %5463 = vmatprep.subr.bf16.mxu1 %v8012_v0  ;;  %v8092_v62 = vld [vmem:[%s11969_s3 + $0x460] ss:$24 sps:$4 sm:$0xff]   ;;  %v8093_v0 = vld [vmem:[%s11969_s3 + $0x84c] ss:$24 sps:$4 sm:$0xff]  }
 0x165   :  { %5353 = vmatpush1.bf16.msra.mxu0 %v8011_v1  ;;  %5465 = vmatpush1.bf16.msra.mxu1 %v8014_v2  ;;  %v8095_v1 = vld [vmem:[%s11969_s3 + $0x848] ss:$24 sps:$4 sm:$0xff]   ;;  %v8096_v2 = vld [vmem:[%s11969_s3 + $0x494] ss:$24 sps:$4 sm:$0xff]  }
 0x166   :  { %5355 = vmatprep.subr.bf16.mxu0 %v8015_v29  ;;  %5467 = vmatprep.subr.bf16.mxu1 %v8018_v4  ;;  %v8098_v29 = vld [vmem:[%s11969_s3 + $0x490] ss:$24 sps:$4 sm:$0xff]   ;;  %v8099_v4 = vld [vmem:[%s11969_s3 + $0x87c] ss:$24 sps:$4 sm:$0xff]  }
 0x169   :  { %5357 = vmatpush1.bf16.msra.mxu0 %v8017_v5  ;;  %5469 = vmatpush1.bf16.msra.mxu1 %v8020_v6  ;;  %v8101_v5 = vld [vmem:[%s11969_s3 + $0x878] ss:$24 sps:$4 sm:$0xff]   ;;  %v8102_v6 = vld [vmem:[%s11969_s3 + $0x4c4] ss:$24 sps:$4 sm:$0xff]  }
 0x16a   :  { %5359 = vmatprep.subr.bf16.mxu0 %v8021_v7  ;;  %5471 = vmatprep.subr.bf16.mxu1 %v8024_v31  ;;  %v8104_v7 = vld [vmem:[%s11969_s3 + $0x4c0] ss:$24 sps:$4 sm:$0xff]   ;;  %v8105_v31 = vld [vmem:[%s11969_s3 + $0x8ac] ss:$24 sps:$4 sm:$0xff]  }
 0x16c   :  { %1605 = vmatmul.mubr.f32.vlgmr.msra.gmra.mrb[8].mxu0 %v9439_v60 }
 0x16d   :  { %5361 = vmatpush1.bf16.msra.mxu0 %v8023_v8  ;;  %1675 = vmatprep.mubr.f32.mxu0 %v9498_v18  ;;  %v8107_v8 = vld [vmem:[%s11969_s3 + $0x8a8] ss:$24 sps:$4 sm:$0xff]  }
 0x16e   :  { %5473 = vmatpush1.bf16.msra.mxu1 %v8026_v9  ;;  %5363 = vmatprep.subr.bf16.mxu0 %v8027_v10  ;;  %v8108_v9 = vld [vmem:[%s11969_s3 + $0x4f4] ss:$24 sps:$4 sm:$0xff]   ;;  %v8110_v10 = vld [vmem:[%s11969_s3 + $0x4f0] ss:$24 sps:$4 sm:$0xff]  }
 0x16f   :  { %5475 = vmatprep.subr.bf16.mxu1 %v8030_v12  ;;  %v8111_v12 = vld [vmem:[%s11969_s3 + $0x8dc] ss:$24 sps:$4 sm:$0xff]  }
 0x171   :  { %5365 = vmatpush1.bf16.msra.mxu0 %v8029_v11  ;;  %v8113_v11 = vld [vmem:[%s11969_s3 + $0x8d8] ss:$24 sps:$4 sm:$0xff]  }
 0x172   :  { %5477 = vmatpush1.bf16.msra.mxu1 %v8032_v14  ;;  %5367 = vmatprep.subr.bf16.mxu0 %v8033_v15  ;;  %v8114_v14 = vld [vmem:[%s11969_s3 + $0x524] ss:$24 sps:$4 sm:$0xff]   ;;  %v8116_v15 = vld [vmem:[%s11969_s3 + $0x520] ss:$24 sps:$4 sm:$0xff]  }
 0x173   :  { %5479 = vmatprep.subr.bf16.mxu1 %v8036_v16  ;;  %v8117_v16 = vld [vmem:[%s11969_s3 + $0x554] ss:$24 sps:$4 sm:$0xff]  }
 0x175   :  { %5369 = vmatpush1.bf16.msra.mxu0 %v8035_v17  ;;  %v8150_v17 = vld [vmem:[%s11971_s5 + $0x4] ss:$24 sps:$4 sm:$0xff]  }
 0x176   :  { %5481 = vmatpush1.bf16.msra.mxu1 %v8038_v19  ;;  %5371 = vmatprep.subr.bf16.mxu0 %v8039_v20  ;;  %v8152_v19 = vld [vmem:[%s11971_s5] ss:$24 sps:$4 sm:$0xff]   ;;  %v8119_v20 = vld [vmem:[%s11969_s3 + $0x550] ss:$24 sps:$4 sm:$0xff]  }
 0x177   :  { %5483 = vmatprep.subr.bf16.mxu1 %v8042_v21  ;;  %v8120_v21 = vld [vmem:[%s11969_s3 + $0x584] ss:$24 sps:$4 sm:$0xff]  }
 0x179   :  { %5373 = vmatpush1.bf16.msra.mxu0 %v8041_v22  ;;  %v8156_v22 = vld [vmem:[%s11971_s5 + $0x34] ss:$24 sps:$4 sm:$0xff]  }
 0x17a   :  { %5485 = vmatpush1.bf16.msra.mxu1 %v8044_v23  ;;  %5375 = vmatprep.subr.bf16.mxu0 %v8045_v40  ;;  %v8158_v23 = vld [vmem:[%s11971_s5 + $0x30] ss:$24 sps:$4 sm:$0xff]   ;;  %v8122_v40 = vld [vmem:[%s11969_s3 + $0x580] ss:$24 sps:$4 sm:$0xff]  }
 0x17b   :  { %5487 = vmatprep.subr.bf16.mxu1 %v8048_v25  ;;  %v8162_v25 = vld [vmem:[%s11971_s5 + $0x64] ss:$24 sps:$4 sm:$0xff]  }
 0x17d   :  { %1747 = vmatmul.mubr.f32.vlgmr.msra.gmra.mrb[2].mxu1 %v9390_v39  ;;  %5377 = vmatpush1.bf16.msra.mxu0 %v8047_v24  ;;  %v8060_v39 = vld [vmem:[%s11969_s3 + $0x374] ss:$24 sps:$4 sm:$0xff]  }
 0x17e   :  { %5489 = vmatpush1.bf16.msra.mxu1 %v8050_v26  ;;  %1817 = vmatprep.mubr.f32.mxu1 %v9431_v57  ;;  %v8062_v57 = vld [vmem:[%s11969_s3 + $0x370] ss:$24 sps:$4 sm:$0xff]   ;;  %v8123_v24 = vld [vmem:[%s11969_s3 + $0x5b4] ss:$24 sps:$4 sm:$0xff]   ;;  %v8164_v26 = vld [vmem:[%s11971_s5 + $0x60] ss:$24 sps:$4 sm:$0xff]  }
 0x17f   :  { %5379 = vmatprep.subr.bf16.mxu0 %v8051_v27  ;;  %5491 = vmatprep.subr.bf16.mxu1 %v8054_v28  ;;  %v8125_v27 = vld [vmem:[%s11969_s3 + $0x5b0] ss:$24 sps:$4 sm:$0xff]   ;;  %v8126_v28 = vld [vmem:[%s11969_s3 + $0x5e4] ss:$24 sps:$4 sm:$0xff]  }
 0x181   :  { %5381 = vmatpush1.bf16.msra.mxu0 %v8053_v33  ;;  %v8168_v33 = vld [vmem:[%s11971_s5 + $0x94] ss:$24 sps:$4 sm:$0xff]  }
 0x182   :  { %5493 = vmatpush1.bf16.msra.mxu1 %v8056_v34  ;;  %5383 = vmatprep.subr.bf16.mxu0 %v8057_v35  ;;  %v8170_v34 = vld [vmem:[%s11971_s5 + $0x90] ss:$24 sps:$4 sm:$0xff]   ;;  %v8128_v35 = vld [vmem:[%s11969_s3 + $0x5e0] ss:$24 sps:$4 sm:$0xff]  }
 0x183   :  { %5495 = vmatprep.subr.bf16.mxu1 %v8060_v39  ;;  %v8129_v39 = vld [vmem:[%s11969_s3 + $0x614] ss:$24 sps:$4 sm:$0xff]  }
 0x185   :  { %5385 = vmatpush1.bf16.msra.mxu0 %v8059_v36  ;;  %v8174_v36 = vld [vmem:[%s11971_s5 + $0xc4] ss:$24 sps:$4 sm:$0xff]  }
 0x186   :  { %5497 = vmatpush1.bf16.msra.mxu1 %v8062_v57  ;;  %5387 = vmatprep.subr.bf16.mxu0 %v8063_v37  ;;  %v8176_v57 = vld [vmem:[%s11971_s5 + $0xc0] ss:$24 sps:$4 sm:$0xff]   ;;  %v8131_v37 = vld [vmem:[%s11969_s3 + $0x610] ss:$24 sps:$4 sm:$0xff]  }
 0x187   :  { %5499 = vmatprep.subr.bf16.mxu1 %v8066_v38  ;;  %v8132_v38 = vld [vmem:[%s11969_s3 + $0x644] ss:$24 sps:$4 sm:$0xff]  }
 0x189   :  { %5389 = vmatpush1.bf16.msra.mxu0 %v8065_v41  ;;  %v8180_v41 = vld [vmem:[%s11971_s5 + $0xf4] ss:$24 sps:$4 sm:$0xff]  }
 0x18a   :  { %5501 = vmatpush1.bf16.msra.mxu1 %v8068_v42  ;;  %5391 = vmatprep.subr.bf16.mxu0 %v8069_v43  ;;  %v8182_v42 = vld [vmem:[%s11971_s5 + $0xf0] ss:$24 sps:$4 sm:$0xff]   ;;  %v8134_v43 = vld [vmem:[%s11969_s3 + $0x640] ss:$24 sps:$4 sm:$0xff]  }
 0x18b   :  { %5503 = vmatprep.subr.bf16.mxu1 %v8072_v44  ;;  %v8186_v44 = vld [vmem:[%s11971_s5 + $0x124] ss:$24 sps:$4 sm:$0xff]  }
 0x18d   :  { %5393 = vmatpush1.bf16.msra.mxu0 %v8071_v47 }
 0x18e   :  { %5505 = vmatpush1.bf16.msra.mxu1 %v8074_v48  ;;  %5395 = vmatprep.subr.bf16.mxu0 %v8075_v49  ;;  %v8137_v49 = vld [vmem:[%s11969_s3 + $0x670] ss:$24 sps:$4 sm:$0xff]  }
 0x18f   :  { %5507 = vmatprep.subr.bf16.mxu1 %v8078_v51  ;;  %v8192_v51 = vld [vmem:[%s11971_s5 + $0x154] ss:$24 sps:$4 sm:$0xff]  }
 0x191   :  { %5397 = vmatpush1.bf16.msra.mxu0 %v8077_v50  ;;  %v8138_v50 = vld [vmem:[%s11969_s3 + $0x6a4] ss:$24 sps:$4 sm:$0xff]  }
 0x192   :  { %5509 = vmatpush1.bf16.msra.mxu1 %v8080_v52  ;;  %5399 = vmatprep.subr.bf16.mxu0 %v8081_v53  ;;  %v8194_v52 = vld [vmem:[%s11971_s5 + $0x150] ss:$24 sps:$4 sm:$0xff]   ;;  %v8140_v53 = vld [vmem:[%s11969_s3 + $0x6a0] ss:$24 sps:$4 sm:$0xff]  }
 0x193   :  { %5511 = vmatprep.subr.bf16.mxu1 %v8084_v54  ;;  %v8141_v54 = vld [vmem:[%s11969_s3 + $0x6d4] ss:$24 sps:$4 sm:$0xff]  }
 0x195   :  { %5401 = vmatpush1.bf16.msra.mxu0 %v8083_v55  ;;  %v8198_v55 = vld [vmem:[%s11971_s5 + $0x184] ss:$24 sps:$4 sm:$0xff]  }
 0x196   :  { %5513 = vmatpush1.bf16.msra.mxu1 %v8086_v56  ;;  %5403 = vmatprep.subr.bf16.mxu0 %v8087_v58  ;;  %v8200_v56 = vld [vmem:[%s11971_s5 + $0x180] ss:$24 sps:$4 sm:$0xff]   ;;  %v8143_v58 = vld [vmem:[%s11969_s3 + $0x6d0] ss:$24 sps:$4 sm:$0xff]  }
 0x197   :  { %5515 = vmatprep.subr.bf16.mxu1 %v8090_v61  ;;  %v8204_v61 = vld [vmem:[%s11971_s5 + $0x1b4] ss:$24 sps:$4 sm:$0xff]  }
 0x199   :  { %5405 = vmatpush1.bf16.msra.mxu0 %v8089_v59  ;;  %v8144_v59 = vld [vmem:[%s11969_s3 + $0x704] ss:$24 sps:$4 sm:$0xff]  }
 0x19a   :  { %5517 = vmatpush1.bf16.msra.mxu1 %v8092_v62  ;;  %5407 = vmatprep.subr.bf16.mxu0 %v8093_v0  ;;  %v8206_v62 = vld [vmem:[%s11971_s5 + $0x1b0] ss:$24 sps:$4 sm:$0xff]   ;;  %v8146_v0 = vld [vmem:[%s11969_s3 + $0x700] ss:$24 sps:$4 sm:$0xff]  }
 0x19b   :  { %5519 = vmatprep.subr.bf16.mxu1 %v8096_v2  ;;  %v8210_v2 = vld [vmem:[%s11971_s5 + $0x1e4] ss:$24 sps:$4 sm:$0xff]  }
 0x19d   :  { %5409 = vmatpush1.bf16.msra.mxu0 %v8095_v1  ;;  %v8147_v1 = vld [vmem:[%s11969_s3 + $0x734] ss:$24 sps:$4 sm:$0xff]  }
 0x19e   :  { %5521 = vmatpush1.bf16.msra.mxu1 %v8098_v29  ;;  %5411 = vmatprep.subr.bf16.mxu0 %v8099_v4  ;;  %v8212_v29 = vld [vmem:[%s11971_s5 + $0x1e0] ss:$24 sps:$4 sm:$0xff]   ;;  %v8149_v4 = vld [vmem:[%s11969_s3 + $0x730] ss:$24 sps:$4 sm:$0xff]  }
 0x19f   :  { %5523 = vmatprep.subr.bf16.mxu1 %v8102_v6  ;;  %v8216_v6 = vld [vmem:[%s11971_s5 + $0x214] ss:$24 sps:$4 sm:$0xff]  }
 0x1a1   :  { %5413 = vmatpush1.bf16.msra.mxu0 %v8101_v5  ;;  %v8153_v5 = vld [vmem:[%s11969_s3 + $0x764] ss:$24 sps:$4 sm:$0xff]  }
 0x1a2   :  { %5525 = vmatpush1.bf16.msra.mxu1 %v8104_v7  ;;  %5415 = vmatprep.subr.bf16.mxu0 %v8105_v31  ;;  %v8218_v7 = vld [vmem:[%s11971_s5 + $0x210] ss:$24 sps:$4 sm:$0xff]   ;;  %v8155_v31 = vld [vmem:[%s11969_s3 + $0x760] ss:$24 sps:$4 sm:$0xff]  }
 0x1a3   :  { %5527 = vmatprep.subr.bf16.mxu1 %v8108_v9  ;;  %v8222_v9 = vld [vmem:[%s11971_s5 + $0x244] ss:$24 sps:$4 sm:$0xff]  }
 0x1a5   :  { %5417 = vmatpush1.bf16.msra.mxu0 %v8107_v8  ;;  %v8159_v8 = vld [vmem:[%s11969_s3 + $0x794] ss:$24 sps:$4 sm:$0xff]  }
 0x1a6   :  { %5529 = vmatpush1.bf16.msra.mxu1 %v8110_v10  ;;  %5419 = vmatprep.subr.bf16.mxu0 %v8111_v12  ;;  %v8224_v10 = vld [vmem:[%s11971_s5 + $0x240] ss:$24 sps:$4 sm:$0xff]   ;;  %v8161_v12 = vld [vmem:[%s11969_s3 + $0x790] ss:$24 sps:$4 sm:$0xff]  }
 0x1a7   :  { %5531 = vmatprep.subr.bf16.mxu1 %v8114_v14  ;;  %v8165_v14 = vld [vmem:[%s11969_s3 + $0x7c4] ss:$24 sps:$4 sm:$0xff]  }
 0x1a9   :  { %5421 = vmatpush1.bf16.msra.mxu0 %v8113_v11  ;;  %v8228_v11 = vld [vmem:[%s11971_s5 + $0x274] ss:$24 sps:$4 sm:$0xff]  }
 0x1aa   :  { %5533 = vmatpush1.bf16.msra.mxu1 %v8116_v15  ;;  %5615 = vmatprep.subr.bf16.mxu0 %v8150_v17  ;;  %v8230_v15 = vld [vmem:[%s11971_s5 + $0x270] ss:$24 sps:$4 sm:$0xff]   ;;  %v8234_v17 = vld [vmem:[%s11971_s5 + $0x2a4] ss:$24 sps:$4 sm:$0xff]  }
 0x1ab   :  { %5535 = vmatprep.subr.bf16.mxu1 %v8117_v16  ;;  %v8167_v16 = vld [vmem:[%s11969_s3 + $0x7c0] ss:$24 sps:$4 sm:$0xff]  }
 0x1ac   :  { %1676 = vmatmul.mubr.f32.vlgmr.msra.gmra.mrb[8].mxu0 %v9647_v13 }
 0x1ad   :  { %5617 = vmatpush1.bf16.msra.mxu0 %v8152_v19  ;;  %v8171_v19 = vld [vmem:[%s11969_s3 + $0x7f4] ss:$24 sps:$4 sm:$0xff]  }
 0x1ae   :  { %5537 = vmatpush1.bf16.msra.mxu1 %v8119_v20  ;;  %5619 = vmatprep.subr.bf16.mxu0 %v8156_v22  ;;  %v8236_v20 = vld [vmem:[%s11971_s5 + $0x2a0] ss:$24 sps:$4 sm:$0xff]   ;;  %v8240_v22 = vld [vmem:[%s11971_s5 + $0x2d4] ss:$24 sps:$4 sm:$0xff]  }
 0x1af   :  { %5539 = vmatprep.subr.bf16.mxu1 %v8120_v21  ;;  %v8173_v21 = vld [vmem:[%s11969_s3 + $0x7f0] ss:$24 sps:$4 sm:$0xff]  }
 0x1b1   :  { %5621 = vmatpush1.bf16.msra.mxu0 %v8158_v23  ;;  %v8177_v23 = vld [vmem:[%s11969_s3 + $0x824] ss:$24 sps:$4 sm:$0xff]  }
 0x1b2   :  { %5541 = vmatpush1.bf16.msra.mxu1 %v8122_v40  ;;  %5623 = vmatprep.subr.bf16.mxu0 %v8162_v25  ;;  %v8242_v40 = vld [vmem:[%s11971_s5 + $0x2d0] ss:$24 sps:$4 sm:$0xff]   ;;  %v8273_v25 = vld [vmem:[%s11971_s5 + $0x304] ss:$24 sps:$4 sm:$0xff]  }
 0x1b3   :  { %5543 = vmatprep.subr.bf16.mxu1 %v8123_v24  ;;  %v8179_v24 = vld [vmem:[%s11969_s3 + $0x820] ss:$24 sps:$4 sm:$0xff]  }
 0x1b5   :  { %5625 = vmatpush1.bf16.msra.mxu0 %v8164_v26  ;;  %v8183_v26 = vld [vmem:[%s11969_s3 + $0x854] ss:$24 sps:$4 sm:$0xff]  }
 0x1b6   :  { %5545 = vmatpush1.bf16.msra.mxu1 %v8125_v27  ;;  %5627 = vmatprep.subr.bf16.mxu0 %v8168_v33  ;;  %v8185_v27 = vld [vmem:[%s11969_s3 + $0x850] ss:$24 sps:$4 sm:$0xff]   ;;  %v8191_v33 = vld [vmem:[%s11969_s3 + $0x880] ss:$24 sps:$4 sm:$0xff]  }
 0x1b7   :  { %5547 = vmatprep.subr.bf16.mxu1 %v8126_v28  ;;  %v8189_v28 = vld [vmem:[%s11969_s3 + $0x884] ss:$24 sps:$4 sm:$0xff]  }
 0x1b9   :  { %5629 = vmatpush1.bf16.msra.mxu0 %v8170_v34  ;;  %v8195_v34 = vld [vmem:[%s11969_s3 + $0x8b4] ss:$24 sps:$4 sm:$0xff]  }
 0x1ba   :  { %5549 = vmatpush1.bf16.msra.mxu1 %v8128_v35  ;;  %5631 = vmatprep.subr.bf16.mxu0 %v8174_v36  ;;  %v8197_v35 = vld [vmem:[%s11969_s3 + $0x8b0] ss:$24 sps:$4 sm:$0xff]   ;;  %v8203_v36 = vld [vmem:[%s11969_s3 + $0x8e0] ss:$24 sps:$4 sm:$0xff]  }
 0x1bb   :  { %5551 = vmatprep.subr.bf16.mxu1 %v8129_v39  ;;  %v8201_v39 = vld [vmem:[%s11969_s3 + $0x8e4] ss:$24 sps:$4 sm:$0xff]  }
 0x1bd   :  { %1818 = vmatmul.mubr.f32.vlgmr.msra.gmra.mrb[2].mxu1 %v9439_v60  ;;  %5633 = vmatpush1.bf16.msra.mxu0 %v8176_v57  ;;  %v8135_v60 = vld [vmem:[%s11969_s3 + $0x674] ss:$24 sps:$4 sm:$0xff]  }
 0x1be   :  { %5553 = vmatpush1.bf16.msra.mxu1 %v8131_v37  ;;  %1888 = vmatprep.mubr.f32.mxu1 %v9498_v18  ;;  %v8188_v18 = vld [vmem:[%s11971_s5 + $0x120] ss:$24 sps:$4 sm:$0xff]   ;;  %v8207_v57 = vld [vmem:[%s11971_s5 + $0xc] ss:$24 sps:$4 sm:$0xff]  }
 0x1bf   :  { %v10063_v47 = vpop.f32.mrb[6].mxu0  ;;  %5555 = vmatprep.subr.bf16.mxu1 %v8132_v38  ;;  %5635 = vmatprep.subr.bf16.mxu0 %v8180_v41  ;;  %v8209_v37 = vld [vmem:[%s11971_s5 + $0x8] ss:$24 sps:$4 sm:$0xff]   ;;  %v8213_v38 = vld [vmem:[%s11971_s5 + $0x3c] ss:$24 sps:$4 sm:$0xff]  }
 0x1c0   :  { %v10071_v48 = vpop.f32.mrb[7].mxu0  ;;  %v8215_v41 = vld [vmem:[%s11971_s5 + $0x38] ss:$24 sps:$4 sm:$0xff]  }
 0x1c1   :  { %5637 = vmatpush1.bf16.msra.mxu0 %v8182_v42  ;;  %v8219_v42 = vld [vmem:[%s11971_s5 + $0x6c] ss:$24 sps:$4 sm:$0xff]  }
 0x1c2   :  { %5557 = vmatpush1.bf16.msra.mxu1 %v8134_v43  ;;  %5639 = vmatprep.subr.bf16.mxu0 %v8186_v44  ;;  %v8221_v43 = vld [vmem:[%s11971_s5 + $0x68] ss:$24 sps:$4 sm:$0xff]   ;;  %v8227_v44 = vld [vmem:[%s11971_s5 + $0x98] ss:$24 sps:$4 sm:$0xff]  }
 0x1c3   :  { %5559 = vmatprep.subr.bf16.mxu1 %v8135_v60  ;;  %v10239_v60 = vld [vmem:[%s11972_s4] sm:$0x3f] }
 0x1c5   :  { %5641 = vmatpush1.bf16.msra.mxu0 %v8188_v18  ;;  %v8231_v18 = vld [vmem:[%s11971_s5 + $0xcc] ss:$24 sps:$4 sm:$0xff]  }
 0x1c6   :  { %5561 = vmatpush1.bf16.msra.mxu1 %v8137_v49  ;;  %5643 = vmatprep.subr.bf16.mxu0 %v8192_v51  ;;  %v1229_v49 = vrot.slane %v10239_v60, %v9376_v30  ;;  %v1233_v51 = vrot.slane %v10239_v60, %v9384_v32 }
 0x1c7   :  { %5563 = vmatprep.subr.bf16.mxu1 %v8138_v50  ;;  %v8233_v50 = vld [vmem:[%s11971_s5 + $0xc8] ss:$24 sps:$4 sm:$0xff]  }
 0x1c9   :  { %5645 = vmatpush1.bf16.msra.mxu0 %v8194_v52  ;;  %v8237_v52 = vld [vmem:[%s11971_s5 + $0xfc] ss:$24 sps:$4 sm:$0xff]  }
 0x1ca   :  { %5565 = vmatpush1.bf16.msra.mxu1 %v8140_v53  ;;  %5647 = vmatprep.subr.bf16.mxu0 %v8198_v55  ;;  %v1323_v53 = vadd.f32 %v10063_v47, %v1229_v49  ;;  %v1325_v55 = vadd.f32 %v10071_v48, %v1233_v51  ;;  %v8245_v47 = vld [vmem:[%s11971_s5 + $0x128] ss:$24 sps:$4 sm:$0xff]   ;;  %v8246_v48 = vld [vmem:[%s11971_s5 + $0x15c] ss:$24 sps:$4 sm:$0xff]   ;;  %v8288_v51 = vld [vmem:[%s11971_s5 + $0x36c] ss:$24 sps:$4 sm:$0xff]  }
 0x1cb   :  { %5567 = vmatprep.subr.bf16.mxu1 %v8141_v54  ;;  %v8239_v54 = vld [vmem:[%s11971_s5 + $0xf8] ss:$24 sps:$4 sm:$0xff]   ;;  %v8339_v49 = vld [vmem:[%s11971_s5 + $0x514] ss:$24 sps:$4 sm:$0xff]  }
 0x1cd   :  { %5649 = vmatpush1.bf16.msra.mxu0 %v8200_v56 }
 0x1ce   :  { %5569 = vmatpush1.bf16.msra.mxu1 %v8143_v58  ;;  %5651 = vmatprep.subr.bf16.mxu0 %v8204_v61  ;;  %v8243_v58 = vld [vmem:[%s11971_s5 + $0x12c] ss:$24 sps:$4 sm:$0xff]  }
 0x1cf   :  { %5571 = vmatprep.subr.bf16.mxu1 %v8144_v59 }
 0x1d1   :  { %5653 = vmatpush1.bf16.msra.mxu0 %v8206_v62 }
 0x1d2   :  { %5573 = vmatpush1.bf16.msra.mxu1 %v8146_v0  ;;  %5655 = vmatprep.subr.bf16.mxu0 %v8210_v2 }
 0x1d3   :  { %5575 = vmatprep.subr.bf16.mxu1 %v8147_v1  ;;  %v8275_v1 = vld [vmem:[%s11971_s5 + $0x300] ss:$24 sps:$4 sm:$0xff]  }
 0x1d5   :  { %5657 = vmatpush1.bf16.msra.mxu0 %v8212_v29  ;;  %v8279_v29 = vld [vmem:[%s11971_s5 + $0x334] ss:$24 sps:$4 sm:$0xff]  }
 0x1d6   :  { %5577 = vmatpush1.bf16.msra.mxu1 %v8149_v4  ;;  %5659 = vmatprep.subr.bf16.mxu0 %v8216_v6  ;;  %v8248_v4 = vld [vmem:[%s11971_s5 + $0x158] ss:$24 sps:$4 sm:$0xff]  }
 0x1d7   :  { %5579 = vmatprep.subr.bf16.mxu1 %v8153_v5  ;;  %v8249_v5 = vld [vmem:[%s11971_s5 + $0x18c] ss:$24 sps:$4 sm:$0xff]   ;;  %v8281_v6 = vld [vmem:[%s11971_s5 + $0x330] ss:$24 sps:$4 sm:$0xff]  }
 0x1d9   :  { %5661 = vmatpush1.bf16.msra.mxu0 %v8218_v7  ;;  %v8285_v7 = vld [vmem:[%s11971_s5 + $0x364] ss:$24 sps:$4 sm:$0xff]  }
 0x1da   :  { %5581 = vmatpush1.bf16.msra.mxu1 %v8155_v31  ;;  %5663 = vmatprep.subr.bf16.mxu0 %v8222_v9  ;;  %v8251_v31 = vld [vmem:[%s11971_s5 + $0x188] ss:$24 sps:$4 sm:$0xff]  }
 0x1db   :  { %5583 = vmatprep.subr.bf16.mxu1 %v8159_v8  ;;  %v8252_v8 = vld [vmem:[%s11971_s5 + $0x1bc] ss:$24 sps:$4 sm:$0xff]   ;;  %v8287_v9 = vld [vmem:[%s11971_s5 + $0x360] ss:$24 sps:$4 sm:$0xff]  }
 0x1dd   :  { %5665 = vmatpush1.bf16.msra.mxu0 %v8224_v10  ;;  %v8291_v10 = vld [vmem:[%s11971_s5 + $0x394] ss:$24 sps:$4 sm:$0xff]  }
 0x1de   :  { %5585 = vmatpush1.bf16.msra.mxu1 %v8161_v12  ;;  %5667 = vmatprep.subr.bf16.mxu0 %v8228_v11  ;;  %v8254_v12 = vld [vmem:[%s11971_s5 + $0x1b8] ss:$24 sps:$4 sm:$0xff]   ;;  %v8255_v11 = vld [vmem:[%s11971_s5 + $0x1ec] ss:$24 sps:$4 sm:$0xff]  }
 0x1df   :  { %5587 = vmatprep.subr.bf16.mxu1 %v8165_v14  ;;  %v8293_v14 = vld [vmem:[%s11971_s5 + $0x390] ss:$24 sps:$4 sm:$0xff]  }
 0x1e1   :  { %5669 = vmatpush1.bf16.msra.mxu0 %v8230_v15  ;;  %v8297_v15 = vld [vmem:[%s11971_s5 + $0x3c4] ss:$24 sps:$4 sm:$0xff]  }
 0x1e2   :  { %5589 = vmatpush1.bf16.msra.mxu1 %v8167_v16  ;;  %5671 = vmatprep.subr.bf16.mxu0 %v8234_v17  ;;  %v8257_v16 = vld [vmem:[%s11971_s5 + $0x1e8] ss:$24 sps:$4 sm:$0xff]   ;;  %v8258_v17 = vld [vmem:[%s11971_s5 + $0x21c] ss:$24 sps:$4 sm:$0xff]  }
 0x1e3   :  { %5591 = vmatprep.subr.bf16.mxu1 %v8171_v19  ;;  %v8299_v19 = vld [vmem:[%s11971_s5 + $0x3c0] ss:$24 sps:$4 sm:$0xff]  }
 0x1e5   :  { %5673 = vmatpush1.bf16.msra.mxu0 %v8236_v20  ;;  %v8303_v20 = vld [vmem:[%s11971_s5 + $0x3f4] ss:$24 sps:$4 sm:$0xff]  }
 0x1e6   :  { %5593 = vmatpush1.bf16.msra.mxu1 %v8173_v21  ;;  %5675 = vmatprep.subr.bf16.mxu0 %v8240_v22  ;;  %v8260_v21 = vld [vmem:[%s11971_s5 + $0x218] ss:$24 sps:$4 sm:$0xff]   ;;  %v8261_v22 = vld [vmem:[%s11971_s5 + $0x24c] ss:$24 sps:$4 sm:$0xff]  }
 0x1e7   :  { %5595 = vmatprep.subr.bf16.mxu1 %v8177_v23  ;;  %v8305_v23 = vld [vmem:[%s11971_s5 + $0x3f0] ss:$24 sps:$4 sm:$0xff]  }
 0x1e9   :  { %5677 = vmatpush1.bf16.msra.mxu0 %v8242_v40  ;;  %v8309_v40 = vld [vmem:[%s11971_s5 + $0x424] ss:$24 sps:$4 sm:$0xff]  }
 0x1ea   :  { %5597 = vmatpush1.bf16.msra.mxu1 %v8179_v24  ;;  %5679 = vmatprep.subr.bf16.mxu0 %v8273_v25  ;;  %v8263_v24 = vld [vmem:[%s11971_s5 + $0x248] ss:$24 sps:$4 sm:$0xff]   ;;  %v8264_v25 = vld [vmem:[%s11971_s5 + $0x27c] ss:$24 sps:$4 sm:$0xff]  }
 0x1eb   :  { %5599 = vmatprep.subr.bf16.mxu1 %v8183_v26  ;;  %v8311_v26 = vld [vmem:[%s11971_s5 + $0x420] ss:$24 sps:$4 sm:$0xff]  }
 0x1ee   :  { %5601 = vmatpush1.bf16.msra.mxu1 %v8185_v27  ;;  %v8315_v27 = vld [vmem:[%s11971_s5 + $0x454] ss:$24 sps:$4 sm:$0xff]  }
 0x1ef   :  { %5603 = vmatprep.subr.bf16.mxu1 %v8189_v28  ;;  %v8266_v28 = vld [vmem:[%s11971_s5 + $0x278] ss:$24 sps:$4 sm:$0xff]  }
 0x1f2   :  { %5605 = vmatpush1.bf16.msra.mxu1 %v8191_v33  ;;  %v8267_v33 = vld [vmem:[%s11971_s5 + $0x2ac] ss:$24 sps:$4 sm:$0xff]  }
 0x1f3   :  { %5607 = vmatprep.subr.bf16.mxu1 %v8195_v34  ;;  %v8317_v34 = vld [vmem:[%s11971_s5 + $0x450] ss:$24 sps:$4 sm:$0xff]  }
 0x1f6   :  { %5609 = vmatpush1.bf16.msra.mxu1 %v8197_v35  ;;  %v8321_v35 = vld [vmem:[%s11971_s5 + $0x484] ss:$24 sps:$4 sm:$0xff]  }
 0x1f7   :  { %5611 = vmatprep.subr.bf16.mxu1 %v8201_v39  ;;  %v8269_v39 = vld [vmem:[%s11971_s5 + $0x2a8] ss:$24 sps:$4 sm:$0xff]  }
 0x1fa   :  { %5613 = vmatpush1.bf16.msra.mxu1 %v8203_v36  ;;  %v8270_v36 = vld [vmem:[%s11971_s5 + $0x2dc] ss:$24 sps:$4 sm:$0xff]  }
 0x1fb   :  { %5807 = vmatprep.subr.bf16.mxu1 %v8207_v57  ;;  %v8323_v57 = vld [vmem:[%s11971_s5 + $0x480] ss:$24 sps:$4 sm:$0xff]  }
 0x1fd   :  { %1889 = vmatmul.mubr.f32.vlgmr.msra.gmra.mrb[2].mxu1 %v9647_v13  ;;  %v8225_v13 = vld [vmem:[%s11971_s5 + $0x9c] ss:$24 sps:$4 sm:$0xff]  }
 0x1fe   :  { %5809 = vmatpush1.bf16.msra.mxu1 %v8209_v37  ;;  %v8327_v37 = vld [vmem:[%s11971_s5 + $0x4b4] ss:$24 sps:$4 sm:$0xff]  }
 0x1ff   :  { %5811 = vmatprep.subr.bf16.mxu1 %v8213_v38  ;;  %v8272_v38 = vld [vmem:[%s11971_s5 + $0x2d8] ss:$24 sps:$4 sm:$0xff]  }
 0x202   :  { %5813 = vmatpush1.bf16.msra.mxu1 %v8215_v41  ;;  %v8276_v41 = vld [vmem:[%s11971_s5 + $0x30c] ss:$24 sps:$4 sm:$0xff]  }
 0x203   :  { %5815 = vmatprep.subr.bf16.mxu1 %v8219_v42  ;;  %v8329_v42 = vld [vmem:[%s11971_s5 + $0x4b0] ss:$24 sps:$4 sm:$0xff]  }
 0x206   :  { %5817 = vmatpush1.bf16.msra.mxu1 %v8221_v43  ;;  %v8333_v43 = vld [vmem:[%s11971_s5 + $0x4e4] ss:$24 sps:$4 sm:$0xff]  }
 0x207   :  { %5819 = vmatprep.subr.bf16.mxu1 %v8225_v13  ;;  %v8278_v13 = vld [vmem:[%s11971_s5 + $0x308] ss:$24 sps:$4 sm:$0xff]  }
 0x20a   :  { %5821 = vmatpush1.bf16.msra.mxu1 %v8227_v44  ;;  %v8282_v44 = vld [vmem:[%s11971_s5 + $0x33c] ss:$24 sps:$4 sm:$0xff]  }
 0x20b   :  { %5823 = vmatprep.subr.bf16.mxu1 %v8231_v18  ;;  %v8335_v18 = vld [vmem:[%s11971_s5 + $0x4e0] ss:$24 sps:$4 sm:$0xff]  }
 0x20e   :  { %5825 = vmatpush1.bf16.msra.mxu1 %v8233_v50  ;;  %v8284_v50 = vld [vmem:[%s11971_s5 + $0x338] ss:$24 sps:$4 sm:$0xff]  }
 0x20f   :  { %v1464_v56 = vpop.f32.mrb[0].mxu1  ;;  %5827 = vmatprep.subr.bf16.mxu1 %v8237_v52  ;;  %v8341_v52 = vld [vmem:[%s11971_s5 + $0x510] ss:$24 sps:$4 sm:$0xff]  }
 0x210   :  { %v6767_v59 = vadd.f32 %v1464_v56, %v1323_v53  ;;  %v1466_v61 = vpop.f32.mrb[1].mxu1  ;;  %v8345_v53 = vld [vmem:[%s11971_s5 + $0x544] ss:$24 sps:$4 sm:$0xff]   ;;  %v8347_v56 = vld [vmem:[%s11971_s5 + $0x540] ss:$24 sps:$4 sm:$0xff]  }
 0x211   :  { %v6769_v62 = vadd.f32 %v1466_v61, %v1325_v55  ;;  %v8294_v55 = vld [vmem:[%s11971_s5 + $0x39c] ss:$24 sps:$4 sm:$0xff]   ;;  %v8300_v61 = vld [vmem:[%s11971_s5 + $0x3cc] ss:$24 sps:$4 sm:$0xff]  }
 0x212   :  { %5829 = vmatpush1.bf16.msra.mxu1 %v8239_v54  ;;  %v10273_v2 = vmax.f32 %v6767_v59, 0.0  ;;  %v8290_v54 = vld [vmem:[%s11971_s5 + $0x368] ss:$24 sps:$4 sm:$0xff]   ;;  %v8296_v59 = vld [vmem:[%s11971_s5 + $0x398] ss:$24 sps:$4 sm:$0xff]  }
 0x213   :  { %v10265_v0 = vmax.f32 %v6769_v62, 0.0  ;;  %5831 = vmatprep.subr.bf16.mxu1 %v8243_v58  ;;  %v8351_v58 = vld [vmem:[%s11971_s5 + $0x574] ss:$24 sps:$4 sm:$0xff]   ;;  %v8353_v62 = vld [vmem:[%s11971_s5 + $0x570] ss:$24 sps:$4 sm:$0xff]  }
 0x215   :  { %2861 = vmatprep.mubr.f32.mxu0 %v10265_v0  ;;  %3074 = vmatprep.mubr.f32.mxu1 %v10265_v0 }
 0x216   :  { %5833 = vmatpush1.bf16.msra.mxu1 %v8245_v47  ;;  %2862 = vmatmul.mubr.f32.vlgmr.msra.gmra.mrb[10].mxu0 %v10273_v2  ;;  %v8357_v47 = vld [vmem:[%s11971_s5 + $0x5a4] ss:$24 sps:$4 sm:$0xff]  }
 0x217   :  { %5835 = vmatprep.subr.bf16.mxu1 %v8246_v48  ;;  %5681 = vmatpush1.bf16.msra.mxu0 %v8275_v1  ;;  %v8302_v48 = vld [vmem:[%s11971_s5 + $0x3c8] ss:$24 sps:$4 sm:$0xff]   ;;  %v8306_v1 = vld [vmem:[%s11971_s5 + $0x3fc] ss:$24 sps:$4 sm:$0xff]  }
 0x218   :  { %5683 = vmatprep.subr.bf16.mxu0 %v8279_v29  ;;  %v8359_v29 = vld [vmem:[%s11971_s5 + $0x5a0] ss:$24 sps:$4 sm:$0xff]  }
 0x21a   :  { %5837 = vmatpush1.bf16.msra.mxu1 %v8248_v4  ;;  %v8363_v4 = vld [vmem:[%s11971_s5 + $0x5d4] ss:$24 sps:$4 sm:$0xff]  }
 0x21b   :  { %5839 = vmatprep.subr.bf16.mxu1 %v8249_v5  ;;  %5685 = vmatpush1.bf16.msra.mxu0 %v8281_v6  ;;  %v8308_v5 = vld [vmem:[%s11971_s5 + $0x3f8] ss:$24 sps:$4 sm:$0xff]   ;;  %v8312_v6 = vld [vmem:[%s11971_s5 + $0x42c] ss:$24 sps:$4 sm:$0xff]  }
 0x21c   :  { %5687 = vmatprep.subr.bf16.mxu0 %v8285_v7  ;;  %v8365_v7 = vld [vmem:[%s11971_s5 + $0x5d0] ss:$24 sps:$4 sm:$0xff]  }
 0x21e   :  { %5841 = vmatpush1.bf16.msra.mxu1 %v8251_v31  ;;  %v8369_v31 = vld [vmem:[%s11971_s5 + $0x604] ss:$24 sps:$4 sm:$0xff]  }
 0x21f   :  { %5843 = vmatprep.subr.bf16.mxu1 %v8252_v8  ;;  %5689 = vmatpush1.bf16.msra.mxu0 %v8287_v9  ;;  %v8314_v8 = vld [vmem:[%s11971_s5 + $0x428] ss:$24 sps:$4 sm:$0xff]   ;;  %v8318_v9 = vld [vmem:[%s11971_s5 + $0x45c] ss:$24 sps:$4 sm:$0xff]  }
 0x220   :  { %5691 = vmatprep.subr.bf16.mxu0 %v8291_v10  ;;  %v8320_v10 = vld [vmem:[%s11971_s5 + $0x458] ss:$24 sps:$4 sm:$0xff]  }
 0x222   :  { %5845 = vmatpush1.bf16.msra.mxu1 %v8254_v12  ;;  %v8324_v12 = vld [vmem:[%s11971_s5 + $0x48c] ss:$24 sps:$4 sm:$0xff]  }
 0x223   :  { %5847 = vmatprep.subr.bf16.mxu1 %v8255_v11  ;;  %5693 = vmatpush1.bf16.msra.mxu0 %v8293_v14  ;;  %v8326_v11 = vld [vmem:[%s11971_s5 + $0x488] ss:$24 sps:$4 sm:$0xff]   ;;  %v8330_v14 = vld [vmem:[%s11971_s5 + $0x4bc] ss:$24 sps:$4 sm:$0xff]  }
 0x224   :  { %5695 = vmatprep.subr.bf16.mxu0 %v8297_v15  ;;  %v8332_v15 = vld [vmem:[%s11971_s5 + $0x4b8] ss:$24 sps:$4 sm:$0xff]  }
 0x226   :  { %5849 = vmatpush1.bf16.msra.mxu1 %v8257_v16  ;;  %v8336_v16 = vld [vmem:[%s11971_s5 + $0x4ec] ss:$24 sps:$4 sm:$0xff]  }
 0x227   :  { %5851 = vmatprep.subr.bf16.mxu1 %v8258_v17  ;;  %5697 = vmatpush1.bf16.msra.mxu0 %v8299_v19  ;;  %v8338_v17 = vld [vmem:[%s11971_s5 + $0x4e8] ss:$24 sps:$4 sm:$0xff]   ;;  %v8342_v19 = vld [vmem:[%s11971_s5 + $0x51c] ss:$24 sps:$4 sm:$0xff]  }
 0x228   :  { %5699 = vmatprep.subr.bf16.mxu0 %v8303_v20  ;;  %v8344_v20 = vld [vmem:[%s11971_s5 + $0x518] ss:$24 sps:$4 sm:$0xff]  }
 0x22a   :  { %5853 = vmatpush1.bf16.msra.mxu1 %v8260_v21  ;;  %v8348_v21 = vld [vmem:[%s11971_s5 + $0x54c] ss:$24 sps:$4 sm:$0xff]  }
 0x22b   :  { %5855 = vmatprep.subr.bf16.mxu1 %v8261_v22  ;;  %5701 = vmatpush1.bf16.msra.mxu0 %v8305_v23  ;;  %v8350_v22 = vld [vmem:[%s11971_s5 + $0x548] ss:$24 sps:$4 sm:$0xff]   ;;  %v8354_v23 = vld [vmem:[%s11971_s5 + $0x57c] ss:$24 sps:$4 sm:$0xff]  }
 0x22c   :  { %5703 = vmatprep.subr.bf16.mxu0 %v8309_v40  ;;  %v8356_v40 = vld [vmem:[%s11971_s5 + $0x578] ss:$24 sps:$4 sm:$0xff]  }
 0x22e   :  { %5857 = vmatpush1.bf16.msra.mxu1 %v8263_v24  ;;  %v8360_v24 = vld [vmem:[%s11971_s5 + $0x5ac] ss:$24 sps:$4 sm:$0xff]  }
 0x22f   :  { %5859 = vmatprep.subr.bf16.mxu1 %v8264_v25  ;;  %5705 = vmatpush1.bf16.msra.mxu0 %v8311_v26  ;;  %v8362_v25 = vld [vmem:[%s11971_s5 + $0x5a8] ss:$24 sps:$4 sm:$0xff]   ;;  %v8366_v26 = vld [vmem:[%s11971_s5 + $0x5dc] ss:$24 sps:$4 sm:$0xff]  }
 0x230   :  { %5707 = vmatprep.subr.bf16.mxu0 %v8315_v27  ;;  %v8368_v27 = vld [vmem:[%s11971_s5 + $0x5d8] ss:$24 sps:$4 sm:$0xff]  }
 0x232   :  { %5861 = vmatpush1.bf16.msra.mxu1 %v8266_v28  ;;  %v8372_v28 = vld [vmem:[%s11971_s5 + $0x60c] ss:$24 sps:$4 sm:$0xff]  }
 0x233   :  { %5863 = vmatprep.subr.bf16.mxu1 %v8267_v33  ;;  %5709 = vmatpush1.bf16.msra.mxu0 %v8317_v34  ;;  %v1237_v33 = vrot.slane %v10239_v60, %v9410_v45  ;;  %v1241_v34 = vrot.slane %v10239_v60, %v9413_v46 }
 0x234   :  { %5711 = vmatprep.subr.bf16.mxu0 %v8321_v35 }
 0x236   :  { %5865 = vmatpush1.bf16.msra.mxu1 %v8269_v39 }
 0x237   :  { %5867 = vmatprep.subr.bf16.mxu1 %v8270_v36  ;;  %5713 = vmatpush1.bf16.msra.mxu0 %v8323_v57 }
 0x238   :  { %5715 = vmatprep.subr.bf16.mxu0 %v8327_v37 }
 0x23a   :  { %5869 = vmatpush1.bf16.msra.mxu1 %v8272_v38  ;;  %v8371_v38 = vld [vmem:[%s11971_s5 + $0x600] ss:$24 sps:$4 sm:$0xff]  }
 0x23b   :  { %5871 = vmatprep.subr.bf16.mxu1 %v8276_v41  ;;  %5717 = vmatpush1.bf16.msra.mxu0 %v8329_v42  ;;  %v8374_v41 = vld [vmem:[%s11971_s5 + $0x608] ss:$24 sps:$4 sm:$0xff]  }
 0x23c   :  { %5719 = vmatprep.subr.bf16.mxu0 %v8333_v43  ;;  %v8375_v43 = vld [vmem:[%s11971_s5 + $0x634] ss:$24 sps:$4 sm:$0xff]  }
 0x23d   :  { %3075 = vmatmul.mubr.f32.vlgmr.msra.gmra.mrb[4].mxu1 %v10273_v2 }
 0x23e   :  { %5873 = vmatpush1.bf16.msra.mxu1 %v8278_v13  ;;  %v8378_v13 = vld [vmem:[%s11971_s5 + $0x63c] ss:$24 sps:$4 sm:$0xff]  }
 0x23f   :  { %5875 = vmatprep.subr.bf16.mxu1 %v8282_v44  ;;  %5721 = vmatpush1.bf16.msra.mxu0 %v8335_v18  ;;  %v8377_v44 = vld [vmem:[%s11971_s5 + $0x630] ss:$24 sps:$4 sm:$0xff]  }
 0x240   :  { %5723 = vmatprep.subr.bf16.mxu0 %v8339_v49  ;;  %v8380_v18 = vld [vmem:[%s11971_s5 + $0x638] ss:$24 sps:$4 sm:$0xff]   ;;  %v8381_v49 = vld [vmem:[%s11971_s5 + $0x664] ss:$24 sps:$4 sm:$0xff]  }
 0x242   :  { %5877 = vmatpush1.bf16.msra.mxu1 %v8284_v50  ;;  %v8384_v50 = vld [vmem:[%s11971_s5 + $0x66c] ss:$24 sps:$4 sm:$0xff]  }
 0x243   :  { %5879 = vmatprep.subr.bf16.mxu1 %v8288_v51  ;;  %5725 = vmatpush1.bf16.msra.mxu0 %v8341_v52  ;;  %v8383_v51 = vld [vmem:[%s11971_s5 + $0x660] ss:$24 sps:$4 sm:$0xff]  }
 0x244   :  { %5727 = vmatprep.subr.bf16.mxu0 %v8345_v53  ;;  %v8386_v52 = vld [vmem:[%s11971_s5 + $0x668] ss:$24 sps:$4 sm:$0xff]   ;;  %v8387_v53 = vld [vmem:[%s11971_s5 + $0x694] ss:$24 sps:$4 sm:$0xff]  }
 0x246   :  { %5881 = vmatpush1.bf16.msra.mxu1 %v8290_v54  ;;  %v8390_v54 = vld [vmem:[%s11971_s5 + $0x69c] ss:$24 sps:$4 sm:$0xff]  }
 0x247   :  { %5883 = vmatprep.subr.bf16.mxu1 %v8294_v55  ;;  %5729 = vmatpush1.bf16.msra.mxu0 %v8347_v56  ;;  %v8389_v55 = vld [vmem:[%s11971_s5 + $0x690] ss:$24 sps:$4 sm:$0xff]  }
 0x248   :  { %5731 = vmatprep.subr.bf16.mxu0 %v8351_v58  ;;  %v8392_v56 = vld [vmem:[%s11971_s5 + $0x698] ss:$24 sps:$4 sm:$0xff]   ;;  %v8393_v58 = vld [vmem:[%s11971_s5 + $0x6c4] ss:$24 sps:$4 sm:$0xff]  }
 0x24a   :  { %5885 = vmatpush1.bf16.msra.mxu1 %v8296_v59  ;;  %v8396_v59 = vld [vmem:[%s11971_s5 + $0x6cc] ss:$24 sps:$4 sm:$0xff]  }
 0x24b   :  { %5887 = vmatprep.subr.bf16.mxu1 %v8300_v61  ;;  %5733 = vmatpush1.bf16.msra.mxu0 %v8353_v62  ;;  %v8395_v61 = vld [vmem:[%s11971_s5 + $0x6c0] ss:$24 sps:$4 sm:$0xff]  }
 0x24c   :  { %5735 = vmatprep.subr.bf16.mxu0 %v8357_v47  ;;  %v8398_v62 = vld [vmem:[%s11971_s5 + $0x6c8] ss:$24 sps:$4 sm:$0xff]   ;;  %v8399_v47 = vld [vmem:[%s11971_s5 + $0x6f4] ss:$24 sps:$4 sm:$0xff]  }
 0x24e   :  { %5889 = vmatpush1.bf16.msra.mxu1 %v8302_v48  ;;  %v8402_v48 = vld [vmem:[%s11971_s5 + $0x6fc] ss:$24 sps:$4 sm:$0xff]  }
 0x24f   :  { %5891 = vmatprep.subr.bf16.mxu1 %v8306_v1  ;;  %5737 = vmatpush1.bf16.msra.mxu0 %v8359_v29  ;;  %v8401_v1 = vld [vmem:[%s11971_s5 + $0x6f0] ss:$24 sps:$4 sm:$0xff]  }
 0x250   :  { %5739 = vmatprep.subr.bf16.mxu0 %v8363_v4  ;;  %v8404_v29 = vld [vmem:[%s11971_s5 + $0x6f8] ss:$24 sps:$4 sm:$0xff]   ;;  %v8405_v4 = vld [vmem:[%s11971_s5 + $0x724] ss:$24 sps:$4 sm:$0xff]  }
 0x252   :  { %5893 = vmatpush1.bf16.msra.mxu1 %v8308_v5  ;;  %v8408_v5 = vld [vmem:[%s11971_s5 + $0x72c] ss:$24 sps:$4 sm:$0xff]  }
 0x253   :  { %5895 = vmatprep.subr.bf16.mxu1 %v8312_v6  ;;  %5741 = vmatpush1.bf16.msra.mxu0 %v8365_v7  ;;  %v8407_v6 = vld [vmem:[%s11971_s5 + $0x720] ss:$24 sps:$4 sm:$0xff]  }
 0x254   :  { %5743 = vmatprep.subr.bf16.mxu0 %v8369_v31  ;;  %v8410_v7 = vld [vmem:[%s11971_s5 + $0x728] ss:$24 sps:$4 sm:$0xff]   ;;  %v8411_v31 = vld [vmem:[%s11971_s5 + $0x754] ss:$24 sps:$4 sm:$0xff]  }
 0x256   :  { %5897 = vmatpush1.bf16.msra.mxu1 %v8314_v8  ;;  %v8414_v8 = vld [vmem:[%s11971_s5 + $0x75c] ss:$24 sps:$4 sm:$0xff]  }
 0x257   :  { %5899 = vmatprep.subr.bf16.mxu1 %v8318_v9  ;;  %v8413_v9 = vld [vmem:[%s11971_s5 + $0x750] ss:$24 sps:$4 sm:$0xff]  }
 0x25a   :  { %5901 = vmatpush1.bf16.msra.mxu1 %v8320_v10  ;;  %v8416_v10 = vld [vmem:[%s11971_s5 + $0x758] ss:$24 sps:$4 sm:$0xff]  }
 0x25b   :  { %5903 = vmatprep.subr.bf16.mxu1 %v8324_v12  ;;  %v8417_v12 = vld [vmem:[%s11971_s5 + $0x784] ss:$24 sps:$4 sm:$0xff]  }
 0x25e   :  { %5905 = vmatpush1.bf16.msra.mxu1 %v8326_v11  ;;  %v8420_v11 = vld [vmem:[%s11971_s5 + $0x78c] ss:$24 sps:$4 sm:$0xff]  }
 0x25f   :  { %5907 = vmatprep.subr.bf16.mxu1 %v8330_v14  ;;  %v8419_v14 = vld [vmem:[%s11971_s5 + $0x780] ss:$24 sps:$4 sm:$0xff]  }
 0x262   :  { %5909 = vmatpush1.bf16.msra.mxu1 %v8332_v15  ;;  %v8422_v15 = vld [vmem:[%s11971_s5 + $0x788] ss:$24 sps:$4 sm:$0xff]  }
 0x263   :  { %5911 = vmatprep.subr.bf16.mxu1 %v8336_v16  ;;  %v8423_v16 = vld [vmem:[%s11971_s5 + $0x7b4] ss:$24 sps:$4 sm:$0xff]  }
 0x266   :  { %5913 = vmatpush1.bf16.msra.mxu1 %v8338_v17  ;;  %v8426_v17 = vld [vmem:[%s11971_s5 + $0x7bc] ss:$24 sps:$4 sm:$0xff]  }
 0x267   :  { %5915 = vmatprep.subr.bf16.mxu1 %v8342_v19  ;;  %v8425_v19 = vld [vmem:[%s11971_s5 + $0x7b0] ss:$24 sps:$4 sm:$0xff]  }
 0x26a   :  { %5917 = vmatpush1.bf16.msra.mxu1 %v8344_v20  ;;  %v8428_v20 = vld [vmem:[%s11971_s5 + $0x7b8] ss:$24 sps:$4 sm:$0xff]  }
 0x26b   :  { %5919 = vmatprep.subr.bf16.mxu1 %v8348_v21  ;;  %v8429_v21 = vld [vmem:[%s11971_s5 + $0x7e4] ss:$24 sps:$4 sm:$0xff]  }
 0x26e   :  { %5921 = vmatpush1.bf16.msra.mxu1 %v8350_v22  ;;  %v8432_v22 = vld [vmem:[%s11971_s5 + $0x7ec] ss:$24 sps:$4 sm:$0xff]  }
 0x26f   :  { %5923 = vmatprep.subr.bf16.mxu1 %v8354_v23  ;;  %v8431_v23 = vld [vmem:[%s11971_s5 + $0x7e0] ss:$24 sps:$4 sm:$0xff]  }
 0x272   :  { %5925 = vmatpush1.bf16.msra.mxu1 %v8356_v40  ;;  %v8434_v40 = vld [vmem:[%s11971_s5 + $0x7e8] ss:$24 sps:$4 sm:$0xff]  }
 0x273   :  { %5927 = vmatprep.subr.bf16.mxu1 %v8360_v24  ;;  %v8435_v24 = vld [vmem:[%s11971_s5 + $0x814] ss:$24 sps:$4 sm:$0xff]  }
 0x276   :  { %5929 = vmatpush1.bf16.msra.mxu1 %v8362_v25  ;;  %v8438_v25 = vld [vmem:[%s11971_s5 + $0x81c] ss:$24 sps:$4 sm:$0xff]  }
 0x277   :  { %5931 = vmatprep.subr.bf16.mxu1 %v8366_v26  ;;  %v8437_v26 = vld [vmem:[%s11971_s5 + $0x810] ss:$24 sps:$4 sm:$0xff]  }
 0x27a   :  { %5933 = vmatpush1.bf16.msra.mxu1 %v8368_v27  ;;  %v8440_v27 = vld [vmem:[%s11971_s5 + $0x818] ss:$24 sps:$4 sm:$0xff]  }
 0x27b   :  { %5935 = vmatprep.subr.bf16.mxu1 %v8372_v28  ;;  %v8441_v28 = vld [vmem:[%s11971_s5 + $0x844] ss:$24 sps:$4 sm:$0xff]  }
 0x27f   :  { %v1677_v35 = vpop.f32.mrb[8].mxu0 }
 0x280   :  { %v6770_v39 = vadd.f32 %v1677_v35, %v1237_v33  ;;  %v1679_v36 = vpop.f32.mrb[9].mxu0  ;;  %v8444_v33 = vld [vmem:[%s11971_s5 + $0x84c] ss:$24 sps:$4 sm:$0xff]   ;;  %v8446_v35 = vld [vmem:[%s11971_s5 + $0x848] ss:$24 sps:$4 sm:$0xff]  }
 0x281   :  { %v6771_v57 = vadd.f32 %v1679_v36, %v1241_v34  ;;  %v8443_v34 = vld [vmem:[%s11971_s5 + $0x840] ss:$24 sps:$4 sm:$0xff]   ;;  %v8450_v36 = vld [vmem:[%s11971_s5 + $0x87c] ss:$24 sps:$4 sm:$0xff]  }
 0x282   :  { %v10534_v42 = vmax.f32 %v6770_v39, 0.0  ;;  %v8447_v39 = vld [vmem:[%s11971_s5 + $0x874] ss:$24 sps:$4 sm:$0xff]  }
 0x283   :  { %v10526_v37 = vmax.f32 %v6771_v57, 0.0  ;;  %v8449_v57 = vld [vmem:[%s11971_s5 + $0x870] ss:$24 sps:$4 sm:$0xff]  }
 0x285   :  { %2932 = vmatprep.mubr.f32.mxu0 %v10526_v37  ;;  %3145 = vmatprep.mubr.f32.mxu1 %v10526_v37 }
 0x286   :  { %2933 = vmatmul.mubr.f32.vlgmr.msra.gmra.mrb[10].mxu0 %v10534_v42  ;;  %3146 = vmatmul.mubr.f32.vlgmr.msra.gmra.mrb[4].mxu1 %v10534_v42 }
 0x287   :  { %5745 = vmatpush1.bf16.msra.mxu0 %v8371_v38  ;;  %5937 = vmatpush1.bf16.msra.mxu1 %v8374_v41  ;;  %v8452_v38 = vld [vmem:[%s11971_s5 + $0x878] ss:$24 sps:$4 sm:$0xff]   ;;  %v8453_v41 = vld [vmem:[%s11971_s5 + $0x8a4] ss:$24 sps:$4 sm:$0xff]  }
 0x288   :  { %5747 = vmatprep.subr.bf16.mxu0 %v8375_v43  ;;  %5939 = vmatprep.subr.bf16.mxu1 %v8378_v13  ;;  %v8456_v43 = vld [vmem:[%s11971_s5 + $0x8ac] ss:$24 sps:$4 sm:$0xff]   ;;  %v8455_v13 = vld [vmem:[%s11971_s5 + $0x8a0] ss:$24 sps:$4 sm:$0xff]  }
 0x28b   :  { %5749 = vmatpush1.bf16.msra.mxu0 %v8377_v44  ;;  %5941 = vmatpush1.bf16.msra.mxu1 %v8380_v18  ;;  %v8458_v44 = vld [vmem:[%s11971_s5 + $0x8a8] ss:$24 sps:$4 sm:$0xff]   ;;  %v8459_v18 = vld [vmem:[%s11971_s5 + $0x8d4] ss:$24 sps:$4 sm:$0xff]  }
 0x28c   :  { %5751 = vmatprep.subr.bf16.mxu0 %v8381_v49  ;;  %5943 = vmatprep.subr.bf16.mxu1 %v8384_v50  ;;  %v8462_v49 = vld [vmem:[%s11971_s5 + $0x8dc] ss:$24 sps:$4 sm:$0xff]   ;;  %v8461_v50 = vld [vmem:[%s11971_s5 + $0x8d0] ss:$24 sps:$4 sm:$0xff]  }
 0x28f   :  { %5753 = vmatpush1.bf16.msra.mxu0 %v8383_v51  ;;  %5945 = vmatpush1.bf16.msra.mxu1 %v8386_v52  ;;  %v8464_v51 = vld [vmem:[%s11971_s5 + $0x8d8] ss:$24 sps:$4 sm:$0xff]   ;;  %v8465_v52 = vld [vmem:[%s11971_s5 + $0x14] ss:$24 sps:$4 sm:$0xff]  }
 0x290   :  { %5755 = vmatprep.subr.bf16.mxu0 %v8387_v53  ;;  %5947 = vmatprep.subr.bf16.mxu1 %v8390_v54  ;;  %v1245_v53 = vrot.slane %v10239_v60, %v9605_v63  ;;  %v1249_v54 = vrot.slane %v10239_v60, %v9462_v3  ;;  %v8470_v60 = vld [vmem:[%s11971_s5 + $0x40] ss:$24 sps:$4 sm:$0xff]  }
 0x293   :  { %5757 = vmatpush1.bf16.msra.mxu0 %v8389_v55  ;;  %5949 = vmatpush1.bf16.msra.mxu1 %v8392_v56 }
 0x294   :  { %5759 = vmatprep.subr.bf16.mxu0 %v8393_v58  ;;  %5951 = vmatprep.subr.bf16.mxu1 %v8396_v59 }
 0x297   :  { %5761 = vmatpush1.bf16.msra.mxu0 %v8395_v61  ;;  %5953 = vmatpush1.bf16.msra.mxu1 %v8398_v62  ;;  %v8467_v62 = vld [vmem:[%s11971_s5 + $0x10] ss:$24 sps:$4 sm:$0xff]  }
 0x298   :  { %5763 = vmatprep.subr.bf16.mxu0 %v8399_v47  ;;  %5955 = vmatprep.subr.bf16.mxu1 %v8402_v48  ;;  %v8468_v48 = vld [vmem:[%s11971_s5 + $0x44] ss:$24 sps:$4 sm:$0xff]  }
 0x29b   :  { %5765 = vmatpush1.bf16.msra.mxu0 %v8401_v1  ;;  %5957 = vmatpush1.bf16.msra.mxu1 %v8404_v29  ;;  %v8471_v1 = vld [vmem:[%s11971_s5 + $0x74] ss:$24 sps:$4 sm:$0xff]   ;;  %v8473_v29 = vld [vmem:[%s11971_s5 + $0x70] ss:$24 sps:$4 sm:$0xff]  }
 0x29c   :  { %5767 = vmatprep.subr.bf16.mxu0 %v8405_v4  ;;  %5959 = vmatprep.subr.bf16.mxu1 %v8408_v5  ;;  %v8474_v4 = vld [vmem:[%s11971_s5 + $0xa4] ss:$24 sps:$4 sm:$0xff]   ;;  %v8477_v5 = vld [vmem:[%s11971_s5 + $0xd4] ss:$24 sps:$4 sm:$0xff]  }
 0x29f   :  { %5769 = vmatpush1.bf16.msra.mxu0 %v8407_v6  ;;  %5961 = vmatpush1.bf16.msra.mxu1 %v8410_v7  ;;  %v8479_v6 = vld [vmem:[%s11971_s5 + $0xd0] ss:$24 sps:$4 sm:$0xff]   ;;  %v8480_v7 = vld [vmem:[%s11971_s5 + $0x104] ss:$24 sps:$4 sm:$0xff]  }
 0x2a0   :  { %5771 = vmatprep.subr.bf16.mxu0 %v8411_v31  ;;  %5963 = vmatprep.subr.bf16.mxu1 %v8414_v8  ;;  %v8482_v31 = vld [vmem:[%s11971_s5 + $0x100] ss:$24 sps:$4 sm:$0xff]   ;;  %v8483_v8 = vld [vmem:[%s11971_s5 + $0x134] ss:$24 sps:$4 sm:$0xff]  }
 0x2a3   :  { %5773 = vmatpush1.bf16.msra.mxu0 %v8413_v9  ;;  %5965 = vmatpush1.bf16.msra.mxu1 %v8416_v10  ;;  %v8485_v9 = vld [vmem:[%s11971_s5 + $0x130] ss:$24 sps:$4 sm:$0xff]   ;;  %v8486_v10 = vld [vmem:[%s11971_s5 + $0x164] ss:$24 sps:$4 sm:$0xff]  }
 0x2a4   :  { %5775 = vmatprep.subr.bf16.mxu0 %v8417_v12  ;;  %5967 = vmatprep.subr.bf16.mxu1 %v8420_v11  ;;  %v8582_v12 = vld [vmem:[%s11973_s7 + $0x4] ss:$24 sps:$4 sm:$0xff]   ;;  %v8488_v11 = vld [vmem:[%s11971_s5 + $0x160] ss:$24 sps:$4 sm:$0xff]  }
 0x2a7   :  { %5777 = vmatpush1.bf16.msra.mxu0 %v8419_v14  ;;  %5969 = vmatpush1.bf16.msra.mxu1 %v8422_v15  ;;  %v8584_v14 = vld [vmem:[%s11973_s7] ss:$24 sps:$4 sm:$0xff]   ;;  %v8489_v15 = vld [vmem:[%s11971_s5 + $0x194] ss:$24 sps:$4 sm:$0xff]  }
 0x2a8   :  { %5779 = vmatprep.subr.bf16.mxu0 %v8423_v16  ;;  %5971 = vmatprep.subr.bf16.mxu1 %v8426_v17  ;;  %v8588_v16 = vld [vmem:[%s11973_s7 + $0x34] ss:$24 sps:$4 sm:$0xff]   ;;  %v8491_v17 = vld [vmem:[%s11971_s5 + $0x190] ss:$24 sps:$4 sm:$0xff]  }
 0x2ab   :  { %5781 = vmatpush1.bf16.msra.mxu0 %v8425_v19  ;;  %5973 = vmatpush1.bf16.msra.mxu1 %v8428_v20  ;;  %v8590_v19 = vld [vmem:[%s11973_s7 + $0x30] ss:$24 sps:$4 sm:$0xff]   ;;  %v8492_v20 = vld [vmem:[%s11971_s5 + $0x1c4] ss:$24 sps:$4 sm:$0xff]  }
 0x2ac   :  { %5783 = vmatprep.subr.bf16.mxu0 %v8429_v21  ;;  %5975 = vmatprep.subr.bf16.mxu1 %v8432_v22  ;;  %v8594_v21 = vld [vmem:[%s11973_s7 + $0x64] ss:$24 sps:$4 sm:$0xff]   ;;  %v8494_v22 = vld [vmem:[%s11971_s5 + $0x1c0] ss:$24 sps:$4 sm:$0xff]  }
 0x2af   :  { %5785 = vmatpush1.bf16.msra.mxu0 %v8431_v23  ;;  %5977 = vmatpush1.bf16.msra.mxu1 %v8434_v40  ;;  %v8596_v23 = vld [vmem:[%s11973_s7 + $0x60] ss:$24 sps:$4 sm:$0xff]   ;;  %v8495_v40 = vld [vmem:[%s11971_s5 + $0x1f4] ss:$24 sps:$4 sm:$0xff]  }
 0x2b0   :  { %5787 = vmatprep.subr.bf16.mxu0 %v8435_v24  ;;  %5979 = vmatprep.subr.bf16.mxu1 %v8438_v25  ;;  %v8600_v24 = vld [vmem:[%s11973_s7 + $0x94] ss:$24 sps:$4 sm:$0xff]   ;;  %v8497_v25 = vld [vmem:[%s11971_s5 + $0x1f0] ss:$24 sps:$4 sm:$0xff]  }
 0x2b3   :  { %5789 = vmatpush1.bf16.msra.mxu0 %v8437_v26  ;;  %5981 = vmatpush1.bf16.msra.mxu1 %v8440_v27  ;;  %v8602_v26 = vld [vmem:[%s11973_s7 + $0x90] ss:$24 sps:$4 sm:$0xff]   ;;  %v8498_v27 = vld [vmem:[%s11971_s5 + $0x224] ss:$24 sps:$4 sm:$0xff]  }
 0x2b4   :  { %5791 = vmatprep.subr.bf16.mxu0 %v8441_v28  ;;  %5983 = vmatprep.subr.bf16.mxu1 %v8444_v33  ;;  %v8606_v28 = vld [vmem:[%s11973_s7 + $0xc4] ss:$24 sps:$4 sm:$0xff]   ;;  %v8500_v33 = vld [vmem:[%s11971_s5 + $0x220] ss:$24 sps:$4 sm:$0xff]  }
 0x2b7   :  { %5793 = vmatpush1.bf16.msra.mxu0 %v8443_v34  ;;  %5985 = vmatpush1.bf16.msra.mxu1 %v8446_v35  ;;  %v8608_v34 = vld [vmem:[%s11973_s7 + $0xc0] ss:$24 sps:$4 sm:$0xff]   ;;  %v8501_v35 = vld [vmem:[%s11971_s5 + $0x254] ss:$24 sps:$4 sm:$0xff]  }
 0x2b8   :  { %5795 = vmatprep.subr.bf16.mxu0 %v8447_v39  ;;  %5987 = vmatprep.subr.bf16.mxu1 %v8450_v36  ;;  %v8612_v39 = vld [vmem:[%s11973_s7 + $0xf4] ss:$24 sps:$4 sm:$0xff]   ;;  %v8503_v36 = vld [vmem:[%s11971_s5 + $0x250] ss:$24 sps:$4 sm:$0xff]  }
 0x2bb   :  { %5797 = vmatpush1.bf16.msra.mxu0 %v8449_v57  ;;  %5989 = vmatpush1.bf16.msra.mxu1 %v8452_v38  ;;  %v8614_v57 = vld [vmem:[%s11973_s7 + $0xf0] ss:$24 sps:$4 sm:$0xff]   ;;  %v8504_v38 = vld [vmem:[%s11971_s5 + $0x284] ss:$24 sps:$4 sm:$0xff]  }
 0x2bc   :  { %5799 = vmatprep.subr.bf16.mxu0 %v8453_v41  ;;  %5991 = vmatprep.subr.bf16.mxu1 %v8456_v43  ;;  %v8618_v41 = vld [vmem:[%s11973_s7 + $0x124] ss:$24 sps:$4 sm:$0xff]   ;;  %v8506_v43 = vld [vmem:[%s11971_s5 + $0x280] ss:$24 sps:$4 sm:$0xff]  }
 0x2bf   :  { %5801 = vmatpush1.bf16.msra.mxu0 %v8455_v13  ;;  %5993 = vmatpush1.bf16.msra.mxu1 %v8458_v44  ;;  %v8620_v13 = vld [vmem:[%s11973_s7 + $0x120] ss:$24 sps:$4 sm:$0xff]   ;;  %v8507_v44 = vld [vmem:[%s11971_s5 + $0x2b4] ss:$24 sps:$4 sm:$0xff]  }
 0x2c0   :  { %5803 = vmatprep.subr.bf16.mxu0 %v8459_v18  ;;  %5995 = vmatprep.subr.bf16.mxu1 %v8462_v49  ;;  %v8624_v18 = vld [vmem:[%s11973_s7 + $0x154] ss:$24 sps:$4 sm:$0xff]   ;;  %v8509_v49 = vld [vmem:[%s11971_s5 + $0x2b0] ss:$24 sps:$4 sm:$0xff]  }
 0x2c3   :  { %5805 = vmatpush1.bf16.msra.mxu0 %v8461_v50  ;;  %5997 = vmatpush1.bf16.msra.mxu1 %v8464_v51  ;;  %v8626_v50 = vld [vmem:[%s11973_s7 + $0x150] ss:$24 sps:$4 sm:$0xff]   ;;  %v8510_v51 = vld [vmem:[%s11971_s5 + $0x2e4] ss:$24 sps:$4 sm:$0xff]  }
 0x2c4   :  { %5999 = vmatprep.subr.bf16.mxu0 %v8465_v52  ;;  %6191 = vmatprep.subr.bf16.mxu1 %v8582_v12  ;;  %v8630_v52 = vld [vmem:[%s11973_s7 + $0x184] ss:$24 sps:$4 sm:$0xff]  }
 0x2c5   :  { %v8528_v12 = vld [vmem:[%s11971_s5 + $0x404] ss:$24 sps:$4 sm:$0xff]  }
 0x2d0   :  { %v1890_v55 = vpop.f32.mrb[2].mxu1 }
 0x2d1   :  { %v6772_v56 = vadd.f32 %v1890_v55, %v1245_v53  ;;  %v1892_v58 = vpop.f32.mrb[3].mxu1  ;;  %v8512_v53 = vld [vmem:[%s11971_s5 + $0x2e0] ss:$24 sps:$4 sm:$0xff]   ;;  %v8513_v55 = vld [vmem:[%s11971_s5 + $0x314] ss:$24 sps:$4 sm:$0xff]  }
 0x2d2   :  { %v6773_v59 = vadd.f32 %v1892_v58, %v1249_v54  ;;  %v8632_v54 = vld [vmem:[%s11973_s7 + $0x180] ss:$24 sps:$4 sm:$0xff]   ;;  %v8636_v58 = vld [vmem:[%s11973_s7 + $0x1b4] ss:$24 sps:$4 sm:$0xff]  }
 0x2d3   :  { %v10732_v47 = vmax.f32 %v6772_v56, 0.0  ;;  %v8515_v56 = vld [vmem:[%s11971_s5 + $0x310] ss:$24 sps:$4 sm:$0xff]  }
 0x2d4   :  { %v10727_v61 = vmax.f32 %v6773_v59, 0.0  ;;  %v8638_v59 = vld [vmem:[%s11973_s7 + $0x1b0] ss:$24 sps:$4 sm:$0xff]  }
 0x2d6   :  { %3003 = vmatprep.mubr.f32.mxu0 %v10727_v61  ;;  %3216 = vmatprep.mubr.f32.mxu1 %v10727_v61 }
 0x2d7   :  { %3004 = vmatmul.mubr.f32.vlgmr.msra.gmra.mrb[10].mxu0 %v10732_v47  ;;  %3217 = vmatmul.mubr.f32.vlgmr.msra.gmra.mrb[4].mxu1 %v10732_v47 }
 0x2d8   :  { %6001 = vmatpush1.bf16.msra.mxu0 %v8467_v62  ;;  %3287 = vmatprep.mubr.f32.mxu0 %v10265_v0  ;;  %v8476_v0 = vld [vmem:[%s11971_s5 + $0xa0] ss:$24 sps:$4 sm:$0xff]   ;;  %v8516_v62 = vld [vmem:[%s11971_s5 + $0x344] ss:$24 sps:$4 sm:$0xff]  }
 0x2d9   :  { %6003 = vmatprep.subr.bf16.mxu0 %v8468_v48  ;;  %6193 = vmatpush1.bf16.msra.mxu1 %v8584_v14  ;;  %v8642_v48 = vld [vmem:[%s11973_s7 + $0x1e4] ss:$24 sps:$4 sm:$0xff]  }
 0x2da   :  { %6195 = vmatprep.subr.bf16.mxu1 %v8588_v16  ;;  %v8666_v14 = vld [vmem:[%s11973_s7 + $0x2a4] ss:$24 sps:$4 sm:$0xff]   ;;  %v8531_v16 = vld [vmem:[%s11971_s5 + $0x434] ss:$24 sps:$4 sm:$0xff]  }
 0x2dc   :  { %6005 = vmatpush1.bf16.msra.mxu0 %v8470_v60  ;;  %v8518_v60 = vld [vmem:[%s11971_s5 + $0x340] ss:$24 sps:$4 sm:$0xff]  }
 0x2dd   :  { %6007 = vmatprep.subr.bf16.mxu0 %v8471_v1  ;;  %6197 = vmatpush1.bf16.msra.mxu1 %v8590_v19  ;;  %v8644_v1 = vld [vmem:[%s11973_s7 + $0x1e0] ss:$24 sps:$4 sm:$0xff]   ;;  %v8672_v19 = vld [vmem:[%s11973_s7 + $0x2d4] ss:$24 sps:$4 sm:$0xff]  }
 0x2de   :  { %6199 = vmatprep.subr.bf16.mxu1 %v8594_v21  ;;  %v8534_v21 = vld [vmem:[%s11971_s5 + $0x464] ss:$24 sps:$4 sm:$0xff]  }
 0x2e0   :  { %6009 = vmatpush1.bf16.msra.mxu0 %v8473_v29  ;;  %v8648_v29 = vld [vmem:[%s11973_s7 + $0x214] ss:$24 sps:$4 sm:$0xff]  }
 0x2e1   :  { %6011 = vmatprep.subr.bf16.mxu0 %v8474_v4  ;;  %6201 = vmatpush1.bf16.msra.mxu1 %v8596_v23  ;;  %v8650_v4 = vld [vmem:[%s11973_s7 + $0x210] ss:$24 sps:$4 sm:$0xff]   ;;  %v8536_v23 = vld [vmem:[%s11971_s5 + $0x460] ss:$24 sps:$4 sm:$0xff]  }
 0x2e2   :  { %6203 = vmatprep.subr.bf16.mxu1 %v8600_v24  ;;  %v8539_v24 = vld [vmem:[%s11971_s5 + $0x490] ss:$24 sps:$4 sm:$0xff]  }
 0x2e4   :  { %6013 = vmatpush1.bf16.msra.mxu0 %v8476_v0  ;;  %v8522_v0 = vld [vmem:[%s11971_s5 + $0x3a4] ss:$24 sps:$4 sm:$0xff]  }
 0x2e5   :  { %6015 = vmatprep.subr.bf16.mxu0 %v8477_v5  ;;  %6205 = vmatpush1.bf16.msra.mxu1 %v8602_v26  ;;  %v8654_v5 = vld [vmem:[%s11973_s7 + $0x244] ss:$24 sps:$4 sm:$0xff]   ;;  %v8542_v26 = vld [vmem:[%s11971_s5 + $0x4c0] ss:$24 sps:$4 sm:$0xff]  }
 0x2e6   :  { %6207 = vmatprep.subr.bf16.mxu1 %v8606_v28  ;;  %v8545_v28 = vld [vmem:[%s11971_s5 + $0x4f0] ss:$24 sps:$4 sm:$0xff]  }
 0x2e8   :  { %6017 = vmatpush1.bf16.msra.mxu0 %v8479_v6  ;;  %v8524_v6 = vld [vmem:[%s11971_s5 + $0x3a0] ss:$24 sps:$4 sm:$0xff]  }
 0x2e9   :  { %6019 = vmatprep.subr.bf16.mxu0 %v8480_v7  ;;  %6209 = vmatpush1.bf16.msra.mxu1 %v8608_v34  ;;  %v8656_v7 = vld [vmem:[%s11973_s7 + $0x240] ss:$24 sps:$4 sm:$0xff]  }
 0x2ea   :  { %6211 = vmatprep.subr.bf16.mxu1 %v8612_v39  ;;  %v8548_v34 = vld [vmem:[%s11971_s5 + $0x520] ss:$24 sps:$4 sm:$0xff]   ;;  %v8551_v39 = vld [vmem:[%s11971_s5 + $0x550] ss:$24 sps:$4 sm:$0xff]  }
 0x2ec   :  { %6021 = vmatpush1.bf16.msra.mxu0 %v8482_v31  ;;  %v8525_v31 = vld [vmem:[%s11971_s5 + $0x3d4] ss:$24 sps:$4 sm:$0xff]  }
 0x2ed   :  { %6023 = vmatprep.subr.bf16.mxu0 %v8483_v8  ;;  %6213 = vmatpush1.bf16.msra.mxu1 %v8614_v57  ;;  %v8660_v8 = vld [vmem:[%s11973_s7 + $0x274] ss:$24 sps:$4 sm:$0xff]   ;;  %v8554_v57 = vld [vmem:[%s11971_s5 + $0x580] ss:$24 sps:$4 sm:$0xff]  }
 0x2ee   :  { %6215 = vmatprep.subr.bf16.mxu1 %v8618_v41  ;;  %v8557_v41 = vld [vmem:[%s11971_s5 + $0x5b0] ss:$24 sps:$4 sm:$0xff]  }
 0x2f0   :  { %6025 = vmatpush1.bf16.msra.mxu0 %v8485_v9  ;;  %v8527_v9 = vld [vmem:[%s11971_s5 + $0x3d0] ss:$24 sps:$4 sm:$0xff]  }
 0x2f1   :  { %6027 = vmatprep.subr.bf16.mxu0 %v8486_v10  ;;  %6217 = vmatpush1.bf16.msra.mxu1 %v8620_v13  ;;  %v8662_v10 = vld [vmem:[%s11973_s7 + $0x270] ss:$24 sps:$4 sm:$0xff]   ;;  %v8560_v13 = vld [vmem:[%s11971_s5 + $0x5e0] ss:$24 sps:$4 sm:$0xff]  }
 0x2f2   :  { %6219 = vmatprep.subr.bf16.mxu1 %v8624_v18  ;;  %v8563_v18 = vld [vmem:[%s11971_s5 + $0x610] ss:$24 sps:$4 sm:$0xff]  }
 0x2f4   :  { %6029 = vmatpush1.bf16.msra.mxu0 %v8488_v11  ;;  %v8530_v11 = vld [vmem:[%s11971_s5 + $0x400] ss:$24 sps:$4 sm:$0xff]  }
 0x2f5   :  { %6031 = vmatprep.subr.bf16.mxu0 %v8489_v15  ;;  %6221 = vmatpush1.bf16.msra.mxu1 %v8626_v50  ;;  %v8668_v15 = vld [vmem:[%s11973_s7 + $0x2a0] ss:$24 sps:$4 sm:$0xff]  }
 0x2f6   :  { %6223 = vmatprep.subr.bf16.mxu1 %v8630_v52  ;;  %v8566_v50 = vld [vmem:[%s11971_s5 + $0x640] ss:$24 sps:$4 sm:$0xff]   ;;  %v8569_v52 = vld [vmem:[%s11971_s5 + $0x670] ss:$24 sps:$4 sm:$0xff]  }
 0x2f8   :  { %6033 = vmatpush1.bf16.msra.mxu0 %v8491_v17  ;;  %v8533_v17 = vld [vmem:[%s11971_s5 + $0x430] ss:$24 sps:$4 sm:$0xff]  }
 0x2f9   :  { %6035 = vmatprep.subr.bf16.mxu0 %v8492_v20  ;;  %6225 = vmatpush1.bf16.msra.mxu1 %v8632_v54  ;;  %v8674_v20 = vld [vmem:[%s11973_s7 + $0x2d0] ss:$24 sps:$4 sm:$0xff]  }
 0x2fa   :  { %6227 = vmatprep.subr.bf16.mxu1 %v8636_v58  ;;  %v8575_v54 = vld [vmem:[%s11971_s5 + $0x6d0] ss:$24 sps:$4 sm:$0xff]   ;;  %v8579_v58 = vld [vmem:[%s11971_s5 + $0x734] ss:$24 sps:$4 sm:$0xff]  }
 0x2fc   :  { %6037 = vmatpush1.bf16.msra.mxu0 %v8494_v22  ;;  %v8678_v22 = vld [vmem:[%s11973_s7 + $0x304] ss:$24 sps:$4 sm:$0xff]  }
 0x2fd   :  { %6039 = vmatprep.subr.bf16.mxu0 %v8495_v40  ;;  %6229 = vmatpush1.bf16.msra.mxu1 %v8638_v59  ;;  %v8537_v40 = vld [vmem:[%s11971_s5 + $0x494] ss:$24 sps:$4 sm:$0xff]   ;;  %v8581_v59 = vld [vmem:[%s11971_s5 + $0x730] ss:$24 sps:$4 sm:$0xff]  }
 0x2fe   :  { %6231 = vmatprep.subr.bf16.mxu1 %v8642_v48  ;;  %v8587_v48 = vld [vmem:[%s11971_s5 + $0x760] ss:$24 sps:$4 sm:$0xff]  }
 0x300   :  { %6041 = vmatpush1.bf16.msra.mxu0 %v8497_v25  ;;  %v8540_v25 = vld [vmem:[%s11971_s5 + $0x4c4] ss:$24 sps:$4 sm:$0xff]  }
 0x301   :  { %6043 = vmatprep.subr.bf16.mxu0 %v8498_v27  ;;  %6233 = vmatpush1.bf16.msra.mxu1 %v8644_v1  ;;  %v8543_v27 = vld [vmem:[%s11971_s5 + $0x4f4] ss:$24 sps:$4 sm:$0xff]   ;;  %v8593_v1 = vld [vmem:[%s11971_s5 + $0x790] ss:$24 sps:$4 sm:$0xff]  }
 0x302   :  { %6235 = vmatprep.subr.bf16.mxu1 %v8648_v29  ;;  %v8599_v29 = vld [vmem:[%s11971_s5 + $0x7c0] ss:$24 sps:$4 sm:$0xff]  }
 0x304   :  { %6045 = vmatpush1.bf16.msra.mxu0 %v8500_v33  ;;  %v8546_v33 = vld [vmem:[%s11971_s5 + $0x524] ss:$24 sps:$4 sm:$0xff]  }
 0x305   :  { %6047 = vmatprep.subr.bf16.mxu0 %v8501_v35  ;;  %6237 = vmatpush1.bf16.msra.mxu1 %v8650_v4  ;;  %v8549_v35 = vld [vmem:[%s11971_s5 + $0x554] ss:$24 sps:$4 sm:$0xff]   ;;  %v8605_v4 = vld [vmem:[%s11971_s5 + $0x7f0] ss:$24 sps:$4 sm:$0xff]  }
 0x306   :  { %6239 = vmatprep.subr.bf16.mxu1 %v8654_v5  ;;  %v8611_v5 = vld [vmem:[%s11971_s5 + $0x820] ss:$24 sps:$4 sm:$0xff]  }
 0x308   :  { %6049 = vmatpush1.bf16.msra.mxu0 %v8503_v36  ;;  %v8552_v36 = vld [vmem:[%s11971_s5 + $0x584] ss:$24 sps:$4 sm:$0xff]  }
 0x309   :  { %6051 = vmatprep.subr.bf16.mxu0 %v8504_v38  ;;  %6241 = vmatpush1.bf16.msra.mxu1 %v8656_v7  ;;  %v8555_v38 = vld [vmem:[%s11971_s5 + $0x5b4] ss:$24 sps:$4 sm:$0xff]   ;;  %v8617_v7 = vld [vmem:[%s11971_s5 + $0x850] ss:$24 sps:$4 sm:$0xff]  }
 0x30a   :  { %6243 = vmatprep.subr.bf16.mxu1 %v8660_v8  ;;  %v8623_v8 = vld [vmem:[%s11971_s5 + $0x880] ss:$24 sps:$4 sm:$0xff]  }
 0x30c   :  { %6053 = vmatpush1.bf16.msra.mxu0 %v8506_v43  ;;  %v8558_v43 = vld [vmem:[%s11971_s5 + $0x5e4] ss:$24 sps:$4 sm:$0xff]  }
 0x30d   :  { %6055 = vmatprep.subr.bf16.mxu0 %v8507_v44  ;;  %6245 = vmatpush1.bf16.msra.mxu1 %v8662_v10  ;;  %v8561_v44 = vld [vmem:[%s11971_s5 + $0x614] ss:$24 sps:$4 sm:$0xff]   ;;  %v8629_v10 = vld [vmem:[%s11971_s5 + $0x8b0] ss:$24 sps:$4 sm:$0xff]  }
 0x30e   :  { %6247 = vmatprep.subr.bf16.mxu1 %v8666_v14  ;;  %v8639_v14 = vld [vmem:[%s11973_s7 + $0xc] ss:$24 sps:$4 sm:$0xff]  }
 0x310   :  { %6057 = vmatpush1.bf16.msra.mxu0 %v8509_v49  ;;  %v8564_v49 = vld [vmem:[%s11971_s5 + $0x644] ss:$24 sps:$4 sm:$0xff]  }
 0x311   :  { %6059 = vmatprep.subr.bf16.mxu0 %v8510_v51  ;;  %6249 = vmatpush1.bf16.msra.mxu1 %v8668_v15  ;;  %v8567_v51 = vld [vmem:[%s11971_s5 + $0x674] ss:$24 sps:$4 sm:$0xff]   ;;  %v8641_v15 = vld [vmem:[%s11973_s7 + $0x8] ss:$24 sps:$4 sm:$0xff]  }
 0x312   :  { %6251 = vmatprep.subr.bf16.mxu1 %v8672_v19  ;;  %v8651_v19 = vld [vmem:[%s11973_s7 + $0x6c] ss:$24 sps:$4 sm:$0xff]  }
 0x314   :  { %6061 = vmatpush1.bf16.msra.mxu0 %v8512_v53  ;;  %v8573_v53 = vld [vmem:[%s11971_s5 + $0x6d4] ss:$24 sps:$4 sm:$0xff]  }
 0x315   :  { %6063 = vmatprep.subr.bf16.mxu0 %v8513_v55  ;;  %6253 = vmatpush1.bf16.msra.mxu1 %v8674_v20  ;;  %v8576_v55 = vld [vmem:[%s11971_s5 + $0x704] ss:$24 sps:$4 sm:$0xff]   ;;  %v8653_v20 = vld [vmem:[%s11973_s7 + $0x68] ss:$24 sps:$4 sm:$0xff]  }
 0x316   :  { %6255 = vmatprep.subr.bf16.mxu1 %v8678_v22  ;;  %v8663_v22 = vld [vmem:[%s11973_s7 + $0xcc] ss:$24 sps:$4 sm:$0xff]  }
 0x317   :  { %3288 = vmatmul.mubr.f32.vlgmr.msra.gmra.mrb[12].mxu0 %v10273_v2  ;;  %v8519_v2 = vld [vmem:[%s11971_s5 + $0x374] ss:$24 sps:$4 sm:$0xff]  }
 0x318   :  { %6065 = vmatpush1.bf16.msra.mxu0 %v8515_v56  ;;  %3358 = vmatprep.mubr.f32.mxu0 %v10526_v37  ;;  %v8521_v37 = vld [vmem:[%s11971_s5 + $0x370] ss:$24 sps:$4 sm:$0xff]   ;;  %v8578_v56 = vld [vmem:[%s11971_s5 + $0x700] ss:$24 sps:$4 sm:$0xff]  }
 0x319   :  { %6067 = vmatprep.subr.bf16.mxu0 %v8516_v62  ;;  %v8585_v62 = vld [vmem:[%s11971_s5 + $0x764] ss:$24 sps:$4 sm:$0xff]  }
 0x31c   :  { %6069 = vmatpush1.bf16.msra.mxu0 %v8518_v60  ;;  %v8591_v60 = vld [vmem:[%s11971_s5 + $0x794] ss:$24 sps:$4 sm:$0xff]  }
 0x31d   :  { %6071 = vmatprep.subr.bf16.mxu0 %v8519_v2  ;;  %v8597_v2 = vld [vmem:[%s11971_s5 + $0x7c4] ss:$24 sps:$4 sm:$0xff]  }
 0x320   :  { %6073 = vmatpush1.bf16.msra.mxu0 %v8521_v37  ;;  %v8603_v37 = vld [vmem:[%s11971_s5 + $0x7f4] ss:$24 sps:$4 sm:$0xff]  }
 0x321   :  { %6075 = vmatprep.subr.bf16.mxu0 %v8522_v0  ;;  %v8609_v0 = vld [vmem:[%s11971_s5 + $0x824] ss:$24 sps:$4 sm:$0xff]  }
 0x324   :  { %6077 = vmatpush1.bf16.msra.mxu0 %v8524_v6  ;;  %v8615_v6 = vld [vmem:[%s11971_s5 + $0x854] ss:$24 sps:$4 sm:$0xff]  }
 0x325   :  { %6079 = vmatprep.subr.bf16.mxu0 %v8525_v31  ;;  %v8621_v31 = vld [vmem:[%s11971_s5 + $0x884] ss:$24 sps:$4 sm:$0xff]  }
 0x328   :  { %6081 = vmatpush1.bf16.msra.mxu0 %v8527_v9  ;;  %v8627_v9 = vld [vmem:[%s11971_s5 + $0x8b4] ss:$24 sps:$4 sm:$0xff]  }
 0x329   :  { %6083 = vmatprep.subr.bf16.mxu0 %v8528_v12  ;;  %v8633_v12 = vld [vmem:[%s11971_s5 + $0x8e4] ss:$24 sps:$4 sm:$0xff]  }
 0x32c   :  { %6085 = vmatpush1.bf16.msra.mxu0 %v8530_v11  ;;  %v8635_v11 = vld [vmem:[%s11971_s5 + $0x8e0] ss:$24 sps:$4 sm:$0xff]  }
 0x32d   :  { %6087 = vmatprep.subr.bf16.mxu0 %v8531_v16  ;;  %v8645_v16 = vld [vmem:[%s11973_s7 + $0x3c] ss:$24 sps:$4 sm:$0xff]  }
 0x330   :  { %6089 = vmatpush1.bf16.msra.mxu0 %v8533_v17  ;;  %v8647_v17 = vld [vmem:[%s11973_s7 + $0x38] ss:$24 sps:$4 sm:$0xff]  }
 0x331   :  { %6091 = vmatprep.subr.bf16.mxu0 %v8534_v21  ;;  %v8659_v21 = vld [vmem:[%s11973_s7 + $0x98] ss:$24 sps:$4 sm:$0xff]  }
 0x334   :  { %6093 = vmatpush1.bf16.msra.mxu0 %v8536_v23  ;;  %v8665_v23 = vld [vmem:[%s11973_s7 + $0xc8] ss:$24 sps:$4 sm:$0xff]  }
 0x335   :  { %6095 = vmatprep.subr.bf16.mxu0 %v8537_v40  ;;  %v11158_v40 = vld [vmem:[%s11974_s6] sm:$0x3f] }
 0x338   :  { %6097 = vmatpush1.bf16.msra.mxu0 %v8539_v24  ;;  %v8669_v24 = vld [vmem:[%s11973_s7 + $0xfc] ss:$24 sps:$4 sm:$0xff]  }
 0x339   :  { %6099 = vmatprep.subr.bf16.mxu0 %v8540_v25  ;;  %v2770_v25 = vrot.slane %v11158_v40, %v9376_v30 }
 0x33c   :  { %6101 = vmatpush1.bf16.msra.mxu0 %v8542_v26  ;;  %v8671_v26 = vld [vmem:[%s11973_s7 + $0xf8] ss:$24 sps:$4 sm:$0xff]  }
 0x33d   :  { %6103 = vmatprep.subr.bf16.mxu0 %v8543_v27  ;;  %v2774_v27 = vrot.slane %v11158_v40, %v9384_v32 }
 0x340   :  { %6105 = vmatpush1.bf16.msra.mxu0 %v8545_v28  ;;  %v2782_v28 = vrot.slane %v11158_v40, %v9413_v46 }
 0x341   :  { %6107 = vmatprep.subr.bf16.mxu0 %v8546_v33  ;;  %v8675_v33 = vld [vmem:[%s11973_s7 + $0x12c] ss:$24 sps:$4 sm:$0xff]  }
 0x344   :  { %6109 = vmatpush1.bf16.msra.mxu0 %v8548_v34 }
 0x345   :  { %6111 = vmatprep.subr.bf16.mxu0 %v8549_v35 }
 0x348   :  { %6113 = vmatpush1.bf16.msra.mxu0 %v8551_v39 }
 0x349   :  { %6115 = vmatprep.subr.bf16.mxu0 %v8552_v36 }
 0x34c   :  { %6117 = vmatpush1.bf16.msra.mxu0 %v8554_v57 }
 0x34d   :  { %6119 = vmatprep.subr.bf16.mxu0 %v8555_v38 }
 0x350   :  { %6121 = vmatpush1.bf16.msra.mxu0 %v8557_v41 }
 0x351   :  { %6123 = vmatprep.subr.bf16.mxu0 %v8558_v43  ;;  %v8677_v43 = vld [vmem:[%s11973_s7 + $0x128] ss:$24 sps:$4 sm:$0xff]  }
 0x354   :  { %6125 = vmatpush1.bf16.msra.mxu0 %v8560_v13 }
 0x355   :  { %6127 = vmatprep.subr.bf16.mxu0 %v8561_v44  ;;  %v8680_v44 = vld [vmem:[%s11973_s7 + $0x300] ss:$24 sps:$4 sm:$0xff]  }
 0x357   :  { %3359 = vmatmul.mubr.f32.vlgmr.msra.gmra.mrb[12].mxu0 %v10534_v42  ;;  %v8570_v42 = vld [vmem:[%s11971_s5 + $0x6a4] ss:$24 sps:$4 sm:$0xff]  }
 0x358   :  { %6129 = vmatpush1.bf16.msra.mxu0 %v8563_v18  ;;  %3429 = vmatprep.mubr.f32.mxu0 %v10727_v61  ;;  %v8572_v61 = vld [vmem:[%s11971_s5 + $0x6a0] ss:$24 sps:$4 sm:$0xff]  }
 0x359   :  { %6131 = vmatprep.subr.bf16.mxu0 %v8564_v49  ;;  %v8681_v49 = vld [vmem:[%s11973_s7 + $0x15c] ss:$24 sps:$4 sm:$0xff]  }
 0x35c   :  { %6133 = vmatpush1.bf16.msra.mxu0 %v8566_v50  ;;  %v8684_v50 = vld [vmem:[%s11973_s7 + $0x334] ss:$24 sps:$4 sm:$0xff]  }
 0x35d   :  { %6135 = vmatprep.subr.bf16.mxu0 %v8567_v51 }
 0x360   :  { %6137 = vmatpush1.bf16.msra.mxu0 %v8569_v52  ;;  %v8683_v52 = vld [vmem:[%s11973_s7 + $0x158] ss:$24 sps:$4 sm:$0xff]  }
 0x361   :  { %6139 = vmatprep.subr.bf16.mxu0 %v8570_v42  ;;  %v8687_v42 = vld [vmem:[%s11973_s7 + $0x18c] ss:$24 sps:$4 sm:$0xff]  }
 0x364   :  { %6141 = vmatpush1.bf16.msra.mxu0 %v8572_v61  ;;  %v8686_v61 = vld [vmem:[%s11973_s7 + $0x330] ss:$24 sps:$4 sm:$0xff]  }
 0x365   :  { %6143 = vmatprep.subr.bf16.mxu0 %v8573_v53  ;;  %v8690_v53 = vld [vmem:[%s11973_s7 + $0x364] ss:$24 sps:$4 sm:$0xff]  }
 0x368   :  { %6145 = vmatpush1.bf16.msra.mxu0 %v8575_v54  ;;  %v8689_v54 = vld [vmem:[%s11973_s7 + $0x188] ss:$24 sps:$4 sm:$0xff]  }
 0x369   :  { %6147 = vmatprep.subr.bf16.mxu0 %v8576_v55  ;;  %v8693_v55 = vld [vmem:[%s11973_s7 + $0x1bc] ss:$24 sps:$4 sm:$0xff]  }
 0x36c   :  { %6149 = vmatpush1.bf16.msra.mxu0 %v8578_v56  ;;  %v8692_v56 = vld [vmem:[%s11973_s7 + $0x360] ss:$24 sps:$4 sm:$0xff]  }
 0x36d   :  { %6151 = vmatprep.subr.bf16.mxu0 %v8579_v58  ;;  %v8696_v58 = vld [vmem:[%s11973_s7 + $0x394] ss:$24 sps:$4 sm:$0xff]  }
 0x370   :  { %6153 = vmatpush1.bf16.msra.mxu0 %v8581_v59  ;;  %v8695_v59 = vld [vmem:[%s11973_s7 + $0x1b8] ss:$24 sps:$4 sm:$0xff]  }
 0x371   :  { %6155 = vmatprep.subr.bf16.mxu0 %v8585_v62  ;;  %v8699_v62 = vld [vmem:[%s11973_s7 + $0x1ec] ss:$24 sps:$4 sm:$0xff]  }
 0x374   :  { %6157 = vmatpush1.bf16.msra.mxu0 %v8587_v48  ;;  %v8698_v48 = vld [vmem:[%s11973_s7 + $0x390] ss:$24 sps:$4 sm:$0xff]  }
 0x375   :  { %6159 = vmatprep.subr.bf16.mxu0 %v8591_v60  ;;  %v8702_v60 = vld [vmem:[%s11973_s7 + $0x3c4] ss:$24 sps:$4 sm:$0xff]  }
 0x378   :  { %6161 = vmatpush1.bf16.msra.mxu0 %v8593_v1  ;;  %v8701_v1 = vld [vmem:[%s11973_s7 + $0x1e8] ss:$24 sps:$4 sm:$0xff]  }
 0x379   :  { %6163 = vmatprep.subr.bf16.mxu0 %v8597_v2  ;;  %v8705_v2 = vld [vmem:[%s11973_s7 + $0x21c] ss:$24 sps:$4 sm:$0xff]  }
 0x37c   :  { %6165 = vmatpush1.bf16.msra.mxu0 %v8599_v29  ;;  %v8704_v29 = vld [vmem:[%s11973_s7 + $0x3c0] ss:$24 sps:$4 sm:$0xff]  }
 0x37d   :  { %6167 = vmatprep.subr.bf16.mxu0 %v8603_v37  ;;  %v8708_v37 = vld [vmem:[%s11973_s7 + $0x3f4] ss:$24 sps:$4 sm:$0xff]  }
 0x380   :  { %6169 = vmatpush1.bf16.msra.mxu0 %v8605_v4  ;;  %v8707_v4 = vld [vmem:[%s11973_s7 + $0x218] ss:$24 sps:$4 sm:$0xff]  }
 0x381   :  { %6171 = vmatprep.subr.bf16.mxu0 %v8609_v0  ;;  %v8711_v0 = vld [vmem:[%s11973_s7 + $0x24c] ss:$24 sps:$4 sm:$0xff]  }
 0x384   :  { %6173 = vmatpush1.bf16.msra.mxu0 %v8611_v5  ;;  %v8710_v5 = vld [vmem:[%s11973_s7 + $0x3f0] ss:$24 sps:$4 sm:$0xff]  }
 0x385   :  { %6175 = vmatprep.subr.bf16.mxu0 %v8615_v6  ;;  %v8714_v6 = vld [vmem:[%s11973_s7 + $0x424] ss:$24 sps:$4 sm:$0xff]  }
 0x388   :  { %6177 = vmatpush1.bf16.msra.mxu0 %v8617_v7  ;;  %v8713_v7 = vld [vmem:[%s11973_s7 + $0x248] ss:$24 sps:$4 sm:$0xff]  }
 0x389   :  { %6179 = vmatprep.subr.bf16.mxu0 %v8621_v31  ;;  %v8717_v31 = vld [vmem:[%s11973_s7 + $0x27c] ss:$24 sps:$4 sm:$0xff]  }
 0x38c   :  { %6181 = vmatpush1.bf16.msra.mxu0 %v8623_v8  ;;  %v8716_v8 = vld [vmem:[%s11973_s7 + $0x420] ss:$24 sps:$4 sm:$0xff]  }
 0x38d   :  { %6183 = vmatprep.subr.bf16.mxu0 %v8627_v9  ;;  %v8720_v9 = vld [vmem:[%s11973_s7 + $0x454] ss:$24 sps:$4 sm:$0xff]  }
 0x390   :  { %6185 = vmatpush1.bf16.msra.mxu0 %v8629_v10  ;;  %v8719_v10 = vld [vmem:[%s11973_s7 + $0x278] ss:$24 sps:$4 sm:$0xff]  }
 0x391   :  { %6187 = vmatprep.subr.bf16.mxu0 %v8633_v12  ;;  %v8723_v12 = vld [vmem:[%s11973_s7 + $0x2ac] ss:$24 sps:$4 sm:$0xff]  }
 0x394   :  { %6189 = vmatpush1.bf16.msra.mxu0 %v8635_v11  ;;  %v8722_v11 = vld [vmem:[%s11973_s7 + $0x450] ss:$24 sps:$4 sm:$0xff]  }
 0x395   :  { %6383 = vmatprep.subr.bf16.mxu0 %v8639_v14  ;;  %v8726_v14 = vld [vmem:[%s11973_s7 + $0x484] ss:$24 sps:$4 sm:$0xff]  }
 0x397   :  { %3430 = vmatmul.mubr.f32.vlgmr.msra.gmra.mrb[12].mxu0 %v10732_v47  ;;  %v8657_v47 = vld [vmem:[%s11973_s7 + $0x9c] ss:$24 sps:$4 sm:$0xff]  }
 0x398   :  { %6385 = vmatpush1.bf16.msra.mxu0 %v8641_v15  ;;  %v8725_v15 = vld [vmem:[%s11973_s7 + $0x2a8] ss:$24 sps:$4 sm:$0xff]  }
 0x399   :  { %6387 = vmatprep.subr.bf16.mxu0 %v8645_v16  ;;  %v8729_v16 = vld [vmem:[%s11973_s7 + $0x2dc] ss:$24 sps:$4 sm:$0xff]  }
 0x39c   :  { %6389 = vmatpush1.bf16.msra.mxu0 %v8647_v17  ;;  %v8728_v17 = vld [vmem:[%s11973_s7 + $0x480] ss:$24 sps:$4 sm:$0xff]  }
 0x39d   :  { %6391 = vmatprep.subr.bf16.mxu0 %v8651_v19  ;;  %v8732_v19 = vld [vmem:[%s11973_s7 + $0x4b4] ss:$24 sps:$4 sm:$0xff]  }
 0x3a0   :  { %6393 = vmatpush1.bf16.msra.mxu0 %v8653_v20  ;;  %v8731_v20 = vld [vmem:[%s11973_s7 + $0x2d8] ss:$24 sps:$4 sm:$0xff]  }
 0x3a1   :  { %6395 = vmatprep.subr.bf16.mxu0 %v8657_v47  ;;  %v8735_v47 = vld [vmem:[%s11973_s7 + $0x30c] ss:$24 sps:$4 sm:$0xff]  }
 0x3a4   :  { %6397 = vmatpush1.bf16.msra.mxu0 %v8659_v21  ;;  %v8734_v21 = vld [vmem:[%s11973_s7 + $0x4b0] ss:$24 sps:$4 sm:$0xff]  }
 0x3a5   :  { %6399 = vmatprep.subr.bf16.mxu0 %v8663_v22  ;;  %v8738_v22 = vld [vmem:[%s11973_s7 + $0x4e4] ss:$24 sps:$4 sm:$0xff]  }
 0x3a8   :  { %6401 = vmatpush1.bf16.msra.mxu0 %v8665_v23  ;;  %v8737_v23 = vld [vmem:[%s11973_s7 + $0x308] ss:$24 sps:$4 sm:$0xff]  }
 0x3a9   :  { %6403 = vmatprep.subr.bf16.mxu0 %v8669_v24  ;;  %v8741_v24 = vld [vmem:[%s11973_s7 + $0x33c] ss:$24 sps:$4 sm:$0xff]  }
 0x3aa   :  { %v3005_v34 = vpop.f32.mrb[10].mxu0  ;;  %v11175_v35 = vpop.f32.mrb[4].mxu1 }
 0x3ab   :  { %v6774_v39 = vadd.f32 %v3005_v34, %v2770_v25  ;;  %v3007_v36 = vpop.f32.mrb[11].mxu0  ;;  %v3220_v57 = vpop.f32.mrb[5].mxu1  ;;  %v8740_v25 = vld [vmem:[%s11973_s7 + $0x4e0] ss:$24 sps:$4 sm:$0xff]   ;;  %v8750_v34 = vld [vmem:[%s11973_s7 + $0x544] ss:$24 sps:$4 sm:$0xff]  }
 0x3ac   :  { %v6775_v38 = vadd.f32 %v3007_v36, %v2774_v27  ;;  %v6777_v41 = vadd.f32 %v3220_v57, %v2782_v28  ;;  %6405 = vmatpush1.bf16.msra.mxu0 %v8671_v26  ;;  %v8744_v26 = vld [vmem:[%s11973_s7 + $0x514] ss:$24 sps:$4 sm:$0xff]   ;;  %v8743_v27 = vld [vmem:[%s11973_s7 + $0x338] ss:$24 sps:$4 sm:$0xff]  }
 0x3ad   :  { %6407 = vmatprep.subr.bf16.mxu0 %v8675_v33  ;;  %v11185_v18 = vmax.f32 %v6774_v39, 0.0  ;;  %v8747_v28 = vld [vmem:[%s11973_s7 + $0x36c] ss:$24 sps:$4 sm:$0xff]   ;;  %v8746_v33 = vld [vmem:[%s11973_s7 + $0x510] ss:$24 sps:$4 sm:$0xff]  }
 0x3ae   :  { %v11180_v13 = vmax.f32 %v6775_v38, 0.0  ;;  %v11193_v51 = vmax.f32 %v6777_v41, 0.0  ;;  %v8749_v39 = vld [vmem:[%s11973_s7 + $0x368] ss:$24 sps:$4 sm:$0xff]   ;;  %v8753_v36 = vld [vmem:[%s11973_s7 + $0x39c] ss:$24 sps:$4 sm:$0xff]  }
 0x3af   :  { %v8752_v57 = vld [vmem:[%s11973_s7 + $0x540] ss:$24 sps:$4 sm:$0xff]   ;;  %v8756_v38 = vld [vmem:[%s11973_s7 + $0x574] ss:$24 sps:$4 sm:$0xff]  }
 0x3b0   :  { %6409 = vmatpush1.bf16.msra.mxu0 %v8677_v43  ;;  %4402 = vmatprep.mubr.f32.mxu1 %v11180_v13  ;;  %v8755_v41 = vld [vmem:[%s11973_s7 + $0x398] ss:$24 sps:$4 sm:$0xff]   ;;  %v8759_v43 = vld [vmem:[%s11973_s7 + $0x3cc] ss:$24 sps:$4 sm:$0xff]  }
 0x3b1   :  { %4615 = vmatprep.mubr.f32.mxu0 %v11180_v13  ;;  %4403 = vmatmul.mubr.f32.vlgmr.msra.gmra.mrb[6].mxu1 %v11185_v18 }
 0x3b2   :  { %6257 = vmatpush1.bf16.msra.mxu1 %v8680_v44  ;;  %4473 = vmatprep.mubr.f32.mxu1 %v11193_v51  ;;  %v8758_v44 = vld [vmem:[%s11973_s7 + $0x570] ss:$24 sps:$4 sm:$0xff]  }
 0x3b3   :  { %6411 = vmatprep.subr.bf16.mxu0 %v8681_v49  ;;  %6259 = vmatprep.subr.bf16.mxu1 %v8684_v50  ;;  %v8762_v49 = vld [vmem:[%s11973_s7 + $0x5a4] ss:$24 sps:$4 sm:$0xff]   ;;  %v8761_v50 = vld [vmem:[%s11973_s7 + $0x3c8] ss:$24 sps:$4 sm:$0xff]  }
 0x3b4   :  { %6413 = vmatpush1.bf16.msra.mxu0 %v8683_v52  ;;  %v8765_v52 = vld [vmem:[%s11973_s7 + $0x3fc] ss:$24 sps:$4 sm:$0xff]  }
 0x3b5   :  { %6415 = vmatprep.subr.bf16.mxu0 %v8687_v42  ;;  %v8764_v42 = vld [vmem:[%s11973_s7 + $0x5a0] ss:$24 sps:$4 sm:$0xff]  }
 0x3b6   :  { %6261 = vmatpush1.bf16.msra.mxu1 %v8686_v61  ;;  %v2778_v61 = vrot.slane %v11158_v40, %v9410_v45 }
 0x3b7   :  { %6263 = vmatprep.subr.bf16.mxu1 %v8690_v53  ;;  %v8768_v53 = vld [vmem:[%s11973_s7 + $0x5d4] ss:$24 sps:$4 sm:$0xff]  }
 0x3b8   :  { %6417 = vmatpush1.bf16.msra.mxu0 %v8689_v54  ;;  %v8767_v54 = vld [vmem:[%s11973_s7 + $0x3f8] ss:$24 sps:$4 sm:$0xff]  }
 0x3b9   :  { %6419 = vmatprep.subr.bf16.mxu0 %v8693_v55  ;;  %v8771_v55 = vld [vmem:[%s11973_s7 + $0x42c] ss:$24 sps:$4 sm:$0xff]  }
 0x3ba   :  { %6265 = vmatpush1.bf16.msra.mxu1 %v8692_v56  ;;  %v8770_v56 = vld [vmem:[%s11973_s7 + $0x5d0] ss:$24 sps:$4 sm:$0xff]  }
 0x3bb   :  { %6267 = vmatprep.subr.bf16.mxu1 %v8696_v58  ;;  %v6776_v58 = vadd.f32 %v11175_v35, %v2778_v61  ;;  %v8803_v35 = vld [vmem:[%s11973_s7 + $0x600] ss:$24 sps:$4 sm:$0xff]   ;;  %v8869_v61 = vld [vmem:[%s11973_s7 + $0x810] ss:$24 sps:$4 sm:$0xff]  }
 0x3bc   :  { %6421 = vmatpush1.bf16.msra.mxu0 %v8695_v59  ;;  %v8801_v59 = vld [vmem:[%s11973_s7 + $0x604] ss:$24 sps:$4 sm:$0xff]  }
 0x3bd   :  { %6423 = vmatprep.subr.bf16.mxu0 %v8699_v62  ;;  %v8773_v62 = vld [vmem:[%s11973_s7 + $0x428] ss:$24 sps:$4 sm:$0xff]  }
 0x3be   :  { %6269 = vmatpush1.bf16.msra.mxu1 %v8698_v48  ;;  %v8774_v48 = vld [vmem:[%s11973_s7 + $0x45c] ss:$24 sps:$4 sm:$0xff]  }
 0x3bf   :  { %6271 = vmatprep.subr.bf16.mxu1 %v8702_v60  ;;  %v11393_v60 = vmax.f32 %v6776_v58, 0.0  ;;  %v8879_v58 = vld [vmem:[%s11973_s7 + $0x874] ss:$24 sps:$4 sm:$0xff]  }
 0x3c0   :  { %6425 = vmatpush1.bf16.msra.mxu0 %v8701_v1  ;;  %v8807_v1 = vld [vmem:[%s11973_s7 + $0x634] ss:$24 sps:$4 sm:$0xff]  }
 0x3c1   :  { %6427 = vmatprep.subr.bf16.mxu0 %v8705_v2  ;;  %v8776_v2 = vld [vmem:[%s11973_s7 + $0x458] ss:$24 sps:$4 sm:$0xff]  }
 0x3c2   :  { %6273 = vmatpush1.bf16.msra.mxu1 %v8704_v29  ;;  %v8777_v29 = vld [vmem:[%s11973_s7 + $0x48c] ss:$24 sps:$4 sm:$0xff]  }
 0x3c3   :  { %6275 = vmatprep.subr.bf16.mxu1 %v8708_v37  ;;  %v8809_v37 = vld [vmem:[%s11973_s7 + $0x630] ss:$24 sps:$4 sm:$0xff]  }
 0x3c4   :  { %6429 = vmatpush1.bf16.msra.mxu0 %v8707_v4  ;;  %v8813_v4 = vld [vmem:[%s11973_s7 + $0x664] ss:$24 sps:$4 sm:$0xff]  }
 0x3c5   :  { %6431 = vmatprep.subr.bf16.mxu0 %v8711_v0  ;;  %v8779_v0 = vld [vmem:[%s11973_s7 + $0x488] ss:$24 sps:$4 sm:$0xff]  }
 0x3c6   :  { %6277 = vmatpush1.bf16.msra.mxu1 %v8710_v5  ;;  %v8780_v5 = vld [vmem:[%s11973_s7 + $0x4bc] ss:$24 sps:$4 sm:$0xff]  }
 0x3c7   :  { %6279 = vmatprep.subr.bf16.mxu1 %v8714_v6  ;;  %v8815_v6 = vld [vmem:[%s11973_s7 + $0x660] ss:$24 sps:$4 sm:$0xff]  }
 0x3c8   :  { %6433 = vmatpush1.bf16.msra.mxu0 %v8713_v7  ;;  %v8819_v7 = vld [vmem:[%s11973_s7 + $0x694] ss:$24 sps:$4 sm:$0xff]  }
 0x3c9   :  { %6435 = vmatprep.subr.bf16.mxu0 %v8717_v31  ;;  %v8782_v31 = vld [vmem:[%s11973_s7 + $0x4b8] ss:$24 sps:$4 sm:$0xff]  }
 0x3ca   :  { %6281 = vmatpush1.bf16.msra.mxu1 %v8716_v8  ;;  %v8783_v8 = vld [vmem:[%s11973_s7 + $0x4ec] ss:$24 sps:$4 sm:$0xff]  }
 0x3cb   :  { %6283 = vmatprep.subr.bf16.mxu1 %v8720_v9  ;;  %v8821_v9 = vld [vmem:[%s11973_s7 + $0x690] ss:$24 sps:$4 sm:$0xff]  }
 0x3cc   :  { %6437 = vmatpush1.bf16.msra.mxu0 %v8719_v10  ;;  %v8825_v10 = vld [vmem:[%s11973_s7 + $0x6c4] ss:$24 sps:$4 sm:$0xff]  }
 0x3cd   :  { %6439 = vmatprep.subr.bf16.mxu0 %v8723_v12  ;;  %v8785_v12 = vld [vmem:[%s11973_s7 + $0x4e8] ss:$24 sps:$4 sm:$0xff]  }
 0x3ce   :  { %6285 = vmatpush1.bf16.msra.mxu1 %v8722_v11  ;;  %v8786_v11 = vld [vmem:[%s11973_s7 + $0x51c] ss:$24 sps:$4 sm:$0xff]  }
 0x3cf   :  { %6287 = vmatprep.subr.bf16.mxu1 %v8726_v14  ;;  %v8827_v14 = vld [vmem:[%s11973_s7 + $0x6c0] ss:$24 sps:$4 sm:$0xff]  }
 0x3d0   :  { %6441 = vmatpush1.bf16.msra.mxu0 %v8725_v15  ;;  %v8831_v15 = vld [vmem:[%s11973_s7 + $0x6f4] ss:$24 sps:$4 sm:$0xff]  }
 0x3d1   :  { %6443 = vmatprep.subr.bf16.mxu0 %v8729_v16  ;;  %v8788_v16 = vld [vmem:[%s11973_s7 + $0x518] ss:$24 sps:$4 sm:$0xff]  }
 0x3d2   :  { %6289 = vmatpush1.bf16.msra.mxu1 %v8728_v17  ;;  %v8789_v17 = vld [vmem:[%s11973_s7 + $0x54c] ss:$24 sps:$4 sm:$0xff]  }
 0x3d3   :  { %6291 = vmatprep.subr.bf16.mxu1 %v8732_v19  ;;  %v8833_v19 = vld [vmem:[%s11973_s7 + $0x6f0] ss:$24 sps:$4 sm:$0xff]  }
 0x3d4   :  { %6445 = vmatpush1.bf16.msra.mxu0 %v8731_v20  ;;  %v8837_v20 = vld [vmem:[%s11973_s7 + $0x724] ss:$24 sps:$4 sm:$0xff]  }
 0x3d5   :  { %6447 = vmatprep.subr.bf16.mxu0 %v8735_v47  ;;  %v8791_v47 = vld [vmem:[%s11973_s7 + $0x548] ss:$24 sps:$4 sm:$0xff]  }
 0x3d6   :  { %6293 = vmatpush1.bf16.msra.mxu1 %v8734_v21  ;;  %v8792_v21 = vld [vmem:[%s11973_s7 + $0x57c] ss:$24 sps:$4 sm:$0xff]  }
 0x3d7   :  { %4616 = vmatmul.mubr.f32.vlgmr.msra.gmra.mrb[14].mxu0 %v11185_v18  ;;  %6295 = vmatprep.subr.bf16.mxu1 %v8738_v22  ;;  %v8839_v22 = vld [vmem:[%s11973_s7 + $0x720] ss:$24 sps:$4 sm:$0xff]  }
 0x3d8   :  { %6449 = vmatpush1.bf16.msra.mxu0 %v8737_v23  ;;  %4686 = vmatprep.mubr.f32.mxu0 %v11193_v51  ;;  %v8843_v23 = vld [vmem:[%s11973_s7 + $0x754] ss:$24 sps:$4 sm:$0xff]  }
 0x3d9   :  { %6451 = vmatprep.subr.bf16.mxu0 %v8741_v24  ;;  %v8794_v24 = vld [vmem:[%s11973_s7 + $0x578] ss:$24 sps:$4 sm:$0xff]  }
 0x3da   :  { %6297 = vmatpush1.bf16.msra.mxu1 %v8740_v25  ;;  %v8795_v25 = vld [vmem:[%s11973_s7 + $0x5ac] ss:$24 sps:$4 sm:$0xff]  }
 0x3db   :  { %6299 = vmatprep.subr.bf16.mxu1 %v8744_v26  ;;  %v8845_v26 = vld [vmem:[%s11973_s7 + $0x750] ss:$24 sps:$4 sm:$0xff]  }
 0x3dc   :  { %6453 = vmatpush1.bf16.msra.mxu0 %v8743_v27  ;;  %v8849_v27 = vld [vmem:[%s11973_s7 + $0x784] ss:$24 sps:$4 sm:$0xff]  }
 0x3dd   :  { %6455 = vmatprep.subr.bf16.mxu0 %v8747_v28  ;;  %v8797_v28 = vld [vmem:[%s11973_s7 + $0x5a8] ss:$24 sps:$4 sm:$0xff]  }
 0x3de   :  { %6301 = vmatpush1.bf16.msra.mxu1 %v8746_v33  ;;  %v8798_v33 = vld [vmem:[%s11973_s7 + $0x5dc] ss:$24 sps:$4 sm:$0xff]  }
 0x3df   :  { %6303 = vmatprep.subr.bf16.mxu1 %v8750_v34  ;;  %v8851_v34 = vld [vmem:[%s11973_s7 + $0x780] ss:$24 sps:$4 sm:$0xff]  }
 0x3e0   :  { %6457 = vmatpush1.bf16.msra.mxu0 %v8749_v39  ;;  %v8855_v39 = vld [vmem:[%s11973_s7 + $0x7b4] ss:$24 sps:$4 sm:$0xff]  }
 0x3e1   :  { %6459 = vmatprep.subr.bf16.mxu0 %v8753_v36  ;;  %v8800_v36 = vld [vmem:[%s11973_s7 + $0x5d8] ss:$24 sps:$4 sm:$0xff]  }
 0x3e2   :  { %6305 = vmatpush1.bf16.msra.mxu1 %v8752_v57  ;;  %v8804_v57 = vld [vmem:[%s11973_s7 + $0x60c] ss:$24 sps:$4 sm:$0xff]  }
 0x3e3   :  { %6307 = vmatprep.subr.bf16.mxu1 %v8756_v38  ;;  %v8857_v38 = vld [vmem:[%s11973_s7 + $0x7b0] ss:$24 sps:$4 sm:$0xff]  }
 0x3e4   :  { %6461 = vmatpush1.bf16.msra.mxu0 %v8755_v41  ;;  %v8861_v41 = vld [vmem:[%s11973_s7 + $0x7e4] ss:$24 sps:$4 sm:$0xff]  }
 0x3e5   :  { %6463 = vmatprep.subr.bf16.mxu0 %v8759_v43  ;;  %v8806_v43 = vld [vmem:[%s11973_s7 + $0x608] ss:$24 sps:$4 sm:$0xff]  }
 0x3e6   :  { %6309 = vmatpush1.bf16.msra.mxu1 %v8758_v44  ;;  %v8810_v44 = vld [vmem:[%s11973_s7 + $0x63c] ss:$24 sps:$4 sm:$0xff]  }
 0x3e7   :  { %6311 = vmatprep.subr.bf16.mxu1 %v8762_v49  ;;  %v8863_v49 = vld [vmem:[%s11973_s7 + $0x7e0] ss:$24 sps:$4 sm:$0xff]  }
 0x3e8   :  { %6465 = vmatpush1.bf16.msra.mxu0 %v8761_v50  ;;  %v8867_v50 = vld [vmem:[%s11973_s7 + $0x814] ss:$24 sps:$4 sm:$0xff]  }
 0x3e9   :  { %6467 = vmatprep.subr.bf16.mxu0 %v8765_v52  ;;  %v8812_v52 = vld [vmem:[%s11973_s7 + $0x638] ss:$24 sps:$4 sm:$0xff]  }
 0x3ea   :  { %6313 = vmatpush1.bf16.msra.mxu1 %v8764_v42  ;;  %v8816_v42 = vld [vmem:[%s11973_s7 + $0x66c] ss:$24 sps:$4 sm:$0xff]  }
 0x3eb   :  { %6315 = vmatprep.subr.bf16.mxu1 %v8768_v53  ;;  %v8873_v53 = vld [vmem:[%s11973_s7 + $0x844] ss:$24 sps:$4 sm:$0xff]  }
 0x3ec   :  { %6469 = vmatpush1.bf16.msra.mxu0 %v8767_v54  ;;  %v8818_v54 = vld [vmem:[%s11973_s7 + $0x668] ss:$24 sps:$4 sm:$0xff]  }
 0x3ed   :  { %6471 = vmatprep.subr.bf16.mxu0 %v8771_v55  ;;  %v8822_v55 = vld [vmem:[%s11973_s7 + $0x69c] ss:$24 sps:$4 sm:$0xff]  }
 0x3ee   :  { %6317 = vmatpush1.bf16.msra.mxu1 %v8770_v56  ;;  %v8875_v56 = vld [vmem:[%s11973_s7 + $0x840] ss:$24 sps:$4 sm:$0xff]  }
 0x3ef   :  { %6319 = vmatprep.subr.bf16.mxu1 %v8801_v59  ;;  %v8824_v59 = vld [vmem:[%s11973_s7 + $0x698] ss:$24 sps:$4 sm:$0xff]  }
 0x3f0   :  { %6473 = vmatpush1.bf16.msra.mxu0 %v8773_v62  ;;  %v8828_v62 = vld [vmem:[%s11973_s7 + $0x6cc] ss:$24 sps:$4 sm:$0xff]  }
 0x3f1   :  { %4474 = vmatmul.mubr.f32.vlgmr.msra.gmra.mrb[6].mxu1 %v11393_v60  ;;  %6475 = vmatprep.subr.bf16.mxu0 %v8774_v48  ;;  %v8881_v48 = vld [vmem:[%s11973_s7 + $0x870] ss:$24 sps:$4 sm:$0xff]  }
 0x3f2   :  { %6321 = vmatpush1.bf16.msra.mxu1 %v8803_v35  ;;  %v8885_v35 = vld [vmem:[%s11973_s7 + $0x8a4] ss:$24 sps:$4 sm:$0xff]  }
 0x3f3   :  { %6323 = vmatprep.subr.bf16.mxu1 %v8807_v1  ;;  %v8830_v1 = vld [vmem:[%s11973_s7 + $0x6c8] ss:$24 sps:$4 sm:$0xff]  }
 0x3f4   :  { %6477 = vmatpush1.bf16.msra.mxu0 %v8776_v2  ;;  %v8834_v2 = vld [vmem:[%s11973_s7 + $0x6fc] ss:$24 sps:$4 sm:$0xff]  }
 0x3f5   :  { %6479 = vmatprep.subr.bf16.mxu0 %v8777_v29  ;;  %v8887_v29 = vld [vmem:[%s11973_s7 + $0x8a0] ss:$24 sps:$4 sm:$0xff]  }
 0x3f6   :  { %6325 = vmatpush1.bf16.msra.mxu1 %v8809_v37  ;;  %v8891_v37 = vld [vmem:[%s11973_s7 + $0x8d4] ss:$24 sps:$4 sm:$0xff]  }
 0x3f7   :  { %6327 = vmatprep.subr.bf16.mxu1 %v8813_v4  ;;  %v8836_v4 = vld [vmem:[%s11973_s7 + $0x6f8] ss:$24 sps:$4 sm:$0xff]  }
 0x3f8   :  { %6481 = vmatpush1.bf16.msra.mxu0 %v8779_v0  ;;  %v8840_v0 = vld [vmem:[%s11973_s7 + $0x72c] ss:$24 sps:$4 sm:$0xff]  }
 0x3f9   :  { %6483 = vmatprep.subr.bf16.mxu0 %v8780_v5  ;;  %v8893_v5 = vld [vmem:[%s11973_s7 + $0x8d0] ss:$24 sps:$4 sm:$0xff]  }
 0x3fa   :  { %6329 = vmatpush1.bf16.msra.mxu1 %v8815_v6  ;;  %v8897_v6 = vld [vmem:[%s11973_s7 + $0x14] ss:$24 sps:$4 sm:$0xff]  }
 0x3fb   :  { %6331 = vmatprep.subr.bf16.mxu1 %v8819_v7  ;;  %v8842_v7 = vld [vmem:[%s11973_s7 + $0x728] ss:$24 sps:$4 sm:$0xff]  }
 0x3fc   :  { %6485 = vmatpush1.bf16.msra.mxu0 %v8782_v31  ;;  %v8846_v31 = vld [vmem:[%s11973_s7 + $0x75c] ss:$24 sps:$4 sm:$0xff]  }
 0x3fd   :  { %6487 = vmatprep.subr.bf16.mxu0 %v8783_v8  ;;  %v8848_v8 = vld [vmem:[%s11973_s7 + $0x758] ss:$24 sps:$4 sm:$0xff]  }
 0x3fe   :  { %6333 = vmatpush1.bf16.msra.mxu1 %v8821_v9  ;;  %v8852_v9 = vld [vmem:[%s11973_s7 + $0x78c] ss:$24 sps:$4 sm:$0xff]  }
 0x3ff   :  { %6335 = vmatprep.subr.bf16.mxu1 %v8825_v10  ;;  %v8854_v10 = vld [vmem:[%s11973_s7 + $0x788] ss:$24 sps:$4 sm:$0xff]  }
 0x400   :  { %6489 = vmatpush1.bf16.msra.mxu0 %v8785_v12  ;;  %v8858_v12 = vld [vmem:[%s11973_s7 + $0x7bc] ss:$24 sps:$4 sm:$0xff]  }
 0x401   :  { %6491 = vmatprep.subr.bf16.mxu0 %v8786_v11  ;;  %v8860_v11 = vld [vmem:[%s11973_s7 + $0x7b8] ss:$24 sps:$4 sm:$0xff]  }
 0x402   :  { %6337 = vmatpush1.bf16.msra.mxu1 %v8827_v14  ;;  %v8864_v14 = vld [vmem:[%s11973_s7 + $0x7ec] ss:$24 sps:$4 sm:$0xff]  }
 0x403   :  { %6339 = vmatprep.subr.bf16.mxu1 %v8831_v15  ;;  %v8866_v15 = vld [vmem:[%s11973_s7 + $0x7e8] ss:$24 sps:$4 sm:$0xff]  }
 0x404   :  { %6493 = vmatpush1.bf16.msra.mxu0 %v8788_v16  ;;  %v8870_v16 = vld [vmem:[%s11973_s7 + $0x81c] ss:$24 sps:$4 sm:$0xff]  }
 0x405   :  { %6495 = vmatprep.subr.bf16.mxu0 %v8789_v17  ;;  %v8872_v17 = vld [vmem:[%s11973_s7 + $0x818] ss:$24 sps:$4 sm:$0xff]  }
 0x406   :  { %6341 = vmatpush1.bf16.msra.mxu1 %v8833_v19  ;;  %v8876_v19 = vld [vmem:[%s11973_s7 + $0x84c] ss:$24 sps:$4 sm:$0xff]  }
 0x407   :  { %6343 = vmatprep.subr.bf16.mxu1 %v8837_v20  ;;  %v8878_v20 = vld [vmem:[%s11973_s7 + $0x848] ss:$24 sps:$4 sm:$0xff]  }
 0x408   :  { %6497 = vmatpush1.bf16.msra.mxu0 %v8791_v47  ;;  %v8882_v47 = vld [vmem:[%s11973_s7 + $0x87c] ss:$24 sps:$4 sm:$0xff]  }
 0x409   :  { %6499 = vmatprep.subr.bf16.mxu0 %v8792_v21  ;;  %v8884_v21 = vld [vmem:[%s11973_s7 + $0x878] ss:$24 sps:$4 sm:$0xff]  }
 0x40a   :  { %6345 = vmatpush1.bf16.msra.mxu1 %v8839_v22  ;;  %v8888_v22 = vld [vmem:[%s11973_s7 + $0x8ac] ss:$24 sps:$4 sm:$0xff]  }
 0x40b   :  { %6347 = vmatprep.subr.bf16.mxu1 %v8843_v23  ;;  %v8890_v23 = vld [vmem:[%s11973_s7 + $0x8a8] ss:$24 sps:$4 sm:$0xff]  }
 0x40c   :  { %6501 = vmatpush1.bf16.msra.mxu0 %v8794_v24  ;;  %v8894_v24 = vld [vmem:[%s11973_s7 + $0x8dc] ss:$24 sps:$4 sm:$0xff]  }
 0x40d   :  { %6503 = vmatprep.subr.bf16.mxu0 %v8795_v25  ;;  %v8896_v25 = vld [vmem:[%s11973_s7 + $0x8d8] ss:$24 sps:$4 sm:$0xff]  }
 0x40e   :  { %6349 = vmatpush1.bf16.msra.mxu1 %v8845_v26  ;;  %v2786_v26 = vrot.slane %v11158_v40, %v9605_v63 }
 0x40f   :  { %6351 = vmatprep.subr.bf16.mxu1 %v8849_v27  ;;  %v2790_v27 = vrot.slane %v11158_v40, %v9462_v3  ;;  %v8902_v40 = vld [vmem:[%s11973_s7 + $0x40] ss:$24 sps:$4 sm:$0xff]  }
 0x410   :  { %6505 = vmatpush1.bf16.msra.mxu0 %v8797_v28 }
 0x411   :  { %6507 = vmatprep.subr.bf16.mxu0 %v8798_v33 }
 0x412   :  { %6353 = vmatpush1.bf16.msra.mxu1 %v8851_v34 }
 0x413   :  { %6355 = vmatprep.subr.bf16.mxu1 %v8855_v39 }
 0x414   :  { %6509 = vmatpush1.bf16.msra.mxu0 %v8800_v36 }
 0x415   :  { %6511 = vmatprep.subr.bf16.mxu0 %v8804_v57  ;;  %v8899_v57 = vld [vmem:[%s11973_s7 + $0x10] ss:$24 sps:$4 sm:$0xff]  }
 0x416   :  { %6357 = vmatpush1.bf16.msra.mxu1 %v8857_v38 }
 0x417   :  { %4687 = vmatmul.mubr.f32.vlgmr.msra.gmra.mrb[14].mxu0 %v11393_v60  ;;  %6359 = vmatprep.subr.bf16.mxu1 %v8861_v41  ;;  %v8900_v41 = vld [vmem:[%s11973_s7 + $0x44] ss:$24 sps:$4 sm:$0xff]  }
 0x418   :  { %6513 = vmatpush1.bf16.msra.mxu0 %v8806_v43  ;;  %v8903_v43 = vld [vmem:[%s11973_s7 + $0x74] ss:$24 sps:$4 sm:$0xff]  }
 0x419   :  { %6515 = vmatprep.subr.bf16.mxu0 %v8810_v44  ;;  %v8905_v44 = vld [vmem:[%s11973_s7 + $0x70] ss:$24 sps:$4 sm:$0xff]  }
 0x41a   :  { %6361 = vmatpush1.bf16.msra.mxu1 %v8863_v49  ;;  %v8906_v49 = vld [vmem:[%s11973_s7 + $0xa4] ss:$24 sps:$4 sm:$0xff]  }
 0x41b   :  { %6363 = vmatprep.subr.bf16.mxu1 %v8867_v50  ;;  %v8909_v50 = vld [vmem:[%s11973_s7 + $0xd4] ss:$24 sps:$4 sm:$0xff]  }
 0x41c   :  { %6517 = vmatpush1.bf16.msra.mxu0 %v8812_v52  ;;  %v8911_v52 = vld [vmem:[%s11973_s7 + $0xd0] ss:$24 sps:$4 sm:$0xff]  }
 0x41d   :  { %6519 = vmatprep.subr.bf16.mxu0 %v8816_v42  ;;  %v8912_v42 = vld [vmem:[%s11973_s7 + $0x104] ss:$24 sps:$4 sm:$0xff]  }
 0x41e   :  { %6365 = vmatpush1.bf16.msra.mxu1 %v8869_v61  ;;  %v8914_v61 = vld [vmem:[%s11973_s7 + $0x100] ss:$24 sps:$4 sm:$0xff]  }
 0x41f   :  { %6367 = vmatprep.subr.bf16.mxu1 %v8873_v53  ;;  %v8915_v53 = vld [vmem:[%s11973_s7 + $0x134] ss:$24 sps:$4 sm:$0xff]  }
 0x420   :  { %6521 = vmatpush1.bf16.msra.mxu0 %v8818_v54  ;;  %v8917_v54 = vld [vmem:[%s11973_s7 + $0x130] ss:$24 sps:$4 sm:$0xff]  }
 0x421   :  { %6523 = vmatprep.subr.bf16.mxu0 %v8822_v55  ;;  %v8918_v55 = vld [vmem:[%s11973_s7 + $0x164] ss:$24 sps:$4 sm:$0xff]  }
 0x422   :  { %6369 = vmatpush1.bf16.msra.mxu1 %v8875_v56  ;;  %v8920_v56 = vld [vmem:[%s11973_s7 + $0x160] ss:$24 sps:$4 sm:$0xff]  }
 0x423   :  { %6371 = vmatprep.subr.bf16.mxu1 %v8879_v58  ;;  %v8921_v58 = vld [vmem:[%s11973_s7 + $0x194] ss:$24 sps:$4 sm:$0xff]  }
 0x424   :  { %6525 = vmatpush1.bf16.msra.mxu0 %v8824_v59  ;;  %v8923_v59 = vld [vmem:[%s11973_s7 + $0x190] ss:$24 sps:$4 sm:$0xff]  }
 0x425   :  { %6527 = vmatprep.subr.bf16.mxu0 %v8828_v62  ;;  %v8924_v62 = vld [vmem:[%s11973_s7 + $0x1c4] ss:$24 sps:$4 sm:$0xff]  }
 0x426   :  { %6373 = vmatpush1.bf16.msra.mxu1 %v8881_v48  ;;  %v8926_v48 = vld [vmem:[%s11973_s7 + $0x1c0] ss:$24 sps:$4 sm:$0xff]  }
 0x427   :  { %6375 = vmatprep.subr.bf16.mxu1 %v8885_v35  ;;  %v8927_v35 = vld [vmem:[%s11973_s7 + $0x1f4] ss:$24 sps:$4 sm:$0xff]  }
 0x428   :  { %6529 = vmatpush1.bf16.msra.mxu0 %v8830_v1  ;;  %v8929_v1 = vld [vmem:[%s11973_s7 + $0x1f0] ss:$24 sps:$4 sm:$0xff]  }
 0x429   :  { %6531 = vmatprep.subr.bf16.mxu0 %v8834_v2  ;;  %v8930_v2 = vld [vmem:[%s11973_s7 + $0x224] ss:$24 sps:$4 sm:$0xff]  }
 0x42a   :  { %6377 = vmatpush1.bf16.msra.mxu1 %v8887_v29  ;;  %v8932_v29 = vld [vmem:[%s11973_s7 + $0x220] ss:$24 sps:$4 sm:$0xff]  }
 0x42b   :  { %6379 = vmatprep.subr.bf16.mxu1 %v8891_v37  ;;  %v8933_v37 = vld [vmem:[%s11973_s7 + $0x254] ss:$24 sps:$4 sm:$0xff]  }
 0x42c   :  { %6533 = vmatpush1.bf16.msra.mxu0 %v8836_v4  ;;  %v8935_v4 = vld [vmem:[%s11973_s7 + $0x250] ss:$24 sps:$4 sm:$0xff]  }
 0x42d   :  { %6535 = vmatprep.subr.bf16.mxu0 %v8840_v0  ;;  %v8936_v0 = vld [vmem:[%s11973_s7 + $0x284] ss:$24 sps:$4 sm:$0xff]  }
 0x42e   :  { %6381 = vmatpush1.bf16.msra.mxu1 %v8893_v5  ;;  %v8938_v5 = vld [vmem:[%s11973_s7 + $0x280] ss:$24 sps:$4 sm:$0xff]  }
 0x42f   :  { %6575 = vmatprep.subr.bf16.mxu1 %v8897_v6  ;;  %v8939_v6 = vld [vmem:[%s11973_s7 + $0x2b4] ss:$24 sps:$4 sm:$0xff]  }
 0x430   :  { %6537 = vmatpush1.bf16.msra.mxu0 %v8842_v7  ;;  %v8941_v7 = vld [vmem:[%s11973_s7 + $0x2b0] ss:$24 sps:$4 sm:$0xff]  }
 0x431   :  { %6539 = vmatprep.subr.bf16.mxu0 %v8846_v31  ;;  %v8942_v31 = vld [vmem:[%s11973_s7 + $0x2e4] ss:$24 sps:$4 sm:$0xff]  }
 0x434   :  { %6541 = vmatpush1.bf16.msra.mxu0 %v8848_v8  ;;  %v8944_v8 = vld [vmem:[%s11973_s7 + $0x2e0] ss:$24 sps:$4 sm:$0xff]  }
 0x435   :  { %6543 = vmatprep.subr.bf16.mxu0 %v8852_v9  ;;  %v8945_v9 = vld [vmem:[%s11973_s7 + $0x314] ss:$24 sps:$4 sm:$0xff]  }
 0x438   :  { %6545 = vmatpush1.bf16.msra.mxu0 %v8854_v10  ;;  %v8947_v10 = vld [vmem:[%s11973_s7 + $0x310] ss:$24 sps:$4 sm:$0xff]  }
 0x439   :  { %6547 = vmatprep.subr.bf16.mxu0 %v8858_v12  ;;  %v8948_v12 = vld [vmem:[%s11973_s7 + $0x344] ss:$24 sps:$4 sm:$0xff]  }
 0x43c   :  { %6549 = vmatpush1.bf16.msra.mxu0 %v8860_v11  ;;  %v8950_v11 = vld [vmem:[%s11973_s7 + $0x340] ss:$24 sps:$4 sm:$0xff]  }
 0x43d   :  { %6551 = vmatprep.subr.bf16.mxu0 %v8864_v14  ;;  %v8951_v14 = vld [vmem:[%s11973_s7 + $0x374] ss:$24 sps:$4 sm:$0xff]  }
 0x440   :  { %6553 = vmatpush1.bf16.msra.mxu0 %v8866_v15  ;;  %v8953_v15 = vld [vmem:[%s11973_s7 + $0x370] ss:$24 sps:$4 sm:$0xff]  }
 0x441   :  { %6555 = vmatprep.subr.bf16.mxu0 %v8870_v16  ;;  %v8957_v16 = vld [vmem:[%s11973_s7 + $0x3d4] ss:$24 sps:$4 sm:$0xff]  }
 0x444   :  { %6557 = vmatpush1.bf16.msra.mxu0 %v8872_v17  ;;  %v8959_v17 = vld [vmem:[%s11973_s7 + $0x3d0] ss:$24 sps:$4 sm:$0xff]  }
 0x445   :  { %6559 = vmatprep.subr.bf16.mxu0 %v8876_v19  ;;  %v8960_v19 = vld [vmem:[%s11973_s7 + $0x404] ss:$24 sps:$4 sm:$0xff]  }
 0x448   :  { %6561 = vmatpush1.bf16.msra.mxu0 %v8878_v20  ;;  %v8962_v20 = vld [vmem:[%s11973_s7 + $0x400] ss:$24 sps:$4 sm:$0xff]  }
 0x449   :  { %6563 = vmatprep.subr.bf16.mxu0 %v8882_v47  ;;  %v8963_v47 = vld [vmem:[%s11973_s7 + $0x434] ss:$24 sps:$4 sm:$0xff]  }
 0x44c   :  { %6565 = vmatpush1.bf16.msra.mxu0 %v8884_v21  ;;  %v8965_v21 = vld [vmem:[%s11973_s7 + $0x430] ss:$24 sps:$4 sm:$0xff]  }
 0x44d   :  { %6567 = vmatprep.subr.bf16.mxu0 %v8888_v22  ;;  %v8966_v22 = vld [vmem:[%s11973_s7 + $0x464] ss:$24 sps:$4 sm:$0xff]  }
 0x450   :  { %6569 = vmatpush1.bf16.msra.mxu0 %v8890_v23  ;;  %v8968_v23 = vld [vmem:[%s11973_s7 + $0x460] ss:$24 sps:$4 sm:$0xff]  }
 0x451   :  { %6571 = vmatprep.subr.bf16.mxu0 %v8894_v24  ;;  %v8969_v24 = vld [vmem:[%s11973_s7 + $0x494] ss:$24 sps:$4 sm:$0xff]  }
 0x454   :  { %6573 = vmatpush1.bf16.msra.mxu0 %v8896_v25  ;;  %v8971_v25 = vld [vmem:[%s11973_s7 + $0x490] ss:$24 sps:$4 sm:$0xff]  }
 0x46a   :  { %v3431_v28 = vpop.f32.mrb[12].mxu0 }
 0x46b   :  { %v6778_v33 = vadd.f32 %v3431_v28, %v2786_v26  ;;  %v3433_v34 = vpop.f32.mrb[13].mxu0  ;;  %v8972_v26 = vld [vmem:[%s11973_s7 + $0x4c4] ss:$24 sps:$4 sm:$0xff]   ;;  %v8975_v28 = vld [vmem:[%s11973_s7 + $0x4f4] ss:$24 sps:$4 sm:$0xff]  }
 0x46c   :  { %v6779_v39 = vadd.f32 %v3433_v34, %v2790_v27  ;;  %v8974_v27 = vld [vmem:[%s11973_s7 + $0x4c0] ss:$24 sps:$4 sm:$0xff]   ;;  %v8978_v34 = vld [vmem:[%s11973_s7 + $0x524] ss:$24 sps:$4 sm:$0xff]  }
 0x46d   :  { %v11646_v38 = vmax.f32 %v6778_v33, 0.0  ;;  %v8977_v33 = vld [vmem:[%s11973_s7 + $0x4f0] ss:$24 sps:$4 sm:$0xff]  }
 0x46e   :  { %v11641_v36 = vmax.f32 %v6779_v39, 0.0  ;;  %v8980_v39 = vld [vmem:[%s11973_s7 + $0x520] ss:$24 sps:$4 sm:$0xff]  }
 0x470   :  { %4544 = vmatprep.mubr.f32.mxu1 %v11641_v36  ;;  %4757 = vmatprep.mubr.f32.mxu0 %v11641_v36 }
 0x471   :  { %4545 = vmatmul.mubr.f32.vlgmr.msra.gmra.mrb[6].mxu1 %v11646_v38  ;;  %4758 = vmatmul.mubr.f32.vlgmr.msra.gmra.mrb[14].mxu0 %v11646_v38 }
 0x472   :  { %6577 = vmatpush1.bf16.msra.mxu1 %v8899_v57  ;;  %4828 = vmatprep.mubr.f32.mxu1 %v11180_v13  ;;  %v8908_v13 = vld [vmem:[%s11973_s7 + $0xa0] ss:$24 sps:$4 sm:$0xff]   ;;  %v8981_v57 = vld [vmem:[%s11973_s7 + $0x554] ss:$24 sps:$4 sm:$0xff]  }
 0x473   :  { %6579 = vmatprep.subr.bf16.mxu1 %v8900_v41  ;;  %v8983_v41 = vld [vmem:[%s11973_s7 + $0x550] ss:$24 sps:$4 sm:$0xff]  }
 0x476   :  { %6581 = vmatpush1.bf16.msra.mxu1 %v8902_v40  ;;  %v8984_v40 = vld [vmem:[%s11973_s7 + $0x584] ss:$24 sps:$4 sm:$0xff]  }
 0x477   :  { %6583 = vmatprep.subr.bf16.mxu1 %v8903_v43  ;;  %v8986_v43 = vld [vmem:[%s11973_s7 + $0x580] ss:$24 sps:$4 sm:$0xff]  }
 0x47a   :  { %6585 = vmatpush1.bf16.msra.mxu1 %v8905_v44  ;;  %v8987_v44 = vld [vmem:[%s11973_s7 + $0x5b4] ss:$24 sps:$4 sm:$0xff]  }
 0x47b   :  { %6587 = vmatprep.subr.bf16.mxu1 %v8906_v49  ;;  %v8989_v49 = vld [vmem:[%s11973_s7 + $0x5b0] ss:$24 sps:$4 sm:$0xff]  }
 0x47e   :  { %6589 = vmatpush1.bf16.msra.mxu1 %v8908_v13  ;;  %v8990_v13 = vld [vmem:[%s11973_s7 + $0x5e4] ss:$24 sps:$4 sm:$0xff]  }
 0x47f   :  { %6591 = vmatprep.subr.bf16.mxu1 %v8909_v50  ;;  %v8992_v50 = vld [vmem:[%s11973_s7 + $0x5e0] ss:$24 sps:$4 sm:$0xff]  }
 0x482   :  { %6593 = vmatpush1.bf16.msra.mxu1 %v8911_v52  ;;  %v8993_v52 = vld [vmem:[%s11973_s7 + $0x614] ss:$24 sps:$4 sm:$0xff]  }
 0x483   :  { %6595 = vmatprep.subr.bf16.mxu1 %v8912_v42  ;;  %v8995_v42 = vld [vmem:[%s11973_s7 + $0x610] ss:$24 sps:$4 sm:$0xff]  }
 0x486   :  { %6597 = vmatpush1.bf16.msra.mxu1 %v8914_v61  ;;  %v8996_v61 = vld [vmem:[%s11973_s7 + $0x644] ss:$24 sps:$4 sm:$0xff]  }
 0x487   :  { %6599 = vmatprep.subr.bf16.mxu1 %v8915_v53  ;;  %v8998_v53 = vld [vmem:[%s11973_s7 + $0x640] ss:$24 sps:$4 sm:$0xff]  }
 0x48a   :  { %6601 = vmatpush1.bf16.msra.mxu1 %v8917_v54  ;;  %v8999_v54 = vld [vmem:[%s11973_s7 + $0x674] ss:$24 sps:$4 sm:$0xff]  }
 0x48b   :  { %6603 = vmatprep.subr.bf16.mxu1 %v8918_v55  ;;  %v9001_v55 = vld [vmem:[%s11973_s7 + $0x670] ss:$24 sps:$4 sm:$0xff]  }
 0x48e   :  { %6605 = vmatpush1.bf16.msra.mxu1 %v8920_v56  ;;  %v9005_v56 = vld [vmem:[%s11973_s7 + $0x6d4] ss:$24 sps:$4 sm:$0xff]  }
 0x48f   :  { %6607 = vmatprep.subr.bf16.mxu1 %v8921_v58  ;;  %v9007_v58 = vld [vmem:[%s11973_s7 + $0x6d0] ss:$24 sps:$4 sm:$0xff]  }
 0x492   :  { %6609 = vmatpush1.bf16.msra.mxu1 %v8923_v59  ;;  %v9008_v59 = vld [vmem:[%s11973_s7 + $0x704] ss:$24 sps:$4 sm:$0xff]  }
 0x493   :  { %6611 = vmatprep.subr.bf16.mxu1 %v8924_v62  ;;  %v9010_v62 = vld [vmem:[%s11973_s7 + $0x700] ss:$24 sps:$4 sm:$0xff]  }
 0x496   :  { %6613 = vmatpush1.bf16.msra.mxu1 %v8926_v48  ;;  %v9011_v48 = vld [vmem:[%s11973_s7 + $0x734] ss:$24 sps:$4 sm:$0xff]  }
 0x497   :  { %6615 = vmatprep.subr.bf16.mxu1 %v8927_v35  ;;  %v9013_v35 = vld [vmem:[%s11973_s7 + $0x730] ss:$24 sps:$4 sm:$0xff]  }
 0x49a   :  { %6617 = vmatpush1.bf16.msra.mxu1 %v8929_v1  ;;  %v9014_v1 = vld [vmem:[%s11973_s7 + $0x764] ss:$24 sps:$4 sm:$0xff]  }
 0x49b   :  { %6619 = vmatprep.subr.bf16.mxu1 %v8930_v2  ;;  %v9016_v2 = vld [vmem:[%s11973_s7 + $0x760] ss:$24 sps:$4 sm:$0xff]  }
 0x49e   :  { %6621 = vmatpush1.bf16.msra.mxu1 %v8932_v29  ;;  %v9017_v29 = vld [vmem:[%s11973_s7 + $0x794] ss:$24 sps:$4 sm:$0xff]  }
 0x49f   :  { %6623 = vmatprep.subr.bf16.mxu1 %v8933_v37  ;;  %v9019_v37 = vld [vmem:[%s11973_s7 + $0x790] ss:$24 sps:$4 sm:$0xff]  }
 0x4a2   :  { %6625 = vmatpush1.bf16.msra.mxu1 %v8935_v4  ;;  %v9020_v4 = vld [vmem:[%s11973_s7 + $0x7c4] ss:$24 sps:$4 sm:$0xff]  }
 0x4a3   :  { %6627 = vmatprep.subr.bf16.mxu1 %v8936_v0  ;;  %v9022_v0 = vld [vmem:[%s11973_s7 + $0x7c0] ss:$24 sps:$4 sm:$0xff]  }
 0x4a6   :  { %6629 = vmatpush1.bf16.msra.mxu1 %v8938_v5  ;;  %v9023_v5 = vld [vmem:[%s11973_s7 + $0x7f4] ss:$24 sps:$4 sm:$0xff]  }
 0x4a7   :  { %6631 = vmatprep.subr.bf16.mxu1 %v8939_v6  ;;  %v9025_v6 = vld [vmem:[%s11973_s7 + $0x7f0] ss:$24 sps:$4 sm:$0xff]  }
 0x4aa   :  { %6633 = vmatpush1.bf16.msra.mxu1 %v8941_v7  ;;  %v9026_v7 = vld [vmem:[%s11973_s7 + $0x824] ss:$24 sps:$4 sm:$0xff]  }
 0x4ab   :  { %6635 = vmatprep.subr.bf16.mxu1 %v8942_v31  ;;  %v9028_v31 = vld [vmem:[%s11973_s7 + $0x820] ss:$24 sps:$4 sm:$0xff]  }
 0x4ae   :  { %6637 = vmatpush1.bf16.msra.mxu1 %v8944_v8  ;;  %v9029_v8 = vld [vmem:[%s11973_s7 + $0x854] ss:$24 sps:$4 sm:$0xff]  }
 0x4af   :  { %6639 = vmatprep.subr.bf16.mxu1 %v8945_v9  ;;  %v9031_v9 = vld [vmem:[%s11973_s7 + $0x850] ss:$24 sps:$4 sm:$0xff]  }
 0x4b1   :  { %4829 = vmatmul.mubr.f32.vlgmr.msra.gmra.mrb[8].mxu1 %v11185_v18  ;;  %v8954_v18 = vld [vmem:[%s11973_s7 + $0x3a4] ss:$24 sps:$4 sm:$0xff]  }
 0x4b2   :  { %6641 = vmatpush1.bf16.msra.mxu1 %v8947_v10  ;;  %4899 = vmatprep.mubr.f32.mxu1 %v11193_v51  ;;  %v8956_v51 = vld [vmem:[%s11973_s7 + $0x3a0] ss:$24 sps:$4 sm:$0xff]   ;;  %v9032_v10 = vld [vmem:[%s11973_s7 + $0x884] ss:$24 sps:$4 sm:$0xff]  }
 0x4b3   :  { %6643 = vmatprep.subr.bf16.mxu1 %v8948_v12  ;;  %v9034_v12 = vld [vmem:[%s11973_s7 + $0x880] ss:$24 sps:$4 sm:$0xff]  }
 0x4b6   :  { %6645 = vmatpush1.bf16.msra.mxu1 %v8950_v11  ;;  %v9035_v11 = vld [vmem:[%s11973_s7 + $0x8b4] ss:$24 sps:$4 sm:$0xff]  }
 0x4b7   :  { %6647 = vmatprep.subr.bf16.mxu1 %v8951_v14  ;;  %v9037_v14 = vld [vmem:[%s11973_s7 + $0x8b0] ss:$24 sps:$4 sm:$0xff]  }
 0x4ba   :  { %6649 = vmatpush1.bf16.msra.mxu1 %v8953_v15  ;;  %v9038_v15 = vld [vmem:[%s11973_s7 + $0x8e4] ss:$24 sps:$4 sm:$0xff]  }
 0x4bb   :  { %6651 = vmatprep.subr.bf16.mxu1 %v8954_v18  ;;  %v9040_v18 = vld [vmem:[%s11973_s7 + $0x8e0] ss:$24 sps:$4 sm:$0xff]  }
 0x4be   :  { %6653 = vmatpush1.bf16.msra.mxu1 %v8956_v51  ;;  %v4306_v51 = vld [vmem:[%s11975_s8] sm:$0x3f] }
 0x4bf   :  { %6655 = vmatprep.subr.bf16.mxu1 %v8957_v16  ;;  %v4311_v16 = vrot.slane %v4306_v51, %v9376_v30  ;;  %v4327_v30 = vrot.slane %v4306_v51, %v9605_v63 }
 0x4c2   :  { %6657 = vmatpush1.bf16.msra.mxu1 %v8959_v17  ;;  %v4319_v17 = vrot.slane %v4306_v51, %v9410_v45 }
 0x4c3   :  { %6659 = vmatprep.subr.bf16.mxu1 %v8960_v19  ;;  %v4315_v19 = vrot.slane %v4306_v51, %v9384_v32  ;;  %v4331_v32 = vrot.slane %v4306_v51, %v9462_v3 }
 0x4c6   :  { %6661 = vmatpush1.bf16.msra.mxu1 %v8962_v20  ;;  %v4323_v20 = vrot.slane %v4306_v51, %v9413_v46 }
 0x4c7   :  { %6663 = vmatprep.subr.bf16.mxu1 %v8963_v47 }
 0x4ca   :  { %6665 = vmatpush1.bf16.msra.mxu1 %v8965_v21 }
 0x4cb   :  { %6667 = vmatprep.subr.bf16.mxu1 %v8966_v22 }
 0x4ce   :  { %6669 = vmatpush1.bf16.msra.mxu1 %v8968_v23 }
 0x4cf   :  { %6671 = vmatprep.subr.bf16.mxu1 %v8969_v24 }
 0x4d2   :  { %6673 = vmatpush1.bf16.msra.mxu1 %v8971_v25 }
 0x4d3   :  { %6675 = vmatprep.subr.bf16.mxu1 %v8972_v26 }
 0x4d6   :  { %6677 = vmatpush1.bf16.msra.mxu1 %v8974_v27 }
 0x4d7   :  { %6679 = vmatprep.subr.bf16.mxu1 %v8975_v28 }
 0x4da   :  { %6681 = vmatpush1.bf16.msra.mxu1 %v8977_v33 }
 0x4db   :  { %6683 = vmatprep.subr.bf16.mxu1 %v8978_v34 }
 0x4de   :  { %6685 = vmatpush1.bf16.msra.mxu1 %v8980_v39 }
 0x4df   :  { %6687 = vmatprep.subr.bf16.mxu1 %v8981_v57 }
 0x4e2   :  { %6689 = vmatpush1.bf16.msra.mxu1 %v8983_v41 }
 0x4e3   :  { %6691 = vmatprep.subr.bf16.mxu1 %v8984_v40 }
 0x4e6   :  { %6693 = vmatpush1.bf16.msra.mxu1 %v8986_v43 }
 0x4e7   :  { %6695 = vmatprep.subr.bf16.mxu1 %v8987_v44 }
 0x4ea   :  { %6697 = vmatpush1.bf16.msra.mxu1 %v8989_v49 }
 0x4eb   :  { %6699 = vmatprep.subr.bf16.mxu1 %v8990_v13 }
 0x4ee   :  { %6701 = vmatpush1.bf16.msra.mxu1 %v8992_v50 }
 0x4ef   :  { %6703 = vmatprep.subr.bf16.mxu1 %v8993_v52 }
 0x4f1   :  { %4900 = vmatmul.mubr.f32.vlgmr.msra.gmra.mrb[8].mxu1 %v11393_v60  ;;  %v9002_v60 = vld [vmem:[%s11973_s7 + $0x6a4] ss:$24 sps:$4 sm:$0xff]  }
 0x4f2   :  { %6705 = vmatpush1.bf16.msra.mxu1 %v8995_v42  ;;  %4970 = vmatprep.mubr.f32.mxu1 %v11641_v36  ;;  %v9004_v36 = vld [vmem:[%s11973_s7 + $0x6a0] ss:$24 sps:$4 sm:$0xff]  }
 0x4f3   :  { %6707 = vmatprep.subr.bf16.mxu1 %v8996_v61 }
 0x4f6   :  { %6709 = vmatpush1.bf16.msra.mxu1 %v8998_v53 }
 0x4f7   :  { %6711 = vmatprep.subr.bf16.mxu1 %v8999_v54 }
 0x4fa   :  { %6713 = vmatpush1.bf16.msra.mxu1 %v9001_v55 }
 0x4fb   :  { %6715 = vmatprep.subr.bf16.mxu1 %v9002_v60 }
 0x4fe   :  { %6717 = vmatpush1.bf16.msra.mxu1 %v9004_v36 }
 0x4ff   :  { %6719 = vmatprep.subr.bf16.mxu1 %v9005_v56 }
 0x502   :  { %6721 = vmatpush1.bf16.msra.mxu1 %v9007_v58 }
 0x503   :  { %6723 = vmatprep.subr.bf16.mxu1 %v9008_v59 }
 0x506   :  { %6725 = vmatpush1.bf16.msra.mxu1 %v9010_v62 }
 0x507   :  { %6727 = vmatprep.subr.bf16.mxu1 %v9011_v48 }
 0x50a   :  { %6729 = vmatpush1.bf16.msra.mxu1 %v9013_v35 }
 0x50b   :  { %6731 = vmatprep.subr.bf16.mxu1 %v9014_v1 }
 0x50e   :  { %6733 = vmatpush1.bf16.msra.mxu1 %v9016_v2 }
 0x50f   :  { %6735 = vmatprep.subr.bf16.mxu1 %v9017_v29 }
 0x512   :  { %6737 = vmatpush1.bf16.msra.mxu1 %v9019_v37 }
 0x513   :  { %6739 = vmatprep.subr.bf16.mxu1 %v9020_v4 }
 0x516   :  { %6741 = vmatpush1.bf16.msra.mxu1 %v9022_v0 }
 0x517   :  { %6743 = vmatprep.subr.bf16.mxu1 %v9023_v5 }
 0x51a   :  { %6745 = vmatpush1.bf16.msra.mxu1 %v9025_v6 }
 0x51b   :  { %6747 = vmatprep.subr.bf16.mxu1 %v9026_v7 }
 0x51e   :  { %6749 = vmatpush1.bf16.msra.mxu1 %v9028_v31 }
 0x51f   :  { %6751 = vmatprep.subr.bf16.mxu1 %v9029_v8 }
 0x522   :  { %6753 = vmatpush1.bf16.msra.mxu1 %v9031_v9 }
 0x523   :  { %6755 = vmatprep.subr.bf16.mxu1 %v9032_v10 }
 0x526   :  { %6757 = vmatpush1.bf16.msra.mxu1 %v9034_v12 }
 0x527   :  { %6759 = vmatprep.subr.bf16.mxu1 %v9035_v11 }
 0x52a   :  { %6761 = vmatpush1.bf16.msra.mxu1 %v9037_v14 }
 0x52b   :  { %6763 = vmatprep.subr.bf16.mxu1 %v9038_v15 }
 0x52e   :  { %6765 = vmatpush1.bf16.msra.mxu1 %v9040_v18 }
 0x531   :  { %4971 = vmatmul.mubr.f32.vlgmr.msra.gmra.mrb[8].mxu1 %v11646_v38 }
 0x544   :  { %v4546_v47 = vpop.f32.mrb[6].mxu1  ;;  %v4759_v21 = vpop.f32.mrb[14].mxu0 }
 0x545   :  { %v6780_v22 = vadd.f32 %v4546_v47, %v4311_v16  ;;  %v6782_v23 = vadd.f32 %v4759_v21, %v4319_v17  ;;  %v4548_v24 = vpop.f32.mrb[7].mxu1  ;;  %v4761_v25 = vpop.f32.mrb[15].mxu0 }
 0x546   :  { %v6781_v26 = vadd.f32 %v4548_v24, %v4315_v19  ;;  %v6783_v38 = vadd.f32 %v4761_v25, %v4323_v20 }
 0x547   :  { %4977 = vst [vmem:[%s11976_s9] sm:$0xff] %v6780_v22  ;;  %4979 = vst [vmem:[%s11976_s9 + $0x10] sm:$0xff] %v6782_v23 }
 0x548   :  { %4978 = vst [vmem:[%s11976_s9 + $0x8] sm:$0xff] %v6781_v26  ;;  %4980 = vst [vmem:[%s11976_s9 + $0x18] sm:$0xff] %v6783_v38 }
 0x604   :  { %v4972_v45 = vpop.f32.mrb[8].mxu1 }
 0x605   :  { %v6784_v46 = vadd.f32 %v4972_v45, %v4327_v30  ;;  %v4974_v27 = vpop.f32.mrb[9].mxu1 }
 0x606   :  { %v6785_v28 = vadd.f32 %v4974_v27, %v4331_v32 }
 0x607   :  { %4981 = vst [vmem:[%s11976_s9 + $0x20] sm:$0xff] %v6784_v46 }
 0x608   :  { %4982 = vst [vmem:[%s11976_s9 + $0x28] sm:$0xff] %v6785_v28 }

// kernel: scenenet_forward_classification.5
= control target key start
LH: loop header
LB: loop body
LE: loop exit
PB: predicated region body
PF: predicated region fallthrough
CT: control target
= control target key end

     0   :  { %s17913_s0 = inlined_call_operand.vmem [shape: f32[8,2560], index: 0, kind: input, shape index: {}]   ;;  %s17914_s1 = inlined_call_operand.hbm [shape: bf16[3,2432,2560], index: 1, kind: input, shape index: {}]   ;;  %s17915_s2 = inlined_call_operand.hbm [shape: f32[3,1,2560], index: 2, kind: input, shape index: {}]   ;;  %s17916_s3 = inlined_call_operand.vmem [shape: f32[8,2560], index: 3, kind: output, shape index: {}]  }
   0x1   :  { %17920 = sst [smem:[#allocation11_spill]] %s17914_s1 }
   0x2   :  { %8 = vsyncpa [#allocation4], 0 }
   0x3   :  { %10 = vsyncpa [#allocation4 + $0x1], 0 }
   0x4   :  { %11 = vsyncpa [#allocation6], 0 }
   0x5   :  { %13 = vsyncpa [#allocation6 + $0x1], 0  ;;  %s15885_s12 = smov 0   ;;  %s15887_s13 = smov 0  }
   0x6   :  { %s15889_s14 = smov 0   ;;  %s15891_s15 = smov 0  }
   0x7   :  { %s15893_s16 = smov 0   ;;  %s15895_s17 = smov 0  }
   0x8   :  { %s15897_s18 = smov 0   ;;  %s15899_s19 = smov 0  }
   0x9 LB: > { %s8672_s20 = sadd.s32 4294967295, %s15857_s19   ;;  %s28_s21 = sadd.s32 1, %s15849_s17  ;;  %s15857_s19 = sphi %s15899_s19, %s19_s19   ;;  %s15853_s18 = sphi %s15897_s18, %s17936_s18   ;;  %s15849_s17 = sphi %s15895_s17, %s17935_s17   ;;  %s15845_s16 = sphi %s15893_s16, %s17934_s16   ;;  %s15841_s15 = sphi %s15891_s15, %s17933_s15   ;;  %s15837_s14 = sphi %s15889_s14, %s17932_s14   ;;  %s15833_s13 = sphi %s15887_s13, %s17931_s13   ;;  %s15829_s12 = sphi %s15885_s12, %s17930_s12  }
   0xa   : > { %p29_p0 = scmp.ge.s32.totalorder %s28_s21, 2  ;;  %s31_s22 = sadd.s32 1, %s15853_s18 }
   0xb   : > { %s61_s23 = sadd.s32 1, %s15837_s14  ;;  %p68_p1 = scmp.ne.s32.totalorder %s15837_s14, %s15833_s13 }
   0xc   : > { %s17938_s21 = smov (%p29_p0, %s28_s21), 0  ;;  %s17940_s22 = smov (!%p29_p0, %s31_s22), %s15853_s18 }
   0xd   : > { %17921 = sst [smem:[#allocation9_spill]] %s17938_s21  ;;  %s57_s24 = ssub.s32 %s15849_s17, %s17938_s21 }
   0xe   : > { %p69_p2 = scmp.eq.s32.totalorder %s15857_s19, 0  ;;  %p33_p3 = scmp.ge.s32.totalorder %s17940_s22, 3 }
   0xf   : > { %p74_p4 = scmp.ne.s32.totalorder %s15833_s13, %s15829_s12  ;;  %p75_p6 = scmp.eq.s32.totalorder %s8672_s20, 0 }
  0x10   : > { %p70_p5 = por %p69_p2, %p68_p1  ;;  %s17942_s22 = smov (%p33_p3, %s17940_s22), 0 }
  0x11   : > { %17922 = sst [smem:[#allocation10_spill]] %s17942_s22  ;;  %p15938_p7 = por %p75_p6, %p74_p4 }
  0x12   : > { %s56_s26 = ssub.s32 %s15853_s18, %s17942_s22  ;;  %p13369_p8 = scmp.lt.s32.totalorder %s15857_s19, 6 }
  0x13   : > { %s17923_s25 = scalar_select %p15938_p7, 1, 0 }
  0x14   : > { %s58_s27 = sor.u32 %s57_s24, %s56_s26  ;;  %s15946_s28 = sand.u32 1, %s15837_s14  }
  0x15   : > { %p59_p9 = scmp.eq.s32.totalorder %s58_s27, 0  ;;  %s13352_s29 = smul.u32 12160, %s15946_s28 }
  0x16   : > { %p15949_p10 = pnand %p13369_p8, %p70_p5  ;;  %s160_s5 = smul.u32 10, %s15849_s17 }
  0x17   : > { %s15954_s4 = scalar_select %p59_p9, %s15837_s14, %s61_s23  }
  0x18   : > { %s13353_s6 = smul.u32 6080, %s15853_s18  ;;  %s159_s7 = scalar_lea.vmem [#allocation3], %s13352_s29 }
  0x19   : > { %s168_s8 = sshll.u32 %s159_s7, 4  ;;  %s17925_s1 = sld [smem:[#allocation11_spill]]  ;;  %s15958_s8 = int_to_ptr.vmem [resolvable:$true] %s168_s8 }
  0x1a   : > { %s165_s9 = sadd.s32 %s13353_s6, %s160_s5  ;;  %s156_s23 = scalar_lea.sflag [#allocation4], %s15946_s28 }
  0x1b   : > { %s8676_s10 = sshll.u32 %s165_s9, 6  ;;  %p15729_p12 = pneg %p15949_p10 }
  0x1f   : > { %s15965_s20 = scalar_lea.hbm %s17925_s1, %s8676_s10  ;;  %s15732_s29 = scalar_lea.hbm %s17925_s1, 1167360 }
  0x20   : > { %s15727_s24 = scalar_lea.hbm %s15965_s20, 194560  ;;  %p15733_p1 = scmp.lt.u32.totalorder %s15965_s20, %s17925_s1 }
  0x21   : > { %p15728_p11 = scmp.ne.s32.totalorder %s15965_s20, %s15727_s24  ;;  %p15734_p2 = scmp.lt.u32.totalorder %s15732_s29, %s15727_s24 }
  0x22   : > { %p15736_p4 = scmp.lt.u32.totalorder %s15727_s24, %s15965_s20 }
  0x23   : > { %p15730_p13 = pnand %p15729_p12, %p15728_p11  ;;  %p15735_p3 = por %p15734_p2, %p15733_p1 }
  0x25   : > { %p15731_p0 = pneg %p15730_p13  ;;  %p15737_p5 = por %p15736_p4, %p15735_p3 }
  0x27   : > { %p15738_p6 = pnand %p15737_p5, %p15731_p0 }
  0x29   : > { %15741 = shalt.err (!%p15738_p6)
}
  0x2a   : > { %s15742_s9 = scalar_lea.vmem %s15958_s8, 194560  ;;  %s15859_s10 = smov [#allocation3]  }
  0x2b   : > { %p15743_p8 = scmp.ne.s32.totalorder %s15958_s8, %s15742_s9  ;;  %s15747_s11 = sshll.u32 %s15859_s10, 4  ;;  %s15748_s11 = int_to_ptr.vmem [resolvable:$false] %s15747_s11 }
  0x2c   : > { %s15749_s12 = scalar_lea.vmem %s15748_s11, 389120  ;;  %p15750_p13 = scmp.lt.s32.totalorder %s15958_s8, %s15748_s11 }
  0x2d   : > { %p15745_p9 = pnand %p15743_p8, %p15729_p12  ;;  %p15751_p1 = scmp.lt.s32.totalorder %s15749_s12, %s15742_s9 }
  0x2f   : > { %p15746_p11 = pneg %p15745_p9  ;;  %p15752_p2 = por %p15751_p1, %p15750_p13 }
  0x31   : > { %p15753_p3 = pnand %p15752_p2, %p15746_p11 }
  0x33   : > { %15756 = shalt.err (!%p15753_p3)
}
  0x34   : > { %s15860_s24 = smov 1280   ;;  %s15861_s26 = smov 640  }
  0x35   : > { %s15862_s27 = smov 40   ;;  %p8678_p0 = scmp.ge.s32.totalorder %s15857_s19, 1 }
  0x36   : > { %13365 = dma.hbm_to_vmem [thread:$0]  (!%p15949_p10), %s15965_s20, 194560, %s15958_s8, %s156_s23, %s15860_s24, %s15861_s26, %s15862_s27  }
  0x37   : > { %p197_p4 = scmp.lt.s32.totalorder %s15857_s19, 7  ;;  %s13354_s29 = smul.u32 10, %s15946_s28 }
  0x38   : > { %s13355_s7 = smul.u32 20, %s15853_s18  ;;  %s179_s8 = scalar_lea.sflag [#allocation6], %s15946_s28 }
  0x39   : > { %p15998_p5 = pnand %p8678_p0, %p197_p4  ;;  %s182_s10 = scalar_lea.vmem [#allocation5], %s13354_s29 }
  0x3a   : > { %s188_s9 = sadd.s32 %s13355_s7, %s160_s5  ;;  %s192_s11 = sshll.u32 %s182_s10, 4  ;;  %s16005_s11 = int_to_ptr.vmem [resolvable:$true] %s192_s11 }
  0x3b   : > { %s8677_s12 = sshll.u32 %s188_s9, 4  ;;  %s15762_s5 = scalar_lea.hbm %s17915_s2, 960 }
  0x3c   : > { %s190_s21 = scalar_lea.hbm %s17915_s2, %s8677_s12 }
  0x3d   : > { %s15757_s20 = scalar_lea.hbm %s190_s21, 160  ;;  %p15763_p11 = scmp.lt.u32.totalorder %s190_s21, %s17915_s2 }
  0x3e   : > { %p15758_p6 = scmp.ne.s32.totalorder %s190_s21, %s15757_s20  ;;  %p15764_p13 = scmp.lt.u32.totalorder %s15762_s5, %s15757_s20 }
  0x3f   : > { %p15766_p2 = scmp.lt.u32.totalorder %s15757_s20, %s190_s21 }
  0x40   : > { %p15760_p8 = pnand %p15758_p6, %p15729_p12  ;;  %p15765_p1 = por %p15764_p13, %p15763_p11 }
  0x42   : > { %p15761_p9 = pneg %p15760_p8  ;;  %p15767_p3 = por %p15766_p2, %p15765_p1 }
  0x44   : > { %p15768_p0 = pnand %p15767_p3, %p15761_p9 }
  0x46   : > { %15771 = shalt.err (!%p15768_p0)
}
  0x47   : > { %s15772_s1 = scalar_lea.vmem %s16005_s11, 160  ;;  %s15863_s22 = smov [#allocation5]  }
  0x48   : > { %p15773_p4 = scmp.ne.s32.totalorder %s16005_s11, %s15772_s1  ;;  %s15777_s28 = sshll.u32 %s15863_s22, 4  ;;  %s15778_s28 = int_to_ptr.vmem [resolvable:$false] %s15777_s28 }
  0x49   : > { %s15779_s29 = scalar_lea.vmem %s15778_s28, 320  ;;  %p15780_p7 = scmp.lt.s32.totalorder %s16005_s11, %s15778_s28 }
  0x4a   : > { %p15775_p6 = pnand %p15773_p4, %p15729_p12  ;;  %p15781_p11 = scmp.lt.s32.totalorder %s15779_s29, %s15772_s1 }
  0x4c   : > { %p15776_p8 = pneg %p15775_p6  ;;  %p15782_p13 = por %p15781_p11, %p15780_p7 }
  0x4e   : > { %p15783_p1 = pnand %p15782_p13, %p15776_p8 }
  0x50   : > { %15786 = shalt.err (!%p15783_p1)
}
  0x51   : > { %13368 = dma.hbm_to_vmem [thread:$0]  (!%p15949_p10), %s190_s21, 160, %s16005_s11, %s179_s8  }
  0x52   : > { %201 = sbr.rel (%p15998_p5) target bundleno = 1865 (0x749), region = 32  ;;  %s203_s7 = sand.u32 (!%p15998_p5), 1, %s15833_s13  }
  0x53   : > { %s13356_s9 = smul.u32 (!%p15998_p5), 12160, %s203_s7  ;;  %s204_s10 = scalar_lea.sflag (!%p15998_p5), [#allocation4], %s203_s7 }
  0x54   : > { %p17927_p12 = scmp.ne.s32.totalorder (!%p15998_p5), %s17923_s25, 0 }
  0x55   : > { %s16032_s12 = scalar_lea.vmem (!%p15998_p5), [#allocation3], %s13356_s9 }
  0x59   : > { %15820 = dma.done.wait (%p17927_p12), %s204_s10, 194560  }
  0x5a   : > { %15822 = vsyncadd (%p17927_p12), %s204_s10, 4294772736  ;;  %s13357_s20 = smul.u32 10, %s203_s7  ;;  %s213_s30 = scalar_lea.sflag [#allocation6], %s203_s7 }
  0x5c   : > { %s16038_s23 = scalar_lea.vmem [#allocation5], %s13357_s20 }
  0x5d   : > { %15824 = dma.done.wait (%p17927_p12), %s213_s30, 160  }
  0x5e   : > { %15826 = vsyncadd (%p17927_p12), %s213_s30, 4294967136  ;;  %s246_s21 = smul.u32 10, %s15841_s15  ;;  %p252_p7 = scmp.eq.s32.totalorder %s15845_s16, 0 }
  0x5f   : > { %p253_p10 = scmp.eq.s32.totalorder %s15841_s15, 0 }
  0x60   : > { %p247_p5 = scmp.lt.s32.totalorder %s246_s21, 19 }
  0x61   : > { %p254_p9 = pnand %p253_p10, %p252_p7 }
  0x62   : > { %s17944_s21 = smov (!%p247_p5, %s246_s21), 19  ;;  %v258_v0 = vld [vmem:[%s17913_s0] sm:$0xff] (!%p254_p9)  ;;  %v259_v1 = vld [vmem:[%s17913_s0 + $0x8] sm:$0xff] (!%p254_p9)  ;;  %v260_v2 = vld [vmem:[%s17913_s0 + $0x10] sm:$0xff] (!%p254_p9) }
  0x63   : > { %s8679_s6 = sshll.u32 %s17944_s21, 3  ;;  %257 = sbr.rel (%p254_p9) target bundleno = 109 (0x6d), region = 44  ;;  %277 = vst [vmem:[#allocation2] sm:$0xff] (!%p254_p9), %v258_v0  ;;  %278 = vst [vmem:[#allocation2 + $0x8] sm:$0xff] (!%p254_p9), %v259_v1  ;;  %v261_v3 = vld [vmem:[%s17913_s0 + $0x18] sm:$0xff] (!%p254_p9)  ;;  %v262_v4 = vld [vmem:[%s17913_s0 + $0x20] sm:$0xff] (!%p254_p9) }
  0x64   : > { %s16050_s24 = scalar_lea.vmem %s17916_s3, %s8679_s6  ;;  %279 = vst [vmem:[#allocation2 + $0x10] sm:$0xff] (!%p254_p9), %v260_v2  ;;  %v263_v5 = vld [vmem:[%s17913_s0 + $0x28] sm:$0xff] (!%p254_p9)  ;;  %280 = vst [vmem:[#allocation2 + $0x18] sm:$0xff] (!%p254_p9), %v261_v3  ;;  %v264_v6 = vld [vmem:[%s17913_s0 + $0x30] sm:$0xff] (!%p254_p9) }
  0x65   : > { %281 = vst [vmem:[#allocation2 + $0x20] sm:$0xff] (!%p254_p9), %v262_v4  ;;  %282 = vst [vmem:[#allocation2 + $0x28] sm:$0xff] (!%p254_p9), %v263_v5  ;;  %v265_v7 = vld [vmem:[%s17913_s0 + $0x38] sm:$0xff] (!%p254_p9)  ;;  %v266_v8 = vld [vmem:[%s17913_s0 + $0x40] sm:$0xff] (!%p254_p9) }
  0x66   : > { %283 = vst [vmem:[#allocation2 + $0x30] sm:$0xff] (!%p254_p9), %v264_v6  ;;  %284 = vst [vmem:[#allocation2 + $0x38] sm:$0xff] (!%p254_p9), %v265_v7  ;;  %v267_v9 = vld [vmem:[%s17913_s0 + $0x48] sm:$0xff] (!%p254_p9)  ;;  %v268_v10 = vld [vmem:[%s17913_s0 + $0x50] sm:$0xff] (!%p254_p9) }
  0x67   : > { %285 = vst [vmem:[#allocation2 + $0x40] sm:$0xff] (!%p254_p9), %v266_v8  ;;  %v269_v11 = vld [vmem:[%s17913_s0 + $0x58] sm:$0xff] (!%p254_p9)  ;;  %286 = vst [vmem:[#allocation2 + $0x48] sm:$0xff] (!%p254_p9), %v267_v9  ;;  %v270_v12 = vld [vmem:[%s17913_s0 + $0x60] sm:$0xff] (!%p254_p9) }
  0x68   : > { %287 = vst [vmem:[#allocation2 + $0x50] sm:$0xff] (!%p254_p9), %v268_v10  ;;  %288 = vst [vmem:[#allocation2 + $0x58] sm:$0xff] (!%p254_p9), %v269_v11  ;;  %v271_v13 = vld [vmem:[%s17913_s0 + $0x68] sm:$0xff] (!%p254_p9)  ;;  %v272_v14 = vld [vmem:[%s17913_s0 + $0x70] sm:$0xff] (!%p254_p9) }
  0x69   : > { %289 = vst [vmem:[#allocation2 + $0x60] sm:$0xff] (!%p254_p9), %v270_v12  ;;  %290 = vst [vmem:[#allocation2 + $0x68] sm:$0xff] (!%p254_p9), %v271_v13  ;;  %v273_v15 = vld [vmem:[%s17913_s0 + $0x78] sm:$0xff] (!%p254_p9)  ;;  %v274_v16 = vld [vmem:[%s17913_s0 + $0x80] sm:$0xff] (!%p254_p9) }
  0x6a   : > { %291 = vst [vmem:[#allocation2 + $0x70] sm:$0xff] %v272_v14  ;;  %v275_v17 = vld [vmem:[%s17913_s0 + $0x88] sm:$0xff]  ;;  %292 = vst [vmem:[#allocation2 + $0x78] sm:$0xff] %v273_v15  ;;  %v276_v18 = vld [vmem:[%s17913_s0 + $0x90] sm:$0xff] }
  0x6b   : > { %293 = vst [vmem:[#allocation2 + $0x80] sm:$0xff] %v274_v16  ;;  %294 = vst [vmem:[#allocation2 + $0x88] sm:$0xff] %v275_v17 }
  0x6c   : > { %295 = vst [vmem:[#allocation2 + $0x90] sm:$0xff] %v276_v18 }
  0x6d PF: > { %v13438_v19 = vld [vmem:[%s16032_s12 + $0x4] ss:$40 sps:$4 sm:$0xff]   ;;  %v13442_v21 = vld [vmem:[%s16032_s12] ss:$40 sps:$4 sm:$0xff]   ;;  %v13444_v23 = vld [vmem:[%s16032_s12 + $0x54] ss:$40 sps:$4 sm:$0xff]  }
  0x6e   : > { %v13440_v20 = vld [vmem:[%s16032_s12 + $0x1904] ss:$40 sps:$4 sm:$0xff]   ;;  %8693 = vmatprep.subr.bf16.mxu1 %v13438_v19  ;;  %v13443_v22 = vld [vmem:[%s16032_s12 + $0x1900] ss:$40 sps:$4 sm:$0xff]   ;;  %v13446_v24 = vld [vmem:[%s16032_s12 + $0x1954] ss:$40 sps:$4 sm:$0xff]  }
  0x6f   : > { %9013 = vmatprep.subr.bf16.mxu0 %v13440_v20  ;;  %8695 = vmatpush1.bf16.msra.mxu1 %v13442_v21  ;;  %v13448_v25 = vld [vmem:[%s16032_s12 + $0x50] ss:$40 sps:$4 sm:$0xff]   ;;  %v13450_v27 = vld [vmem:[%s16032_s12 + $0xa4] ss:$40 sps:$4 sm:$0xff]   ;;  %v13454_v29 = vld [vmem:[%s16032_s12 + $0xa0] ss:$40 sps:$4 sm:$0xff]  }
  0x70   : > { %9015 = vmatpush1.bf16.msra.mxu0 %v13443_v22  ;;  %8697 = vmatprep.subr.bf16.mxu1 %v13444_v23  ;;  %v13449_v26 = vld [vmem:[%s16032_s12 + $0x1950] ss:$40 sps:$4 sm:$0xff]   ;;  %v13452_v28 = vld [vmem:[%s16032_s12 + $0x19a4] ss:$40 sps:$4 sm:$0xff]   ;;  %v13455_v30 = vld [vmem:[%s16032_s12 + $0x19a0] ss:$40 sps:$4 sm:$0xff]  }
  0x71   : > { %9017 = vmatprep.subr.bf16.mxu0 %v13446_v24  ;;  %v13456_v31 = vld [vmem:[%s16032_s12 + $0xf4] ss:$40 sps:$4 sm:$0xff]   ;;  %v13460_v33 = vld [vmem:[%s16032_s12 + $0xf0] ss:$40 sps:$4 sm:$0xff]   ;;  %s297_s1 = ssub.s32 0, %s15845_s16  ;;  %p296_p2 = scmp.lt.s32.totalorder %s15845_s16, 0 }
  0x72   : > { %v13458_v32 = vld [vmem:[%s16032_s12 + $0x19f4] ss:$40 sps:$4 sm:$0xff]   ;;  %v13461_v34 = vld [vmem:[%s16032_s12 + $0x19f0] ss:$40 sps:$4 sm:$0xff]   ;;  %v13462_v35 = vld [vmem:[%s16032_s12 + $0x144] ss:$40 sps:$4 sm:$0xff]   ;;  %s8680_s22 = smin.u32 %s15845_s16, %s297_s1 }
  0x73   : > { %8699 = vmatpush1.bf16.msra.mxu1 %v13448_v25  ;;  %v13464_v36 = vld [vmem:[%s16032_s12 + $0x1a44] ss:$40 sps:$4 sm:$0xff]   ;;  %v13466_v37 = vld [vmem:[%s16032_s12 + $0x140] ss:$40 sps:$4 sm:$0xff]   ;;  %v13468_v39 = vld [vmem:[%s16032_s12 + $0x194] ss:$40 sps:$4 sm:$0xff]  }
  0x74   : > { %9019 = vmatpush1.bf16.msra.mxu0 %v13449_v26  ;;  %8701 = vmatprep.subr.bf16.mxu1 %v13450_v27  ;;  %v13467_v38 = vld [vmem:[%s16032_s12 + $0x1a40] ss:$40 sps:$4 sm:$0xff]   ;;  %v13470_v40 = vld [vmem:[%s16032_s12 + $0x1a94] ss:$40 sps:$4 sm:$0xff]   ;;  %s299_s28 = sand.u32 1, %s8680_s22   ;;  %s16710_s20 = sadd.s32 1, %s15845_s16 }
  0x75   : > { %9021 = vmatprep.subr.bf16.mxu0 %v13452_v28  ;;  %v13472_v41 = vld [vmem:[%s16032_s12 + $0x190] ss:$40 sps:$4 sm:$0xff]   ;;  %v13474_v43 = vld [vmem:[%s16032_s12 + $0x1e4] ss:$40 sps:$4 sm:$0xff]   ;;  %s300_s29 = ssub.s32 0, %s299_s28  ;;  %s310_s30 = ssub.s32 0, %s16710_s20 }
  0x76   : > { %v13473_v42 = vld [vmem:[%s16032_s12 + $0x1a90] ss:$40 sps:$4 sm:$0xff]   ;;  %v13476_v44 = vld [vmem:[%s16032_s12 + $0x1ae4] ss:$40 sps:$4 sm:$0xff]   ;;  %v13478_v45 = vld [vmem:[%s16032_s12 + $0x1e0] ss:$40 sps:$4 sm:$0xff]   ;;  %s17946_s29 = smov (!%p296_p2, %s300_s29), %s299_s28  ;;  %s8683_s21 = smin.u32 %s310_s30, %s16710_s20 }
  0x77   : > { %8703 = vmatpush1.bf16.msra.mxu1 %v13454_v29  ;;  %v13479_v46 = vld [vmem:[%s16032_s12 + $0x1ae0] ss:$40 sps:$4 sm:$0xff]   ;;  %v13480_v47 = vld [vmem:[%s16032_s12 + $0x234] ss:$40 sps:$4 sm:$0xff]   ;;  %v13484_v49 = vld [vmem:[%s16032_s12 + $0x230] ss:$40 sps:$4 sm:$0xff]  }
  0x78   : > { %9023 = vmatpush1.bf16.msra.mxu0 %v13455_v30  ;;  %8705 = vmatprep.subr.bf16.mxu1 %v13456_v31  ;;  %v13482_v48 = vld [vmem:[%s16032_s12 + $0x1b34] ss:$40 sps:$4 sm:$0xff]   ;;  %p8682_p3 = scmp.lt.s32.totalorder %s17946_s29, 0  ;;  %v13485_v50 = vld [vmem:[%s16032_s12 + $0x1b30] ss:$40 sps:$4 sm:$0xff]   ;;  %s306_s7 = sadd.s32 2, %s17946_s29 }
  0x79   : > { %9025 = vmatprep.subr.bf16.mxu0 %v13458_v32  ;;  %v13486_v51 = vld [vmem:[%s16032_s12 + $0x284] ss:$40 sps:$4 sm:$0xff]   ;;  %v13490_v53 = vld [vmem:[%s16032_s12 + $0x280] ss:$40 sps:$4 sm:$0xff]   ;;  %v13492_v55 = vld [vmem:[%s16032_s12 + $0x2d4] ss:$40 sps:$4 sm:$0xff]  }
  0x7a   : > { %v13488_v52 = vld [vmem:[%s16032_s12 + $0x1b84] ss:$40 sps:$4 sm:$0xff]   ;;  %v13491_v54 = vld [vmem:[%s16032_s12 + $0x1b80] ss:$40 sps:$4 sm:$0xff]   ;;  %s17948_s7 = smov (!%p8682_p3, %s306_s7), %s17946_s29  ;;  %v13494_v56 = vld [vmem:[%s16032_s12 + $0x1bd4] ss:$40 sps:$4 sm:$0xff]  }
  0x7b   : > { %8707 = vmatpush1.bf16.msra.mxu1 %v13460_v33  ;;  %v13496_v57 = vld [vmem:[%s16032_s12 + $0x2d0] ss:$40 sps:$4 sm:$0xff]   ;;  %s8691_s9 = smul.u32 160, %s17948_s7  ;;  %v13498_v59 = vld [vmem:[%s16032_s12 + $0x324] ss:$40 sps:$4 sm:$0xff]   ;;  %s312_s6 = sand.u32 1, %s8683_s21  }
  0x7c   : > { %9027 = vmatpush1.bf16.msra.mxu0 %v13461_v34  ;;  %8709 = vmatprep.subr.bf16.mxu1 %v13462_v35  ;;  %v13497_v58 = vld [vmem:[%s16032_s12 + $0x1bd0] ss:$40 sps:$4 sm:$0xff]   ;;  %v13500_v60 = vld [vmem:[%s16032_s12 + $0x1c24] ss:$40 sps:$4 sm:$0xff]   ;;  %v13502_v61 = vld [vmem:[%s16032_s12 + $0x320] ss:$40 sps:$4 sm:$0xff]  }
  0x7d   : > { %9029 = vmatprep.subr.bf16.mxu0 %v13464_v36  ;;  %v13503_v62 = vld [vmem:[%s16032_s12 + $0x1c20] ss:$40 sps:$4 sm:$0xff]   ;;  %v13504_v63 = vld [vmem:[%s16032_s12 + $0x374] ss:$40 sps:$4 sm:$0xff]   ;;  %s16158_s10 = scalar_lea.vmem [#allocation2], %s8691_s9  ;;  %p309_p0 = scmp.lt.s32.totalorder %s16710_s20, 0 }
  0x7e   : > { %v13506_v0 = vld [vmem:[%s16032_s12 + $0x1c74] ss:$40 sps:$4 sm:$0xff]   ;;  %v325_v1 = vld [vmem:[%s16158_s10 + $0x8] sm:$0xff]  ;;  %v13508_v2 = vld [vmem:[%s16032_s12 + $0x370] ss:$40 sps:$4 sm:$0xff]   ;;  %s313_s11 = ssub.s32 0, %s312_s6 }
  0x7f   : > { %8711 = vmatpush1.bf16.msra.mxu1 %v13466_v37  ;;  %5021 = vmatprep.mubr.f32.mxu1 %v325_v1  ;;  %v13509_v3 = vld [vmem:[%s16032_s12 + $0x1c70] ss:$40 sps:$4 sm:$0xff]   ;;  %v13510_v5 = vld [vmem:[%s16032_s12 + $0x3c4] ss:$40 sps:$4 sm:$0xff]   ;;  %v13514_v7 = vld [vmem:[%s16032_s12 + $0x3c0] ss:$40 sps:$4 sm:$0xff]   ;;  %s17950_s11 = smov (!%p309_p0, %s313_s11), %s312_s6 }
  0x80   : > { %9031 = vmatpush1.bf16.msra.mxu0 %v13467_v38  ;;  %8713 = vmatprep.subr.bf16.mxu1 %v13468_v39  ;;  %v16164_v4 = vld [vmem:[%s16158_s10 + $0x58] sm:$0xff]  ;;  %v13512_v6 = vld [vmem:[%s16032_s12 + $0x1cc4] ss:$40 sps:$4 sm:$0xff]   ;;  %v13515_v8 = vld [vmem:[%s16032_s12 + $0x1cc0] ss:$40 sps:$4 sm:$0xff]   ;;  %p8685_p4 = scmp.lt.s32.totalorder %s17950_s11, 0 }
  0x81   : > { %9033 = vmatprep.subr.bf16.mxu0 %v13470_v40  ;;  %5376 = vmatprep.mubr.f32.mxu0 %v16164_v4  ;;  %v13516_v9 = vld [vmem:[%s16032_s12 + $0x414] ss:$40 sps:$4 sm:$0xff]   ;;  %v13520_v11 = vld [vmem:[%s16032_s12 + $0x410] ss:$40 sps:$4 sm:$0xff]   ;;  %v13522_v13 = vld [vmem:[%s16032_s12 + $0x464] ss:$40 sps:$4 sm:$0xff]  }
  0x82   : > { %v13518_v10 = vld [vmem:[%s16032_s12 + $0x1d14] ss:$40 sps:$4 sm:$0xff]   ;;  %v13521_v12 = vld [vmem:[%s16032_s12 + $0x1d10] ss:$40 sps:$4 sm:$0xff]   ;;  %v13524_v14 = vld [vmem:[%s16032_s12 + $0x1d64] ss:$40 sps:$4 sm:$0xff]  }
  0x83   : > { %8715 = vmatpush1.bf16.msra.mxu1 %v13472_v41  ;;  %v13526_v15 = vld [vmem:[%s16032_s12 + $0x460] ss:$40 sps:$4 sm:$0xff]   ;;  %v13528_v17 = vld [vmem:[%s16032_s12 + $0x4b4] ss:$40 sps:$4 sm:$0xff]   ;;  %v13532_v19 = vld [vmem:[%s16032_s12 + $0x4b0] ss:$40 sps:$4 sm:$0xff]  }
  0x84   : > { %9035 = vmatpush1.bf16.msra.mxu0 %v13473_v42  ;;  %8717 = vmatprep.subr.bf16.mxu1 %v13474_v43  ;;  %v13527_v16 = vld [vmem:[%s16032_s12 + $0x1d60] ss:$40 sps:$4 sm:$0xff]   ;;  %v13530_v18 = vld [vmem:[%s16032_s12 + $0x1db4] ss:$40 sps:$4 sm:$0xff]   ;;  %v13533_v20 = vld [vmem:[%s16032_s12 + $0x1db0] ss:$40 sps:$4 sm:$0xff]  }
  0x85   : > { %9037 = vmatprep.subr.bf16.mxu0 %v13476_v44  ;;  %v13534_v21 = vld [vmem:[%s16032_s12 + $0x504] ss:$40 sps:$4 sm:$0xff]   ;;  %v13536_v23 = vld [vmem:[%s16032_s12 + $0x500] ss:$40 sps:$4 sm:$0xff]   ;;  %v16189_v26 = vld [vmem:[%s16158_s10 + $0x50] sm:$0xff]  ;;  %s319_s8 = sadd.s32 2, %s17950_s11 }
  0x86   : > { %v13537_v22 = vld [vmem:[%s16032_s12 + $0x1e04] ss:$40 sps:$4 sm:$0xff]   ;;  %v13539_v24 = vld [vmem:[%s16032_s12 + $0x1e00] ss:$40 sps:$4 sm:$0xff]   ;;  %v13540_v27 = vld [vmem:[%s16032_s12 + $0x554] ss:$40 sps:$4 sm:$0xff]   ;;  %s17952_s8 = smov (!%p8685_p4, %s319_s8), %s17950_s11 }
  0x87   : > { %8719 = vmatpush1.bf16.msra.mxu1 %v13478_v45  ;;  %v324_v25 = vld [vmem:[%s16158_s10] sm:$0xff]  ;;  %v13543_v28 = vld [vmem:[%s16032_s12 + $0x1e54] ss:$40 sps:$4 sm:$0xff]   ;;  %v13542_v29 = vld [vmem:[%s16032_s12 + $0x550] ss:$40 sps:$4 sm:$0xff]   ;;  %s8517_s5 = smul.u32 1280, %s15841_s15 }
  0x88   : > { %9039 = vmatpush1.bf16.msra.mxu0 %v13479_v46  ;;  %8721 = vmatprep.subr.bf16.mxu1 %v13480_v47  ;;  %v13545_v30 = vld [vmem:[%s16032_s12 + $0x1e50] ss:$40 sps:$4 sm:$0xff]   ;;  %v13546_v31 = vld [vmem:[%s16032_s12 + $0x5a4] ss:$40 sps:$4 sm:$0xff]   ;;  %v13548_v33 = vld [vmem:[%s16032_s12 + $0x5a0] ss:$40 sps:$4 sm:$0xff]  }
  0x89   : > { %9041 = vmatprep.subr.bf16.mxu0 %v13482_v48  ;;  %v13549_v32 = vld [vmem:[%s16032_s12 + $0x1ea4] ss:$40 sps:$4 sm:$0xff]   ;;  %v13551_v34 = vld [vmem:[%s16032_s12 + $0x1ea0] ss:$40 sps:$4 sm:$0xff]   ;;  %v13552_v35 = vld [vmem:[%s16032_s12 + $0x5f4] ss:$40 sps:$4 sm:$0xff]  }
  0x8a   : > { %v13555_v36 = vld [vmem:[%s16032_s12 + $0x1ef4] ss:$40 sps:$4 sm:$0xff]   ;;  %v13554_v37 = vld [vmem:[%s16032_s12 + $0x5f0] ss:$40 sps:$4 sm:$0xff]   ;;  %v13558_v39 = vld [vmem:[%s16032_s12 + $0x644] ss:$40 sps:$4 sm:$0xff]  }
  0x8b   : > { %8723 = vmatpush1.bf16.msra.mxu1 %v13484_v49  ;;  %v13557_v38 = vld [vmem:[%s16032_s12 + $0x1ef0] ss:$40 sps:$4 sm:$0xff]   ;;  %v13561_v40 = vld [vmem:[%s16032_s12 + $0x1f44] ss:$40 sps:$4 sm:$0xff]   ;;  %v13560_v41 = vld [vmem:[%s16032_s12 + $0x640] ss:$40 sps:$4 sm:$0xff]  }
  0x8c   : > { %9043 = vmatpush1.bf16.msra.mxu0 %v13485_v50  ;;  %8725 = vmatprep.subr.bf16.mxu1 %v13486_v51  ;;  %v13563_v42 = vld [vmem:[%s16032_s12 + $0x1f40] ss:$40 sps:$4 sm:$0xff]   ;;  %v13564_v43 = vld [vmem:[%s16032_s12 + $0x694] ss:$40 sps:$4 sm:$0xff]   ;;  %v13566_v45 = vld [vmem:[%s16032_s12 + $0x690] ss:$40 sps:$4 sm:$0xff]  }
  0x8d   : > { %9045 = vmatprep.subr.bf16.mxu0 %v13488_v52  ;;  %v13567_v44 = vld [vmem:[%s16032_s12 + $0x1f94] ss:$40 sps:$4 sm:$0xff]   ;;  %v13569_v46 = vld [vmem:[%s16032_s12 + $0x1f90] ss:$40 sps:$4 sm:$0xff]   ;;  %v13570_v47 = vld [vmem:[%s16032_s12 + $0x6e4] ss:$40 sps:$4 sm:$0xff]  }
  0x8e   : > { %v13573_v48 = vld [vmem:[%s16032_s12 + $0x1fe4] ss:$40 sps:$4 sm:$0xff]   ;;  %v327_v49 = vld [vmem:[%s16158_s10 + $0x18] sm:$0xff]  ;;  %v13572_v50 = vld [vmem:[%s16032_s12 + $0x6e0] ss:$40 sps:$4 sm:$0xff]   ;;  %s8520_s26 = smul.u32 20, %s17952_s8 }
  0x8f   : > { %8727 = vmatpush1.bf16.msra.mxu1 %v13490_v53  ;;  %v13575_v51 = vld [vmem:[%s16032_s12 + $0x1fe0] ss:$40 sps:$4 sm:$0xff]   ;;  %v13576_v53 = vld [vmem:[%s16032_s12 + $0x734] ss:$40 sps:$4 sm:$0xff]   ;;  %v13594_v1 = vld [vmem:[%s16032_s12 + $0x824] ss:$40 sps:$4 sm:$0xff]  }
  0x90   : > { %9047 = vmatpush1.bf16.msra.mxu0 %v13491_v54  ;;  %8729 = vmatprep.subr.bf16.mxu1 %v13492_v55  ;;  %v16218_v52 = vld [vmem:[%s16158_s10 + $0x68] sm:$0xff]  ;;  %v13579_v54 = vld [vmem:[%s16032_s12 + $0x2034] ss:$40 sps:$4 sm:$0xff]   ;;  %v13578_v55 = vld [vmem:[%s16032_s12 + $0x730] ss:$40 sps:$4 sm:$0xff]   ;;  %s8518_s25 = sshra.s32 %s8517_s5, 7 }
  0x91   : > { %9049 = vmatprep.subr.bf16.mxu0 %v13494_v56  ;;  %v13581_v56 = vld [vmem:[%s16032_s12 + $0x2030] ss:$40 sps:$4 sm:$0xff]   ;;  %s8521_s15 = sadd.s32 %s8520_s26, %s8518_s25  ;;  %p8688_p6 = scmp.ne.s32.totalorder %s15845_s16, 2 }
  0x92   : > { %s8687_s27 = sshll.u32 %s8521_s15, 3 }
  0x93   : > { %8731 = vmatpush1.bf16.msra.mxu1 %v13496_v57  ;;  %v13582_v57 = vld [vmem:[%s16032_s12 + $0x784] ss:$40 sps:$4 sm:$0xff]   ;;  %s16777_s1 = scalar_lea.vmem [#allocation2], %s8687_s27 }
  0x94   : > { %9051 = vmatpush1.bf16.msra.mxu0 %v13497_v58  ;;  %8733 = vmatprep.subr.bf16.mxu1 %v13498_v59  ;;  %v13585_v58 = vld [vmem:[%s16032_s12 + $0x2084] ss:$40 sps:$4 sm:$0xff]   ;;  %v13584_v59 = vld [vmem:[%s16032_s12 + $0x780] ss:$40 sps:$4 sm:$0xff]  }
  0x95   : > { %9053 = vmatprep.subr.bf16.mxu0 %v13500_v60  ;;  %v13587_v60 = vld [vmem:[%s16032_s12 + $0x2080] ss:$40 sps:$4 sm:$0xff]  }
  0x97   : > { %8735 = vmatpush1.bf16.msra.mxu1 %v13502_v61  ;;  %v13588_v61 = vld [vmem:[%s16032_s12 + $0x7d4] ss:$40 sps:$4 sm:$0xff]  }
  0x98   : > { %9055 = vmatpush1.bf16.msra.mxu0 %v13503_v62  ;;  %8737 = vmatprep.subr.bf16.mxu1 %v13504_v63  ;;  %v13591_v62 = vld [vmem:[%s16032_s12 + $0x20d4] ss:$40 sps:$4 sm:$0xff]   ;;  %v13590_v63 = vld [vmem:[%s16032_s12 + $0x7d0] ss:$40 sps:$4 sm:$0xff]  }
  0x99   : > { %9057 = vmatprep.subr.bf16.mxu0 %v13506_v0  ;;  %v13593_v0 = vld [vmem:[%s16032_s12 + $0x20d0] ss:$40 sps:$4 sm:$0xff]  }
  0x9b   : > { %8739 = vmatpush1.bf16.msra.mxu1 %v13508_v2  ;;  %v13597_v2 = vld [vmem:[%s16032_s12 + $0x2124] ss:$40 sps:$4 sm:$0xff]  }
  0x9c   : > { %9059 = vmatpush1.bf16.msra.mxu0 %v13509_v3  ;;  %8741 = vmatprep.subr.bf16.mxu1 %v13510_v5  ;;  %v13596_v3 = vld [vmem:[%s16032_s12 + $0x820] ss:$40 sps:$4 sm:$0xff]  }
  0x9d   : > { %9061 = vmatprep.subr.bf16.mxu0 %v13512_v6  ;;  %v13599_v5 = vld [vmem:[%s16032_s12 + $0x2120] ss:$40 sps:$4 sm:$0xff]   ;;  %v13600_v6 = vld [vmem:[%s16032_s12 + $0x874] ss:$40 sps:$4 sm:$0xff]  }
  0x9f   : > { %8743 = vmatpush1.bf16.msra.mxu1 %v13514_v7  ;;  %v13603_v7 = vld [vmem:[%s16032_s12 + $0x2174] ss:$40 sps:$4 sm:$0xff]  }
  0xa0   : > { %9063 = vmatpush1.bf16.msra.mxu0 %v13515_v8  ;;  %8745 = vmatprep.subr.bf16.mxu1 %v13516_v9  ;;  %v13602_v8 = vld [vmem:[%s16032_s12 + $0x870] ss:$40 sps:$4 sm:$0xff]  }
  0xa1   : > { %9065 = vmatprep.subr.bf16.mxu0 %v13518_v10  ;;  %v13605_v9 = vld [vmem:[%s16032_s12 + $0x2170] ss:$40 sps:$4 sm:$0xff]   ;;  %v13606_v10 = vld [vmem:[%s16032_s12 + $0x8c4] ss:$40 sps:$4 sm:$0xff]  }
  0xa3   : > { %8747 = vmatpush1.bf16.msra.mxu1 %v13520_v11  ;;  %v13609_v11 = vld [vmem:[%s16032_s12 + $0x21c4] ss:$40 sps:$4 sm:$0xff]  }
  0xa4   : > { %9067 = vmatpush1.bf16.msra.mxu0 %v13521_v12  ;;  %8749 = vmatprep.subr.bf16.mxu1 %v13522_v13  ;;  %v13608_v12 = vld [vmem:[%s16032_s12 + $0x8c0] ss:$40 sps:$4 sm:$0xff]  }
  0xa5   : > { %9069 = vmatprep.subr.bf16.mxu0 %v13524_v14  ;;  %v13611_v13 = vld [vmem:[%s16032_s12 + $0x21c0] ss:$40 sps:$4 sm:$0xff]   ;;  %v13612_v14 = vld [vmem:[%s16032_s12 + $0x914] ss:$40 sps:$4 sm:$0xff]  }
  0xa7   : > { %8751 = vmatpush1.bf16.msra.mxu1 %v13526_v15  ;;  %v13615_v15 = vld [vmem:[%s16032_s12 + $0x2214] ss:$40 sps:$4 sm:$0xff]  }
  0xa8   : > { %9071 = vmatpush1.bf16.msra.mxu0 %v13527_v16  ;;  %8753 = vmatprep.subr.bf16.mxu1 %v13528_v17  ;;  %v13614_v16 = vld [vmem:[%s16032_s12 + $0x910] ss:$40 sps:$4 sm:$0xff]  }
  0xa9   : > { %9073 = vmatprep.subr.bf16.mxu0 %v13530_v18  ;;  %v13617_v17 = vld [vmem:[%s16032_s12 + $0x2210] ss:$40 sps:$4 sm:$0xff]   ;;  %v13618_v18 = vld [vmem:[%s16032_s12 + $0x964] ss:$40 sps:$4 sm:$0xff]  }
  0xab   : > { %8755 = vmatpush1.bf16.msra.mxu1 %v13532_v19  ;;  %v13621_v19 = vld [vmem:[%s16032_s12 + $0x2264] ss:$40 sps:$4 sm:$0xff]  }
  0xac   : > { %9075 = vmatpush1.bf16.msra.mxu0 %v13533_v20  ;;  %8757 = vmatprep.subr.bf16.mxu1 %v13534_v21  ;;  %v13620_v20 = vld [vmem:[%s16032_s12 + $0x960] ss:$40 sps:$4 sm:$0xff]  }
  0xad   : > { %9077 = vmatprep.subr.bf16.mxu0 %v13537_v22  ;;  %v13623_v21 = vld [vmem:[%s16032_s12 + $0x2260] ss:$40 sps:$4 sm:$0xff]   ;;  %v13624_v22 = vld [vmem:[%s16032_s12 + $0x9b4] ss:$40 sps:$4 sm:$0xff]  }
  0xae   : > { %5022 = vmatmul.mubr.f32.vlgmr.msra.gmra.mrb[0].mxu1 %v324_v25  ;;  %v13629_v25 = vld [vmem:[%s16032_s12 + $0x22b0] ss:$40 sps:$4 sm:$0xff]  }
  0xaf   : > { %5377 = vmatmul.mubr.f32.vlgmr.msra.gmra.mrb[0].mxu0 %v16189_v26  ;;  %8759 = vmatpush1.bf16.msra.mxu1 %v13536_v23  ;;  %v13627_v23 = vld [vmem:[%s16032_s12 + $0x22b4] ss:$40 sps:$4 sm:$0xff]  }
  0xb0   : > { %9079 = vmatpush1.bf16.msra.mxu0 %v13539_v24  ;;  %8761 = vmatprep.subr.bf16.mxu1 %v13540_v27  ;;  %v13626_v24 = vld [vmem:[%s16032_s12 + $0x9b0] ss:$40 sps:$4 sm:$0xff]   ;;  %v13630_v27 = vld [vmem:[%s16032_s12 + $0xa04] ss:$40 sps:$4 sm:$0xff]  }
  0xb1   : > { %9081 = vmatprep.subr.bf16.mxu0 %v13543_v28  ;;  %5092 = vmatprep.mubr.f32.mxu1 %v327_v49  ;;  %v13633_v28 = vld [vmem:[%s16032_s12 + $0x2304] ss:$40 sps:$4 sm:$0xff]   ;;  %v13656_v49 = vld [vmem:[%s16032_s12 + $0xb40] ss:$40 sps:$4 sm:$0xff]  }
  0xb2   : > { %5447 = vmatprep.mubr.f32.mxu0 %v16218_v52 }
  0xb3   : > { %8763 = vmatpush1.bf16.msra.mxu1 %v13542_v29  ;;  %v13632_v29 = vld [vmem:[%s16032_s12 + $0xa00] ss:$40 sps:$4 sm:$0xff]  }
  0xb4   : > { %9083 = vmatpush1.bf16.msra.mxu0 %v13545_v30  ;;  %8765 = vmatprep.subr.bf16.mxu1 %v13546_v31  ;;  %v13635_v30 = vld [vmem:[%s16032_s12 + $0x2300] ss:$40 sps:$4 sm:$0xff]   ;;  %v326_v31 = vld [vmem:[%s16158_s10 + $0x10] sm:$0xff] }
  0xb5   : > { %9085 = vmatprep.subr.bf16.mxu0 %v13549_v32  ;;  %v16263_v32 = vld [vmem:[%s16158_s10 + $0x60] sm:$0xff] }
  0xb7   : > { %8767 = vmatpush1.bf16.msra.mxu1 %v13548_v33  ;;  %v13636_v33 = vld [vmem:[%s16032_s12 + $0xa54] ss:$40 sps:$4 sm:$0xff]  }
  0xb8   : > { %9087 = vmatpush1.bf16.msra.mxu0 %v13551_v34  ;;  %8769 = vmatprep.subr.bf16.mxu1 %v13552_v35  ;;  %v13639_v34 = vld [vmem:[%s16032_s12 + $0x2354] ss:$40 sps:$4 sm:$0xff]   ;;  %v13638_v35 = vld [vmem:[%s16032_s12 + $0xa50] ss:$40 sps:$4 sm:$0xff]  }
  0xb9   : > { %9089 = vmatprep.subr.bf16.mxu0 %v13555_v36  ;;  %v329_v36 = vld [vmem:[%s16158_s10 + $0x28] sm:$0xff] }
  0xbb   : > { %8771 = vmatpush1.bf16.msra.mxu1 %v13554_v37  ;;  %v13641_v37 = vld [vmem:[%s16032_s12 + $0x2350] ss:$40 sps:$4 sm:$0xff]  }
  0xbc   : > { %9091 = vmatpush1.bf16.msra.mxu0 %v13557_v38  ;;  %8773 = vmatprep.subr.bf16.mxu1 %v13558_v39  ;;  %v16272_v38 = vld [vmem:[%s16158_s10 + $0x78] sm:$0xff]  ;;  %v13642_v39 = vld [vmem:[%s16032_s12 + $0xaa4] ss:$40 sps:$4 sm:$0xff]  }
  0xbd   : > { %9093 = vmatprep.subr.bf16.mxu0 %v13561_v40  ;;  %v13645_v40 = vld [vmem:[%s16032_s12 + $0x23a4] ss:$40 sps:$4 sm:$0xff]  }
  0xbf   : > { %8775 = vmatpush1.bf16.msra.mxu1 %v13560_v41  ;;  %v13644_v41 = vld [vmem:[%s16032_s12 + $0xaa0] ss:$40 sps:$4 sm:$0xff]  }
  0xc0   : > { %9095 = vmatpush1.bf16.msra.mxu0 %v13563_v42  ;;  %8777 = vmatprep.subr.bf16.mxu1 %v13564_v43  ;;  %v13647_v42 = vld [vmem:[%s16032_s12 + $0x23a0] ss:$40 sps:$4 sm:$0xff]   ;;  %v13648_v43 = vld [vmem:[%s16032_s12 + $0xaf4] ss:$40 sps:$4 sm:$0xff]  }
  0xc1   : > { %9097 = vmatprep.subr.bf16.mxu0 %v13567_v44  ;;  %v13651_v44 = vld [vmem:[%s16032_s12 + $0x23f4] ss:$40 sps:$4 sm:$0xff]  }
  0xc3   : > { %8779 = vmatpush1.bf16.msra.mxu1 %v13566_v45  ;;  %v13650_v45 = vld [vmem:[%s16032_s12 + $0xaf0] ss:$40 sps:$4 sm:$0xff]  }
  0xc4   : > { %9099 = vmatpush1.bf16.msra.mxu0 %v13569_v46  ;;  %8781 = vmatprep.subr.bf16.mxu1 %v13570_v47  ;;  %v13653_v46 = vld [vmem:[%s16032_s12 + $0x23f0] ss:$40 sps:$4 sm:$0xff]   ;;  %v13654_v47 = vld [vmem:[%s16032_s12 + $0xb44] ss:$40 sps:$4 sm:$0xff]  }
  0xc5   : > { %9101 = vmatprep.subr.bf16.mxu0 %v13573_v48  ;;  %v13657_v48 = vld [vmem:[%s16032_s12 + $0x2444] ss:$40 sps:$4 sm:$0xff]  }
  0xc7   : > { %8783 = vmatpush1.bf16.msra.mxu1 %v13572_v50  ;;  %v13659_v50 = vld [vmem:[%s16032_s12 + $0x2440] ss:$40 sps:$4 sm:$0xff]  }
  0xc8   : > { %9103 = vmatpush1.bf16.msra.mxu0 %v13575_v51  ;;  %8785 = vmatprep.subr.bf16.mxu1 %v13576_v53  ;;  %v13660_v51 = vld [vmem:[%s16032_s12 + $0xb94] ss:$40 sps:$4 sm:$0xff]  }
  0xc9   : > { %9105 = vmatprep.subr.bf16.mxu0 %v13579_v54  ;;  %v13663_v53 = vld [vmem:[%s16032_s12 + $0x2494] ss:$40 sps:$4 sm:$0xff]   ;;  %v13662_v54 = vld [vmem:[%s16032_s12 + $0xb90] ss:$40 sps:$4 sm:$0xff]  }
  0xcb   : > { %8787 = vmatpush1.bf16.msra.mxu1 %v13578_v55  ;;  %v13665_v55 = vld [vmem:[%s16032_s12 + $0x2490] ss:$40 sps:$4 sm:$0xff]  }
  0xcc   : > { %9107 = vmatpush1.bf16.msra.mxu0 %v13581_v56  ;;  %8789 = vmatprep.subr.bf16.mxu1 %v13582_v57  ;;  %v13666_v56 = vld [vmem:[%s16032_s12 + $0xbe4] ss:$40 sps:$4 sm:$0xff]  }
  0xcd   : > { %9109 = vmatprep.subr.bf16.mxu0 %v13585_v58  ;;  %v13669_v57 = vld [vmem:[%s16032_s12 + $0x24e4] ss:$40 sps:$4 sm:$0xff]   ;;  %v13668_v58 = vld [vmem:[%s16032_s12 + $0xbe0] ss:$40 sps:$4 sm:$0xff]  }
  0xcf   : > { %8791 = vmatpush1.bf16.msra.mxu1 %v13584_v59  ;;  %v13671_v59 = vld [vmem:[%s16032_s12 + $0x24e0] ss:$40 sps:$4 sm:$0xff]  }
  0xd0   : > { %9111 = vmatpush1.bf16.msra.mxu0 %v13587_v60  ;;  %8793 = vmatprep.subr.bf16.mxu1 %v13588_v61  ;;  %v13672_v60 = vld [vmem:[%s16032_s12 + $0xc34] ss:$40 sps:$4 sm:$0xff]  }
  0xd1   : > { %9113 = vmatprep.subr.bf16.mxu0 %v13591_v62  ;;  %v13675_v61 = vld [vmem:[%s16032_s12 + $0x2534] ss:$40 sps:$4 sm:$0xff]   ;;  %v13674_v62 = vld [vmem:[%s16032_s12 + $0xc30] ss:$40 sps:$4 sm:$0xff]  }
  0xd3   : > { %8795 = vmatpush1.bf16.msra.mxu1 %v13590_v63  ;;  %v13677_v63 = vld [vmem:[%s16032_s12 + $0x2530] ss:$40 sps:$4 sm:$0xff]  }
  0xd4   : > { %9115 = vmatpush1.bf16.msra.mxu0 %v13593_v0  ;;  %8797 = vmatprep.subr.bf16.mxu1 %v13594_v1  ;;  %v13678_v0 = vld [vmem:[%s16032_s12 + $0xc84] ss:$40 sps:$4 sm:$0xff]  }
  0xd5   : > { %9117 = vmatprep.subr.bf16.mxu0 %v13597_v2  ;;  %v13681_v1 = vld [vmem:[%s16032_s12 + $0x2584] ss:$40 sps:$4 sm:$0xff]   ;;  %v13680_v2 = vld [vmem:[%s16032_s12 + $0xc80] ss:$40 sps:$4 sm:$0xff]  }
  0xd7   : > { %8799 = vmatpush1.bf16.msra.mxu1 %v13596_v3  ;;  %v13683_v3 = vld [vmem:[%s16032_s12 + $0x2580] ss:$40 sps:$4 sm:$0xff]  }
  0xd8   : > { %9119 = vmatpush1.bf16.msra.mxu0 %v13599_v5  ;;  %8801 = vmatprep.subr.bf16.mxu1 %v13600_v6  ;;  %v13684_v5 = vld [vmem:[%s16032_s12 + $0xcd4] ss:$40 sps:$4 sm:$0xff]  }
  0xd9   : > { %9121 = vmatprep.subr.bf16.mxu0 %v13603_v7  ;;  %v13687_v6 = vld [vmem:[%s16032_s12 + $0x25d4] ss:$40 sps:$4 sm:$0xff]   ;;  %v13686_v7 = vld [vmem:[%s16032_s12 + $0xcd0] ss:$40 sps:$4 sm:$0xff]  }
  0xdb   : > { %8803 = vmatpush1.bf16.msra.mxu1 %v13602_v8  ;;  %v13689_v8 = vld [vmem:[%s16032_s12 + $0x25d0] ss:$40 sps:$4 sm:$0xff]  }
  0xdc   : > { %9123 = vmatpush1.bf16.msra.mxu0 %v13605_v9  ;;  %8805 = vmatprep.subr.bf16.mxu1 %v13606_v10  ;;  %v13690_v9 = vld [vmem:[%s16032_s12 + $0xd24] ss:$40 sps:$4 sm:$0xff]  }
  0xdd   : > { %9125 = vmatprep.subr.bf16.mxu0 %v13609_v11  ;;  %v13693_v10 = vld [vmem:[%s16032_s12 + $0x2624] ss:$40 sps:$4 sm:$0xff]   ;;  %v13692_v11 = vld [vmem:[%s16032_s12 + $0xd20] ss:$40 sps:$4 sm:$0xff]  }
  0xdf   : > { %8807 = vmatpush1.bf16.msra.mxu1 %v13608_v12  ;;  %v13695_v12 = vld [vmem:[%s16032_s12 + $0x2620] ss:$40 sps:$4 sm:$0xff]  }
  0xe0   : > { %9127 = vmatpush1.bf16.msra.mxu0 %v13611_v13  ;;  %8809 = vmatprep.subr.bf16.mxu1 %v13612_v14  ;;  %v13696_v13 = vld [vmem:[%s16032_s12 + $0xd74] ss:$40 sps:$4 sm:$0xff]  }
  0xe1   : > { %9129 = vmatprep.subr.bf16.mxu0 %v13615_v15  ;;  %v13699_v14 = vld [vmem:[%s16032_s12 + $0x2674] ss:$40 sps:$4 sm:$0xff]   ;;  %v13698_v15 = vld [vmem:[%s16032_s12 + $0xd70] ss:$40 sps:$4 sm:$0xff]  }
  0xe3   : > { %8811 = vmatpush1.bf16.msra.mxu1 %v13614_v16  ;;  %v13701_v16 = vld [vmem:[%s16032_s12 + $0x2670] ss:$40 sps:$4 sm:$0xff]  }
  0xe4   : > { %9131 = vmatpush1.bf16.msra.mxu0 %v13617_v17  ;;  %8813 = vmatprep.subr.bf16.mxu1 %v13618_v18  ;;  %v13702_v17 = vld [vmem:[%s16032_s12 + $0xdc4] ss:$40 sps:$4 sm:$0xff]  }
  0xe5   : > { %9133 = vmatprep.subr.bf16.mxu0 %v13621_v19  ;;  %v13705_v18 = vld [vmem:[%s16032_s12 + $0x26c4] ss:$40 sps:$4 sm:$0xff]   ;;  %v13704_v19 = vld [vmem:[%s16032_s12 + $0xdc0] ss:$40 sps:$4 sm:$0xff]  }
  0xe7   : > { %8815 = vmatpush1.bf16.msra.mxu1 %v13620_v20  ;;  %v13707_v20 = vld [vmem:[%s16032_s12 + $0x26c0] ss:$40 sps:$4 sm:$0xff]  }
  0xe8   : > { %9135 = vmatpush1.bf16.msra.mxu0 %v13623_v21  ;;  %8817 = vmatprep.subr.bf16.mxu1 %v13624_v22  ;;  %v13708_v21 = vld [vmem:[%s16032_s12 + $0xe14] ss:$40 sps:$4 sm:$0xff]  }
  0xe9   : > { %9137 = vmatprep.subr.bf16.mxu0 %v13627_v23  ;;  %v13711_v22 = vld [vmem:[%s16032_s12 + $0x2714] ss:$40 sps:$4 sm:$0xff]   ;;  %v13710_v23 = vld [vmem:[%s16032_s12 + $0xe10] ss:$40 sps:$4 sm:$0xff]  }
  0xeb   : > { %8819 = vmatpush1.bf16.msra.mxu1 %v13626_v24  ;;  %v13713_v24 = vld [vmem:[%s16032_s12 + $0x2710] ss:$40 sps:$4 sm:$0xff]  }
  0xec   : > { %9139 = vmatpush1.bf16.msra.mxu0 %v13629_v25  ;;  %8821 = vmatprep.subr.bf16.mxu1 %v13630_v27  ;;  %v13714_v25 = vld [vmem:[%s16032_s12 + $0xe64] ss:$40 sps:$4 sm:$0xff]  }
  0xed   : > { %9141 = vmatprep.subr.bf16.mxu0 %v13633_v28  ;;  %v13717_v27 = vld [vmem:[%s16032_s12 + $0x2764] ss:$40 sps:$4 sm:$0xff]   ;;  %v13716_v28 = vld [vmem:[%s16032_s12 + $0xe60] ss:$40 sps:$4 sm:$0xff]  }
  0xee   : > { %5093 = vmatmul.mubr.f32.vlgmr.msra.gmra.mrb[0].mxu1 %v326_v31  ;;  %v13723_v31 = vld [vmem:[%s16032_s12 + $0x27b4] ss:$40 sps:$4 sm:$0xff]  }
  0xef   : > { %5448 = vmatmul.mubr.f32.vlgmr.msra.gmra.mrb[0].mxu0 %v16263_v32  ;;  %8823 = vmatpush1.bf16.msra.mxu1 %v13632_v29  ;;  %v13719_v29 = vld [vmem:[%s16032_s12 + $0x2760] ss:$40 sps:$4 sm:$0xff]  }
  0xf0   : > { %9143 = vmatpush1.bf16.msra.mxu0 %v13635_v30  ;;  %8825 = vmatprep.subr.bf16.mxu1 %v13636_v33  ;;  %v13720_v30 = vld [vmem:[%s16032_s12 + $0xeb4] ss:$40 sps:$4 sm:$0xff]   ;;  %v13722_v33 = vld [vmem:[%s16032_s12 + $0xeb0] ss:$40 sps:$4 sm:$0xff]  }
  0xf1   : > { %9145 = vmatprep.subr.bf16.mxu0 %v13639_v34  ;;  %5163 = vmatprep.mubr.f32.mxu1 %v329_v36  ;;  %v13725_v34 = vld [vmem:[%s16032_s12 + $0x27b0] ss:$40 sps:$4 sm:$0xff]   ;;  %v13729_v36 = vld [vmem:[%s16032_s12 + $0x2804] ss:$40 sps:$4 sm:$0xff]  }
  0xf2   : > { %5518 = vmatprep.mubr.f32.mxu0 %v16272_v38 }
  0xf3   : > { %8827 = vmatpush1.bf16.msra.mxu1 %v13638_v35  ;;  %v13726_v35 = vld [vmem:[%s16032_s12 + $0xf04] ss:$40 sps:$4 sm:$0xff]  }
  0xf4   : > { %9147 = vmatpush1.bf16.msra.mxu0 %v13641_v37  ;;  %8829 = vmatprep.subr.bf16.mxu1 %v13642_v39  ;;  %v13728_v37 = vld [vmem:[%s16032_s12 + $0xf00] ss:$40 sps:$4 sm:$0xff]  }
  0xf5   : > { %9149 = vmatprep.subr.bf16.mxu0 %v13645_v40  ;;  %v13731_v39 = vld [vmem:[%s16032_s12 + $0x2800] ss:$40 sps:$4 sm:$0xff]  }
  0xf6   : > { %v328_v40 = vld [vmem:[%s16158_s10 + $0x20] sm:$0xff] }
  0xf7   : > { %8831 = vmatpush1.bf16.msra.mxu1 %v13644_v41  ;;  %v16337_v41 = vld [vmem:[%s16158_s10 + $0x70] sm:$0xff] }
  0xf8   : > { %9151 = vmatpush1.bf16.msra.mxu0 %v13647_v42  ;;  %8833 = vmatprep.subr.bf16.mxu1 %v13648_v43  ;;  %v13732_v42 = vld [vmem:[%s16032_s12 + $0xf54] ss:$40 sps:$4 sm:$0xff]  }
  0xf9   : > { %9153 = vmatprep.subr.bf16.mxu0 %v13651_v44  ;;  %v13735_v43 = vld [vmem:[%s16032_s12 + $0x2854] ss:$40 sps:$4 sm:$0xff]   ;;  %v13734_v44 = vld [vmem:[%s16032_s12 + $0xf50] ss:$40 sps:$4 sm:$0xff]  }
  0xfb   : > { %8835 = vmatpush1.bf16.msra.mxu1 %v13650_v45  ;;  %v13737_v45 = vld [vmem:[%s16032_s12 + $0x2850] ss:$40 sps:$4 sm:$0xff]  }
  0xfc   : > { %9155 = vmatpush1.bf16.msra.mxu0 %v13653_v46  ;;  %8837 = vmatprep.subr.bf16.mxu1 %v13654_v47  ;;  %v331_v46 = vld [vmem:[%s16158_s10 + $0x38] sm:$0xff]  ;;  %v16346_v47 = vld [vmem:[%s16158_s10 + $0x88] sm:$0xff] }
  0xfd   : > { %9157 = vmatprep.subr.bf16.mxu0 %v13657_v48  ;;  %v13738_v48 = vld [vmem:[%s16032_s12 + $0xfa4] ss:$40 sps:$4 sm:$0xff]  }
  0xff   : > { %8839 = vmatpush1.bf16.msra.mxu1 %v13656_v49  ;;  %v13741_v49 = vld [vmem:[%s16032_s12 + $0x28a4] ss:$40 sps:$4 sm:$0xff]  }
 0x100   : > { %9159 = vmatpush1.bf16.msra.mxu0 %v13659_v50  ;;  %8841 = vmatprep.subr.bf16.mxu1 %v13660_v51  ;;  %v13740_v50 = vld [vmem:[%s16032_s12 + $0xfa0] ss:$40 sps:$4 sm:$0xff]  }
 0x101   : > { %9161 = vmatprep.subr.bf16.mxu0 %v13663_v53  ;;  %v13743_v51 = vld [vmem:[%s16032_s12 + $0x28a0] ss:$40 sps:$4 sm:$0xff]   ;;  %v13744_v53 = vld [vmem:[%s16032_s12 + $0xff4] ss:$40 sps:$4 sm:$0xff]  }
 0x103   : > { %8843 = vmatpush1.bf16.msra.mxu1 %v13662_v54  ;;  %v13747_v54 = vld [vmem:[%s16032_s12 + $0x28f4] ss:$40 sps:$4 sm:$0xff]  }
 0x104   : > { %9163 = vmatpush1.bf16.msra.mxu0 %v13665_v55  ;;  %8845 = vmatprep.subr.bf16.mxu1 %v13666_v56  ;;  %v13746_v55 = vld [vmem:[%s16032_s12 + $0xff0] ss:$40 sps:$4 sm:$0xff]  }
 0x105   : > { %9165 = vmatprep.subr.bf16.mxu0 %v13669_v57  ;;  %v13749_v56 = vld [vmem:[%s16032_s12 + $0x28f0] ss:$40 sps:$4 sm:$0xff]   ;;  %v13750_v57 = vld [vmem:[%s16032_s12 + $0x1044] ss:$40 sps:$4 sm:$0xff]  }
 0x107   : > { %8847 = vmatpush1.bf16.msra.mxu1 %v13668_v58  ;;  %v13753_v58 = vld [vmem:[%s16032_s12 + $0x2944] ss:$40 sps:$4 sm:$0xff]  }
 0x108   : > { %9167 = vmatpush1.bf16.msra.mxu0 %v13671_v59  ;;  %8849 = vmatprep.subr.bf16.mxu1 %v13672_v60  ;;  %v13752_v59 = vld [vmem:[%s16032_s12 + $0x1040] ss:$40 sps:$4 sm:$0xff]  }
 0x109   : > { %9169 = vmatprep.subr.bf16.mxu0 %v13675_v61  ;;  %v13755_v60 = vld [vmem:[%s16032_s12 + $0x2940] ss:$40 sps:$4 sm:$0xff]   ;;  %v13756_v61 = vld [vmem:[%s16032_s12 + $0x1094] ss:$40 sps:$4 sm:$0xff]  }
 0x10b   : > { %8851 = vmatpush1.bf16.msra.mxu1 %v13674_v62  ;;  %v13759_v62 = vld [vmem:[%s16032_s12 + $0x2994] ss:$40 sps:$4 sm:$0xff]  }
 0x10c   : > { %9171 = vmatpush1.bf16.msra.mxu0 %v13677_v63  ;;  %8853 = vmatprep.subr.bf16.mxu1 %v13678_v0  ;;  %v13758_v63 = vld [vmem:[%s16032_s12 + $0x1090] ss:$40 sps:$4 sm:$0xff]  }
 0x10d   : > { %9173 = vmatprep.subr.bf16.mxu0 %v13681_v1  ;;  %v13761_v0 = vld [vmem:[%s16032_s12 + $0x2990] ss:$40 sps:$4 sm:$0xff]   ;;  %v13762_v1 = vld [vmem:[%s16032_s12 + $0x10e4] ss:$40 sps:$4 sm:$0xff]  }
 0x10f   : > { %8855 = vmatpush1.bf16.msra.mxu1 %v13680_v2  ;;  %v13765_v2 = vld [vmem:[%s16032_s12 + $0x29e4] ss:$40 sps:$4 sm:$0xff]  }
 0x110   : > { %9175 = vmatpush1.bf16.msra.mxu0 %v13683_v3  ;;  %8857 = vmatprep.subr.bf16.mxu1 %v13684_v5  ;;  %v13764_v3 = vld [vmem:[%s16032_s12 + $0x10e0] ss:$40 sps:$4 sm:$0xff]  }
 0x111   : > { %9177 = vmatprep.subr.bf16.mxu0 %v13687_v6  ;;  %v13767_v5 = vld [vmem:[%s16032_s12 + $0x29e0] ss:$40 sps:$4 sm:$0xff]   ;;  %v13768_v6 = vld [vmem:[%s16032_s12 + $0x1134] ss:$40 sps:$4 sm:$0xff]  }
 0x113   : > { %8859 = vmatpush1.bf16.msra.mxu1 %v13686_v7  ;;  %v13771_v7 = vld [vmem:[%s16032_s12 + $0x2a34] ss:$40 sps:$4 sm:$0xff]  }
 0x114   : > { %9179 = vmatpush1.bf16.msra.mxu0 %v13689_v8  ;;  %8861 = vmatprep.subr.bf16.mxu1 %v13690_v9  ;;  %v13770_v8 = vld [vmem:[%s16032_s12 + $0x1130] ss:$40 sps:$4 sm:$0xff]  }
 0x115   : > { %9181 = vmatprep.subr.bf16.mxu0 %v13693_v10  ;;  %v13773_v9 = vld [vmem:[%s16032_s12 + $0x2a30] ss:$40 sps:$4 sm:$0xff]   ;;  %v13774_v10 = vld [vmem:[%s16032_s12 + $0x1184] ss:$40 sps:$4 sm:$0xff]  }
 0x117   : > { %8863 = vmatpush1.bf16.msra.mxu1 %v13692_v11  ;;  %v13777_v11 = vld [vmem:[%s16032_s12 + $0x2a84] ss:$40 sps:$4 sm:$0xff]  }
 0x118   : > { %9183 = vmatpush1.bf16.msra.mxu0 %v13695_v12  ;;  %8865 = vmatprep.subr.bf16.mxu1 %v13696_v13  ;;  %v13776_v12 = vld [vmem:[%s16032_s12 + $0x1180] ss:$40 sps:$4 sm:$0xff]  }
 0x119   : > { %9185 = vmatprep.subr.bf16.mxu0 %v13699_v14  ;;  %v13779_v13 = vld [vmem:[%s16032_s12 + $0x2a80] ss:$40 sps:$4 sm:$0xff]   ;;  %v13780_v14 = vld [vmem:[%s16032_s12 + $0x11d4] ss:$40 sps:$4 sm:$0xff]  }
 0x11b   : > { %8867 = vmatpush1.bf16.msra.mxu1 %v13698_v15  ;;  %v13783_v15 = vld [vmem:[%s16032_s12 + $0x2ad4] ss:$40 sps:$4 sm:$0xff]  }
 0x11c   : > { %9187 = vmatpush1.bf16.msra.mxu0 %v13701_v16  ;;  %8869 = vmatprep.subr.bf16.mxu1 %v13702_v17  ;;  %v13782_v16 = vld [vmem:[%s16032_s12 + $0x11d0] ss:$40 sps:$4 sm:$0xff]  }
 0x11d   : > { %9189 = vmatprep.subr.bf16.mxu0 %v13705_v18  ;;  %v13785_v17 = vld [vmem:[%s16032_s12 + $0x2ad0] ss:$40 sps:$4 sm:$0xff]   ;;  %v13786_v18 = vld [vmem:[%s16032_s12 + $0x1224] ss:$40 sps:$4 sm:$0xff]  }
 0x11f   : > { %8871 = vmatpush1.bf16.msra.mxu1 %v13704_v19  ;;  %v13789_v19 = vld [vmem:[%s16032_s12 + $0x2b24] ss:$40 sps:$4 sm:$0xff]  }
 0x120   : > { %9191 = vmatpush1.bf16.msra.mxu0 %v13707_v20  ;;  %8873 = vmatprep.subr.bf16.mxu1 %v13708_v21  ;;  %v13788_v20 = vld [vmem:[%s16032_s12 + $0x1220] ss:$40 sps:$4 sm:$0xff]  }
 0x121   : > { %9193 = vmatprep.subr.bf16.mxu0 %v13711_v22  ;;  %v13791_v21 = vld [vmem:[%s16032_s12 + $0x2b20] ss:$40 sps:$4 sm:$0xff]   ;;  %v13792_v22 = vld [vmem:[%s16032_s12 + $0x1274] ss:$40 sps:$4 sm:$0xff]  }
 0x123   : > { %8875 = vmatpush1.bf16.msra.mxu1 %v13710_v23  ;;  %v13795_v23 = vld [vmem:[%s16032_s12 + $0x2b74] ss:$40 sps:$4 sm:$0xff]  }
 0x124   : > { %9195 = vmatpush1.bf16.msra.mxu0 %v13713_v24  ;;  %8877 = vmatprep.subr.bf16.mxu1 %v13714_v25  ;;  %v13794_v24 = vld [vmem:[%s16032_s12 + $0x1270] ss:$40 sps:$4 sm:$0xff]  }
 0x125   : > { %9197 = vmatprep.subr.bf16.mxu0 %v13717_v27  ;;  %v13797_v25 = vld [vmem:[%s16032_s12 + $0x2b70] ss:$40 sps:$4 sm:$0xff]   ;;  %v13798_v27 = vld [vmem:[%s16032_s12 + $0x12c4] ss:$40 sps:$4 sm:$0xff]  }
 0x127   : > { %8879 = vmatpush1.bf16.msra.mxu1 %v13716_v28  ;;  %v13801_v28 = vld [vmem:[%s16032_s12 + $0x2bc4] ss:$40 sps:$4 sm:$0xff]  }
 0x128   : > { %9199 = vmatpush1.bf16.msra.mxu0 %v13719_v29  ;;  %8881 = vmatprep.subr.bf16.mxu1 %v13720_v30  ;;  %v13800_v29 = vld [vmem:[%s16032_s12 + $0x12c0] ss:$40 sps:$4 sm:$0xff]  }
 0x129   : > { %9201 = vmatprep.subr.bf16.mxu0 %v13723_v31  ;;  %v13803_v30 = vld [vmem:[%s16032_s12 + $0x2bc0] ss:$40 sps:$4 sm:$0xff]   ;;  %v13804_v31 = vld [vmem:[%s16032_s12 + $0x1314] ss:$40 sps:$4 sm:$0xff]  }
 0x12b   : > { %8883 = vmatpush1.bf16.msra.mxu1 %v13722_v33  ;;  %v13807_v33 = vld [vmem:[%s16032_s12 + $0x2c14] ss:$40 sps:$4 sm:$0xff]  }
 0x12c   : > { %9203 = vmatpush1.bf16.msra.mxu0 %v13725_v34  ;;  %8885 = vmatprep.subr.bf16.mxu1 %v13726_v35  ;;  %v13806_v34 = vld [vmem:[%s16032_s12 + $0x1310] ss:$40 sps:$4 sm:$0xff]  }
 0x12d   : > { %9205 = vmatprep.subr.bf16.mxu0 %v13729_v36  ;;  %v13809_v35 = vld [vmem:[%s16032_s12 + $0x2c10] ss:$40 sps:$4 sm:$0xff]   ;;  %v13810_v36 = vld [vmem:[%s16032_s12 + $0x1364] ss:$40 sps:$4 sm:$0xff]  }
 0x12e   : > { %5164 = vmatmul.mubr.f32.vlgmr.msra.gmra.mrb[0].mxu1 %v328_v40  ;;  %v13815_v40 = vld [vmem:[%s16032_s12 + $0x2c60] ss:$40 sps:$4 sm:$0xff]  }
 0x12f   : > { %5519 = vmatmul.mubr.f32.vlgmr.msra.gmra.mrb[0].mxu0 %v16337_v41  ;;  %8887 = vmatpush1.bf16.msra.mxu1 %v13728_v37  ;;  %v13813_v37 = vld [vmem:[%s16032_s12 + $0x2c64] ss:$40 sps:$4 sm:$0xff]  }
 0x130   : > { %9207 = vmatpush1.bf16.msra.mxu0 %v13731_v39  ;;  %8889 = vmatprep.subr.bf16.mxu1 %v13732_v42  ;;  %v13812_v39 = vld [vmem:[%s16032_s12 + $0x1360] ss:$40 sps:$4 sm:$0xff]   ;;  %v13816_v42 = vld [vmem:[%s16032_s12 + $0x13b4] ss:$40 sps:$4 sm:$0xff]  }
 0x131   : > { %9209 = vmatprep.subr.bf16.mxu0 %v13735_v43  ;;  %5234 = vmatprep.mubr.f32.mxu1 %v331_v46  ;;  %v13819_v43 = vld [vmem:[%s16032_s12 + $0x2cb4] ss:$40 sps:$4 sm:$0xff]   ;;  %v13822_v46 = vld [vmem:[%s16032_s12 + $0x1404] ss:$40 sps:$4 sm:$0xff]  }
 0x132   : > { %5589 = vmatprep.mubr.f32.mxu0 %v16346_v47 }
 0x133   : > { %8891 = vmatpush1.bf16.msra.mxu1 %v13734_v44  ;;  %v13818_v44 = vld [vmem:[%s16032_s12 + $0x13b0] ss:$40 sps:$4 sm:$0xff]  }
 0x134   : > { %9211 = vmatpush1.bf16.msra.mxu0 %v13737_v45  ;;  %8893 = vmatprep.subr.bf16.mxu1 %v13738_v48  ;;  %v13821_v45 = vld [vmem:[%s16032_s12 + $0x2cb0] ss:$40 sps:$4 sm:$0xff]   ;;  %v13825_v48 = vld [vmem:[%s16032_s12 + $0x2d04] ss:$40 sps:$4 sm:$0xff]  }
 0x135   : > { %9213 = vmatprep.subr.bf16.mxu0 %v13741_v49  ;;  %v13824_v49 = vld [vmem:[%s16032_s12 + $0x1400] ss:$40 sps:$4 sm:$0xff]  }
 0x137   : > { %8895 = vmatpush1.bf16.msra.mxu1 %v13740_v50  ;;  %v13827_v50 = vld [vmem:[%s16032_s12 + $0x2d00] ss:$40 sps:$4 sm:$0xff]  }
 0x138   : > { %9215 = vmatpush1.bf16.msra.mxu0 %v13743_v51  ;;  %8897 = vmatprep.subr.bf16.mxu1 %v13744_v53  ;;  %v16410_v51 = vld [vmem:[%s16158_s10 + $0x30] sm:$0xff]  ;;  %v16413_v53 = vld [vmem:[%s16158_s10 + $0x80] sm:$0xff] }
 0x139   : > { %9217 = vmatprep.subr.bf16.mxu0 %v13747_v54  ;;  %v13828_v54 = vld [vmem:[%s16032_s12 + $0x1454] ss:$40 sps:$4 sm:$0xff]  }
 0x13b   : > { %8899 = vmatpush1.bf16.msra.mxu1 %v13746_v55  ;;  %v13831_v55 = vld [vmem:[%s16032_s12 + $0x2d54] ss:$40 sps:$4 sm:$0xff]  }
 0x13c   : > { %9219 = vmatpush1.bf16.msra.mxu0 %v13749_v56  ;;  %8901 = vmatprep.subr.bf16.mxu1 %v13750_v57  ;;  %v13830_v56 = vld [vmem:[%s16032_s12 + $0x1450] ss:$40 sps:$4 sm:$0xff]   ;;  %v16421_v57 = vld [vmem:[%s16158_s10 + $0x48] sm:$0xff] }
 0x13d   : > { %9221 = vmatprep.subr.bf16.mxu0 %v13753_v58  ;;  %v13833_v58 = vld [vmem:[%s16032_s12 + $0x2d50] ss:$40 sps:$4 sm:$0xff]  }
 0x13f   : > { %8903 = vmatpush1.bf16.msra.mxu1 %v13752_v59  ;;  %v13834_v59 = vld [vmem:[%s16032_s12 + $0x14a4] ss:$40 sps:$4 sm:$0xff]  }
 0x140   : > { %9223 = vmatpush1.bf16.msra.mxu0 %v13755_v60  ;;  %8905 = vmatprep.subr.bf16.mxu1 %v13756_v61  ;;  %v13837_v60 = vld [vmem:[%s16032_s12 + $0x2da4] ss:$40 sps:$4 sm:$0xff]   ;;  %v15864_v61 = vmov 0.0  }
 0x141   : > { %9225 = vmatprep.subr.bf16.mxu0 %v13759_v62  ;;  %v13836_v62 = vld [vmem:[%s16032_s12 + $0x14a0] ss:$40 sps:$4 sm:$0xff]  }
 0x143   : > { %8907 = vmatpush1.bf16.msra.mxu1 %v13758_v63  ;;  %v13839_v63 = vld [vmem:[%s16032_s12 + $0x2da0] ss:$40 sps:$4 sm:$0xff]  }
 0x144   : > { %9227 = vmatpush1.bf16.msra.mxu0 %v13761_v0  ;;  %8909 = vmatprep.subr.bf16.mxu1 %v13762_v1  ;;  %v13840_v0 = vld [vmem:[%s16032_s12 + $0x14f4] ss:$40 sps:$4 sm:$0xff]  }
 0x145   : > { %9229 = vmatprep.subr.bf16.mxu0 %v13765_v2  ;;  %v13843_v1 = vld [vmem:[%s16032_s12 + $0x2df4] ss:$40 sps:$4 sm:$0xff]   ;;  %v13842_v2 = vld [vmem:[%s16032_s12 + $0x14f0] ss:$40 sps:$4 sm:$0xff]  }
 0x147   : > { %8911 = vmatpush1.bf16.msra.mxu1 %v13764_v3  ;;  %v13845_v3 = vld [vmem:[%s16032_s12 + $0x2df0] ss:$40 sps:$4 sm:$0xff]  }
 0x148   : > { %9231 = vmatpush1.bf16.msra.mxu0 %v13767_v5  ;;  %8913 = vmatprep.subr.bf16.mxu1 %v13768_v6  ;;  %v13846_v5 = vld [vmem:[%s16032_s12 + $0x1544] ss:$40 sps:$4 sm:$0xff]  }
 0x149   : > { %9233 = vmatprep.subr.bf16.mxu0 %v13771_v7  ;;  %v13849_v6 = vld [vmem:[%s16032_s12 + $0x2e44] ss:$40 sps:$4 sm:$0xff]   ;;  %v13848_v7 = vld [vmem:[%s16032_s12 + $0x1540] ss:$40 sps:$4 sm:$0xff]  }
 0x14b   : > { %8915 = vmatpush1.bf16.msra.mxu1 %v13770_v8  ;;  %v13851_v8 = vld [vmem:[%s16032_s12 + $0x2e40] ss:$40 sps:$4 sm:$0xff]  }
 0x14c   : > { %9235 = vmatpush1.bf16.msra.mxu0 %v13773_v9  ;;  %8917 = vmatprep.subr.bf16.mxu1 %v13774_v10  ;;  %v13852_v9 = vld [vmem:[%s16032_s12 + $0x1594] ss:$40 sps:$4 sm:$0xff]  }
 0x14d   : > { %9237 = vmatprep.subr.bf16.mxu0 %v13777_v11  ;;  %v13855_v10 = vld [vmem:[%s16032_s12 + $0x2e94] ss:$40 sps:$4 sm:$0xff]   ;;  %v13854_v11 = vld [vmem:[%s16032_s12 + $0x1590] ss:$40 sps:$4 sm:$0xff]  }
 0x14f   : > { %8919 = vmatpush1.bf16.msra.mxu1 %v13776_v12  ;;  %v13857_v12 = vld [vmem:[%s16032_s12 + $0x2e90] ss:$40 sps:$4 sm:$0xff]  }
 0x150   : > { %9239 = vmatpush1.bf16.msra.mxu0 %v13779_v13  ;;  %8921 = vmatprep.subr.bf16.mxu1 %v13780_v14  ;;  %v13858_v13 = vld [vmem:[%s16032_s12 + $0x15e4] ss:$40 sps:$4 sm:$0xff]  }
 0x151   : > { %9241 = vmatprep.subr.bf16.mxu0 %v13783_v15  ;;  %v13861_v14 = vld [vmem:[%s16032_s12 + $0x2ee4] ss:$40 sps:$4 sm:$0xff]   ;;  %v13860_v15 = vld [vmem:[%s16032_s12 + $0x15e0] ss:$40 sps:$4 sm:$0xff]  }
 0x153   : > { %8923 = vmatpush1.bf16.msra.mxu1 %v13782_v16  ;;  %v13863_v16 = vld [vmem:[%s16032_s12 + $0x2ee0] ss:$40 sps:$4 sm:$0xff]  }
 0x154   : > { %9243 = vmatpush1.bf16.msra.mxu0 %v13785_v17  ;;  %8925 = vmatprep.subr.bf16.mxu1 %v13786_v18  ;;  %v13864_v17 = vld [vmem:[%s16032_s12 + $0x1634] ss:$40 sps:$4 sm:$0xff]  }
 0x155   : > { %9245 = vmatprep.subr.bf16.mxu0 %v13789_v19  ;;  %v13867_v18 = vld [vmem:[%s16032_s12 + $0x2f34] ss:$40 sps:$4 sm:$0xff]   ;;  %v13866_v19 = vld [vmem:[%s16032_s12 + $0x1630] ss:$40 sps:$4 sm:$0xff]  }
 0x157   : > { %8927 = vmatpush1.bf16.msra.mxu1 %v13788_v20  ;;  %v13869_v20 = vld [vmem:[%s16032_s12 + $0x2f30] ss:$40 sps:$4 sm:$0xff]  }
 0x158   : > { %9247 = vmatpush1.bf16.msra.mxu0 %v13791_v21  ;;  %8929 = vmatprep.subr.bf16.mxu1 %v13792_v22  ;;  %v13870_v21 = vld [vmem:[%s16032_s12 + $0x1684] ss:$40 sps:$4 sm:$0xff]   ;;  %v13873_v22 = vld [vmem:[%s16032_s12 + $0x14] ss:$40 sps:$4 sm:$0xff]  }
 0x159   : > { %9249 = vmatprep.subr.bf16.mxu0 %v13795_v23  ;;  %v13872_v23 = vld [vmem:[%s16032_s12 + $0x1680] ss:$40 sps:$4 sm:$0xff]  }
 0x15b   : > { %8931 = vmatpush1.bf16.msra.mxu1 %v13794_v24  ;;  %v16454_v24 = vld [vmem:[%s16158_s10 + $0x90] sm:$0xff] }
 0x15c   : > { %9251 = vmatpush1.bf16.msra.mxu0 %v13797_v25  ;;  %8933 = vmatprep.subr.bf16.mxu1 %v13798_v27  ;;  %v13875_v25 = vld [vmem:[%s16032_s12 + $0x10] ss:$40 sps:$4 sm:$0xff]   ;;  %v13876_v27 = vld [vmem:[%s16032_s12 + $0x16d4] ss:$40 sps:$4 sm:$0xff]  }
 0x15d   : > { %9253 = vmatprep.subr.bf16.mxu0 %v13801_v28  ;;  %v13879_v28 = vld [vmem:[%s16032_s12 + $0x64] ss:$40 sps:$4 sm:$0xff]  }
 0x15f   : > { %8935 = vmatpush1.bf16.msra.mxu1 %v13800_v29  ;;  %v13878_v29 = vld [vmem:[%s16032_s12 + $0x16d0] ss:$40 sps:$4 sm:$0xff]  }
 0x160   : > { %9255 = vmatpush1.bf16.msra.mxu0 %v13803_v30  ;;  %8937 = vmatprep.subr.bf16.mxu1 %v13804_v31  ;;  %v13881_v30 = vld [vmem:[%s16032_s12 + $0x60] ss:$40 sps:$4 sm:$0xff]   ;;  %v13882_v31 = vld [vmem:[%s16032_s12 + $0x1724] ss:$40 sps:$4 sm:$0xff]  }
 0x161   : > { %9257 = vmatprep.subr.bf16.mxu0 %v13807_v33  ;;  %v13885_v33 = vld [vmem:[%s16032_s12 + $0xb4] ss:$40 sps:$4 sm:$0xff]  }
 0x163   : > { %8939 = vmatpush1.bf16.msra.mxu1 %v13806_v34  ;;  %v13884_v34 = vld [vmem:[%s16032_s12 + $0x1720] ss:$40 sps:$4 sm:$0xff]  }
 0x164   : > { %9259 = vmatpush1.bf16.msra.mxu0 %v13809_v35  ;;  %8941 = vmatprep.subr.bf16.mxu1 %v13810_v36  ;;  %v16466_v35 = vld [vmem:[%s16158_s10 + $0x8] sm:$0xff]  ;;  %v13887_v36 = vld [vmem:[%s16032_s12 + $0xb0] ss:$40 sps:$4 sm:$0xff]  }
 0x165   : > { %9261 = vmatprep.subr.bf16.mxu0 %v13813_v37  ;;  %v13888_v37 = vld [vmem:[%s16032_s12 + $0x1774] ss:$40 sps:$4 sm:$0xff]  }
 0x167   : > { %8943 = vmatpush1.bf16.msra.mxu1 %v13812_v39  ;;  %v13891_v39 = vld [vmem:[%s16032_s12 + $0x104] ss:$40 sps:$4 sm:$0xff]  }
 0x168   : > { %9263 = vmatpush1.bf16.msra.mxu0 %v13815_v40  ;;  %8945 = vmatprep.subr.bf16.mxu1 %v13816_v42  ;;  %v13890_v40 = vld [vmem:[%s16032_s12 + $0x1770] ss:$40 sps:$4 sm:$0xff]   ;;  %v13893_v42 = vld [vmem:[%s16032_s12 + $0x100] ss:$40 sps:$4 sm:$0xff]  }
 0x169   : > { %9265 = vmatprep.subr.bf16.mxu0 %v13819_v43  ;;  %v13894_v43 = vld [vmem:[%s16032_s12 + $0x17c4] ss:$40 sps:$4 sm:$0xff]  }
 0x16b   : > { %8947 = vmatpush1.bf16.msra.mxu1 %v13818_v44  ;;  %v13897_v44 = vld [vmem:[%s16032_s12 + $0x154] ss:$40 sps:$4 sm:$0xff]  }
 0x16c   : > { %9267 = vmatpush1.bf16.msra.mxu0 %v13821_v45  ;;  %8949 = vmatprep.subr.bf16.mxu1 %v13822_v46  ;;  %v13896_v45 = vld [vmem:[%s16032_s12 + $0x17c0] ss:$40 sps:$4 sm:$0xff]   ;;  %v13899_v46 = vld [vmem:[%s16032_s12 + $0x150] ss:$40 sps:$4 sm:$0xff]  }
 0x16d   : > { %9269 = vmatprep.subr.bf16.mxu0 %v13825_v48  ;;  %v13900_v48 = vld [vmem:[%s16032_s12 + $0x1814] ss:$40 sps:$4 sm:$0xff]  }
 0x16e   : > { %5235 = vmatmul.mubr.f32.vlgmr.msra.gmra.mrb[0].mxu1 %v16410_v51 }
 0x16f   : > { %5590 = vmatmul.mubr.f32.vlgmr.msra.gmra.mrb[0].mxu0 %v16413_v53  ;;  %8951 = vmatpush1.bf16.msra.mxu1 %v13824_v49  ;;  %v13903_v49 = vld [vmem:[%s16032_s12 + $0x1a4] ss:$40 sps:$4 sm:$0xff]  }
 0x170   : > { %9271 = vmatpush1.bf16.msra.mxu0 %v13827_v50  ;;  %8953 = vmatprep.subr.bf16.mxu1 %v13828_v54  ;;  %v13902_v50 = vld [vmem:[%s16032_s12 + $0x1810] ss:$40 sps:$4 sm:$0xff]   ;;  %v13905_v54 = vld [vmem:[%s16032_s12 + $0x1a0] ss:$40 sps:$4 sm:$0xff]  }
 0x171   : > { %9273 = vmatprep.subr.bf16.mxu0 %v13831_v55  ;;  %5660 = vmatprep.mubr.f32.mxu0 %v15864_v61  ;;  %v13906_v55 = vld [vmem:[%s16032_s12 + $0x1864] ss:$40 sps:$4 sm:$0xff]  }
 0x172   : > { %5305 = vmatprep.mubr.f32.mxu1 %v16421_v57 }
 0x173   : > { %8955 = vmatpush1.bf16.msra.mxu1 %v13830_v56  ;;  %v13909_v56 = vld [vmem:[%s16032_s12 + $0x1f4] ss:$40 sps:$4 sm:$0xff]  }
 0x174   : > { %9275 = vmatpush1.bf16.msra.mxu0 %v13833_v58  ;;  %8957 = vmatprep.subr.bf16.mxu1 %v13834_v59  ;;  %v13908_v58 = vld [vmem:[%s16032_s12 + $0x1860] ss:$40 sps:$4 sm:$0xff]   ;;  %v13911_v59 = vld [vmem:[%s16032_s12 + $0x1f0] ss:$40 sps:$4 sm:$0xff]  }
 0x175   : > { %9277 = vmatprep.subr.bf16.mxu0 %v13837_v60  ;;  %v13912_v60 = vld [vmem:[%s16032_s12 + $0x18b4] ss:$40 sps:$4 sm:$0xff]  }
 0x177   : > { %8959 = vmatpush1.bf16.msra.mxu1 %v13836_v62  ;;  %v13915_v62 = vld [vmem:[%s16032_s12 + $0x244] ss:$40 sps:$4 sm:$0xff]  }
 0x178   : > { %9279 = vmatpush1.bf16.msra.mxu0 %v13839_v63  ;;  %8961 = vmatprep.subr.bf16.mxu1 %v13840_v0  ;;  %v13914_v63 = vld [vmem:[%s16032_s12 + $0x18b0] ss:$40 sps:$4 sm:$0xff]   ;;  %v13917_v0 = vld [vmem:[%s16032_s12 + $0x240] ss:$40 sps:$4 sm:$0xff]  }
 0x179   : > { %9281 = vmatprep.subr.bf16.mxu0 %v13843_v1  ;;  %v13918_v1 = vld [vmem:[%s16032_s12 + $0xc] ss:$40 sps:$4 sm:$0xff]  }
 0x17b   : > { %8963 = vmatpush1.bf16.msra.mxu1 %v13842_v2  ;;  %v13921_v2 = vld [vmem:[%s16032_s12 + $0x294] ss:$40 sps:$4 sm:$0xff]  }
 0x17c   : > { %9283 = vmatpush1.bf16.msra.mxu0 %v13845_v3  ;;  %8965 = vmatprep.subr.bf16.mxu1 %v13846_v5  ;;  %v16493_v3 = vld [vmem:[%s16158_s10 + $0x40] sm:$0xff]  ;;  %v13920_v5 = vld [vmem:[%s16032_s12 + $0x8] ss:$40 sps:$4 sm:$0xff]  }
 0x17d   : > { %9285 = vmatprep.subr.bf16.mxu0 %v13849_v6  ;;  %v13923_v6 = vld [vmem:[%s16032_s12 + $0x290] ss:$40 sps:$4 sm:$0xff]  }
 0x17f   : > { %8967 = vmatpush1.bf16.msra.mxu1 %v13848_v7  ;;  %v13924_v7 = vld [vmem:[%s16032_s12 + $0x5c] ss:$40 sps:$4 sm:$0xff]  }
 0x180   : > { %9287 = vmatpush1.bf16.msra.mxu0 %v13851_v8  ;;  %8969 = vmatprep.subr.bf16.mxu1 %v13852_v9  ;;  %v13927_v8 = vld [vmem:[%s16032_s12 + $0x2e4] ss:$40 sps:$4 sm:$0xff]   ;;  %v13926_v9 = vld [vmem:[%s16032_s12 + $0x58] ss:$40 sps:$4 sm:$0xff]  }
 0x181   : > { %9289 = vmatprep.subr.bf16.mxu0 %v13855_v10  ;;  %v13929_v10 = vld [vmem:[%s16032_s12 + $0x2e0] ss:$40 sps:$4 sm:$0xff]  }
 0x183   : > { %8971 = vmatpush1.bf16.msra.mxu1 %v13854_v11  ;;  %v13930_v11 = vld [vmem:[%s16032_s12 + $0xac] ss:$40 sps:$4 sm:$0xff]  }
 0x184   : > { %9291 = vmatpush1.bf16.msra.mxu0 %v13857_v12  ;;  %8973 = vmatprep.subr.bf16.mxu1 %v13858_v13  ;;  %v13933_v12 = vld [vmem:[%s16032_s12 + $0x334] ss:$40 sps:$4 sm:$0xff]   ;;  %v13932_v13 = vld [vmem:[%s16032_s12 + $0xa8] ss:$40 sps:$4 sm:$0xff]  }
 0x185   : > { %9293 = vmatprep.subr.bf16.mxu0 %v13861_v14  ;;  %v13935_v14 = vld [vmem:[%s16032_s12 + $0x330] ss:$40 sps:$4 sm:$0xff]  }
 0x187   : > { %8975 = vmatpush1.bf16.msra.mxu1 %v13860_v15  ;;  %v13936_v15 = vld [vmem:[%s16032_s12 + $0xfc] ss:$40 sps:$4 sm:$0xff]  }
 0x188   : > { %9295 = vmatpush1.bf16.msra.mxu0 %v13863_v16  ;;  %8977 = vmatprep.subr.bf16.mxu1 %v13864_v17  ;;  %v13939_v16 = vld [vmem:[%s16032_s12 + $0x384] ss:$40 sps:$4 sm:$0xff]   ;;  %v13938_v17 = vld [vmem:[%s16032_s12 + $0xf8] ss:$40 sps:$4 sm:$0xff]  }
 0x189   : > { %9297 = vmatprep.subr.bf16.mxu0 %v13867_v18  ;;  %v13941_v18 = vld [vmem:[%s16032_s12 + $0x380] ss:$40 sps:$4 sm:$0xff]  }
 0x18b   : > { %8979 = vmatpush1.bf16.msra.mxu1 %v13866_v19  ;;  %v13942_v19 = vld [vmem:[%s16032_s12 + $0x14c] ss:$40 sps:$4 sm:$0xff]  }
 0x18c   : > { %9299 = vmatpush1.bf16.msra.mxu0 %v13869_v20  ;;  %8981 = vmatprep.subr.bf16.mxu1 %v13870_v21  ;;  %v13945_v20 = vld [vmem:[%s16032_s12 + $0x3d4] ss:$40 sps:$4 sm:$0xff]   ;;  %v13944_v21 = vld [vmem:[%s16032_s12 + $0x148] ss:$40 sps:$4 sm:$0xff]  }
 0x18d   : > { %9909 = vmatprep.subr.bf16.mxu0 %v13873_v22  ;;  %v13947_v22 = vld [vmem:[%s16032_s12 + $0x3d0] ss:$40 sps:$4 sm:$0xff]  }
 0x18f   : > { %5661 = vmatmul.mubr.f32.vlgmr.msra.gmra.mrb[0].mxu0 %v16454_v24  ;;  %8983 = vmatpush1.bf16.msra.mxu1 %v13872_v23  ;;  %v13948_v23 = vld [vmem:[%s16032_s12 + $0x19c] ss:$40 sps:$4 sm:$0xff]  }
 0x190   : > { %9911 = vmatpush1.bf16.msra.mxu0 %v13875_v25  ;;  %8985 = vmatprep.subr.bf16.mxu1 %v13876_v27  ;;  %v13951_v25 = vld [vmem:[%s16032_s12 + $0x424] ss:$40 sps:$4 sm:$0xff]   ;;  %v13950_v27 = vld [vmem:[%s16032_s12 + $0x198] ss:$40 sps:$4 sm:$0xff]  }
 0x191   : > { %9913 = vmatprep.subr.bf16.mxu0 %v13879_v28  ;;  %6441 = vmatprep.mubr.f32.mxu0 %v16466_v35  ;;  %v13953_v28 = vld [vmem:[%s16032_s12 + $0x420] ss:$40 sps:$4 sm:$0xff]  }
 0x193   : > { %8987 = vmatpush1.bf16.msra.mxu1 %v13878_v29  ;;  %v13954_v29 = vld [vmem:[%s16032_s12 + $0x1ec] ss:$40 sps:$4 sm:$0xff]  }
 0x194   : > { %9915 = vmatpush1.bf16.msra.mxu0 %v13881_v30  ;;  %8989 = vmatprep.subr.bf16.mxu1 %v13882_v31  ;;  %v13957_v30 = vld [vmem:[%s16032_s12 + $0x474] ss:$40 sps:$4 sm:$0xff]   ;;  %v13956_v31 = vld [vmem:[%s16032_s12 + $0x1e8] ss:$40 sps:$4 sm:$0xff]  }
 0x195   : > { %9917 = vmatprep.subr.bf16.mxu0 %v13885_v33  ;;  %v13959_v33 = vld [vmem:[%s16032_s12 + $0x470] ss:$40 sps:$4 sm:$0xff]  }
 0x197   : > { %8991 = vmatpush1.bf16.msra.mxu1 %v13884_v34  ;;  %v13960_v34 = vld [vmem:[%s16032_s12 + $0x23c] ss:$40 sps:$4 sm:$0xff]  }
 0x198   : > { %9919 = vmatpush1.bf16.msra.mxu0 %v13887_v36  ;;  %8993 = vmatprep.subr.bf16.mxu1 %v13888_v37  ;;  %v13963_v36 = vld [vmem:[%s16032_s12 + $0x4c4] ss:$40 sps:$4 sm:$0xff]   ;;  %v13962_v37 = vld [vmem:[%s16032_s12 + $0x238] ss:$40 sps:$4 sm:$0xff]  }
 0x199   : > { %9921 = vmatprep.subr.bf16.mxu0 %v13891_v39  ;;  %v13965_v39 = vld [vmem:[%s16032_s12 + $0x4c0] ss:$40 sps:$4 sm:$0xff]  }
 0x19b   : > { %8995 = vmatpush1.bf16.msra.mxu1 %v13890_v40  ;;  %v13966_v40 = vld [vmem:[%s16032_s12 + $0x28c] ss:$40 sps:$4 sm:$0xff]  }
 0x19c   : > { %9923 = vmatpush1.bf16.msra.mxu0 %v13893_v42  ;;  %8997 = vmatprep.subr.bf16.mxu1 %v13894_v43  ;;  %v13969_v42 = vld [vmem:[%s16032_s12 + $0x514] ss:$40 sps:$4 sm:$0xff]   ;;  %v13968_v43 = vld [vmem:[%s16032_s12 + $0x288] ss:$40 sps:$4 sm:$0xff]  }
 0x19d   : > { %9925 = vmatprep.subr.bf16.mxu0 %v13897_v44  ;;  %v13971_v44 = vld [vmem:[%s16032_s12 + $0x510] ss:$40 sps:$4 sm:$0xff]  }
 0x19f   : > { %8999 = vmatpush1.bf16.msra.mxu1 %v13896_v45  ;;  %v13972_v45 = vld [vmem:[%s16032_s12 + $0x2dc] ss:$40 sps:$4 sm:$0xff]  }
 0x1a0   : > { %9927 = vmatpush1.bf16.msra.mxu0 %v13899_v46  ;;  %9001 = vmatprep.subr.bf16.mxu1 %v13900_v48  ;;  %v13975_v46 = vld [vmem:[%s16032_s12 + $0x564] ss:$40 sps:$4 sm:$0xff]   ;;  %v13974_v48 = vld [vmem:[%s16032_s12 + $0x2d8] ss:$40 sps:$4 sm:$0xff]  }
 0x1a1   : > { %9929 = vmatprep.subr.bf16.mxu0 %v13903_v49  ;;  %v16535_v49 = vld [vmem:[%s16158_s10] sm:$0xff] }
 0x1a3   : > { %9003 = vmatpush1.bf16.msra.mxu1 %v13902_v50  ;;  %v13977_v50 = vld [vmem:[%s16032_s12 + $0x560] ss:$40 sps:$4 sm:$0xff]  }
 0x1a4   : > { %9931 = vmatpush1.bf16.msra.mxu0 %v13905_v54  ;;  %9005 = vmatprep.subr.bf16.mxu1 %v13906_v55  ;;  %v13978_v54 = vld [vmem:[%s16032_s12 + $0x32c] ss:$40 sps:$4 sm:$0xff]  }
 0x1a5   : > { %9933 = vmatprep.subr.bf16.mxu0 %v13909_v56  ;;  %v13981_v55 = vld [vmem:[%s16032_s12 + $0x5b4] ss:$40 sps:$4 sm:$0xff]   ;;  %v13980_v56 = vld [vmem:[%s16032_s12 + $0x328] ss:$40 sps:$4 sm:$0xff]  }
 0x1a7   : > { %9007 = vmatpush1.bf16.msra.mxu1 %v13908_v58  ;;  %v16543_v58 = vld [vmem:[%s16158_s10 + $0x18] sm:$0xff] }
 0x1a8   : > { %9935 = vmatpush1.bf16.msra.mxu0 %v13911_v59  ;;  %9009 = vmatprep.subr.bf16.mxu1 %v13912_v60  ;;  %v13983_v59 = vld [vmem:[%s16032_s12 + $0x5b0] ss:$40 sps:$4 sm:$0xff]   ;;  %v13984_v60 = vld [vmem:[%s16032_s12 + $0x37c] ss:$40 sps:$4 sm:$0xff]  }
 0x1a9   : > { %9937 = vmatprep.subr.bf16.mxu0 %v13915_v62  ;;  %v13987_v62 = vld [vmem:[%s16032_s12 + $0x604] ss:$40 sps:$4 sm:$0xff]  }
 0x1ab   : > { %9011 = vmatpush1.bf16.msra.mxu1 %v13914_v63  ;;  %v13986_v63 = vld [vmem:[%s16032_s12 + $0x378] ss:$40 sps:$4 sm:$0xff]  }
 0x1ac   : > { %9939 = vmatpush1.bf16.msra.mxu0 %v13917_v0  ;;  %9301 = vmatprep.subr.bf16.mxu1 %v13918_v1  ;;  %v13989_v0 = vld [vmem:[%s16032_s12 + $0x600] ss:$40 sps:$4 sm:$0xff]   ;;  %v13990_v1 = vld [vmem:[%s16032_s12 + $0x3cc] ss:$40 sps:$4 sm:$0xff]  }
 0x1ad   : > { %9941 = vmatprep.subr.bf16.mxu0 %v13921_v2  ;;  %v13993_v2 = vld [vmem:[%s16032_s12 + $0x654] ss:$40 sps:$4 sm:$0xff]  }
 0x1ae   : > { %5306 = vmatmul.mubr.f32.vlgmr.msra.gmra.mrb[0].mxu1 %v16493_v3 }
 0x1af   : > { %9303 = vmatpush1.bf16.msra.mxu1 %v13920_v5  ;;  %5731 = vmatprep.mubr.f32.mxu1 %v16466_v35  ;;  %v13992_v5 = vld [vmem:[%s16032_s12 + $0x3c8] ss:$40 sps:$4 sm:$0xff]  }
 0x1b0   : > { %9943 = vmatpush1.bf16.msra.mxu0 %v13923_v6  ;;  %9305 = vmatprep.subr.bf16.mxu1 %v13924_v7  ;;  %v13995_v6 = vld [vmem:[%s16032_s12 + $0x650] ss:$40 sps:$4 sm:$0xff]   ;;  %v13996_v7 = vld [vmem:[%s16032_s12 + $0x41c] ss:$40 sps:$4 sm:$0xff]  }
 0x1b1   : > { %9945 = vmatprep.subr.bf16.mxu0 %v13927_v8  ;;  %v13999_v8 = vld [vmem:[%s16032_s12 + $0x6a4] ss:$40 sps:$4 sm:$0xff]  }
 0x1b3   : > { %9307 = vmatpush1.bf16.msra.mxu1 %v13926_v9  ;;  %v13998_v9 = vld [vmem:[%s16032_s12 + $0x418] ss:$40 sps:$4 sm:$0xff]  }
 0x1b4   : > { %9947 = vmatpush1.bf16.msra.mxu0 %v13929_v10  ;;  %9309 = vmatprep.subr.bf16.mxu1 %v13930_v11  ;;  %v14001_v10 = vld [vmem:[%s16032_s12 + $0x6a0] ss:$40 sps:$4 sm:$0xff]   ;;  %v14002_v11 = vld [vmem:[%s16032_s12 + $0x46c] ss:$40 sps:$4 sm:$0xff]  }
 0x1b5   : > { %9949 = vmatprep.subr.bf16.mxu0 %v13933_v12  ;;  %v14005_v12 = vld [vmem:[%s16032_s12 + $0x6f4] ss:$40 sps:$4 sm:$0xff]  }
 0x1b7   : > { %9311 = vmatpush1.bf16.msra.mxu1 %v13932_v13  ;;  %v14004_v13 = vld [vmem:[%s16032_s12 + $0x468] ss:$40 sps:$4 sm:$0xff]  }
 0x1b8   : > { %9951 = vmatpush1.bf16.msra.mxu0 %v13935_v14  ;;  %9313 = vmatprep.subr.bf16.mxu1 %v13936_v15  ;;  %v14007_v14 = vld [vmem:[%s16032_s12 + $0x6f0] ss:$40 sps:$4 sm:$0xff]   ;;  %v14008_v15 = vld [vmem:[%s16032_s12 + $0x4bc] ss:$40 sps:$4 sm:$0xff]  }
 0x1b9   : > { %9953 = vmatprep.subr.bf16.mxu0 %v13939_v16  ;;  %v14011_v16 = vld [vmem:[%s16032_s12 + $0x744] ss:$40 sps:$4 sm:$0xff]  }
 0x1bb   : > { %9315 = vmatpush1.bf16.msra.mxu1 %v13938_v17  ;;  %v14010_v17 = vld [vmem:[%s16032_s12 + $0x4b8] ss:$40 sps:$4 sm:$0xff]  }
 0x1bc   : > { %9955 = vmatpush1.bf16.msra.mxu0 %v13941_v18  ;;  %9317 = vmatprep.subr.bf16.mxu1 %v13942_v19  ;;  %v14013_v18 = vld [vmem:[%s16032_s12 + $0x740] ss:$40 sps:$4 sm:$0xff]   ;;  %v14014_v19 = vld [vmem:[%s16032_s12 + $0x50c] ss:$40 sps:$4 sm:$0xff]  }
 0x1bd   : > { %9957 = vmatprep.subr.bf16.mxu0 %v13945_v20  ;;  %v14017_v20 = vld [vmem:[%s16032_s12 + $0x794] ss:$40 sps:$4 sm:$0xff]  }
 0x1bf   : > { %9319 = vmatpush1.bf16.msra.mxu1 %v13944_v21  ;;  %v14016_v21 = vld [vmem:[%s16032_s12 + $0x508] ss:$40 sps:$4 sm:$0xff]  }
 0x1c0   : > { %9959 = vmatpush1.bf16.msra.mxu0 %v13947_v22  ;;  %9321 = vmatprep.subr.bf16.mxu1 %v13948_v23  ;;  %v14019_v22 = vld [vmem:[%s16032_s12 + $0x790] ss:$40 sps:$4 sm:$0xff]   ;;  %v14020_v23 = vld [vmem:[%s16032_s12 + $0x55c] ss:$40 sps:$4 sm:$0xff]  }
 0x1c1   : > { %9961 = vmatprep.subr.bf16.mxu0 %v13951_v25  ;;  %v14023_v25 = vld [vmem:[%s16032_s12 + $0x7e4] ss:$40 sps:$4 sm:$0xff]  }
 0x1c3   : > { %9323 = vmatpush1.bf16.msra.mxu1 %v13950_v27  ;;  %v14022_v27 = vld [vmem:[%s16032_s12 + $0x558] ss:$40 sps:$4 sm:$0xff]  }
 0x1c4   : > { %9963 = vmatpush1.bf16.msra.mxu0 %v13953_v28  ;;  %9325 = vmatprep.subr.bf16.mxu1 %v13954_v29  ;;  %v14025_v28 = vld [vmem:[%s16032_s12 + $0x7e0] ss:$40 sps:$4 sm:$0xff]   ;;  %v14026_v29 = vld [vmem:[%s16032_s12 + $0x5ac] ss:$40 sps:$4 sm:$0xff]  }
 0x1c5   : > { %9965 = vmatprep.subr.bf16.mxu0 %v13957_v30  ;;  %v14029_v30 = vld [vmem:[%s16032_s12 + $0x834] ss:$40 sps:$4 sm:$0xff]  }
 0x1c7   : > { %9327 = vmatpush1.bf16.msra.mxu1 %v13956_v31  ;;  %v14028_v31 = vld [vmem:[%s16032_s12 + $0x5a8] ss:$40 sps:$4 sm:$0xff]  }
 0x1c8   : > { %9967 = vmatpush1.bf16.msra.mxu0 %v13959_v33  ;;  %9329 = vmatprep.subr.bf16.mxu1 %v13960_v34  ;;  %v14031_v33 = vld [vmem:[%s16032_s12 + $0x830] ss:$40 sps:$4 sm:$0xff]   ;;  %v14032_v34 = vld [vmem:[%s16032_s12 + $0x5fc] ss:$40 sps:$4 sm:$0xff]  }
 0x1c9   : > { %9969 = vmatprep.subr.bf16.mxu0 %v13963_v36  ;;  %v14035_v36 = vld [vmem:[%s16032_s12 + $0x884] ss:$40 sps:$4 sm:$0xff]  }
 0x1cb   : > { %9331 = vmatpush1.bf16.msra.mxu1 %v13962_v37  ;;  %v14034_v37 = vld [vmem:[%s16032_s12 + $0x5f8] ss:$40 sps:$4 sm:$0xff]  }
 0x1cc   : > { %9971 = vmatpush1.bf16.msra.mxu0 %v13965_v39  ;;  %9333 = vmatprep.subr.bf16.mxu1 %v13966_v40  ;;  %v14037_v39 = vld [vmem:[%s16032_s12 + $0x880] ss:$40 sps:$4 sm:$0xff]   ;;  %v14038_v40 = vld [vmem:[%s16032_s12 + $0x64c] ss:$40 sps:$4 sm:$0xff]  }
 0x1cd   : > { %9973 = vmatprep.subr.bf16.mxu0 %v13969_v42  ;;  %v14041_v42 = vld [vmem:[%s16032_s12 + $0x8d4] ss:$40 sps:$4 sm:$0xff]  }
 0x1cf   : > { %6442 = vmatmul.mubr.f32.vlgmr.msra.gmra.mrb[2].mxu0 %v16535_v49  ;;  %9335 = vmatpush1.bf16.msra.mxu1 %v13968_v43  ;;  %v14040_v43 = vld [vmem:[%s16032_s12 + $0x648] ss:$40 sps:$4 sm:$0xff]  }
 0x1d0   : > { %9975 = vmatpush1.bf16.msra.mxu0 %v13971_v44  ;;  %9337 = vmatprep.subr.bf16.mxu1 %v13972_v45  ;;  %v14043_v44 = vld [vmem:[%s16032_s12 + $0x8d0] ss:$40 sps:$4 sm:$0xff]   ;;  %v14044_v45 = vld [vmem:[%s16032_s12 + $0x69c] ss:$40 sps:$4 sm:$0xff]  }
 0x1d1   : > { %9977 = vmatprep.subr.bf16.mxu0 %v13975_v46  ;;  %6512 = vmatprep.mubr.f32.mxu0 %v16543_v58  ;;  %v14047_v46 = vld [vmem:[%s16032_s12 + $0x924] ss:$40 sps:$4 sm:$0xff]  }
 0x1d3   : > { %9339 = vmatpush1.bf16.msra.mxu1 %v13974_v48  ;;  %v14046_v48 = vld [vmem:[%s16032_s12 + $0x698] ss:$40 sps:$4 sm:$0xff]  }
 0x1d4   : > { %9979 = vmatpush1.bf16.msra.mxu0 %v13977_v50  ;;  %9341 = vmatprep.subr.bf16.mxu1 %v13978_v54  ;;  %v14049_v50 = vld [vmem:[%s16032_s12 + $0x920] ss:$40 sps:$4 sm:$0xff]   ;;  %v14050_v54 = vld [vmem:[%s16032_s12 + $0x6ec] ss:$40 sps:$4 sm:$0xff]  }
 0x1d5   : > { %9981 = vmatprep.subr.bf16.mxu0 %v13981_v55  ;;  %v14053_v55 = vld [vmem:[%s16032_s12 + $0x974] ss:$40 sps:$4 sm:$0xff]  }
 0x1d7   : > { %9343 = vmatpush1.bf16.msra.mxu1 %v13980_v56  ;;  %v14052_v56 = vld [vmem:[%s16032_s12 + $0x6e8] ss:$40 sps:$4 sm:$0xff]  }
 0x1d8   : > { %9983 = vmatpush1.bf16.msra.mxu0 %v13983_v59  ;;  %9345 = vmatprep.subr.bf16.mxu1 %v13984_v60  ;;  %v14055_v59 = vld [vmem:[%s16032_s12 + $0x970] ss:$40 sps:$4 sm:$0xff]   ;;  %v14056_v60 = vld [vmem:[%s16032_s12 + $0x73c] ss:$40 sps:$4 sm:$0xff]  }
 0x1d9   : > { %9985 = vmatprep.subr.bf16.mxu0 %v13987_v62  ;;  %v14059_v62 = vld [vmem:[%s16032_s12 + $0x9c4] ss:$40 sps:$4 sm:$0xff]  }
 0x1db   : > { %9347 = vmatpush1.bf16.msra.mxu1 %v13986_v63  ;;  %v14058_v63 = vld [vmem:[%s16032_s12 + $0x738] ss:$40 sps:$4 sm:$0xff]  }
 0x1dc   : > { %9987 = vmatpush1.bf16.msra.mxu0 %v13989_v0  ;;  %9349 = vmatprep.subr.bf16.mxu1 %v13990_v1  ;;  %v14061_v0 = vld [vmem:[%s16032_s12 + $0x9c0] ss:$40 sps:$4 sm:$0xff]   ;;  %v14062_v1 = vld [vmem:[%s16032_s12 + $0x78c] ss:$40 sps:$4 sm:$0xff]  }
 0x1dd   : > { %9989 = vmatprep.subr.bf16.mxu0 %v13993_v2  ;;  %v14065_v2 = vld [vmem:[%s16032_s12 + $0xa14] ss:$40 sps:$4 sm:$0xff]  }
 0x1df   : > { %9351 = vmatpush1.bf16.msra.mxu1 %v13992_v5  ;;  %v14064_v5 = vld [vmem:[%s16032_s12 + $0x788] ss:$40 sps:$4 sm:$0xff]  }
 0x1e0   : > { %9991 = vmatpush1.bf16.msra.mxu0 %v13995_v6  ;;  %9353 = vmatprep.subr.bf16.mxu1 %v13996_v7  ;;  %v14067_v6 = vld [vmem:[%s16032_s12 + $0xa10] ss:$40 sps:$4 sm:$0xff]   ;;  %v14068_v7 = vld [vmem:[%s16032_s12 + $0x7dc] ss:$40 sps:$4 sm:$0xff]  }
 0x1e1   : > { %9993 = vmatprep.subr.bf16.mxu0 %v13999_v8  ;;  %v14071_v8 = vld [vmem:[%s16032_s12 + $0xa64] ss:$40 sps:$4 sm:$0xff]  }
 0x1e3   : > { %9355 = vmatpush1.bf16.msra.mxu1 %v13998_v9  ;;  %v14070_v9 = vld [vmem:[%s16032_s12 + $0x7d8] ss:$40 sps:$4 sm:$0xff]  }
 0x1e4   : > { %9995 = vmatpush1.bf16.msra.mxu0 %v14001_v10  ;;  %9357 = vmatprep.subr.bf16.mxu1 %v14002_v11  ;;  %v16609_v10 = vld [vmem:[%s16158_s10 + $0x10] sm:$0xff]  ;;  %v14073_v11 = vld [vmem:[%s16032_s12 + $0xa60] ss:$40 sps:$4 sm:$0xff]  }
 0x1e5   : > { %9997 = vmatprep.subr.bf16.mxu0 %v14005_v12  ;;  %v14074_v12 = vld [vmem:[%s16032_s12 + $0x82c] ss:$40 sps:$4 sm:$0xff]  }
 0x1e7   : > { %9359 = vmatpush1.bf16.msra.mxu1 %v14004_v13  ;;  %v14077_v13 = vld [vmem:[%s16032_s12 + $0xab4] ss:$40 sps:$4 sm:$0xff]  }
 0x1e8   : > { %9999 = vmatpush1.bf16.msra.mxu0 %v14007_v14  ;;  %9361 = vmatprep.subr.bf16.mxu1 %v14008_v15  ;;  %v14076_v14 = vld [vmem:[%s16032_s12 + $0x828] ss:$40 sps:$4 sm:$0xff]  }
 0x1e9   : > { %10001 = vmatprep.subr.bf16.mxu0 %v14011_v16  ;;  %v16617_v15 = vld [vmem:[%s16158_s10 + $0x28] sm:$0xff]  ;;  %v14079_v16 = vld [vmem:[%s16032_s12 + $0xab0] ss:$40 sps:$4 sm:$0xff]  }
 0x1eb   : > { %9363 = vmatpush1.bf16.msra.mxu1 %v14010_v17  ;;  %v14080_v17 = vld [vmem:[%s16032_s12 + $0x87c] ss:$40 sps:$4 sm:$0xff]  }
 0x1ec   : > { %10003 = vmatpush1.bf16.msra.mxu0 %v14013_v18  ;;  %9365 = vmatprep.subr.bf16.mxu1 %v14014_v19  ;;  %v14083_v18 = vld [vmem:[%s16032_s12 + $0xb04] ss:$40 sps:$4 sm:$0xff]   ;;  %v14082_v19 = vld [vmem:[%s16032_s12 + $0x878] ss:$40 sps:$4 sm:$0xff]  }
 0x1ed   : > { %10005 = vmatprep.subr.bf16.mxu0 %v14017_v20  ;;  %v14085_v20 = vld [vmem:[%s16032_s12 + $0xb00] ss:$40 sps:$4 sm:$0xff]  }
 0x1ee   : > { %5732 = vmatmul.mubr.f32.vlgmr.msra.gmra.mrb[2].mxu1 %v16535_v49 }
 0x1ef   : > { %9367 = vmatpush1.bf16.msra.mxu1 %v14016_v21  ;;  %5802 = vmatprep.mubr.f32.mxu1 %v16543_v58  ;;  %v14086_v21 = vld [vmem:[%s16032_s12 + $0x8cc] ss:$40 sps:$4 sm:$0xff]  }
 0x1f0   : > { %10007 = vmatpush1.bf16.msra.mxu0 %v14019_v22  ;;  %9369 = vmatprep.subr.bf16.mxu1 %v14020_v23  ;;  %v14089_v22 = vld [vmem:[%s16032_s12 + $0xb54] ss:$40 sps:$4 sm:$0xff]   ;;  %v14088_v23 = vld [vmem:[%s16032_s12 + $0x8c8] ss:$40 sps:$4 sm:$0xff]  }
 0x1f1   : > { %10009 = vmatprep.subr.bf16.mxu0 %v14023_v25  ;;  %v14091_v25 = vld [vmem:[%s16032_s12 + $0xb50] ss:$40 sps:$4 sm:$0xff]  }
 0x1f3   : > { %9371 = vmatpush1.bf16.msra.mxu1 %v14022_v27  ;;  %v14092_v27 = vld [vmem:[%s16032_s12 + $0x91c] ss:$40 sps:$4 sm:$0xff]  }
 0x1f4   : > { %10011 = vmatpush1.bf16.msra.mxu0 %v14025_v28  ;;  %9373 = vmatprep.subr.bf16.mxu1 %v14026_v29  ;;  %v14095_v28 = vld [vmem:[%s16032_s12 + $0xba4] ss:$40 sps:$4 sm:$0xff]   ;;  %v14094_v29 = vld [vmem:[%s16032_s12 + $0x918] ss:$40 sps:$4 sm:$0xff]  }
 0x1f5   : > { %10013 = vmatprep.subr.bf16.mxu0 %v14029_v30  ;;  %v14097_v30 = vld [vmem:[%s16032_s12 + $0xba0] ss:$40 sps:$4 sm:$0xff]  }
 0x1f7   : > { %9375 = vmatpush1.bf16.msra.mxu1 %v14028_v31  ;;  %v14098_v31 = vld [vmem:[%s16032_s12 + $0x96c] ss:$40 sps:$4 sm:$0xff]  }
 0x1f8   : > { %10015 = vmatpush1.bf16.msra.mxu0 %v14031_v33  ;;  %9377 = vmatprep.subr.bf16.mxu1 %v14032_v34  ;;  %v14101_v33 = vld [vmem:[%s16032_s12 + $0xbf4] ss:$40 sps:$4 sm:$0xff]   ;;  %v14100_v34 = vld [vmem:[%s16032_s12 + $0x968] ss:$40 sps:$4 sm:$0xff]  }
 0x1f9   : > { %10017 = vmatprep.subr.bf16.mxu0 %v14035_v36  ;;  %v14103_v36 = vld [vmem:[%s16032_s12 + $0xbf0] ss:$40 sps:$4 sm:$0xff]  }
 0x1fb   : > { %9379 = vmatpush1.bf16.msra.mxu1 %v14034_v37  ;;  %v14104_v37 = vld [vmem:[%s16032_s12 + $0x9bc] ss:$40 sps:$4 sm:$0xff]  }
 0x1fc   : > { %10019 = vmatpush1.bf16.msra.mxu0 %v14037_v39  ;;  %9381 = vmatprep.subr.bf16.mxu1 %v14038_v40  ;;  %v14107_v39 = vld [vmem:[%s16032_s12 + $0xc44] ss:$40 sps:$4 sm:$0xff]   ;;  %v14106_v40 = vld [vmem:[%s16032_s12 + $0x9b8] ss:$40 sps:$4 sm:$0xff]  }
 0x1fd   : > { %10021 = vmatprep.subr.bf16.mxu0 %v14041_v42  ;;  %v14109_v42 = vld [vmem:[%s16032_s12 + $0xc40] ss:$40 sps:$4 sm:$0xff]  }
 0x1ff   : > { %9383 = vmatpush1.bf16.msra.mxu1 %v14040_v43  ;;  %v14110_v43 = vld [vmem:[%s16032_s12 + $0xa0c] ss:$40 sps:$4 sm:$0xff]  }
 0x200   : > { %10023 = vmatpush1.bf16.msra.mxu0 %v14043_v44  ;;  %9385 = vmatprep.subr.bf16.mxu1 %v14044_v45  ;;  %v14113_v44 = vld [vmem:[%s16032_s12 + $0xc94] ss:$40 sps:$4 sm:$0xff]   ;;  %v14112_v45 = vld [vmem:[%s16032_s12 + $0xa08] ss:$40 sps:$4 sm:$0xff]  }
 0x201   : > { %10025 = vmatprep.subr.bf16.mxu0 %v14047_v46  ;;  %v14115_v46 = vld [vmem:[%s16032_s12 + $0xc90] ss:$40 sps:$4 sm:$0xff]  }
 0x203   : > { %9387 = vmatpush1.bf16.msra.mxu1 %v14046_v48  ;;  %v14116_v48 = vld [vmem:[%s16032_s12 + $0xa5c] ss:$40 sps:$4 sm:$0xff]  }
 0x204   : > { %10027 = vmatpush1.bf16.msra.mxu0 %v14049_v50  ;;  %9389 = vmatprep.subr.bf16.mxu1 %v14050_v54  ;;  %v14119_v50 = vld [vmem:[%s16032_s12 + $0xce4] ss:$40 sps:$4 sm:$0xff]   ;;  %v14118_v54 = vld [vmem:[%s16032_s12 + $0xa58] ss:$40 sps:$4 sm:$0xff]  }
 0x205   : > { %10029 = vmatprep.subr.bf16.mxu0 %v14053_v55  ;;  %v14121_v55 = vld [vmem:[%s16032_s12 + $0xce0] ss:$40 sps:$4 sm:$0xff]  }
 0x207   : > { %9391 = vmatpush1.bf16.msra.mxu1 %v14052_v56  ;;  %v14122_v56 = vld [vmem:[%s16032_s12 + $0xaac] ss:$40 sps:$4 sm:$0xff]  }
 0x208   : > { %10031 = vmatpush1.bf16.msra.mxu0 %v14055_v59  ;;  %9393 = vmatprep.subr.bf16.mxu1 %v14056_v60  ;;  %v14125_v59 = vld [vmem:[%s16032_s12 + $0xd34] ss:$40 sps:$4 sm:$0xff]   ;;  %v14124_v60 = vld [vmem:[%s16032_s12 + $0xaa8] ss:$40 sps:$4 sm:$0xff]  }
 0x209   : > { %10033 = vmatprep.subr.bf16.mxu0 %v14059_v62  ;;  %v14127_v62 = vld [vmem:[%s16032_s12 + $0xd30] ss:$40 sps:$4 sm:$0xff]  }
 0x20b   : > { %9395 = vmatpush1.bf16.msra.mxu1 %v14058_v63  ;;  %v14128_v63 = vld [vmem:[%s16032_s12 + $0xafc] ss:$40 sps:$4 sm:$0xff]  }
 0x20c   : > { %10035 = vmatpush1.bf16.msra.mxu0 %v14061_v0  ;;  %9397 = vmatprep.subr.bf16.mxu1 %v14062_v1  ;;  %v14131_v0 = vld [vmem:[%s16032_s12 + $0xd84] ss:$40 sps:$4 sm:$0xff]   ;;  %v14130_v1 = vld [vmem:[%s16032_s12 + $0xaf8] ss:$40 sps:$4 sm:$0xff]  }
 0x20d   : > { %10037 = vmatprep.subr.bf16.mxu0 %v14065_v2  ;;  %v14133_v2 = vld [vmem:[%s16032_s12 + $0xd80] ss:$40 sps:$4 sm:$0xff]  }
 0x20f   : > { %6513 = vmatmul.mubr.f32.vlgmr.msra.gmra.mrb[2].mxu0 %v16609_v10  ;;  %9399 = vmatpush1.bf16.msra.mxu1 %v14064_v5  ;;  %v14134_v5 = vld [vmem:[%s16032_s12 + $0xb4c] ss:$40 sps:$4 sm:$0xff]  }
 0x210   : > { %10039 = vmatpush1.bf16.msra.mxu0 %v14067_v6  ;;  %9401 = vmatprep.subr.bf16.mxu1 %v14068_v7  ;;  %v14137_v6 = vld [vmem:[%s16032_s12 + $0xdd4] ss:$40 sps:$4 sm:$0xff]   ;;  %v14136_v7 = vld [vmem:[%s16032_s12 + $0xb48] ss:$40 sps:$4 sm:$0xff]  }
 0x211   : > { %10041 = vmatprep.subr.bf16.mxu0 %v14071_v8  ;;  %6583 = vmatprep.mubr.f32.mxu0 %v16617_v15  ;;  %v14139_v8 = vld [vmem:[%s16032_s12 + $0xdd0] ss:$40 sps:$4 sm:$0xff]  }
 0x213   : > { %9403 = vmatpush1.bf16.msra.mxu1 %v14070_v9  ;;  %v14140_v9 = vld [vmem:[%s16032_s12 + $0xb9c] ss:$40 sps:$4 sm:$0xff]  }
 0x214   : > { %10043 = vmatpush1.bf16.msra.mxu0 %v14073_v11  ;;  %9405 = vmatprep.subr.bf16.mxu1 %v14074_v12  ;;  %v14143_v11 = vld [vmem:[%s16032_s12 + $0xe24] ss:$40 sps:$4 sm:$0xff]   ;;  %v14142_v12 = vld [vmem:[%s16032_s12 + $0xb98] ss:$40 sps:$4 sm:$0xff]  }
 0x215   : > { %10045 = vmatprep.subr.bf16.mxu0 %v14077_v13  ;;  %v14145_v13 = vld [vmem:[%s16032_s12 + $0xe20] ss:$40 sps:$4 sm:$0xff]  }
 0x217   : > { %9407 = vmatpush1.bf16.msra.mxu1 %v14076_v14  ;;  %v14146_v14 = vld [vmem:[%s16032_s12 + $0xbec] ss:$40 sps:$4 sm:$0xff]  }
 0x218   : > { %10047 = vmatpush1.bf16.msra.mxu0 %v14079_v16  ;;  %9409 = vmatprep.subr.bf16.mxu1 %v14080_v17  ;;  %v14149_v16 = vld [vmem:[%s16032_s12 + $0xe74] ss:$40 sps:$4 sm:$0xff]   ;;  %v14148_v17 = vld [vmem:[%s16032_s12 + $0xbe8] ss:$40 sps:$4 sm:$0xff]  }
 0x219   : > { %10049 = vmatprep.subr.bf16.mxu0 %v14083_v18  ;;  %v14151_v18 = vld [vmem:[%s16032_s12 + $0xe70] ss:$40 sps:$4 sm:$0xff]  }
 0x21b   : > { %9411 = vmatpush1.bf16.msra.mxu1 %v14082_v19  ;;  %v14152_v19 = vld [vmem:[%s16032_s12 + $0xc3c] ss:$40 sps:$4 sm:$0xff]  }
 0x21c   : > { %10051 = vmatpush1.bf16.msra.mxu0 %v14085_v20  ;;  %9413 = vmatprep.subr.bf16.mxu1 %v14086_v21  ;;  %v14155_v20 = vld [vmem:[%s16032_s12 + $0xec4] ss:$40 sps:$4 sm:$0xff]   ;;  %v14154_v21 = vld [vmem:[%s16032_s12 + $0xc38] ss:$40 sps:$4 sm:$0xff]  }
 0x21d   : > { %10053 = vmatprep.subr.bf16.mxu0 %v14089_v22  ;;  %v14157_v22 = vld [vmem:[%s16032_s12 + $0xec0] ss:$40 sps:$4 sm:$0xff]  }
 0x21f   : > { %9415 = vmatpush1.bf16.msra.mxu1 %v14088_v23  ;;  %v14158_v23 = vld [vmem:[%s16032_s12 + $0xc8c] ss:$40 sps:$4 sm:$0xff]  }
 0x220   : > { %10055 = vmatpush1.bf16.msra.mxu0 %v14091_v25  ;;  %9417 = vmatprep.subr.bf16.mxu1 %v14092_v27  ;;  %v14161_v25 = vld [vmem:[%s16032_s12 + $0xf14] ss:$40 sps:$4 sm:$0xff]   ;;  %v14160_v27 = vld [vmem:[%s16032_s12 + $0xc88] ss:$40 sps:$4 sm:$0xff]  }
 0x221   : > { %10057 = vmatprep.subr.bf16.mxu0 %v14095_v28  ;;  %v14163_v28 = vld [vmem:[%s16032_s12 + $0xf10] ss:$40 sps:$4 sm:$0xff]  }
 0x223   : > { %9419 = vmatpush1.bf16.msra.mxu1 %v14094_v29  ;;  %v14164_v29 = vld [vmem:[%s16032_s12 + $0xcdc] ss:$40 sps:$4 sm:$0xff]  }
 0x224   : > { %10059 = vmatpush1.bf16.msra.mxu0 %v14097_v30  ;;  %9421 = vmatprep.subr.bf16.mxu1 %v14098_v31  ;;  %v14167_v30 = vld [vmem:[%s16032_s12 + $0xf64] ss:$40 sps:$4 sm:$0xff]   ;;  %v14166_v31 = vld [vmem:[%s16032_s12 + $0xcd8] ss:$40 sps:$4 sm:$0xff]  }
 0x225   : > { %10061 = vmatprep.subr.bf16.mxu0 %v14101_v33  ;;  %v16683_v33 = vld [vmem:[%s16158_s10 + $0x20] sm:$0xff] }
 0x227   : > { %9423 = vmatpush1.bf16.msra.mxu1 %v14100_v34  ;;  %v14169_v34 = vld [vmem:[%s16032_s12 + $0xf60] ss:$40 sps:$4 sm:$0xff]  }
 0x228   : > { %10063 = vmatpush1.bf16.msra.mxu0 %v14103_v36  ;;  %9425 = vmatprep.subr.bf16.mxu1 %v14104_v37  ;;  %v14170_v36 = vld [vmem:[%s16032_s12 + $0xd2c] ss:$40 sps:$4 sm:$0xff]  }
 0x229   : > { %10065 = vmatprep.subr.bf16.mxu0 %v14107_v39  ;;  %v14173_v37 = vld [vmem:[%s16032_s12 + $0xfb4] ss:$40 sps:$4 sm:$0xff]   ;;  %v14172_v39 = vld [vmem:[%s16032_s12 + $0xd28] ss:$40 sps:$4 sm:$0xff]  }
 0x22b   : > { %9427 = vmatpush1.bf16.msra.mxu1 %v14106_v40  ;;  %v16691_v40 = vld [vmem:[%s16158_s10 + $0x38] sm:$0xff] }
 0x22c   : > { %10067 = vmatpush1.bf16.msra.mxu0 %v14109_v42  ;;  %9429 = vmatprep.subr.bf16.mxu1 %v14110_v43  ;;  %v14175_v42 = vld [vmem:[%s16032_s12 + $0xfb0] ss:$40 sps:$4 sm:$0xff]   ;;  %v14176_v43 = vld [vmem:[%s16032_s12 + $0xd7c] ss:$40 sps:$4 sm:$0xff]  }
 0x22d   : > { %10069 = vmatprep.subr.bf16.mxu0 %v14113_v44  ;;  %v14179_v44 = vld [vmem:[%s16032_s12 + $0x1004] ss:$40 sps:$4 sm:$0xff]  }
 0x22e   : > { %5803 = vmatmul.mubr.f32.vlgmr.msra.gmra.mrb[2].mxu1 %v16609_v10 }
 0x22f   : > { %9431 = vmatpush1.bf16.msra.mxu1 %v14112_v45  ;;  %5873 = vmatprep.mubr.f32.mxu1 %v16617_v15  ;;  %v14178_v45 = vld [vmem:[%s16032_s12 + $0xd78] ss:$40 sps:$4 sm:$0xff]  }
 0x230   : > { %10071 = vmatpush1.bf16.msra.mxu0 %v14115_v46  ;;  %9433 = vmatprep.subr.bf16.mxu1 %v14116_v48  ;;  %v14181_v46 = vld [vmem:[%s16032_s12 + $0x1000] ss:$40 sps:$4 sm:$0xff]   ;;  %v14182_v48 = vld [vmem:[%s16032_s12 + $0xdcc] ss:$40 sps:$4 sm:$0xff]  }
 0x231   : > { %10073 = vmatprep.subr.bf16.mxu0 %v14119_v50  ;;  %v14185_v50 = vld [vmem:[%s16032_s12 + $0x1054] ss:$40 sps:$4 sm:$0xff]  }
 0x233   : > { %9435 = vmatpush1.bf16.msra.mxu1 %v14118_v54  ;;  %v14184_v54 = vld [vmem:[%s16032_s12 + $0xdc8] ss:$40 sps:$4 sm:$0xff]  }
 0x234   : > { %10075 = vmatpush1.bf16.msra.mxu0 %v14121_v55  ;;  %9437 = vmatprep.subr.bf16.mxu1 %v14122_v56  ;;  %v14187_v55 = vld [vmem:[%s16032_s12 + $0x1050] ss:$40 sps:$4 sm:$0xff]   ;;  %v14188_v56 = vld [vmem:[%s16032_s12 + $0xe1c] ss:$40 sps:$4 sm:$0xff]  }
 0x235   : > { %10077 = vmatprep.subr.bf16.mxu0 %v14125_v59  ;;  %v14191_v59 = vld [vmem:[%s16032_s12 + $0x10a4] ss:$40 sps:$4 sm:$0xff]  }
 0x237   : > { %9439 = vmatpush1.bf16.msra.mxu1 %v14124_v60  ;;  %v14190_v60 = vld [vmem:[%s16032_s12 + $0xe18] ss:$40 sps:$4 sm:$0xff]  }
 0x238   : > { %10079 = vmatpush1.bf16.msra.mxu0 %v14127_v62  ;;  %9441 = vmatprep.subr.bf16.mxu1 %v14128_v63  ;;  %v14193_v62 = vld [vmem:[%s16032_s12 + $0x10a0] ss:$40 sps:$4 sm:$0xff]   ;;  %v14194_v63 = vld [vmem:[%s16032_s12 + $0xe6c] ss:$40 sps:$4 sm:$0xff]  }
 0x239   : > { %10081 = vmatprep.subr.bf16.mxu0 %v14131_v0  ;;  %v14197_v0 = vld [vmem:[%s16032_s12 + $0x10f4] ss:$40 sps:$4 sm:$0xff]  }
 0x23b   : > { %9443 = vmatpush1.bf16.msra.mxu1 %v14130_v1 }
 0x23c   : > { %10083 = vmatpush1.bf16.msra.mxu0 %v14133_v2  ;;  %9445 = vmatprep.subr.bf16.mxu1 %v14134_v5  ;;  %v14196_v2 = vld [vmem:[%s16032_s12 + $0xe68] ss:$40 sps:$4 sm:$0xff]  }
 0x23d   : > { %10085 = vmatprep.subr.bf16.mxu0 %v14137_v6  ;;  %v14199_v6 = vld [vmem:[%s16032_s12 + $0x10f0] ss:$40 sps:$4 sm:$0xff]  }
 0x23f   : > { %9447 = vmatpush1.bf16.msra.mxu1 %v14136_v7  ;;  %v14200_v7 = vld [vmem:[%s16032_s12 + $0xebc] ss:$40 sps:$4 sm:$0xff]  }
 0x240   : > { %10087 = vmatpush1.bf16.msra.mxu0 %v14139_v8  ;;  %9449 = vmatprep.subr.bf16.mxu1 %v14140_v9  ;;  %v14203_v8 = vld [vmem:[%s16032_s12 + $0x1144] ss:$40 sps:$4 sm:$0xff]   ;;  %v14202_v9 = vld [vmem:[%s16032_s12 + $0xeb8] ss:$40 sps:$4 sm:$0xff]  }
 0x241   : > { %10089 = vmatprep.subr.bf16.mxu0 %v14143_v11  ;;  %v14205_v11 = vld [vmem:[%s16032_s12 + $0x1140] ss:$40 sps:$4 sm:$0xff]  }
 0x243   : > { %9451 = vmatpush1.bf16.msra.mxu1 %v14142_v12  ;;  %v14206_v12 = vld [vmem:[%s16032_s12 + $0xf0c] ss:$40 sps:$4 sm:$0xff]  }
 0x244   : > { %10091 = vmatpush1.bf16.msra.mxu0 %v14145_v13  ;;  %9453 = vmatprep.subr.bf16.mxu1 %v14146_v14  ;;  %v14209_v13 = vld [vmem:[%s16032_s12 + $0x1194] ss:$40 sps:$4 sm:$0xff]   ;;  %v14208_v14 = vld [vmem:[%s16032_s12 + $0xf08] ss:$40 sps:$4 sm:$0xff]  }
 0x245   : > { %10093 = vmatprep.subr.bf16.mxu0 %v14149_v16  ;;  %v14211_v16 = vld [vmem:[%s16032_s12 + $0x1190] ss:$40 sps:$4 sm:$0xff]  }
 0x247   : > { %9455 = vmatpush1.bf16.msra.mxu1 %v14148_v17  ;;  %v14212_v17 = vld [vmem:[%s16032_s12 + $0xf5c] ss:$40 sps:$4 sm:$0xff]  }
 0x248   : > { %10095 = vmatpush1.bf16.msra.mxu0 %v14151_v18  ;;  %9457 = vmatprep.subr.bf16.mxu1 %v14152_v19  ;;  %v14215_v18 = vld [vmem:[%s16032_s12 + $0x11e4] ss:$40 sps:$4 sm:$0xff]   ;;  %v14214_v19 = vld [vmem:[%s16032_s12 + $0xf58] ss:$40 sps:$4 sm:$0xff]  }
 0x249   : > { %10097 = vmatprep.subr.bf16.mxu0 %v14155_v20  ;;  %v14217_v20 = vld [vmem:[%s16032_s12 + $0x11e0] ss:$40 sps:$4 sm:$0xff]  }
 0x24b   : > { %9459 = vmatpush1.bf16.msra.mxu1 %v14154_v21  ;;  %v14218_v21 = vld [vmem:[%s16032_s12 + $0xfac] ss:$40 sps:$4 sm:$0xff]  }
 0x24c   : > { %10099 = vmatpush1.bf16.msra.mxu0 %v14157_v22  ;;  %9461 = vmatprep.subr.bf16.mxu1 %v14158_v23  ;;  %v14221_v22 = vld [vmem:[%s16032_s12 + $0x1234] ss:$40 sps:$4 sm:$0xff]   ;;  %v14220_v23 = vld [vmem:[%s16032_s12 + $0xfa8] ss:$40 sps:$4 sm:$0xff]  }
 0x24d   : > { %10101 = vmatprep.subr.bf16.mxu0 %v14161_v25  ;;  %v4907_v25 = vlaneseq }
 0x24f   : > { %6584 = vmatmul.mubr.f32.vlgmr.msra.gmra.mrb[2].mxu0 %v16683_v33  ;;  %9463 = vmatpush1.bf16.msra.mxu1 %v14160_v27  ;;  %v14223_v27 = vld [vmem:[%s16032_s12 + $0x1230] ss:$40 sps:$4 sm:$0xff]  }
 0x250   : > { %10103 = vmatpush1.bf16.msra.mxu0 %v14163_v28  ;;  %9465 = vmatprep.subr.bf16.mxu1 %v14164_v29  ;;  %v14224_v28 = vld [vmem:[%s16032_s12 + $0xffc] ss:$40 sps:$4 sm:$0xff]  }
 0x251   : > { %10105 = vmatprep.subr.bf16.mxu0 %v14167_v30  ;;  %6654 = vmatprep.mubr.f32.mxu0 %v16691_v40  ;;  %v14227_v29 = vld [vmem:[%s16032_s12 + $0x1284] ss:$40 sps:$4 sm:$0xff]   ;;  %v14226_v30 = vld [vmem:[%s16032_s12 + $0xff8] ss:$40 sps:$4 sm:$0xff]  }
 0x253   : > { %9467 = vmatpush1.bf16.msra.mxu1 %v14166_v31  ;;  %v16742_v31 = vshrl.u32 %v4907_v25, 7  ;;  %v14266_v25 = vld [vmem:[%s16032_s12 + $0x122c] ss:$40 sps:$4 sm:$0xff]  }
 0x254   : > { %10107 = vmatpush1.bf16.msra.mxu0 %v14169_v34  ;;  %9469 = vmatprep.subr.bf16.mxu1 %v14170_v36  ;;  %v14229_v34 = vld [vmem:[%s16032_s12 + $0x1280] ss:$40 sps:$4 sm:$0xff]   ;;  %v14230_v36 = vld [vmem:[%s16032_s12 + $0x104c] ss:$40 sps:$4 sm:$0xff]  }
 0x255   : > { %10109 = vmatprep.subr.bf16.mxu0 %v14173_v37  ;;  %v14233_v37 = vld [vmem:[%s16032_s12 + $0x12d4] ss:$40 sps:$4 sm:$0xff]  }
 0x257   : > { %9471 = vmatpush1.bf16.msra.mxu1 %v14172_v39  ;;  %v14232_v39 = vld [vmem:[%s16032_s12 + $0x1048] ss:$40 sps:$4 sm:$0xff]  }
 0x258   : > { %10111 = vmatpush1.bf16.msra.mxu0 %v14175_v42  ;;  %9473 = vmatprep.subr.bf16.mxu1 %v14176_v43  ;;  %v14235_v42 = vld [vmem:[%s16032_s12 + $0x12d0] ss:$40 sps:$4 sm:$0xff]   ;;  %v4909_v43 = vsub.s32 0, %v16742_v31 }
 0x259   : > { %10113 = vmatprep.subr.bf16.mxu0 %v14179_v44  ;;  %v4903_v44 = vld [vmem:[%s16038_s23] sm:$0xff] }
 0x25b   : > { %9475 = vmatpush1.bf16.msra.mxu1 %v14178_v45  ;;  %v4913_v45 = vsub.s32 1, %v16742_v31 }
 0x25c   : > { %10115 = vmatpush1.bf16.msra.mxu0 %v14181_v46  ;;  %9477 = vmatprep.subr.bf16.mxu1 %v14182_v48  ;;  %v14236_v46 = vld [vmem:[%s16032_s12 + $0x109c] ss:$40 sps:$4 sm:$0xff]  }
 0x25d   : > { %10117 = vmatprep.subr.bf16.mxu0 %v14185_v50  ;;  %v14239_v48 = vld [vmem:[%s16032_s12 + $0x1324] ss:$40 sps:$4 sm:$0xff]   ;;  %v14238_v50 = vld [vmem:[%s16032_s12 + $0x1098] ss:$40 sps:$4 sm:$0xff]  }
 0x25f   : > { %9479 = vmatpush1.bf16.msra.mxu1 %v14184_v54  ;;  %v4910_v54 = vrot.slane %v4903_v44, %v4909_v43 }
 0x260   : > { %10119 = vmatpush1.bf16.msra.mxu0 %v14187_v55  ;;  %9481 = vmatprep.subr.bf16.mxu1 %v14188_v56  ;;  %v4914_v55 = vrot.slane %v4903_v44, %v4913_v45  ;;  %v14241_v56 = vld [vmem:[%s16032_s12 + $0x1320] ss:$40 sps:$4 sm:$0xff]  }
 0x261   : > { %10121 = vmatprep.subr.bf16.mxu0 %v14191_v59  ;;  %v14242_v59 = vld [vmem:[%s16032_s12 + $0x10ec] ss:$40 sps:$4 sm:$0xff]   ;;  %v14280_v44 = vld [vmem:[%s16032_s12 + $0x12c8] ss:$40 sps:$4 sm:$0xff]  }
 0x262   : > { %v16712_v1 = vpop.f32.mrb[0].mxu0 }
 0x263   : > { %v16715_v5 = vpop.f32.mrb[1].mxu0  ;;  %9483 = vmatpush1.bf16.msra.mxu1 %v14190_v60  ;;  %v14245_v60 = vld [vmem:[%s16032_s12 + $0x1374] ss:$40 sps:$4 sm:$0xff]  }
 0x264   : > { %10123 = vmatpush1.bf16.msra.mxu0 %v14193_v62  ;;  %9485 = vmatprep.subr.bf16.mxu1 %v14194_v63  ;;  %v14244_v63 = vld [vmem:[%s16032_s12 + $0x10e8] ss:$40 sps:$4 sm:$0xff]  }
 0x265   : > { %10125 = vmatprep.subr.bf16.mxu0 %v14197_v0 }
 0x267   : > { %9487 = vmatpush1.bf16.msra.mxu1 %v14196_v2 }
 0x268   : > { %10127 = vmatpush1.bf16.msra.mxu0 %v14199_v6  ;;  %9489 = vmatprep.subr.bf16.mxu1 %v14200_v7  ;;  %v14247_v7 = vld [vmem:[%s16032_s12 + $0x1370] ss:$40 sps:$4 sm:$0xff]  }
 0x269   : > { %10129 = vmatprep.subr.bf16.mxu0 %v14203_v8 }
 0x26b   : > { %9491 = vmatpush1.bf16.msra.mxu1 %v14202_v9  ;;  %v14248_v9 = vld [vmem:[%s16032_s12 + $0x113c] ss:$40 sps:$4 sm:$0xff]  }
 0x26c   : > { %10131 = vmatpush1.bf16.msra.mxu0 %v14205_v11  ;;  %9493 = vmatprep.subr.bf16.mxu1 %v14206_v12  ;;  %v14251_v11 = vld [vmem:[%s16032_s12 + $0x13c4] ss:$40 sps:$4 sm:$0xff]  }
 0x26d   : > { %10133 = vmatprep.subr.bf16.mxu0 %v14209_v13  ;;  %v14250_v13 = vld [vmem:[%s16032_s12 + $0x1138] ss:$40 sps:$4 sm:$0xff]  }
 0x26e   : > { %5874 = vmatmul.mubr.f32.vlgmr.msra.gmra.mrb[2].mxu1 %v16683_v33 }
 0x26f   : > { %9495 = vmatpush1.bf16.msra.mxu1 %v14208_v14  ;;  %5944 = vmatprep.mubr.f32.mxu1 %v16691_v40 }
 0x270   : > { %10135 = vmatpush1.bf16.msra.mxu0 %v14211_v16  ;;  %9497 = vmatprep.subr.bf16.mxu1 %v14212_v17  ;;  %v14257_v17 = vld [vmem:[%s16032_s12 + $0x1414] ss:$40 sps:$4 sm:$0xff]  }
 0x271   : > { %10137 = vmatprep.subr.bf16.mxu0 %v14215_v18  ;;  %v14256_v18 = vld [vmem:[%s16032_s12 + $0x1188] ss:$40 sps:$4 sm:$0xff]  }
 0x273   : > { %9499 = vmatpush1.bf16.msra.mxu1 %v14214_v19  ;;  %v14259_v19 = vld [vmem:[%s16032_s12 + $0x1410] ss:$40 sps:$4 sm:$0xff]  }
 0x274   : > { %10139 = vmatpush1.bf16.msra.mxu0 %v14217_v20  ;;  %9501 = vmatprep.subr.bf16.mxu1 %v14218_v21  ;;  %v14260_v20 = vld [vmem:[%s16032_s12 + $0x11dc] ss:$40 sps:$4 sm:$0xff]  }
 0x275   : > { %10141 = vmatprep.subr.bf16.mxu0 %v14221_v22  ;;  %v14263_v21 = vld [vmem:[%s16032_s12 + $0x1464] ss:$40 sps:$4 sm:$0xff]   ;;  %v14262_v22 = vld [vmem:[%s16032_s12 + $0x11d8] ss:$40 sps:$4 sm:$0xff]  }
 0x277   : > { %9503 = vmatpush1.bf16.msra.mxu1 %v14220_v23  ;;  %v14265_v23 = vld [vmem:[%s16032_s12 + $0x1460] ss:$40 sps:$4 sm:$0xff]  }
 0x278   : > { %10143 = vmatpush1.bf16.msra.mxu0 %v14223_v27  ;;  %9505 = vmatprep.subr.bf16.mxu1 %v14224_v28  ;;  %v14269_v27 = vld [vmem:[%s16032_s12 + $0x14b4] ss:$40 sps:$4 sm:$0xff]   ;;  %v14268_v28 = vld [vmem:[%s16032_s12 + $0x1228] ss:$40 sps:$4 sm:$0xff]  }
 0x279   : > { %10145 = vmatprep.subr.bf16.mxu0 %v14227_v29  ;;  %v14271_v29 = vld [vmem:[%s16032_s12 + $0x14b0] ss:$40 sps:$4 sm:$0xff]  }
 0x27b   : > { %9507 = vmatpush1.bf16.msra.mxu1 %v14226_v30  ;;  %v14272_v30 = vld [vmem:[%s16032_s12 + $0x127c] ss:$40 sps:$4 sm:$0xff]  }
 0x27c   : > { %10147 = vmatpush1.bf16.msra.mxu0 %v14229_v34  ;;  %9509 = vmatprep.subr.bf16.mxu1 %v14230_v36  ;;  %v14275_v34 = vld [vmem:[%s16032_s12 + $0x1504] ss:$40 sps:$4 sm:$0xff]   ;;  %v14274_v36 = vld [vmem:[%s16032_s12 + $0x1278] ss:$40 sps:$4 sm:$0xff]  }
 0x27d   : > { %10149 = vmatprep.subr.bf16.mxu0 %v14233_v37  ;;  %v14277_v37 = vld [vmem:[%s16032_s12 + $0x1500] ss:$40 sps:$4 sm:$0xff]  }
 0x27f   : > { %9511 = vmatpush1.bf16.msra.mxu1 %v14232_v39  ;;  %v14278_v39 = vld [vmem:[%s16032_s12 + $0x12cc] ss:$40 sps:$4 sm:$0xff]  }
 0x280   : > { %10151 = vmatpush1.bf16.msra.mxu0 %v14235_v42  ;;  %9513 = vmatprep.subr.bf16.mxu1 %v14236_v46  ;;  %v14281_v42 = vld [vmem:[%s16032_s12 + $0x1554] ss:$40 sps:$4 sm:$0xff]   ;;  %v14283_v46 = vld [vmem:[%s16032_s12 + $0x1550] ss:$40 sps:$4 sm:$0xff]  }
 0x281   : > { %10153 = vmatprep.subr.bf16.mxu0 %v14239_v48  ;;  %v5307_v62 = vpop.f32.mrb[0].mxu1  ;;  %v14284_v48 = vld [vmem:[%s16032_s12 + $0x131c] ss:$40 sps:$4 sm:$0xff]  }
 0x282   : > { %v11732_v0 = vadd.f32 %v5307_v62, %v4910_v54  ;;  %v5309_v2 = vpop.f32.mrb[1].mxu1  ;;  %v14286_v54 = vld [vmem:[%s16032_s12 + $0x1318] ss:$40 sps:$4 sm:$0xff]  }
 0x283   : > { %v11734_v6 = vadd.f32 %v5309_v2, %v4914_v55  ;;  %9515 = vmatpush1.bf16.msra.mxu1 %v14238_v50  ;;  %v14287_v50 = vld [vmem:[%s16032_s12 + $0x15a4] ss:$40 sps:$4 sm:$0xff]   ;;  %v14289_v55 = vld [vmem:[%s16032_s12 + $0x15a0] ss:$40 sps:$4 sm:$0xff]   ;;  %v14295_v62 = vld [vmem:[%s16032_s12 + $0x15f0] ss:$40 sps:$4 sm:$0xff]  }
 0x284   : > { %10155 = vmatpush1.bf16.msra.mxu0 %v14241_v56  ;;  %v16766_v8 = vadd.f32 %v11732_v0, %v16712_v1  ;;  %9517 = vmatprep.subr.bf16.mxu1 %v14242_v59  ;;  %v14253_v1 = vld [vmem:[%s16032_s12 + $0x13c0] ss:$40 sps:$4 sm:$0xff]   ;;  %v14290_v56 = vld [vmem:[%s16032_s12 + $0x136c] ss:$40 sps:$4 sm:$0xff]  }
 0x285   : > { %10157 = vmatprep.subr.bf16.mxu0 %v14245_v60  ;;  %v16771_v12 = vadd.f32 %v11734_v6, %v16715_v5  ;;  %v14254_v5 = vld [vmem:[%s16032_s12 + $0x118c] ss:$40 sps:$4 sm:$0xff]   ;;  %v14292_v60 = vld [vmem:[%s16032_s12 + $0x1368] ss:$40 sps:$4 sm:$0xff]   ;;  %v14298_v2 = vld [vmem:[%s16032_s12 + $0x13b8] ss:$40 sps:$4 sm:$0xff]  }
 0x286   : > { %v8507_v14 = vmax.f32 %v16766_v8, 0.0  ;;  %v14293_v59 = vld [vmem:[%s16032_s12 + $0x15f4] ss:$40 sps:$4 sm:$0xff]   ;;  %v14299_v0 = vld [vmem:[%s16032_s12 + $0x1644] ss:$40 sps:$4 sm:$0xff]  }
 0x287   : > { %v8508_v16 = vmax.f32 %v16771_v12, 0.0  ;;  %9519 = vmatpush1.bf16.msra.mxu1 %v14244_v63  ;;  %v14296_v63 = vld [vmem:[%s16032_s12 + $0x13bc] ss:$40 sps:$4 sm:$0xff]   ;;  %v14301_v6 = vld [vmem:[%s16032_s12 + $0x1640] ss:$40 sps:$4 sm:$0xff]  }
 0x288   : > { %10159 = vmatpush1.bf16.msra.mxu0 %v14247_v7  ;;  %8524 = vst [vmem:[%s16777_s1] sm:$0xff] %v8507_v14  ;;  %8534 = vst [vmem:[%s16050_s24] sm:$0xff] %v8507_v14  ;;  %9521 = vmatprep.subr.bf16.mxu1 %v14248_v9  ;;  %v14302_v7 = vld [vmem:[%s16032_s12 + $0x140c] ss:$40 sps:$4 sm:$0xff]   ;;  %v14308_v14 = vld [vmem:[%s16032_s12 + $0x145c] ss:$40 sps:$4 sm:$0xff]  }
 0x289   : > { %10161 = vmatprep.subr.bf16.mxu0 %v14251_v11  ;;  %8525 = vst [vmem:[%s16777_s1 + $0x8] sm:$0xff] %v8508_v16  ;;  %8535 = vst [vmem:[%s16050_s24 + $0x8] sm:$0xff] %v8508_v16  ;;  %v14305_v9 = vld [vmem:[%s16032_s12 + $0x1694] ss:$40 sps:$4 sm:$0xff]   ;;  %v14304_v11 = vld [vmem:[%s16032_s12 + $0x1408] ss:$40 sps:$4 sm:$0xff]  }
 0x28a   : > { %v14311_v16 = vld [vmem:[%s16032_s12 + $0x16e4] ss:$40 sps:$4 sm:$0xff]   ;;  %8548 = vst [vmem:[%s16050_s24] sm:$0xff] (!%p8688_p6), %v16766_v8  ;;  %8549 = vst [vmem:[%s16050_s24 + $0x8] sm:$0xff] (!%p8688_p6), %v16771_v12 }
 0x28b   : > { %9523 = vmatpush1.bf16.msra.mxu1 %v14250_v13  ;;  %v14307_v13 = vld [vmem:[%s16032_s12 + $0x1690] ss:$40 sps:$4 sm:$0xff]  }
 0x28c   : > { %10163 = vmatpush1.bf16.msra.mxu0 %v14253_v1  ;;  %9525 = vmatprep.subr.bf16.mxu1 %v14254_v5  ;;  %v14310_v1 = vld [vmem:[%s16032_s12 + $0x1458] ss:$40 sps:$4 sm:$0xff]  }
 0x28d   : > { %10165 = vmatprep.subr.bf16.mxu0 %v14257_v17  ;;  %v14313_v5 = vld [vmem:[%s16032_s12 + $0x16e0] ss:$40 sps:$4 sm:$0xff]   ;;  %v14314_v17 = vld [vmem:[%s16032_s12 + $0x14ac] ss:$40 sps:$4 sm:$0xff]  }
 0x28f   : > { %6655 = vmatmul.mubr.f32.vlgmr.msra.gmra.mrb[2].mxu0 %v16410_v51  ;;  %9527 = vmatpush1.bf16.msra.mxu1 %v14256_v18  ;;  %v14317_v18 = vld [vmem:[%s16032_s12 + $0x1734] ss:$40 sps:$4 sm:$0xff]  }
 0x290   : > { %10167 = vmatpush1.bf16.msra.mxu0 %v14259_v19  ;;  %9529 = vmatprep.subr.bf16.mxu1 %v14260_v20  ;;  %v14316_v19 = vld [vmem:[%s16032_s12 + $0x14a8] ss:$40 sps:$4 sm:$0xff]  }
 0x291   : > { %10169 = vmatprep.subr.bf16.mxu0 %v14263_v21  ;;  %6725 = vmatprep.mubr.f32.mxu0 %v16421_v57  ;;  %v14319_v20 = vld [vmem:[%s16032_s12 + $0x1730] ss:$40 sps:$4 sm:$0xff]   ;;  %v14320_v21 = vld [vmem:[%s16032_s12 + $0x14fc] ss:$40 sps:$4 sm:$0xff]  }
 0x293   : > { %9531 = vmatpush1.bf16.msra.mxu1 %v14262_v22  ;;  %v14323_v22 = vld [vmem:[%s16032_s12 + $0x1784] ss:$40 sps:$4 sm:$0xff]  }
 0x294   : > { %10171 = vmatpush1.bf16.msra.mxu0 %v14265_v23  ;;  %9533 = vmatprep.subr.bf16.mxu1 %v14266_v25  ;;  %v14322_v23 = vld [vmem:[%s16032_s12 + $0x14f8] ss:$40 sps:$4 sm:$0xff]  }
 0x295   : > { %10173 = vmatprep.subr.bf16.mxu0 %v14269_v27  ;;  %v14325_v25 = vld [vmem:[%s16032_s12 + $0x1780] ss:$40 sps:$4 sm:$0xff]   ;;  %v14326_v27 = vld [vmem:[%s16032_s12 + $0x154c] ss:$40 sps:$4 sm:$0xff]  }
 0x297   : > { %9535 = vmatpush1.bf16.msra.mxu1 %v14268_v28  ;;  %v14329_v28 = vld [vmem:[%s16032_s12 + $0x17d4] ss:$40 sps:$4 sm:$0xff]  }
 0x298   : > { %10175 = vmatpush1.bf16.msra.mxu0 %v14271_v29  ;;  %9537 = vmatprep.subr.bf16.mxu1 %v14272_v30  ;;  %v14328_v29 = vld [vmem:[%s16032_s12 + $0x1548] ss:$40 sps:$4 sm:$0xff]  }
 0x299   : > { %10177 = vmatprep.subr.bf16.mxu0 %v14275_v34  ;;  %v14331_v30 = vld [vmem:[%s16032_s12 + $0x17d0] ss:$40 sps:$4 sm:$0xff]   ;;  %v14332_v34 = vld [vmem:[%s16032_s12 + $0x159c] ss:$40 sps:$4 sm:$0xff]  }
 0x29b   : > { %9539 = vmatpush1.bf16.msra.mxu1 %v14274_v36  ;;  %v14335_v36 = vld [vmem:[%s16032_s12 + $0x1824] ss:$40 sps:$4 sm:$0xff]  }
 0x29c   : > { %10179 = vmatpush1.bf16.msra.mxu0 %v14277_v37  ;;  %9541 = vmatprep.subr.bf16.mxu1 %v14278_v39  ;;  %v14334_v37 = vld [vmem:[%s16032_s12 + $0x1598] ss:$40 sps:$4 sm:$0xff]  }
 0x29d   : > { %10181 = vmatprep.subr.bf16.mxu0 %v14281_v42  ;;  %v14337_v39 = vld [vmem:[%s16032_s12 + $0x1820] ss:$40 sps:$4 sm:$0xff]   ;;  %v14338_v42 = vld [vmem:[%s16032_s12 + $0x15ec] ss:$40 sps:$4 sm:$0xff]  }
 0x29f   : > { %9543 = vmatpush1.bf16.msra.mxu1 %v14280_v44  ;;  %v14341_v44 = vld [vmem:[%s16032_s12 + $0x1874] ss:$40 sps:$4 sm:$0xff]  }
 0x2a0   : > { %10183 = vmatpush1.bf16.msra.mxu0 %v14283_v46  ;;  %9545 = vmatprep.subr.bf16.mxu1 %v14284_v48  ;;  %v14340_v46 = vld [vmem:[%s16032_s12 + $0x15e8] ss:$40 sps:$4 sm:$0xff]  }
 0x2a1   : > { %10185 = vmatprep.subr.bf16.mxu0 %v14287_v50  ;;  %v14343_v48 = vld [vmem:[%s16032_s12 + $0x1870] ss:$40 sps:$4 sm:$0xff]   ;;  %v14344_v50 = vld [vmem:[%s16032_s12 + $0x163c] ss:$40 sps:$4 sm:$0xff]  }
 0x2a3   : > { %9547 = vmatpush1.bf16.msra.mxu1 %v14286_v54  ;;  %v14347_v54 = vld [vmem:[%s16032_s12 + $0x18c4] ss:$40 sps:$4 sm:$0xff]  }
 0x2a4   : > { %10187 = vmatpush1.bf16.msra.mxu0 %v14289_v55  ;;  %9549 = vmatprep.subr.bf16.mxu1 %v14290_v56  ;;  %v14346_v55 = vld [vmem:[%s16032_s12 + $0x1638] ss:$40 sps:$4 sm:$0xff]  }
 0x2a5   : > { %10189 = vmatprep.subr.bf16.mxu0 %v14293_v59  ;;  %v14349_v56 = vld [vmem:[%s16032_s12 + $0x18c0] ss:$40 sps:$4 sm:$0xff]   ;;  %v14350_v59 = vld [vmem:[%s16032_s12 + $0x168c] ss:$40 sps:$4 sm:$0xff]  }
 0x2a7   : > { %9551 = vmatpush1.bf16.msra.mxu1 %v14292_v60  ;;  %v14353_v60 = vld [vmem:[%s16032_s12 + $0x1914] ss:$40 sps:$4 sm:$0xff]  }
 0x2a8   : > { %10191 = vmatpush1.bf16.msra.mxu0 %v14295_v62  ;;  %9553 = vmatprep.subr.bf16.mxu1 %v14296_v63  ;;  %v14352_v62 = vld [vmem:[%s16032_s12 + $0x1688] ss:$40 sps:$4 sm:$0xff]  }
 0x2a9   : > { %10193 = vmatprep.subr.bf16.mxu0 %v14299_v0  ;;  %v14355_v63 = vld [vmem:[%s16032_s12 + $0x1910] ss:$40 sps:$4 sm:$0xff]   ;;  %v14356_v0 = vld [vmem:[%s16032_s12 + $0x16dc] ss:$40 sps:$4 sm:$0xff]  }
 0x2ab   : > { %9555 = vmatpush1.bf16.msra.mxu1 %v14298_v2  ;;  %v14359_v2 = vld [vmem:[%s16032_s12 + $0x1964] ss:$40 sps:$4 sm:$0xff]  }
 0x2ac   : > { %10195 = vmatpush1.bf16.msra.mxu0 %v14301_v6  ;;  %9557 = vmatprep.subr.bf16.mxu1 %v14302_v7  ;;  %v14358_v6 = vld [vmem:[%s16032_s12 + $0x16d8] ss:$40 sps:$4 sm:$0xff]  }
 0x2ad   : > { %10197 = vmatprep.subr.bf16.mxu0 %v14305_v9  ;;  %v14361_v7 = vld [vmem:[%s16032_s12 + $0x1960] ss:$40 sps:$4 sm:$0xff]   ;;  %v14362_v9 = vld [vmem:[%s16032_s12 + $0x172c] ss:$40 sps:$4 sm:$0xff]  }
 0x2ae   : > { %5945 = vmatmul.mubr.f32.vlgmr.msra.gmra.mrb[2].mxu1 %v16410_v51 }
 0x2af   : > { %9559 = vmatpush1.bf16.msra.mxu1 %v14304_v11  ;;  %6015 = vmatprep.mubr.f32.mxu1 %v16421_v57  ;;  %v14365_v11 = vld [vmem:[%s16032_s12 + $0x19b4] ss:$40 sps:$4 sm:$0xff]  }
 0x2b0   : > { %10199 = vmatpush1.bf16.msra.mxu0 %v14307_v13  ;;  %9561 = vmatprep.subr.bf16.mxu1 %v14308_v14  ;;  %v14364_v13 = vld [vmem:[%s16032_s12 + $0x1728] ss:$40 sps:$4 sm:$0xff]  }
 0x2b1   : > { %10201 = vmatprep.subr.bf16.mxu0 %v14311_v16  ;;  %v14367_v14 = vld [vmem:[%s16032_s12 + $0x19b0] ss:$40 sps:$4 sm:$0xff]   ;;  %v14368_v16 = vld [vmem:[%s16032_s12 + $0x177c] ss:$40 sps:$4 sm:$0xff]  }
 0x2b3   : > { %9563 = vmatpush1.bf16.msra.mxu1 %v14310_v1  ;;  %v14371_v1 = vld [vmem:[%s16032_s12 + $0x1a04] ss:$40 sps:$4 sm:$0xff]  }
 0x2b4   : > { %10203 = vmatpush1.bf16.msra.mxu0 %v14313_v5  ;;  %9565 = vmatprep.subr.bf16.mxu1 %v14314_v17  ;;  %v14370_v5 = vld [vmem:[%s16032_s12 + $0x1778] ss:$40 sps:$4 sm:$0xff]  }
 0x2b5   : > { %10205 = vmatprep.subr.bf16.mxu0 %v14317_v18  ;;  %v14373_v17 = vld [vmem:[%s16032_s12 + $0x1a00] ss:$40 sps:$4 sm:$0xff]   ;;  %v14374_v18 = vld [vmem:[%s16032_s12 + $0x17cc] ss:$40 sps:$4 sm:$0xff]  }
 0x2b7   : > { %9567 = vmatpush1.bf16.msra.mxu1 %v14316_v19  ;;  %v14377_v19 = vld [vmem:[%s16032_s12 + $0x1a54] ss:$40 sps:$4 sm:$0xff]  }
 0x2b8   : > { %10207 = vmatpush1.bf16.msra.mxu0 %v14319_v20  ;;  %9569 = vmatprep.subr.bf16.mxu1 %v14320_v21  ;;  %v14376_v20 = vld [vmem:[%s16032_s12 + $0x17c8] ss:$40 sps:$4 sm:$0xff]  }
 0x2b9   : > { %10209 = vmatprep.subr.bf16.mxu0 %v14323_v22  ;;  %v14379_v21 = vld [vmem:[%s16032_s12 + $0x1a50] ss:$40 sps:$4 sm:$0xff]   ;;  %v14380_v22 = vld [vmem:[%s16032_s12 + $0x181c] ss:$40 sps:$4 sm:$0xff]  }
 0x2bb   : > { %9571 = vmatpush1.bf16.msra.mxu1 %v14322_v23  ;;  %v14383_v23 = vld [vmem:[%s16032_s12 + $0x1aa4] ss:$40 sps:$4 sm:$0xff]  }
 0x2bc   : > { %10211 = vmatpush1.bf16.msra.mxu0 %v14325_v25  ;;  %9573 = vmatprep.subr.bf16.mxu1 %v14326_v27  ;;  %v14382_v25 = vld [vmem:[%s16032_s12 + $0x1818] ss:$40 sps:$4 sm:$0xff]  }
 0x2bd   : > { %10213 = vmatprep.subr.bf16.mxu0 %v14329_v28  ;;  %v14385_v27 = vld [vmem:[%s16032_s12 + $0x1aa0] ss:$40 sps:$4 sm:$0xff]   ;;  %v14386_v28 = vld [vmem:[%s16032_s12 + $0x186c] ss:$40 sps:$4 sm:$0xff]  }
 0x2bf   : > { %9575 = vmatpush1.bf16.msra.mxu1 %v14328_v29  ;;  %v14389_v29 = vld [vmem:[%s16032_s12 + $0x1af4] ss:$40 sps:$4 sm:$0xff]  }
 0x2c0   : > { %10215 = vmatpush1.bf16.msra.mxu0 %v14331_v30  ;;  %9577 = vmatprep.subr.bf16.mxu1 %v14332_v34  ;;  %v14388_v30 = vld [vmem:[%s16032_s12 + $0x1868] ss:$40 sps:$4 sm:$0xff]  }
 0x2c1   : > { %10217 = vmatprep.subr.bf16.mxu0 %v14335_v36  ;;  %v14391_v34 = vld [vmem:[%s16032_s12 + $0x1af0] ss:$40 sps:$4 sm:$0xff]   ;;  %v14392_v36 = vld [vmem:[%s16032_s12 + $0x18bc] ss:$40 sps:$4 sm:$0xff]  }
 0x2c3   : > { %9579 = vmatpush1.bf16.msra.mxu1 %v14334_v37  ;;  %v14395_v37 = vld [vmem:[%s16032_s12 + $0x1b44] ss:$40 sps:$4 sm:$0xff]  }
 0x2c4   : > { %10219 = vmatpush1.bf16.msra.mxu0 %v14337_v39  ;;  %9581 = vmatprep.subr.bf16.mxu1 %v14338_v42  ;;  %v14394_v39 = vld [vmem:[%s16032_s12 + $0x18b8] ss:$40 sps:$4 sm:$0xff]  }
 0x2c5   : > { %10221 = vmatprep.subr.bf16.mxu0 %v14341_v44  ;;  %v14397_v42 = vld [vmem:[%s16032_s12 + $0x1b40] ss:$40 sps:$4 sm:$0xff]   ;;  %v14398_v44 = vld [vmem:[%s16032_s12 + $0x190c] ss:$40 sps:$4 sm:$0xff]  }
 0x2c7   : > { %9583 = vmatpush1.bf16.msra.mxu1 %v14340_v46  ;;  %v14401_v46 = vld [vmem:[%s16032_s12 + $0x1b94] ss:$40 sps:$4 sm:$0xff]  }
 0x2c8   : > { %10223 = vmatpush1.bf16.msra.mxu0 %v14343_v48  ;;  %9585 = vmatprep.subr.bf16.mxu1 %v14344_v50  ;;  %v14400_v48 = vld [vmem:[%s16032_s12 + $0x1908] ss:$40 sps:$4 sm:$0xff]  }
 0x2c9   : > { %10225 = vmatprep.subr.bf16.mxu0 %v14347_v54  ;;  %v14403_v50 = vld [vmem:[%s16032_s12 + $0x1b90] ss:$40 sps:$4 sm:$0xff]   ;;  %v14404_v54 = vld [vmem:[%s16032_s12 + $0x195c] ss:$40 sps:$4 sm:$0xff]  }
 0x2cb   : > { %9587 = vmatpush1.bf16.msra.mxu1 %v14346_v55  ;;  %v14407_v55 = vld [vmem:[%s16032_s12 + $0x1be4] ss:$40 sps:$4 sm:$0xff]  }
 0x2cc   : > { %10227 = vmatpush1.bf16.msra.mxu0 %v14349_v56  ;;  %9589 = vmatprep.subr.bf16.mxu1 %v14350_v59  ;;  %v14406_v56 = vld [vmem:[%s16032_s12 + $0x1958] ss:$40 sps:$4 sm:$0xff]  }
 0x2cd   : > { %10229 = vmatprep.subr.bf16.mxu0 %v14353_v60  ;;  %v14409_v59 = vld [vmem:[%s16032_s12 + $0x1be0] ss:$40 sps:$4 sm:$0xff]   ;;  %v14410_v60 = vld [vmem:[%s16032_s12 + $0x19ac] ss:$40 sps:$4 sm:$0xff]  }
 0x2cf   : > { %6726 = vmatmul.mubr.f32.vlgmr.msra.gmra.mrb[2].mxu0 %v16493_v3  ;;  %9591 = vmatpush1.bf16.msra.mxu1 %v14352_v62  ;;  %v14413_v62 = vld [vmem:[%s16032_s12 + $0x1c34] ss:$40 sps:$4 sm:$0xff]  }
 0x2d0   : > { %10231 = vmatpush1.bf16.msra.mxu0 %v14355_v63  ;;  %9593 = vmatprep.subr.bf16.mxu1 %v14356_v0  ;;  %v14412_v63 = vld [vmem:[%s16032_s12 + $0x19a8] ss:$40 sps:$4 sm:$0xff]  }
 0x2d1   : > { %10233 = vmatprep.subr.bf16.mxu0 %v14359_v2  ;;  %6796 = vmatprep.mubr.f32.mxu0 %v16164_v4  ;;  %v14415_v0 = vld [vmem:[%s16032_s12 + $0x1c30] ss:$40 sps:$4 sm:$0xff]   ;;  %v14416_v2 = vld [vmem:[%s16032_s12 + $0x19fc] ss:$40 sps:$4 sm:$0xff]  }
 0x2d3   : > { %9595 = vmatpush1.bf16.msra.mxu1 %v14358_v6  ;;  %v14419_v6 = vld [vmem:[%s16032_s12 + $0x1c84] ss:$40 sps:$4 sm:$0xff]  }
 0x2d4   : > { %10235 = vmatpush1.bf16.msra.mxu0 %v14361_v7  ;;  %9597 = vmatprep.subr.bf16.mxu1 %v14362_v9  ;;  %v14418_v7 = vld [vmem:[%s16032_s12 + $0x19f8] ss:$40 sps:$4 sm:$0xff]  }
 0x2d5   : > { %10237 = vmatprep.subr.bf16.mxu0 %v14365_v11  ;;  %v14421_v9 = vld [vmem:[%s16032_s12 + $0x1c80] ss:$40 sps:$4 sm:$0xff]   ;;  %v14422_v11 = vld [vmem:[%s16032_s12 + $0x1a4c] ss:$40 sps:$4 sm:$0xff]  }
 0x2d7   : > { %9599 = vmatpush1.bf16.msra.mxu1 %v14364_v13  ;;  %v14425_v13 = vld [vmem:[%s16032_s12 + $0x1cd4] ss:$40 sps:$4 sm:$0xff]  }
 0x2d8   : > { %10239 = vmatpush1.bf16.msra.mxu0 %v14367_v14  ;;  %9601 = vmatprep.subr.bf16.mxu1 %v14368_v16  ;;  %v14424_v14 = vld [vmem:[%s16032_s12 + $0x1a48] ss:$40 sps:$4 sm:$0xff]  }
 0x2d9   : > { %10241 = vmatprep.subr.bf16.mxu0 %v14371_v1  ;;  %v14427_v16 = vld [vmem:[%s16032_s12 + $0x1cd0] ss:$40 sps:$4 sm:$0xff]   ;;  %v14428_v1 = vld [vmem:[%s16032_s12 + $0x1a9c] ss:$40 sps:$4 sm:$0xff]  }
 0x2db   : > { %9603 = vmatpush1.bf16.msra.mxu1 %v14370_v5  ;;  %v14431_v5 = vld [vmem:[%s16032_s12 + $0x1d24] ss:$40 sps:$4 sm:$0xff]  }
 0x2dc   : > { %10243 = vmatpush1.bf16.msra.mxu0 %v14373_v17  ;;  %9605 = vmatprep.subr.bf16.mxu1 %v14374_v18  ;;  %v14430_v17 = vld [vmem:[%s16032_s12 + $0x1a98] ss:$40 sps:$4 sm:$0xff]  }
 0x2dd   : > { %10245 = vmatprep.subr.bf16.mxu0 %v14377_v19  ;;  %v14433_v18 = vld [vmem:[%s16032_s12 + $0x1d20] ss:$40 sps:$4 sm:$0xff]   ;;  %v14434_v19 = vld [vmem:[%s16032_s12 + $0x1aec] ss:$40 sps:$4 sm:$0xff]  }
 0x2df   : > { %9607 = vmatpush1.bf16.msra.mxu1 %v14376_v20  ;;  %v14437_v20 = vld [vmem:[%s16032_s12 + $0x1d74] ss:$40 sps:$4 sm:$0xff]  }
 0x2e0   : > { %10247 = vmatpush1.bf16.msra.mxu0 %v14379_v21  ;;  %9609 = vmatprep.subr.bf16.mxu1 %v14380_v22  ;;  %v14436_v21 = vld [vmem:[%s16032_s12 + $0x1ae8] ss:$40 sps:$4 sm:$0xff]  }
 0x2e1   : > { %10249 = vmatprep.subr.bf16.mxu0 %v14383_v23  ;;  %v14439_v22 = vld [vmem:[%s16032_s12 + $0x1d70] ss:$40 sps:$4 sm:$0xff]   ;;  %v14440_v23 = vld [vmem:[%s16032_s12 + $0x1b3c] ss:$40 sps:$4 sm:$0xff]  }
 0x2e3   : > { %9611 = vmatpush1.bf16.msra.mxu1 %v14382_v25  ;;  %v14443_v25 = vld [vmem:[%s16032_s12 + $0x1dc4] ss:$40 sps:$4 sm:$0xff]  }
 0x2e4   : > { %10251 = vmatpush1.bf16.msra.mxu0 %v14385_v27  ;;  %9613 = vmatprep.subr.bf16.mxu1 %v14386_v28  ;;  %v14442_v27 = vld [vmem:[%s16032_s12 + $0x1b38] ss:$40 sps:$4 sm:$0xff]  }
 0x2e5   : > { %10253 = vmatprep.subr.bf16.mxu0 %v14389_v29  ;;  %v14445_v28 = vld [vmem:[%s16032_s12 + $0x1dc0] ss:$40 sps:$4 sm:$0xff]   ;;  %v14446_v29 = vld [vmem:[%s16032_s12 + $0x1b8c] ss:$40 sps:$4 sm:$0xff]  }
 0x2e7   : > { %9615 = vmatpush1.bf16.msra.mxu1 %v14388_v30  ;;  %v14449_v30 = vld [vmem:[%s16032_s12 + $0x1e14] ss:$40 sps:$4 sm:$0xff]  }
 0x2e8   : > { %10255 = vmatpush1.bf16.msra.mxu0 %v14391_v34  ;;  %9617 = vmatprep.subr.bf16.mxu1 %v14392_v36  ;;  %v14448_v34 = vld [vmem:[%s16032_s12 + $0x1b88] ss:$40 sps:$4 sm:$0xff]  }
 0x2e9   : > { %10257 = vmatprep.subr.bf16.mxu0 %v14395_v37  ;;  %v14451_v36 = vld [vmem:[%s16032_s12 + $0x1e10] ss:$40 sps:$4 sm:$0xff]   ;;  %v14452_v37 = vld [vmem:[%s16032_s12 + $0x1bdc] ss:$40 sps:$4 sm:$0xff]  }
 0x2eb   : > { %9619 = vmatpush1.bf16.msra.mxu1 %v14394_v39  ;;  %v14455_v39 = vld [vmem:[%s16032_s12 + $0x1e64] ss:$40 sps:$4 sm:$0xff]  }
 0x2ec   : > { %10259 = vmatpush1.bf16.msra.mxu0 %v14397_v42  ;;  %9621 = vmatprep.subr.bf16.mxu1 %v14398_v44  ;;  %v14454_v42 = vld [vmem:[%s16032_s12 + $0x1bd8] ss:$40 sps:$4 sm:$0xff]  }
 0x2ed   : > { %10261 = vmatprep.subr.bf16.mxu0 %v14401_v46  ;;  %v14457_v44 = vld [vmem:[%s16032_s12 + $0x1e60] ss:$40 sps:$4 sm:$0xff]   ;;  %v14458_v46 = vld [vmem:[%s16032_s12 + $0x1c2c] ss:$40 sps:$4 sm:$0xff]  }
 0x2ee   : > { %6016 = vmatmul.mubr.f32.vlgmr.msra.gmra.mrb[2].mxu1 %v16493_v3 }
 0x2ef   : > { %9623 = vmatpush1.bf16.msra.mxu1 %v14400_v48  ;;  %6086 = vmatprep.mubr.f32.mxu1 %v16164_v4  ;;  %v14461_v48 = vld [vmem:[%s16032_s12 + $0x1eb4] ss:$40 sps:$4 sm:$0xff]  }
 0x2f0   : > { %10263 = vmatpush1.bf16.msra.mxu0 %v14403_v50  ;;  %9625 = vmatprep.subr.bf16.mxu1 %v14404_v54  ;;  %v14460_v50 = vld [vmem:[%s16032_s12 + $0x1c28] ss:$40 sps:$4 sm:$0xff]  }
 0x2f1   : > { %10265 = vmatprep.subr.bf16.mxu0 %v14407_v55  ;;  %v14463_v54 = vld [vmem:[%s16032_s12 + $0x1eb0] ss:$40 sps:$4 sm:$0xff]   ;;  %v14464_v55 = vld [vmem:[%s16032_s12 + $0x1c7c] ss:$40 sps:$4 sm:$0xff]  }
 0x2f3   : > { %9627 = vmatpush1.bf16.msra.mxu1 %v14406_v56  ;;  %v14467_v56 = vld [vmem:[%s16032_s12 + $0x1f04] ss:$40 sps:$4 sm:$0xff]  }
 0x2f4   : > { %10267 = vmatpush1.bf16.msra.mxu0 %v14409_v59  ;;  %9629 = vmatprep.subr.bf16.mxu1 %v14410_v60  ;;  %v14466_v59 = vld [vmem:[%s16032_s12 + $0x1c78] ss:$40 sps:$4 sm:$0xff]  }
 0x2f5   : > { %10269 = vmatprep.subr.bf16.mxu0 %v14413_v62  ;;  %v14469_v60 = vld [vmem:[%s16032_s12 + $0x1f00] ss:$40 sps:$4 sm:$0xff]   ;;  %v14470_v62 = vld [vmem:[%s16032_s12 + $0x1ccc] ss:$40 sps:$4 sm:$0xff]  }
 0x2f7   : > { %9631 = vmatpush1.bf16.msra.mxu1 %v14412_v63  ;;  %v14473_v63 = vld [vmem:[%s16032_s12 + $0x1f54] ss:$40 sps:$4 sm:$0xff]  }
 0x2f8   : > { %10271 = vmatpush1.bf16.msra.mxu0 %v14415_v0  ;;  %9633 = vmatprep.subr.bf16.mxu1 %v14416_v2  ;;  %v14472_v0 = vld [vmem:[%s16032_s12 + $0x1cc8] ss:$40 sps:$4 sm:$0xff]  }
 0x2f9   : > { %10273 = vmatprep.subr.bf16.mxu0 %v14419_v6  ;;  %v14475_v2 = vld [vmem:[%s16032_s12 + $0x1f50] ss:$40 sps:$4 sm:$0xff]   ;;  %v14476_v6 = vld [vmem:[%s16032_s12 + $0x1d1c] ss:$40 sps:$4 sm:$0xff]  }
 0x2fb   : > { %9635 = vmatpush1.bf16.msra.mxu1 %v14418_v7  ;;  %v14479_v7 = vld [vmem:[%s16032_s12 + $0x1fa4] ss:$40 sps:$4 sm:$0xff]  }
 0x2fc   : > { %10275 = vmatpush1.bf16.msra.mxu0 %v14421_v9  ;;  %9637 = vmatprep.subr.bf16.mxu1 %v14422_v11  ;;  %v14478_v9 = vld [vmem:[%s16032_s12 + $0x1d18] ss:$40 sps:$4 sm:$0xff]  }
 0x2fd   : > { %10277 = vmatprep.subr.bf16.mxu0 %v14425_v13  ;;  %v14481_v11 = vld [vmem:[%s16032_s12 + $0x1fa0] ss:$40 sps:$4 sm:$0xff]   ;;  %v14482_v13 = vld [vmem:[%s16032_s12 + $0x1d6c] ss:$40 sps:$4 sm:$0xff]  }
 0x2ff   : > { %9639 = vmatpush1.bf16.msra.mxu1 %v14424_v14  ;;  %v14485_v14 = vld [vmem:[%s16032_s12 + $0x1ff4] ss:$40 sps:$4 sm:$0xff]  }
 0x300   : > { %10279 = vmatpush1.bf16.msra.mxu0 %v14427_v16  ;;  %9641 = vmatprep.subr.bf16.mxu1 %v14428_v1  ;;  %v14484_v16 = vld [vmem:[%s16032_s12 + $0x1d68] ss:$40 sps:$4 sm:$0xff]  }
 0x301   : > { %10281 = vmatprep.subr.bf16.mxu0 %v14431_v5  ;;  %v14487_v1 = vld [vmem:[%s16032_s12 + $0x1ff0] ss:$40 sps:$4 sm:$0xff]   ;;  %v14488_v5 = vld [vmem:[%s16032_s12 + $0x1dbc] ss:$40 sps:$4 sm:$0xff]  }
 0x303   : > { %9643 = vmatpush1.bf16.msra.mxu1 %v14430_v17  ;;  %v14491_v17 = vld [vmem:[%s16032_s12 + $0x2044] ss:$40 sps:$4 sm:$0xff]  }
 0x304   : > { %10283 = vmatpush1.bf16.msra.mxu0 %v14433_v18  ;;  %9645 = vmatprep.subr.bf16.mxu1 %v14434_v19  ;;  %v14490_v18 = vld [vmem:[%s16032_s12 + $0x1db8] ss:$40 sps:$4 sm:$0xff]  }
 0x305   : > { %10285 = vmatprep.subr.bf16.mxu0 %v14437_v20  ;;  %v14493_v19 = vld [vmem:[%s16032_s12 + $0x2040] ss:$40 sps:$4 sm:$0xff]   ;;  %v14494_v20 = vld [vmem:[%s16032_s12 + $0x1e0c] ss:$40 sps:$4 sm:$0xff]  }
 0x307   : > { %9647 = vmatpush1.bf16.msra.mxu1 %v14436_v21  ;;  %v14497_v21 = vld [vmem:[%s16032_s12 + $0x2094] ss:$40 sps:$4 sm:$0xff]  }
 0x308   : > { %10287 = vmatpush1.bf16.msra.mxu0 %v14439_v22  ;;  %9649 = vmatprep.subr.bf16.mxu1 %v14440_v23  ;;  %v14496_v22 = vld [vmem:[%s16032_s12 + $0x1e08] ss:$40 sps:$4 sm:$0xff]  }
 0x309   : > { %10289 = vmatprep.subr.bf16.mxu0 %v14443_v25  ;;  %v14499_v23 = vld [vmem:[%s16032_s12 + $0x2090] ss:$40 sps:$4 sm:$0xff]   ;;  %v14500_v25 = vld [vmem:[%s16032_s12 + $0x1e5c] ss:$40 sps:$4 sm:$0xff]  }
 0x30b   : > { %9651 = vmatpush1.bf16.msra.mxu1 %v14442_v27  ;;  %v14503_v27 = vld [vmem:[%s16032_s12 + $0x20e4] ss:$40 sps:$4 sm:$0xff]  }
 0x30c   : > { %10291 = vmatpush1.bf16.msra.mxu0 %v14445_v28  ;;  %9653 = vmatprep.subr.bf16.mxu1 %v14446_v29  ;;  %v14502_v28 = vld [vmem:[%s16032_s12 + $0x1e58] ss:$40 sps:$4 sm:$0xff]  }
 0x30d   : > { %10293 = vmatprep.subr.bf16.mxu0 %v14449_v30  ;;  %v14505_v29 = vld [vmem:[%s16032_s12 + $0x20e0] ss:$40 sps:$4 sm:$0xff]   ;;  %v14506_v30 = vld [vmem:[%s16032_s12 + $0x1eac] ss:$40 sps:$4 sm:$0xff]  }
 0x30f   : > { %6797 = vmatmul.mubr.f32.vlgmr.msra.gmra.mrb[2].mxu0 %v16189_v26  ;;  %9655 = vmatpush1.bf16.msra.mxu1 %v14448_v34  ;;  %v14509_v34 = vld [vmem:[%s16032_s12 + $0x2134] ss:$40 sps:$4 sm:$0xff]  }
 0x310   : > { %10295 = vmatpush1.bf16.msra.mxu0 %v14451_v36  ;;  %9657 = vmatprep.subr.bf16.mxu1 %v14452_v37  ;;  %v14508_v36 = vld [vmem:[%s16032_s12 + $0x1ea8] ss:$40 sps:$4 sm:$0xff]  }
 0x311   : > { %10297 = vmatprep.subr.bf16.mxu0 %v14455_v39  ;;  %6867 = vmatprep.mubr.f32.mxu0 %v16218_v52  ;;  %v14511_v37 = vld [vmem:[%s16032_s12 + $0x2130] ss:$40 sps:$4 sm:$0xff]   ;;  %v14512_v39 = vld [vmem:[%s16032_s12 + $0x1efc] ss:$40 sps:$4 sm:$0xff]  }
 0x313   : > { %9659 = vmatpush1.bf16.msra.mxu1 %v14454_v42  ;;  %v14515_v42 = vld [vmem:[%s16032_s12 + $0x2184] ss:$40 sps:$4 sm:$0xff]  }
 0x314   : > { %10299 = vmatpush1.bf16.msra.mxu0 %v14457_v44  ;;  %9661 = vmatprep.subr.bf16.mxu1 %v14458_v46  ;;  %v14514_v44 = vld [vmem:[%s16032_s12 + $0x1ef8] ss:$40 sps:$4 sm:$0xff]  }
 0x315   : > { %10301 = vmatprep.subr.bf16.mxu0 %v14461_v48  ;;  %v14517_v46 = vld [vmem:[%s16032_s12 + $0x2180] ss:$40 sps:$4 sm:$0xff]   ;;  %v14518_v48 = vld [vmem:[%s16032_s12 + $0x1f4c] ss:$40 sps:$4 sm:$0xff]  }
 0x317   : > { %9663 = vmatpush1.bf16.msra.mxu1 %v14460_v50  ;;  %v14521_v50 = vld [vmem:[%s16032_s12 + $0x21d4] ss:$40 sps:$4 sm:$0xff]  }
 0x318   : > { %10303 = vmatpush1.bf16.msra.mxu0 %v14463_v54  ;;  %9665 = vmatprep.subr.bf16.mxu1 %v14464_v55  ;;  %v14520_v54 = vld [vmem:[%s16032_s12 + $0x1f48] ss:$40 sps:$4 sm:$0xff]  }
 0x319   : > { %10305 = vmatprep.subr.bf16.mxu0 %v14467_v56  ;;  %v14523_v55 = vld [vmem:[%s16032_s12 + $0x21d0] ss:$40 sps:$4 sm:$0xff]   ;;  %v14524_v56 = vld [vmem:[%s16032_s12 + $0x1f9c] ss:$40 sps:$4 sm:$0xff]  }
 0x31b   : > { %9667 = vmatpush1.bf16.msra.mxu1 %v14466_v59  ;;  %v14527_v59 = vld [vmem:[%s16032_s12 + $0x2224] ss:$40 sps:$4 sm:$0xff]  }
 0x31c   : > { %10307 = vmatpush1.bf16.msra.mxu0 %v14469_v60  ;;  %9669 = vmatprep.subr.bf16.mxu1 %v14470_v62  ;;  %v14526_v60 = vld [vmem:[%s16032_s12 + $0x1f98] ss:$40 sps:$4 sm:$0xff]  }
 0x31d   : > { %10309 = vmatprep.subr.bf16.mxu0 %v14473_v63  ;;  %v14529_v62 = vld [vmem:[%s16032_s12 + $0x2220] ss:$40 sps:$4 sm:$0xff]   ;;  %v14530_v63 = vld [vmem:[%s16032_s12 + $0x1fec] ss:$40 sps:$4 sm:$0xff]  }
 0x31f   : > { %9671 = vmatpush1.bf16.msra.mxu1 %v14472_v0  ;;  %v14533_v0 = vld [vmem:[%s16032_s12 + $0x2274] ss:$40 sps:$4 sm:$0xff]  }
 0x320   : > { %10311 = vmatpush1.bf16.msra.mxu0 %v14475_v2  ;;  %9673 = vmatprep.subr.bf16.mxu1 %v14476_v6  ;;  %v14532_v2 = vld [vmem:[%s16032_s12 + $0x1fe8] ss:$40 sps:$4 sm:$0xff]  }
 0x321   : > { %10313 = vmatprep.subr.bf16.mxu0 %v14479_v7  ;;  %v14535_v6 = vld [vmem:[%s16032_s12 + $0x2270] ss:$40 sps:$4 sm:$0xff]   ;;  %v14536_v7 = vld [vmem:[%s16032_s12 + $0x203c] ss:$40 sps:$4 sm:$0xff]  }
 0x323   : > { %9675 = vmatpush1.bf16.msra.mxu1 %v14478_v9  ;;  %v14539_v9 = vld [vmem:[%s16032_s12 + $0x22c4] ss:$40 sps:$4 sm:$0xff]  }
 0x324   : > { %10315 = vmatpush1.bf16.msra.mxu0 %v14481_v11  ;;  %9677 = vmatprep.subr.bf16.mxu1 %v14482_v13  ;;  %v14538_v11 = vld [vmem:[%s16032_s12 + $0x2038] ss:$40 sps:$4 sm:$0xff]  }
 0x325   : > { %10317 = vmatprep.subr.bf16.mxu0 %v14485_v14  ;;  %v14541_v13 = vld [vmem:[%s16032_s12 + $0x22c0] ss:$40 sps:$4 sm:$0xff]   ;;  %v14542_v14 = vld [vmem:[%s16032_s12 + $0x208c] ss:$40 sps:$4 sm:$0xff]  }
 0x327   : > { %9679 = vmatpush1.bf16.msra.mxu1 %v14484_v16  ;;  %v14545_v16 = vld [vmem:[%s16032_s12 + $0x2314] ss:$40 sps:$4 sm:$0xff]  }
 0x328   : > { %10319 = vmatpush1.bf16.msra.mxu0 %v14487_v1  ;;  %9681 = vmatprep.subr.bf16.mxu1 %v14488_v5  ;;  %v14544_v1 = vld [vmem:[%s16032_s12 + $0x2088] ss:$40 sps:$4 sm:$0xff]  }
 0x329   : > { %10321 = vmatprep.subr.bf16.mxu0 %v14491_v17  ;;  %v14547_v5 = vld [vmem:[%s16032_s12 + $0x2310] ss:$40 sps:$4 sm:$0xff]   ;;  %v14548_v17 = vld [vmem:[%s16032_s12 + $0x20dc] ss:$40 sps:$4 sm:$0xff]  }
 0x32b   : > { %9683 = vmatpush1.bf16.msra.mxu1 %v14490_v18  ;;  %v14551_v18 = vld [vmem:[%s16032_s12 + $0x2364] ss:$40 sps:$4 sm:$0xff]  }
 0x32c   : > { %10323 = vmatpush1.bf16.msra.mxu0 %v14493_v19  ;;  %9685 = vmatprep.subr.bf16.mxu1 %v14494_v20  ;;  %v14550_v19 = vld [vmem:[%s16032_s12 + $0x20d8] ss:$40 sps:$4 sm:$0xff]  }
 0x32d   : > { %10325 = vmatprep.subr.bf16.mxu0 %v14497_v21  ;;  %v14553_v20 = vld [vmem:[%s16032_s12 + $0x2360] ss:$40 sps:$4 sm:$0xff]   ;;  %v14554_v21 = vld [vmem:[%s16032_s12 + $0x212c] ss:$40 sps:$4 sm:$0xff]  }
 0x32e   : > { %6087 = vmatmul.mubr.f32.vlgmr.msra.gmra.mrb[2].mxu1 %v16189_v26 }
 0x32f   : > { %9687 = vmatpush1.bf16.msra.mxu1 %v14496_v22  ;;  %6157 = vmatprep.mubr.f32.mxu1 %v16218_v52  ;;  %v14557_v22 = vld [vmem:[%s16032_s12 + $0x23b4] ss:$40 sps:$4 sm:$0xff]  }
 0x330   : > { %10327 = vmatpush1.bf16.msra.mxu0 %v14499_v23  ;;  %9689 = vmatprep.subr.bf16.mxu1 %v14500_v25  ;;  %v14556_v23 = vld [vmem:[%s16032_s12 + $0x2128] ss:$40 sps:$4 sm:$0xff]  }
 0x331   : > { %10329 = vmatprep.subr.bf16.mxu0 %v14503_v27  ;;  %v14559_v25 = vld [vmem:[%s16032_s12 + $0x23b0] ss:$40 sps:$4 sm:$0xff]   ;;  %v14560_v27 = vld [vmem:[%s16032_s12 + $0x217c] ss:$40 sps:$4 sm:$0xff]  }
 0x333   : > { %9691 = vmatpush1.bf16.msra.mxu1 %v14502_v28  ;;  %v14563_v28 = vld [vmem:[%s16032_s12 + $0x2404] ss:$40 sps:$4 sm:$0xff]  }
 0x334   : > { %10331 = vmatpush1.bf16.msra.mxu0 %v14505_v29  ;;  %9693 = vmatprep.subr.bf16.mxu1 %v14506_v30  ;;  %v14562_v29 = vld [vmem:[%s16032_s12 + $0x2178] ss:$40 sps:$4 sm:$0xff]  }
 0x335   : > { %10333 = vmatprep.subr.bf16.mxu0 %v14509_v34  ;;  %v14565_v30 = vld [vmem:[%s16032_s12 + $0x2400] ss:$40 sps:$4 sm:$0xff]   ;;  %v14566_v34 = vld [vmem:[%s16032_s12 + $0x21cc] ss:$40 sps:$4 sm:$0xff]  }
 0x337   : > { %9695 = vmatpush1.bf16.msra.mxu1 %v14508_v36  ;;  %v14569_v36 = vld [vmem:[%s16032_s12 + $0x2454] ss:$40 sps:$4 sm:$0xff]  }
 0x338   : > { %10335 = vmatpush1.bf16.msra.mxu0 %v14511_v37  ;;  %9697 = vmatprep.subr.bf16.mxu1 %v14512_v39  ;;  %v14568_v37 = vld [vmem:[%s16032_s12 + $0x21c8] ss:$40 sps:$4 sm:$0xff]  }
 0x339   : > { %10337 = vmatprep.subr.bf16.mxu0 %v14515_v42  ;;  %v14571_v39 = vld [vmem:[%s16032_s12 + $0x2450] ss:$40 sps:$4 sm:$0xff]   ;;  %v14572_v42 = vld [vmem:[%s16032_s12 + $0x221c] ss:$40 sps:$4 sm:$0xff]  }
 0x33b   : > { %9699 = vmatpush1.bf16.msra.mxu1 %v14514_v44  ;;  %v14575_v44 = vld [vmem:[%s16032_s12 + $0x24a4] ss:$40 sps:$4 sm:$0xff]  }
 0x33c   : > { %10339 = vmatpush1.bf16.msra.mxu0 %v14517_v46  ;;  %9701 = vmatprep.subr.bf16.mxu1 %v14518_v48  ;;  %v14574_v46 = vld [vmem:[%s16032_s12 + $0x2218] ss:$40 sps:$4 sm:$0xff]  }
 0x33d   : > { %10341 = vmatprep.subr.bf16.mxu0 %v14521_v50  ;;  %v14577_v48 = vld [vmem:[%s16032_s12 + $0x24a0] ss:$40 sps:$4 sm:$0xff]   ;;  %v14578_v50 = vld [vmem:[%s16032_s12 + $0x226c] ss:$40 sps:$4 sm:$0xff]  }
 0x33f   : > { %9703 = vmatpush1.bf16.msra.mxu1 %v14520_v54  ;;  %v14581_v54 = vld [vmem:[%s16032_s12 + $0x24f4] ss:$40 sps:$4 sm:$0xff]  }
 0x340   : > { %10343 = vmatpush1.bf16.msra.mxu0 %v14523_v55  ;;  %9705 = vmatprep.subr.bf16.mxu1 %v14524_v56  ;;  %v14580_v55 = vld [vmem:[%s16032_s12 + $0x2268] ss:$40 sps:$4 sm:$0xff]  }
 0x341   : > { %10345 = vmatprep.subr.bf16.mxu0 %v14527_v59  ;;  %v14583_v56 = vld [vmem:[%s16032_s12 + $0x24f0] ss:$40 sps:$4 sm:$0xff]   ;;  %v14584_v59 = vld [vmem:[%s16032_s12 + $0x22bc] ss:$40 sps:$4 sm:$0xff]  }
 0x343   : > { %9707 = vmatpush1.bf16.msra.mxu1 %v14526_v60  ;;  %v14587_v60 = vld [vmem:[%s16032_s12 + $0x2544] ss:$40 sps:$4 sm:$0xff]  }
 0x344   : > { %10347 = vmatpush1.bf16.msra.mxu0 %v14529_v62  ;;  %9709 = vmatprep.subr.bf16.mxu1 %v14530_v63  ;;  %v14586_v62 = vld [vmem:[%s16032_s12 + $0x22b8] ss:$40 sps:$4 sm:$0xff]  }
 0x345   : > { %10349 = vmatprep.subr.bf16.mxu0 %v14533_v0  ;;  %v14589_v63 = vld [vmem:[%s16032_s12 + $0x2540] ss:$40 sps:$4 sm:$0xff]   ;;  %v14590_v0 = vld [vmem:[%s16032_s12 + $0x230c] ss:$40 sps:$4 sm:$0xff]  }
 0x347   : > { %9711 = vmatpush1.bf16.msra.mxu1 %v14532_v2  ;;  %v14593_v2 = vld [vmem:[%s16032_s12 + $0x2594] ss:$40 sps:$4 sm:$0xff]  }
 0x348   : > { %10351 = vmatpush1.bf16.msra.mxu0 %v14535_v6  ;;  %9713 = vmatprep.subr.bf16.mxu1 %v14536_v7  ;;  %v14592_v6 = vld [vmem:[%s16032_s12 + $0x2308] ss:$40 sps:$4 sm:$0xff]  }
 0x349   : > { %10353 = vmatprep.subr.bf16.mxu0 %v14539_v9  ;;  %v14595_v7 = vld [vmem:[%s16032_s12 + $0x2590] ss:$40 sps:$4 sm:$0xff]   ;;  %v14596_v9 = vld [vmem:[%s16032_s12 + $0x235c] ss:$40 sps:$4 sm:$0xff]  }
 0x34b   : > { %9715 = vmatpush1.bf16.msra.mxu1 %v14538_v11  ;;  %v14599_v11 = vld [vmem:[%s16032_s12 + $0x25e4] ss:$40 sps:$4 sm:$0xff]  }
 0x34c   : > { %10355 = vmatpush1.bf16.msra.mxu0 %v14541_v13  ;;  %9717 = vmatprep.subr.bf16.mxu1 %v14542_v14  ;;  %v14598_v13 = vld [vmem:[%s16032_s12 + $0x2358] ss:$40 sps:$4 sm:$0xff]  }
 0x34d   : > { %10357 = vmatprep.subr.bf16.mxu0 %v14545_v16  ;;  %v14601_v14 = vld [vmem:[%s16032_s12 + $0x25e0] ss:$40 sps:$4 sm:$0xff]   ;;  %v14602_v16 = vld [vmem:[%s16032_s12 + $0x23ac] ss:$40 sps:$4 sm:$0xff]  }
 0x34f   : > { %6868 = vmatmul.mubr.f32.vlgmr.msra.gmra.mrb[2].mxu0 %v16263_v32  ;;  %9719 = vmatpush1.bf16.msra.mxu1 %v14544_v1  ;;  %v14605_v1 = vld [vmem:[%s16032_s12 + $0x2634] ss:$40 sps:$4 sm:$0xff]  }
 0x350   : > { %10359 = vmatpush1.bf16.msra.mxu0 %v14547_v5  ;;  %9721 = vmatprep.subr.bf16.mxu1 %v14548_v17  ;;  %v14604_v5 = vld [vmem:[%s16032_s12 + $0x23a8] ss:$40 sps:$4 sm:$0xff]  }
 0x351   : > { %10361 = vmatprep.subr.bf16.mxu0 %v14551_v18  ;;  %6938 = vmatprep.mubr.f32.mxu0 %v16272_v38  ;;  %v14607_v17 = vld [vmem:[%s16032_s12 + $0x2630] ss:$40 sps:$4 sm:$0xff]   ;;  %v14608_v18 = vld [vmem:[%s16032_s12 + $0x23fc] ss:$40 sps:$4 sm:$0xff]  }
 0x353   : > { %9723 = vmatpush1.bf16.msra.mxu1 %v14550_v19  ;;  %v14611_v19 = vld [vmem:[%s16032_s12 + $0x2684] ss:$40 sps:$4 sm:$0xff]  }
 0x354   : > { %10363 = vmatpush1.bf16.msra.mxu0 %v14553_v20  ;;  %9725 = vmatprep.subr.bf16.mxu1 %v14554_v21  ;;  %v14610_v20 = vld [vmem:[%s16032_s12 + $0x23f8] ss:$40 sps:$4 sm:$0xff]  }
 0x355   : > { %10365 = vmatprep.subr.bf16.mxu0 %v14557_v22  ;;  %v14613_v21 = vld [vmem:[%s16032_s12 + $0x2680] ss:$40 sps:$4 sm:$0xff]   ;;  %v14614_v22 = vld [vmem:[%s16032_s12 + $0x244c] ss:$40 sps:$4 sm:$0xff]  }
 0x357   : > { %9727 = vmatpush1.bf16.msra.mxu1 %v14556_v23  ;;  %v14617_v23 = vld [vmem:[%s16032_s12 + $0x26d4] ss:$40 sps:$4 sm:$0xff]  }
 0x358   : > { %10367 = vmatpush1.bf16.msra.mxu0 %v14559_v25  ;;  %9729 = vmatprep.subr.bf16.mxu1 %v14560_v27  ;;  %v14616_v25 = vld [vmem:[%s16032_s12 + $0x2448] ss:$40 sps:$4 sm:$0xff]  }
 0x359   : > { %10369 = vmatprep.subr.bf16.mxu0 %v14563_v28  ;;  %v14619_v27 = vld [vmem:[%s16032_s12 + $0x26d0] ss:$40 sps:$4 sm:$0xff]   ;;  %v14620_v28 = vld [vmem:[%s16032_s12 + $0x249c] ss:$40 sps:$4 sm:$0xff]  }
 0x35b   : > { %9731 = vmatpush1.bf16.msra.mxu1 %v14562_v29  ;;  %v14623_v29 = vld [vmem:[%s16032_s12 + $0x2724] ss:$40 sps:$4 sm:$0xff]  }
 0x35c   : > { %10371 = vmatpush1.bf16.msra.mxu0 %v14565_v30  ;;  %9733 = vmatprep.subr.bf16.mxu1 %v14566_v34  ;;  %v14622_v30 = vld [vmem:[%s16032_s12 + $0x2498] ss:$40 sps:$4 sm:$0xff]  }
 0x35d   : > { %10373 = vmatprep.subr.bf16.mxu0 %v14569_v36  ;;  %v14625_v34 = vld [vmem:[%s16032_s12 + $0x2720] ss:$40 sps:$4 sm:$0xff]   ;;  %v14626_v36 = vld [vmem:[%s16032_s12 + $0x24ec] ss:$40 sps:$4 sm:$0xff]  }
 0x35f   : > { %9735 = vmatpush1.bf16.msra.mxu1 %v14568_v37  ;;  %v14629_v37 = vld [vmem:[%s16032_s12 + $0x2774] ss:$40 sps:$4 sm:$0xff]  }
 0x360   : > { %10375 = vmatpush1.bf16.msra.mxu0 %v14571_v39  ;;  %9737 = vmatprep.subr.bf16.mxu1 %v14572_v42  ;;  %v14628_v39 = vld [vmem:[%s16032_s12 + $0x24e8] ss:$40 sps:$4 sm:$0xff]  }
 0x361   : > { %10377 = vmatprep.subr.bf16.mxu0 %v14575_v44  ;;  %v14631_v42 = vld [vmem:[%s16032_s12 + $0x2770] ss:$40 sps:$4 sm:$0xff]   ;;  %v14632_v44 = vld [vmem:[%s16032_s12 + $0x253c] ss:$40 sps:$4 sm:$0xff]  }
 0x363   : > { %9739 = vmatpush1.bf16.msra.mxu1 %v14574_v46  ;;  %v14635_v46 = vld [vmem:[%s16032_s12 + $0x27c4] ss:$40 sps:$4 sm:$0xff]  }
 0x364   : > { %10379 = vmatpush1.bf16.msra.mxu0 %v14577_v48  ;;  %9741 = vmatprep.subr.bf16.mxu1 %v14578_v50  ;;  %v14634_v48 = vld [vmem:[%s16032_s12 + $0x2538] ss:$40 sps:$4 sm:$0xff]  }
 0x365   : > { %10381 = vmatprep.subr.bf16.mxu0 %v14581_v54  ;;  %v14637_v50 = vld [vmem:[%s16032_s12 + $0x27c0] ss:$40 sps:$4 sm:$0xff]   ;;  %v14638_v54 = vld [vmem:[%s16032_s12 + $0x258c] ss:$40 sps:$4 sm:$0xff]  }
 0x367   : > { %9743 = vmatpush1.bf16.msra.mxu1 %v14580_v55  ;;  %v14641_v55 = vld [vmem:[%s16032_s12 + $0x2814] ss:$40 sps:$4 sm:$0xff]  }
 0x368   : > { %10383 = vmatpush1.bf16.msra.mxu0 %v14583_v56  ;;  %9745 = vmatprep.subr.bf16.mxu1 %v14584_v59  ;;  %v14640_v56 = vld [vmem:[%s16032_s12 + $0x2588] ss:$40 sps:$4 sm:$0xff]  }
 0x369   : > { %10385 = vmatprep.subr.bf16.mxu0 %v14587_v60  ;;  %v14643_v59 = vld [vmem:[%s16032_s12 + $0x2810] ss:$40 sps:$4 sm:$0xff]   ;;  %v14644_v60 = vld [vmem:[%s16032_s12 + $0x25dc] ss:$40 sps:$4 sm:$0xff]  }
 0x36b   : > { %9747 = vmatpush1.bf16.msra.mxu1 %v14586_v62  ;;  %v14647_v62 = vld [vmem:[%s16032_s12 + $0x2864] ss:$40 sps:$4 sm:$0xff]  }
 0x36c   : > { %10387 = vmatpush1.bf16.msra.mxu0 %v14589_v63  ;;  %9749 = vmatprep.subr.bf16.mxu1 %v14590_v0  ;;  %v14646_v63 = vld [vmem:[%s16032_s12 + $0x25d8] ss:$40 sps:$4 sm:$0xff]  }
 0x36d   : > { %10389 = vmatprep.subr.bf16.mxu0 %v14593_v2  ;;  %v14649_v0 = vld [vmem:[%s16032_s12 + $0x2860] ss:$40 sps:$4 sm:$0xff]   ;;  %v14650_v2 = vld [vmem:[%s16032_s12 + $0x262c] ss:$40 sps:$4 sm:$0xff]  }
 0x36e   : > { %6158 = vmatmul.mubr.f32.vlgmr.msra.gmra.mrb[2].mxu1 %v16263_v32 }
 0x36f   : > { %9751 = vmatpush1.bf16.msra.mxu1 %v14592_v6  ;;  %6228 = vmatprep.mubr.f32.mxu1 %v16272_v38  ;;  %v14653_v6 = vld [vmem:[%s16032_s12 + $0x28b4] ss:$40 sps:$4 sm:$0xff]  }
 0x370   : > { %10391 = vmatpush1.bf16.msra.mxu0 %v14595_v7  ;;  %9753 = vmatprep.subr.bf16.mxu1 %v14596_v9  ;;  %v14652_v7 = vld [vmem:[%s16032_s12 + $0x2628] ss:$40 sps:$4 sm:$0xff]  }
 0x371   : > { %10393 = vmatprep.subr.bf16.mxu0 %v14599_v11  ;;  %v14655_v9 = vld [vmem:[%s16032_s12 + $0x28b0] ss:$40 sps:$4 sm:$0xff]   ;;  %v14656_v11 = vld [vmem:[%s16032_s12 + $0x267c] ss:$40 sps:$4 sm:$0xff]  }
 0x373   : > { %9755 = vmatpush1.bf16.msra.mxu1 %v14598_v13  ;;  %v14659_v13 = vld [vmem:[%s16032_s12 + $0x2904] ss:$40 sps:$4 sm:$0xff]  }
 0x374   : > { %10395 = vmatpush1.bf16.msra.mxu0 %v14601_v14  ;;  %9757 = vmatprep.subr.bf16.mxu1 %v14602_v16  ;;  %v14658_v14 = vld [vmem:[%s16032_s12 + $0x2678] ss:$40 sps:$4 sm:$0xff]  }
 0x375   : > { %10397 = vmatprep.subr.bf16.mxu0 %v14605_v1  ;;  %v14661_v16 = vld [vmem:[%s16032_s12 + $0x2900] ss:$40 sps:$4 sm:$0xff]   ;;  %v14662_v1 = vld [vmem:[%s16032_s12 + $0x26cc] ss:$40 sps:$4 sm:$0xff]  }
 0x377   : > { %9759 = vmatpush1.bf16.msra.mxu1 %v14604_v5  ;;  %v14665_v5 = vld [vmem:[%s16032_s12 + $0x2954] ss:$40 sps:$4 sm:$0xff]  }
 0x378   : > { %10399 = vmatpush1.bf16.msra.mxu0 %v14607_v17  ;;  %9761 = vmatprep.subr.bf16.mxu1 %v14608_v18  ;;  %v14664_v17 = vld [vmem:[%s16032_s12 + $0x26c8] ss:$40 sps:$4 sm:$0xff]  }
 0x379   : > { %10401 = vmatprep.subr.bf16.mxu0 %v14611_v19  ;;  %v14667_v18 = vld [vmem:[%s16032_s12 + $0x2950] ss:$40 sps:$4 sm:$0xff]   ;;  %v14668_v19 = vld [vmem:[%s16032_s12 + $0x271c] ss:$40 sps:$4 sm:$0xff]  }
 0x37b   : > { %9763 = vmatpush1.bf16.msra.mxu1 %v14610_v20  ;;  %v14671_v20 = vld [vmem:[%s16032_s12 + $0x29a4] ss:$40 sps:$4 sm:$0xff]  }
 0x37c   : > { %10403 = vmatpush1.bf16.msra.mxu0 %v14613_v21  ;;  %9765 = vmatprep.subr.bf16.mxu1 %v14614_v22  ;;  %v14670_v21 = vld [vmem:[%s16032_s12 + $0x2718] ss:$40 sps:$4 sm:$0xff]  }
 0x37d   : > { %10405 = vmatprep.subr.bf16.mxu0 %v14617_v23  ;;  %v14673_v22 = vld [vmem:[%s16032_s12 + $0x29a0] ss:$40 sps:$4 sm:$0xff]   ;;  %v14674_v23 = vld [vmem:[%s16032_s12 + $0x276c] ss:$40 sps:$4 sm:$0xff]  }
 0x37f   : > { %9767 = vmatpush1.bf16.msra.mxu1 %v14616_v25  ;;  %v14677_v25 = vld [vmem:[%s16032_s12 + $0x29f4] ss:$40 sps:$4 sm:$0xff]  }
 0x380   : > { %10407 = vmatpush1.bf16.msra.mxu0 %v14619_v27  ;;  %9769 = vmatprep.subr.bf16.mxu1 %v14620_v28  ;;  %v14676_v27 = vld [vmem:[%s16032_s12 + $0x2768] ss:$40 sps:$4 sm:$0xff]  }
 0x381   : > { %10409 = vmatprep.subr.bf16.mxu0 %v14623_v29  ;;  %v14679_v28 = vld [vmem:[%s16032_s12 + $0x29f0] ss:$40 sps:$4 sm:$0xff]   ;;  %v14680_v29 = vld [vmem:[%s16032_s12 + $0x27bc] ss:$40 sps:$4 sm:$0xff]  }
 0x383   : > { %9771 = vmatpush1.bf16.msra.mxu1 %v14622_v30  ;;  %v14683_v30 = vld [vmem:[%s16032_s12 + $0x2a44] ss:$40 sps:$4 sm:$0xff]  }
 0x384   : > { %10411 = vmatpush1.bf16.msra.mxu0 %v14625_v34  ;;  %9773 = vmatprep.subr.bf16.mxu1 %v14626_v36  ;;  %v14682_v34 = vld [vmem:[%s16032_s12 + $0x27b8] ss:$40 sps:$4 sm:$0xff]  }
 0x385   : > { %10413 = vmatprep.subr.bf16.mxu0 %v14629_v37  ;;  %v14685_v36 = vld [vmem:[%s16032_s12 + $0x2a40] ss:$40 sps:$4 sm:$0xff]   ;;  %v14686_v37 = vld [vmem:[%s16032_s12 + $0x280c] ss:$40 sps:$4 sm:$0xff]  }
 0x387   : > { %9775 = vmatpush1.bf16.msra.mxu1 %v14628_v39  ;;  %v14689_v39 = vld [vmem:[%s16032_s12 + $0x2a94] ss:$40 sps:$4 sm:$0xff]  }
 0x388   : > { %10415 = vmatpush1.bf16.msra.mxu0 %v14631_v42  ;;  %9777 = vmatprep.subr.bf16.mxu1 %v14632_v44  ;;  %v14688_v42 = vld [vmem:[%s16032_s12 + $0x2808] ss:$40 sps:$4 sm:$0xff]  }
 0x389   : > { %10417 = vmatprep.subr.bf16.mxu0 %v14635_v46  ;;  %v14691_v44 = vld [vmem:[%s16032_s12 + $0x2a90] ss:$40 sps:$4 sm:$0xff]   ;;  %v14692_v46 = vld [vmem:[%s16032_s12 + $0x285c] ss:$40 sps:$4 sm:$0xff]  }
 0x38b   : > { %9779 = vmatpush1.bf16.msra.mxu1 %v14634_v48  ;;  %v14695_v48 = vld [vmem:[%s16032_s12 + $0x2ae4] ss:$40 sps:$4 sm:$0xff]  }
 0x38c   : > { %10419 = vmatpush1.bf16.msra.mxu0 %v14637_v50  ;;  %9781 = vmatprep.subr.bf16.mxu1 %v14638_v54  ;;  %v14694_v50 = vld [vmem:[%s16032_s12 + $0x2858] ss:$40 sps:$4 sm:$0xff]  }
 0x38d   : > { %10421 = vmatprep.subr.bf16.mxu0 %v14641_v55  ;;  %v14697_v54 = vld [vmem:[%s16032_s12 + $0x2ae0] ss:$40 sps:$4 sm:$0xff]   ;;  %v14698_v55 = vld [vmem:[%s16032_s12 + $0x28ac] ss:$40 sps:$4 sm:$0xff]  }
 0x38f   : > { %6939 = vmatmul.mubr.f32.vlgmr.msra.gmra.mrb[2].mxu0 %v16337_v41  ;;  %9783 = vmatpush1.bf16.msra.mxu1 %v14640_v56  ;;  %v14701_v56 = vld [vmem:[%s16032_s12 + $0x2b34] ss:$40 sps:$4 sm:$0xff]  }
 0x390   : > { %10423 = vmatpush1.bf16.msra.mxu0 %v14643_v59  ;;  %9785 = vmatprep.subr.bf16.mxu1 %v14644_v60  ;;  %v14700_v59 = vld [vmem:[%s16032_s12 + $0x28a8] ss:$40 sps:$4 sm:$0xff]  }
 0x391   : > { %10425 = vmatprep.subr.bf16.mxu0 %v14647_v62  ;;  %7009 = vmatprep.mubr.f32.mxu0 %v16346_v47  ;;  %v14703_v60 = vld [vmem:[%s16032_s12 + $0x2b30] ss:$40 sps:$4 sm:$0xff]   ;;  %v14704_v62 = vld [vmem:[%s16032_s12 + $0x28fc] ss:$40 sps:$4 sm:$0xff]  }
 0x393   : > { %9787 = vmatpush1.bf16.msra.mxu1 %v14646_v63  ;;  %v14707_v63 = vld [vmem:[%s16032_s12 + $0x2b84] ss:$40 sps:$4 sm:$0xff]  }
 0x394   : > { %10427 = vmatpush1.bf16.msra.mxu0 %v14649_v0  ;;  %9789 = vmatprep.subr.bf16.mxu1 %v14650_v2  ;;  %v14706_v0 = vld [vmem:[%s16032_s12 + $0x28f8] ss:$40 sps:$4 sm:$0xff]  }
 0x395   : > { %10429 = vmatprep.subr.bf16.mxu0 %v14653_v6  ;;  %v14709_v2 = vld [vmem:[%s16032_s12 + $0x2b80] ss:$40 sps:$4 sm:$0xff]   ;;  %v14710_v6 = vld [vmem:[%s16032_s12 + $0x294c] ss:$40 sps:$4 sm:$0xff]  }
 0x397   : > { %9791 = vmatpush1.bf16.msra.mxu1 %v14652_v7  ;;  %v14713_v7 = vld [vmem:[%s16032_s12 + $0x2bd4] ss:$40 sps:$4 sm:$0xff]  }
 0x398   : > { %10431 = vmatpush1.bf16.msra.mxu0 %v14655_v9  ;;  %9793 = vmatprep.subr.bf16.mxu1 %v14656_v11  ;;  %v14712_v9 = vld [vmem:[%s16032_s12 + $0x2948] ss:$40 sps:$4 sm:$0xff]  }
 0x399   : > { %10433 = vmatprep.subr.bf16.mxu0 %v14659_v13  ;;  %v14715_v11 = vld [vmem:[%s16032_s12 + $0x2bd0] ss:$40 sps:$4 sm:$0xff]   ;;  %v14716_v13 = vld [vmem:[%s16032_s12 + $0x299c] ss:$40 sps:$4 sm:$0xff]  }
 0x39b   : > { %9795 = vmatpush1.bf16.msra.mxu1 %v14658_v14  ;;  %v14719_v14 = vld [vmem:[%s16032_s12 + $0x2c24] ss:$40 sps:$4 sm:$0xff]  }
 0x39c   : > { %10435 = vmatpush1.bf16.msra.mxu0 %v14661_v16  ;;  %9797 = vmatprep.subr.bf16.mxu1 %v14662_v1  ;;  %v14718_v16 = vld [vmem:[%s16032_s12 + $0x2998] ss:$40 sps:$4 sm:$0xff]  }
 0x39d   : > { %10437 = vmatprep.subr.bf16.mxu0 %v14665_v5  ;;  %v14721_v1 = vld [vmem:[%s16032_s12 + $0x2c20] ss:$40 sps:$4 sm:$0xff]   ;;  %v14722_v5 = vld [vmem:[%s16032_s12 + $0x29ec] ss:$40 sps:$4 sm:$0xff]  }
 0x39f   : > { %9799 = vmatpush1.bf16.msra.mxu1 %v14664_v17  ;;  %v14725_v17 = vld [vmem:[%s16032_s12 + $0x2c74] ss:$40 sps:$4 sm:$0xff]  }
 0x3a0   : > { %10439 = vmatpush1.bf16.msra.mxu0 %v14667_v18  ;;  %9801 = vmatprep.subr.bf16.mxu1 %v14668_v19  ;;  %v14724_v18 = vld [vmem:[%s16032_s12 + $0x29e8] ss:$40 sps:$4 sm:$0xff]  }
 0x3a1   : > { %10441 = vmatprep.subr.bf16.mxu0 %v14671_v20  ;;  %v14727_v19 = vld [vmem:[%s16032_s12 + $0x2c70] ss:$40 sps:$4 sm:$0xff]   ;;  %v14728_v20 = vld [vmem:[%s16032_s12 + $0x2a3c] ss:$40 sps:$4 sm:$0xff]  }
 0x3a3   : > { %9803 = vmatpush1.bf16.msra.mxu1 %v14670_v21  ;;  %v14731_v21 = vld [vmem:[%s16032_s12 + $0x2cc4] ss:$40 sps:$4 sm:$0xff]  }
 0x3a4   : > { %10443 = vmatpush1.bf16.msra.mxu0 %v14673_v22  ;;  %9805 = vmatprep.subr.bf16.mxu1 %v14674_v23  ;;  %v14730_v22 = vld [vmem:[%s16032_s12 + $0x2a38] ss:$40 sps:$4 sm:$0xff]  }
 0x3a5   : > { %10445 = vmatprep.subr.bf16.mxu0 %v14677_v25  ;;  %v14733_v23 = vld [vmem:[%s16032_s12 + $0x2cc0] ss:$40 sps:$4 sm:$0xff]   ;;  %v14734_v25 = vld [vmem:[%s16032_s12 + $0x2a8c] ss:$40 sps:$4 sm:$0xff]  }
 0x3a7   : > { %9807 = vmatpush1.bf16.msra.mxu1 %v14676_v27  ;;  %v14737_v27 = vld [vmem:[%s16032_s12 + $0x2d14] ss:$40 sps:$4 sm:$0xff]  }
 0x3a8   : > { %10447 = vmatpush1.bf16.msra.mxu0 %v14679_v28  ;;  %9809 = vmatprep.subr.bf16.mxu1 %v14680_v29  ;;  %v14736_v28 = vld [vmem:[%s16032_s12 + $0x2a88] ss:$40 sps:$4 sm:$0xff]  }
 0x3a9   : > { %10449 = vmatprep.subr.bf16.mxu0 %v14683_v30  ;;  %v14739_v29 = vld [vmem:[%s16032_s12 + $0x2d10] ss:$40 sps:$4 sm:$0xff]   ;;  %v14740_v30 = vld [vmem:[%s16032_s12 + $0x2adc] ss:$40 sps:$4 sm:$0xff]  }
 0x3ab   : > { %9811 = vmatpush1.bf16.msra.mxu1 %v14682_v34  ;;  %v14743_v34 = vld [vmem:[%s16032_s12 + $0x2d64] ss:$40 sps:$4 sm:$0xff]  }
 0x3ac   : > { %10451 = vmatpush1.bf16.msra.mxu0 %v14685_v36  ;;  %9813 = vmatprep.subr.bf16.mxu1 %v14686_v37  ;;  %v14742_v36 = vld [vmem:[%s16032_s12 + $0x2ad8] ss:$40 sps:$4 sm:$0xff]  }
 0x3ad   : > { %10453 = vmatprep.subr.bf16.mxu0 %v14689_v39  ;;  %v14745_v37 = vld [vmem:[%s16032_s12 + $0x2d60] ss:$40 sps:$4 sm:$0xff]   ;;  %v14746_v39 = vld [vmem:[%s16032_s12 + $0x2b2c] ss:$40 sps:$4 sm:$0xff]  }
 0x3ae   : > { %6229 = vmatmul.mubr.f32.vlgmr.msra.gmra.mrb[2].mxu1 %v16337_v41 }
 0x3af   : > { %9815 = vmatpush1.bf16.msra.mxu1 %v14688_v42  ;;  %6299 = vmatprep.mubr.f32.mxu1 %v16346_v47  ;;  %v14749_v42 = vld [vmem:[%s16032_s12 + $0x2db4] ss:$40 sps:$4 sm:$0xff]  }
 0x3b0   : > { %10455 = vmatpush1.bf16.msra.mxu0 %v14691_v44  ;;  %9817 = vmatprep.subr.bf16.mxu1 %v14692_v46  ;;  %v14748_v44 = vld [vmem:[%s16032_s12 + $0x2b28] ss:$40 sps:$4 sm:$0xff]  }
 0x3b1   : > { %10457 = vmatprep.subr.bf16.mxu0 %v14695_v48  ;;  %v14751_v46 = vld [vmem:[%s16032_s12 + $0x2db0] ss:$40 sps:$4 sm:$0xff]   ;;  %v14752_v48 = vld [vmem:[%s16032_s12 + $0x2b7c] ss:$40 sps:$4 sm:$0xff]  }
 0x3b3   : > { %9819 = vmatpush1.bf16.msra.mxu1 %v14694_v50  ;;  %v14755_v50 = vld [vmem:[%s16032_s12 + $0x2e04] ss:$40 sps:$4 sm:$0xff]  }
 0x3b4   : > { %10459 = vmatpush1.bf16.msra.mxu0 %v14697_v54  ;;  %9821 = vmatprep.subr.bf16.mxu1 %v14698_v55  ;;  %v14754_v54 = vld [vmem:[%s16032_s12 + $0x2b78] ss:$40 sps:$4 sm:$0xff]  }
 0x3b5   : > { %10461 = vmatprep.subr.bf16.mxu0 %v14701_v56  ;;  %v14757_v55 = vld [vmem:[%s16032_s12 + $0x2e00] ss:$40 sps:$4 sm:$0xff]   ;;  %v14758_v56 = vld [vmem:[%s16032_s12 + $0x2bcc] ss:$40 sps:$4 sm:$0xff]  }
 0x3b7   : > { %9823 = vmatpush1.bf16.msra.mxu1 %v14700_v59  ;;  %v14761_v59 = vld [vmem:[%s16032_s12 + $0x2e54] ss:$40 sps:$4 sm:$0xff]  }
 0x3b8   : > { %10463 = vmatpush1.bf16.msra.mxu0 %v14703_v60  ;;  %9825 = vmatprep.subr.bf16.mxu1 %v14704_v62  ;;  %v14760_v60 = vld [vmem:[%s16032_s12 + $0x2bc8] ss:$40 sps:$4 sm:$0xff]  }
 0x3b9   : > { %10465 = vmatprep.subr.bf16.mxu0 %v14707_v63  ;;  %v14763_v62 = vld [vmem:[%s16032_s12 + $0x2e50] ss:$40 sps:$4 sm:$0xff]   ;;  %v14764_v63 = vld [vmem:[%s16032_s12 + $0x2c1c] ss:$40 sps:$4 sm:$0xff]  }
 0x3bb   : > { %9827 = vmatpush1.bf16.msra.mxu1 %v14706_v0  ;;  %v14767_v0 = vld [vmem:[%s16032_s12 + $0x2ea4] ss:$40 sps:$4 sm:$0xff]  }
 0x3bc   : > { %10467 = vmatpush1.bf16.msra.mxu0 %v14709_v2  ;;  %9829 = vmatprep.subr.bf16.mxu1 %v14710_v6  ;;  %v14766_v2 = vld [vmem:[%s16032_s12 + $0x2c18] ss:$40 sps:$4 sm:$0xff]  }
 0x3bd   : > { %10469 = vmatprep.subr.bf16.mxu0 %v14713_v7  ;;  %v14769_v6 = vld [vmem:[%s16032_s12 + $0x2ea0] ss:$40 sps:$4 sm:$0xff]   ;;  %v14770_v7 = vld [vmem:[%s16032_s12 + $0x2c6c] ss:$40 sps:$4 sm:$0xff]  }
 0x3bf   : > { %9831 = vmatpush1.bf16.msra.mxu1 %v14712_v9  ;;  %v14773_v9 = vld [vmem:[%s16032_s12 + $0x2ef4] ss:$40 sps:$4 sm:$0xff]  }
 0x3c0   : > { %10471 = vmatpush1.bf16.msra.mxu0 %v14715_v11  ;;  %9833 = vmatprep.subr.bf16.mxu1 %v14716_v13  ;;  %v14772_v11 = vld [vmem:[%s16032_s12 + $0x2c68] ss:$40 sps:$4 sm:$0xff]  }
 0x3c1   : > { %10473 = vmatprep.subr.bf16.mxu0 %v14719_v14  ;;  %v14775_v13 = vld [vmem:[%s16032_s12 + $0x2ef0] ss:$40 sps:$4 sm:$0xff]   ;;  %v14776_v14 = vld [vmem:[%s16032_s12 + $0x2cbc] ss:$40 sps:$4 sm:$0xff]  }
 0x3c3   : > { %9835 = vmatpush1.bf16.msra.mxu1 %v14718_v16  ;;  %v14779_v16 = vld [vmem:[%s16032_s12 + $0x2f44] ss:$40 sps:$4 sm:$0xff]  }
 0x3c4   : > { %10475 = vmatpush1.bf16.msra.mxu0 %v14721_v1  ;;  %9837 = vmatprep.subr.bf16.mxu1 %v14722_v5  ;;  %v14778_v1 = vld [vmem:[%s16032_s12 + $0x2cb8] ss:$40 sps:$4 sm:$0xff]  }
 0x3c5   : > { %10477 = vmatprep.subr.bf16.mxu0 %v14725_v17  ;;  %v14781_v5 = vld [vmem:[%s16032_s12 + $0x2f40] ss:$40 sps:$4 sm:$0xff]   ;;  %v14782_v17 = vld [vmem:[%s16032_s12 + $0x2d0c] ss:$40 sps:$4 sm:$0xff]  }
 0x3c7   : > { %9839 = vmatpush1.bf16.msra.mxu1 %v14724_v18  ;;  %v14785_v18 = vld [vmem:[%s16032_s12 + $0x24] ss:$40 sps:$4 sm:$0xff]  }
 0x3c8   : > { %10479 = vmatpush1.bf16.msra.mxu0 %v14727_v19  ;;  %9841 = vmatprep.subr.bf16.mxu1 %v14728_v20  ;;  %v14784_v19 = vld [vmem:[%s16032_s12 + $0x2d08] ss:$40 sps:$4 sm:$0xff]  }
 0x3c9   : > { %10481 = vmatprep.subr.bf16.mxu0 %v14731_v21  ;;  %v14787_v20 = vld [vmem:[%s16032_s12 + $0x20] ss:$40 sps:$4 sm:$0xff]   ;;  %v14788_v21 = vld [vmem:[%s16032_s12 + $0x2d5c] ss:$40 sps:$4 sm:$0xff]  }
 0x3cb   : > { %9843 = vmatpush1.bf16.msra.mxu1 %v14730_v22  ;;  %v14791_v22 = vld [vmem:[%s16032_s12 + $0x74] ss:$40 sps:$4 sm:$0xff]  }
 0x3cc   : > { %10483 = vmatpush1.bf16.msra.mxu0 %v14733_v23  ;;  %9845 = vmatprep.subr.bf16.mxu1 %v14734_v25  ;;  %v14790_v23 = vld [vmem:[%s16032_s12 + $0x2d58] ss:$40 sps:$4 sm:$0xff]  }
 0x3cd   : > { %10485 = vmatprep.subr.bf16.mxu0 %v14737_v27  ;;  %v14793_v25 = vld [vmem:[%s16032_s12 + $0x70] ss:$40 sps:$4 sm:$0xff]   ;;  %v14794_v27 = vld [vmem:[%s16032_s12 + $0x2dac] ss:$40 sps:$4 sm:$0xff]  }
 0x3cf   : > { %7010 = vmatmul.mubr.f32.vlgmr.msra.gmra.mrb[2].mxu0 %v16413_v53  ;;  %9847 = vmatpush1.bf16.msra.mxu1 %v14736_v28  ;;  %v14797_v28 = vld [vmem:[%s16032_s12 + $0xc4] ss:$40 sps:$4 sm:$0xff]  }
 0x3d0   : > { %10487 = vmatpush1.bf16.msra.mxu0 %v14739_v29  ;;  %9849 = vmatprep.subr.bf16.mxu1 %v14740_v30  ;;  %v14796_v29 = vld [vmem:[%s16032_s12 + $0x2da8] ss:$40 sps:$4 sm:$0xff]  }
 0x3d1   : > { %10489 = vmatprep.subr.bf16.mxu0 %v14743_v34  ;;  %7080 = vmatprep.mubr.f32.mxu0 %v15864_v61  ;;  %v14799_v30 = vld [vmem:[%s16032_s12 + $0xc0] ss:$40 sps:$4 sm:$0xff]   ;;  %v14800_v34 = vld [vmem:[%s16032_s12 + $0x2dfc] ss:$40 sps:$4 sm:$0xff]  }
 0x3d3   : > { %9851 = vmatpush1.bf16.msra.mxu1 %v14742_v36  ;;  %v14803_v36 = vld [vmem:[%s16032_s12 + $0x114] ss:$40 sps:$4 sm:$0xff]  }
 0x3d4   : > { %10491 = vmatpush1.bf16.msra.mxu0 %v14745_v37  ;;  %9853 = vmatprep.subr.bf16.mxu1 %v14746_v39  ;;  %v14802_v37 = vld [vmem:[%s16032_s12 + $0x2df8] ss:$40 sps:$4 sm:$0xff]  }
 0x3d5   : > { %10493 = vmatprep.subr.bf16.mxu0 %v14749_v42  ;;  %v14805_v39 = vld [vmem:[%s16032_s12 + $0x110] ss:$40 sps:$4 sm:$0xff]   ;;  %v14806_v42 = vld [vmem:[%s16032_s12 + $0x2e4c] ss:$40 sps:$4 sm:$0xff]  }
 0x3d7   : > { %9855 = vmatpush1.bf16.msra.mxu1 %v14748_v44  ;;  %v14809_v44 = vld [vmem:[%s16032_s12 + $0x164] ss:$40 sps:$4 sm:$0xff]  }
 0x3d8   : > { %10495 = vmatpush1.bf16.msra.mxu0 %v14751_v46  ;;  %9857 = vmatprep.subr.bf16.mxu1 %v14752_v48  ;;  %v14808_v46 = vld [vmem:[%s16032_s12 + $0x2e48] ss:$40 sps:$4 sm:$0xff]  }
 0x3d9   : > { %10497 = vmatprep.subr.bf16.mxu0 %v14755_v50  ;;  %v14811_v48 = vld [vmem:[%s16032_s12 + $0x160] ss:$40 sps:$4 sm:$0xff]   ;;  %v14812_v50 = vld [vmem:[%s16032_s12 + $0x2e9c] ss:$40 sps:$4 sm:$0xff]  }
 0x3db   : > { %9859 = vmatpush1.bf16.msra.mxu1 %v14754_v54  ;;  %v14815_v54 = vld [vmem:[%s16032_s12 + $0x1b4] ss:$40 sps:$4 sm:$0xff]  }
 0x3dc   : > { %10499 = vmatpush1.bf16.msra.mxu0 %v14757_v55  ;;  %9861 = vmatprep.subr.bf16.mxu1 %v14758_v56  ;;  %v14814_v55 = vld [vmem:[%s16032_s12 + $0x2e98] ss:$40 sps:$4 sm:$0xff]  }
 0x3dd   : > { %10501 = vmatprep.subr.bf16.mxu0 %v14761_v59  ;;  %v14817_v56 = vld [vmem:[%s16032_s12 + $0x1b0] ss:$40 sps:$4 sm:$0xff]   ;;  %v14818_v59 = vld [vmem:[%s16032_s12 + $0x2eec] ss:$40 sps:$4 sm:$0xff]  }
 0x3df   : > { %9863 = vmatpush1.bf16.msra.mxu1 %v14760_v60  ;;  %v14821_v60 = vld [vmem:[%s16032_s12 + $0x204] ss:$40 sps:$4 sm:$0xff]  }
 0x3e0   : > { %10503 = vmatpush1.bf16.msra.mxu0 %v14763_v62  ;;  %9865 = vmatprep.subr.bf16.mxu1 %v14764_v63  ;;  %v14820_v62 = vld [vmem:[%s16032_s12 + $0x2ee8] ss:$40 sps:$4 sm:$0xff]  }
 0x3e1   : > { %10505 = vmatprep.subr.bf16.mxu0 %v14767_v0  ;;  %v14823_v63 = vld [vmem:[%s16032_s12 + $0x200] ss:$40 sps:$4 sm:$0xff]   ;;  %v14824_v0 = vld [vmem:[%s16032_s12 + $0x2f3c] ss:$40 sps:$4 sm:$0xff]  }
 0x3e3   : > { %9867 = vmatpush1.bf16.msra.mxu1 %v14766_v2  ;;  %v14827_v2 = vld [vmem:[%s16032_s12 + $0x254] ss:$40 sps:$4 sm:$0xff]  }
 0x3e4   : > { %10507 = vmatpush1.bf16.msra.mxu0 %v14769_v6  ;;  %9869 = vmatprep.subr.bf16.mxu1 %v14770_v7  ;;  %v14826_v6 = vld [vmem:[%s16032_s12 + $0x2f38] ss:$40 sps:$4 sm:$0xff]  }
 0x3e5   : > { %10509 = vmatprep.subr.bf16.mxu0 %v14773_v9  ;;  %v14829_v7 = vld [vmem:[%s16032_s12 + $0x250] ss:$40 sps:$4 sm:$0xff]   ;;  %v14830_v9 = vld [vmem:[%s16032_s12 + $0x1c] ss:$40 sps:$4 sm:$0xff]  }
 0x3e7   : > { %9871 = vmatpush1.bf16.msra.mxu1 %v14772_v11  ;;  %v14833_v11 = vld [vmem:[%s16032_s12 + $0x2a4] ss:$40 sps:$4 sm:$0xff]  }
 0x3e8   : > { %10511 = vmatpush1.bf16.msra.mxu0 %v14775_v13  ;;  %9873 = vmatprep.subr.bf16.mxu1 %v14776_v14  ;;  %v14832_v13 = vld [vmem:[%s16032_s12 + $0x18] ss:$40 sps:$4 sm:$0xff]  }
 0x3e9   : > { %10513 = vmatprep.subr.bf16.mxu0 %v14779_v16  ;;  %v14835_v14 = vld [vmem:[%s16032_s12 + $0x2a0] ss:$40 sps:$4 sm:$0xff]   ;;  %v14836_v16 = vld [vmem:[%s16032_s12 + $0x6c] ss:$40 sps:$4 sm:$0xff]  }
 0x3eb   : > { %9875 = vmatpush1.bf16.msra.mxu1 %v14778_v1  ;;  %v14839_v1 = vld [vmem:[%s16032_s12 + $0x2f4] ss:$40 sps:$4 sm:$0xff]  }
 0x3ec   : > { %10515 = vmatpush1.bf16.msra.mxu0 %v14781_v5  ;;  %9877 = vmatprep.subr.bf16.mxu1 %v14782_v17  ;;  %v14838_v5 = vld [vmem:[%s16032_s12 + $0x68] ss:$40 sps:$4 sm:$0xff]  }
 0x3ed   : > { %11125 = vmatprep.subr.bf16.mxu0 %v14785_v18  ;;  %v14841_v17 = vld [vmem:[%s16032_s12 + $0x2f0] ss:$40 sps:$4 sm:$0xff]   ;;  %v14842_v18 = vld [vmem:[%s16032_s12 + $0xbc] ss:$40 sps:$4 sm:$0xff]  }
 0x3ee   : > { %6300 = vmatmul.mubr.f32.vlgmr.msra.gmra.mrb[2].mxu1 %v16413_v53 }
 0x3ef   : > { %7081 = vmatmul.mubr.f32.vlgmr.msra.gmra.mrb[2].mxu0 %v16454_v24  ;;  %9879 = vmatpush1.bf16.msra.mxu1 %v14784_v19  ;;  %v14845_v19 = vld [vmem:[%s16032_s12 + $0x344] ss:$40 sps:$4 sm:$0xff]  }
 0x3f0   : > { %11127 = vmatpush1.bf16.msra.mxu0 %v14787_v20  ;;  %9881 = vmatprep.subr.bf16.mxu1 %v14788_v21  ;;  %v14844_v20 = vld [vmem:[%s16032_s12 + $0xb8] ss:$40 sps:$4 sm:$0xff]  }
 0x3f1   : > { %11129 = vmatprep.subr.bf16.mxu0 %v14791_v22  ;;  %6370 = vmatprep.mubr.f32.mxu1 %v15864_v61  ;;  %v14847_v21 = vld [vmem:[%s16032_s12 + $0x340] ss:$40 sps:$4 sm:$0xff]   ;;  %v14848_v22 = vld [vmem:[%s16032_s12 + $0x10c] ss:$40 sps:$4 sm:$0xff]  }
 0x3f2   : > { %7861 = vmatprep.mubr.f32.mxu0 %v16466_v35 }
 0x3f3   : > { %9883 = vmatpush1.bf16.msra.mxu1 %v14790_v23  ;;  %v14851_v23 = vld [vmem:[%s16032_s12 + $0x394] ss:$40 sps:$4 sm:$0xff]  }
 0x3f4   : > { %11131 = vmatpush1.bf16.msra.mxu0 %v14793_v25  ;;  %9885 = vmatprep.subr.bf16.mxu1 %v14794_v27  ;;  %v14850_v25 = vld [vmem:[%s16032_s12 + $0x108] ss:$40 sps:$4 sm:$0xff]  }
 0x3f5   : > { %11133 = vmatprep.subr.bf16.mxu0 %v14797_v28  ;;  %v14853_v27 = vld [vmem:[%s16032_s12 + $0x390] ss:$40 sps:$4 sm:$0xff]   ;;  %v14857_v28 = vld [vmem:[%s16032_s12 + $0x3e4] ss:$40 sps:$4 sm:$0xff]  }
 0x3f7   : > { %9887 = vmatpush1.bf16.msra.mxu1 %v14796_v29  ;;  %v14856_v29 = vld [vmem:[%s16032_s12 + $0x158] ss:$40 sps:$4 sm:$0xff]  }
 0x3f8   : > { %11135 = vmatpush1.bf16.msra.mxu0 %v14799_v30  ;;  %9889 = vmatprep.subr.bf16.mxu1 %v14800_v34  ;;  %v14859_v30 = vld [vmem:[%s16032_s12 + $0x3e0] ss:$40 sps:$4 sm:$0xff]   ;;  %v14860_v34 = vld [vmem:[%s16032_s12 + $0x1ac] ss:$40 sps:$4 sm:$0xff]  }
 0x3f9   : > { %11137 = vmatprep.subr.bf16.mxu0 %v14803_v36  ;;  %v14863_v36 = vld [vmem:[%s16032_s12 + $0x434] ss:$40 sps:$4 sm:$0xff]  }
 0x3fb   : > { %9891 = vmatpush1.bf16.msra.mxu1 %v14802_v37  ;;  %v14862_v37 = vld [vmem:[%s16032_s12 + $0x1a8] ss:$40 sps:$4 sm:$0xff]  }
 0x3fc   : > { %11139 = vmatpush1.bf16.msra.mxu0 %v14805_v39  ;;  %9893 = vmatprep.subr.bf16.mxu1 %v14806_v42  ;;  %v14865_v39 = vld [vmem:[%s16032_s12 + $0x430] ss:$40 sps:$4 sm:$0xff]   ;;  %v14866_v42 = vld [vmem:[%s16032_s12 + $0x1fc] ss:$40 sps:$4 sm:$0xff]  }
 0x3fd   : > { %11141 = vmatprep.subr.bf16.mxu0 %v14809_v44  ;;  %v14869_v44 = vld [vmem:[%s16032_s12 + $0x484] ss:$40 sps:$4 sm:$0xff]  }
 0x3ff   : > { %9895 = vmatpush1.bf16.msra.mxu1 %v14808_v46  ;;  %v14868_v46 = vld [vmem:[%s16032_s12 + $0x1f8] ss:$40 sps:$4 sm:$0xff]  }
 0x400   : > { %11143 = vmatpush1.bf16.msra.mxu0 %v14811_v48  ;;  %9897 = vmatprep.subr.bf16.mxu1 %v14812_v50  ;;  %v14871_v48 = vld [vmem:[%s16032_s12 + $0x480] ss:$40 sps:$4 sm:$0xff]   ;;  %v14872_v50 = vld [vmem:[%s16032_s12 + $0x24c] ss:$40 sps:$4 sm:$0xff]  }
 0x401   : > { %11145 = vmatprep.subr.bf16.mxu0 %v14815_v54  ;;  %v14875_v54 = vld [vmem:[%s16032_s12 + $0x4d4] ss:$40 sps:$4 sm:$0xff]  }
 0x403   : > { %9899 = vmatpush1.bf16.msra.mxu1 %v14814_v55  ;;  %v14874_v55 = vld [vmem:[%s16032_s12 + $0x248] ss:$40 sps:$4 sm:$0xff]  }
 0x404   : > { %11147 = vmatpush1.bf16.msra.mxu0 %v14817_v56  ;;  %9901 = vmatprep.subr.bf16.mxu1 %v14818_v59  ;;  %v14877_v56 = vld [vmem:[%s16032_s12 + $0x4d0] ss:$40 sps:$4 sm:$0xff]   ;;  %v14878_v59 = vld [vmem:[%s16032_s12 + $0x29c] ss:$40 sps:$4 sm:$0xff]  }
 0x405   : > { %11149 = vmatprep.subr.bf16.mxu0 %v14821_v60  ;;  %v14881_v60 = vld [vmem:[%s16032_s12 + $0x524] ss:$40 sps:$4 sm:$0xff]  }
 0x407   : > { %9903 = vmatpush1.bf16.msra.mxu1 %v14820_v62  ;;  %v14880_v62 = vld [vmem:[%s16032_s12 + $0x298] ss:$40 sps:$4 sm:$0xff]  }
 0x408   : > { %11151 = vmatpush1.bf16.msra.mxu0 %v14823_v63  ;;  %9905 = vmatprep.subr.bf16.mxu1 %v14824_v0  ;;  %v14883_v63 = vld [vmem:[%s16032_s12 + $0x520] ss:$40 sps:$4 sm:$0xff]   ;;  %v14884_v0 = vld [vmem:[%s16032_s12 + $0x2ec] ss:$40 sps:$4 sm:$0xff]  }
 0x409   : > { %11153 = vmatprep.subr.bf16.mxu0 %v14827_v2  ;;  %v14887_v2 = vld [vmem:[%s16032_s12 + $0x574] ss:$40 sps:$4 sm:$0xff]  }
 0x40b   : > { %9907 = vmatpush1.bf16.msra.mxu1 %v14826_v6  ;;  %v14886_v6 = vld [vmem:[%s16032_s12 + $0x2e8] ss:$40 sps:$4 sm:$0xff]  }
 0x40c   : > { %11155 = vmatpush1.bf16.msra.mxu0 %v14829_v7  ;;  %10517 = vmatprep.subr.bf16.mxu1 %v14830_v9  ;;  %v14889_v7 = vld [vmem:[%s16032_s12 + $0x570] ss:$40 sps:$4 sm:$0xff]   ;;  %v14890_v9 = vld [vmem:[%s16032_s12 + $0x33c] ss:$40 sps:$4 sm:$0xff]  }
 0x40d   : > { %11157 = vmatprep.subr.bf16.mxu0 %v14833_v11  ;;  %v14893_v11 = vld [vmem:[%s16032_s12 + $0x5c4] ss:$40 sps:$4 sm:$0xff]  }
 0x40e   : > { %6371 = vmatmul.mubr.f32.vlgmr.msra.gmra.mrb[2].mxu1 %v16454_v24 }
 0x40f   : > { %10519 = vmatpush1.bf16.msra.mxu1 %v14832_v13  ;;  %7151 = vmatprep.mubr.f32.mxu1 %v16466_v35  ;;  %v14854_v35 = vld [vmem:[%s16032_s12 + $0x15c] ss:$40 sps:$4 sm:$0xff]   ;;  %v14892_v13 = vld [vmem:[%s16032_s12 + $0x338] ss:$40 sps:$4 sm:$0xff]  }
 0x410   : > { %11159 = vmatpush1.bf16.msra.mxu0 %v14835_v14  ;;  %10521 = vmatprep.subr.bf16.mxu1 %v14836_v16  ;;  %v14895_v14 = vld [vmem:[%s16032_s12 + $0x5c0] ss:$40 sps:$4 sm:$0xff]   ;;  %v14896_v16 = vld [vmem:[%s16032_s12 + $0x38c] ss:$40 sps:$4 sm:$0xff]  }
 0x411   : > { %11161 = vmatprep.subr.bf16.mxu0 %v14839_v1  ;;  %v14899_v1 = vld [vmem:[%s16032_s12 + $0x614] ss:$40 sps:$4 sm:$0xff]  }
 0x413   : > { %10523 = vmatpush1.bf16.msra.mxu1 %v14838_v5  ;;  %v14898_v5 = vld [vmem:[%s16032_s12 + $0x388] ss:$40 sps:$4 sm:$0xff]  }
 0x414   : > { %11163 = vmatpush1.bf16.msra.mxu0 %v14841_v17  ;;  %10525 = vmatprep.subr.bf16.mxu1 %v14842_v18  ;;  %v14901_v17 = vld [vmem:[%s16032_s12 + $0x610] ss:$40 sps:$4 sm:$0xff]   ;;  %v14902_v18 = vld [vmem:[%s16032_s12 + $0x3dc] ss:$40 sps:$4 sm:$0xff]  }
 0x415   : > { %11165 = vmatprep.subr.bf16.mxu0 %v14845_v19  ;;  %v14905_v19 = vld [vmem:[%s16032_s12 + $0x664] ss:$40 sps:$4 sm:$0xff]  }
 0x417   : > { %10527 = vmatpush1.bf16.msra.mxu1 %v14844_v20  ;;  %v14904_v20 = vld [vmem:[%s16032_s12 + $0x3d8] ss:$40 sps:$4 sm:$0xff]  }
 0x418   : > { %11167 = vmatpush1.bf16.msra.mxu0 %v14847_v21  ;;  %10529 = vmatprep.subr.bf16.mxu1 %v14848_v22  ;;  %v14907_v21 = vld [vmem:[%s16032_s12 + $0x660] ss:$40 sps:$4 sm:$0xff]   ;;  %v14908_v22 = vld [vmem:[%s16032_s12 + $0x42c] ss:$40 sps:$4 sm:$0xff]  }
 0x419   : > { %11169 = vmatprep.subr.bf16.mxu0 %v14851_v23  ;;  %v14911_v23 = vld [vmem:[%s16032_s12 + $0x6b4] ss:$40 sps:$4 sm:$0xff]  }
 0x41b   : > { %10531 = vmatpush1.bf16.msra.mxu1 %v14850_v25  ;;  %v14910_v25 = vld [vmem:[%s16032_s12 + $0x428] ss:$40 sps:$4 sm:$0xff]  }
 0x41c   : > { %11171 = vmatpush1.bf16.msra.mxu0 %v14853_v27  ;;  %10533 = vmatprep.subr.bf16.mxu1 %v14854_v35  ;;  %v14913_v27 = vld [vmem:[%s16032_s12 + $0x6b0] ss:$40 sps:$4 sm:$0xff]   ;;  %v14914_v35 = vld [vmem:[%s16032_s12 + $0x47c] ss:$40 sps:$4 sm:$0xff]  }
 0x41d   : > { %11173 = vmatprep.subr.bf16.mxu0 %v14857_v28  ;;  %v14917_v28 = vld [vmem:[%s16032_s12 + $0x704] ss:$40 sps:$4 sm:$0xff]  }
 0x41f   : > { %10535 = vmatpush1.bf16.msra.mxu1 %v14856_v29  ;;  %v14916_v29 = vld [vmem:[%s16032_s12 + $0x478] ss:$40 sps:$4 sm:$0xff]  }
 0x420   : > { %11175 = vmatpush1.bf16.msra.mxu0 %v14859_v30  ;;  %10537 = vmatprep.subr.bf16.mxu1 %v14860_v34  ;;  %v14919_v30 = vld [vmem:[%s16032_s12 + $0x700] ss:$40 sps:$4 sm:$0xff]   ;;  %v14920_v34 = vld [vmem:[%s16032_s12 + $0x4cc] ss:$40 sps:$4 sm:$0xff]  }
 0x421   : > { %11177 = vmatprep.subr.bf16.mxu0 %v14863_v36  ;;  %v14923_v36 = vld [vmem:[%s16032_s12 + $0x754] ss:$40 sps:$4 sm:$0xff]  }
 0x423   : > { %10539 = vmatpush1.bf16.msra.mxu1 %v14862_v37  ;;  %v14922_v37 = vld [vmem:[%s16032_s12 + $0x4c8] ss:$40 sps:$4 sm:$0xff]  }
 0x424   : > { %11179 = vmatpush1.bf16.msra.mxu0 %v14865_v39  ;;  %10541 = vmatprep.subr.bf16.mxu1 %v14866_v42  ;;  %v14925_v39 = vld [vmem:[%s16032_s12 + $0x750] ss:$40 sps:$4 sm:$0xff]   ;;  %v14926_v42 = vld [vmem:[%s16032_s12 + $0x51c] ss:$40 sps:$4 sm:$0xff]  }
 0x425   : > { %11181 = vmatprep.subr.bf16.mxu0 %v14869_v44  ;;  %v14929_v44 = vld [vmem:[%s16032_s12 + $0x7a4] ss:$40 sps:$4 sm:$0xff]  }
 0x427   : > { %10543 = vmatpush1.bf16.msra.mxu1 %v14868_v46  ;;  %v14928_v46 = vld [vmem:[%s16032_s12 + $0x518] ss:$40 sps:$4 sm:$0xff]  }
 0x428   : > { %11183 = vmatpush1.bf16.msra.mxu0 %v14871_v48  ;;  %10545 = vmatprep.subr.bf16.mxu1 %v14872_v50  ;;  %v14931_v48 = vld [vmem:[%s16032_s12 + $0x7a0] ss:$40 sps:$4 sm:$0xff]   ;;  %v14932_v50 = vld [vmem:[%s16032_s12 + $0x56c] ss:$40 sps:$4 sm:$0xff]  }
 0x429   : > { %11185 = vmatprep.subr.bf16.mxu0 %v14875_v54  ;;  %v14935_v54 = vld [vmem:[%s16032_s12 + $0x7f4] ss:$40 sps:$4 sm:$0xff]  }
 0x42b   : > { %10547 = vmatpush1.bf16.msra.mxu1 %v14874_v55  ;;  %v14934_v55 = vld [vmem:[%s16032_s12 + $0x568] ss:$40 sps:$4 sm:$0xff]  }
 0x42c   : > { %11187 = vmatpush1.bf16.msra.mxu0 %v14877_v56  ;;  %10549 = vmatprep.subr.bf16.mxu1 %v14878_v59  ;;  %v14937_v56 = vld [vmem:[%s16032_s12 + $0x7f0] ss:$40 sps:$4 sm:$0xff]   ;;  %v14938_v59 = vld [vmem:[%s16032_s12 + $0x5bc] ss:$40 sps:$4 sm:$0xff]  }
 0x42d   : > { %11189 = vmatprep.subr.bf16.mxu0 %v14881_v60  ;;  %v14941_v60 = vld [vmem:[%s16032_s12 + $0x844] ss:$40 sps:$4 sm:$0xff]  }
 0x42f   : > { %7862 = vmatmul.mubr.f32.vlgmr.msra.gmra.mrb[4].mxu0 %v16535_v49  ;;  %10551 = vmatpush1.bf16.msra.mxu1 %v14880_v62  ;;  %v14940_v62 = vld [vmem:[%s16032_s12 + $0x5b8] ss:$40 sps:$4 sm:$0xff]  }
 0x430   : > { %11191 = vmatpush1.bf16.msra.mxu0 %v14883_v63  ;;  %10553 = vmatprep.subr.bf16.mxu1 %v14884_v0  ;;  %v14944_v63 = vld [vmem:[%s16032_s12 + $0x60c] ss:$40 sps:$4 sm:$0xff]  }
 0x431   : > { %11193 = vmatprep.subr.bf16.mxu0 %v14887_v2  ;;  %7932 = vmatprep.mubr.f32.mxu0 %v16543_v58  ;;  %v14947_v0 = vld [vmem:[%s16032_s12 + $0x894] ss:$40 sps:$4 sm:$0xff]   ;;  %v14946_v2 = vld [vmem:[%s16032_s12 + $0x608] ss:$40 sps:$4 sm:$0xff]  }
 0x433   : > { %10555 = vmatpush1.bf16.msra.mxu1 %v14886_v6  ;;  %v14949_v6 = vld [vmem:[%s16032_s12 + $0x890] ss:$40 sps:$4 sm:$0xff]  }
 0x434   : > { %11195 = vmatpush1.bf16.msra.mxu0 %v14889_v7  ;;  %10557 = vmatprep.subr.bf16.mxu1 %v14890_v9  ;;  %v14953_v7 = vld [vmem:[%s16032_s12 + $0x8e4] ss:$40 sps:$4 sm:$0xff]   ;;  %v14952_v9 = vld [vmem:[%s16032_s12 + $0x658] ss:$40 sps:$4 sm:$0xff]  }
 0x435   : > { %11197 = vmatprep.subr.bf16.mxu0 %v14893_v11  ;;  %v14955_v11 = vld [vmem:[%s16032_s12 + $0x8e0] ss:$40 sps:$4 sm:$0xff]  }
 0x437   : > { %10559 = vmatpush1.bf16.msra.mxu1 %v14892_v13  ;;  %v14956_v13 = vld [vmem:[%s16032_s12 + $0x6ac] ss:$40 sps:$4 sm:$0xff]  }
 0x438   : > { %11199 = vmatpush1.bf16.msra.mxu0 %v14895_v14  ;;  %10561 = vmatprep.subr.bf16.mxu1 %v14896_v16  ;;  %v14959_v14 = vld [vmem:[%s16032_s12 + $0x934] ss:$40 sps:$4 sm:$0xff]   ;;  %v14958_v16 = vld [vmem:[%s16032_s12 + $0x6a8] ss:$40 sps:$4 sm:$0xff]  }
 0x439   : > { %11201 = vmatprep.subr.bf16.mxu0 %v14899_v1  ;;  %v14961_v1 = vld [vmem:[%s16032_s12 + $0x930] ss:$40 sps:$4 sm:$0xff]  }
 0x43b   : > { %10563 = vmatpush1.bf16.msra.mxu1 %v14898_v5  ;;  %v14962_v5 = vld [vmem:[%s16032_s12 + $0x6fc] ss:$40 sps:$4 sm:$0xff]  }
 0x43c   : > { %11203 = vmatpush1.bf16.msra.mxu0 %v14901_v17  ;;  %10565 = vmatprep.subr.bf16.mxu1 %v14902_v18  ;;  %v14965_v17 = vld [vmem:[%s16032_s12 + $0x984] ss:$40 sps:$4 sm:$0xff]   ;;  %v14964_v18 = vld [vmem:[%s16032_s12 + $0x6f8] ss:$40 sps:$4 sm:$0xff]  }
 0x43d   : > { %11205 = vmatprep.subr.bf16.mxu0 %v14905_v19  ;;  %v14967_v19 = vld [vmem:[%s16032_s12 + $0x980] ss:$40 sps:$4 sm:$0xff]  }
 0x43f   : > { %10567 = vmatpush1.bf16.msra.mxu1 %v14904_v20  ;;  %v14968_v20 = vld [vmem:[%s16032_s12 + $0x74c] ss:$40 sps:$4 sm:$0xff]  }
 0x440   : > { %11207 = vmatpush1.bf16.msra.mxu0 %v14907_v21  ;;  %10569 = vmatprep.subr.bf16.mxu1 %v14908_v22  ;;  %v14971_v21 = vld [vmem:[%s16032_s12 + $0x9d4] ss:$40 sps:$4 sm:$0xff]   ;;  %v14970_v22 = vld [vmem:[%s16032_s12 + $0x748] ss:$40 sps:$4 sm:$0xff]  }
 0x441   : > { %11209 = vmatprep.subr.bf16.mxu0 %v14911_v23  ;;  %v14973_v23 = vld [vmem:[%s16032_s12 + $0x9d0] ss:$40 sps:$4 sm:$0xff]  }
 0x443   : > { %10571 = vmatpush1.bf16.msra.mxu1 %v14910_v25  ;;  %v14974_v25 = vld [vmem:[%s16032_s12 + $0x79c] ss:$40 sps:$4 sm:$0xff]  }
 0x444   : > { %11211 = vmatpush1.bf16.msra.mxu0 %v14913_v27  ;;  %10573 = vmatprep.subr.bf16.mxu1 %v14914_v35  ;;  %v14977_v27 = vld [vmem:[%s16032_s12 + $0xa24] ss:$40 sps:$4 sm:$0xff]   ;;  %v14976_v35 = vld [vmem:[%s16032_s12 + $0x798] ss:$40 sps:$4 sm:$0xff]  }
 0x445   : > { %11213 = vmatprep.subr.bf16.mxu0 %v14917_v28  ;;  %v14979_v28 = vld [vmem:[%s16032_s12 + $0xa20] ss:$40 sps:$4 sm:$0xff]  }
 0x447   : > { %10575 = vmatpush1.bf16.msra.mxu1 %v14916_v29  ;;  %v14980_v29 = vld [vmem:[%s16032_s12 + $0x7ec] ss:$40 sps:$4 sm:$0xff]  }
 0x448   : > { %11215 = vmatpush1.bf16.msra.mxu0 %v14919_v30  ;;  %10577 = vmatprep.subr.bf16.mxu1 %v14920_v34  ;;  %v14983_v30 = vld [vmem:[%s16032_s12 + $0xa74] ss:$40 sps:$4 sm:$0xff]   ;;  %v14982_v34 = vld [vmem:[%s16032_s12 + $0x7e8] ss:$40 sps:$4 sm:$0xff]  }
 0x449   : > { %11217 = vmatprep.subr.bf16.mxu0 %v14923_v36  ;;  %v14985_v36 = vld [vmem:[%s16032_s12 + $0xa70] ss:$40 sps:$4 sm:$0xff]  }
 0x44b   : > { %10579 = vmatpush1.bf16.msra.mxu1 %v14922_v37  ;;  %v14986_v37 = vld [vmem:[%s16032_s12 + $0x83c] ss:$40 sps:$4 sm:$0xff]  }
 0x44c   : > { %11219 = vmatpush1.bf16.msra.mxu0 %v14925_v39  ;;  %10581 = vmatprep.subr.bf16.mxu1 %v14926_v42  ;;  %v14989_v39 = vld [vmem:[%s16032_s12 + $0xac4] ss:$40 sps:$4 sm:$0xff]   ;;  %v14988_v42 = vld [vmem:[%s16032_s12 + $0x838] ss:$40 sps:$4 sm:$0xff]  }
 0x44d   : > { %11221 = vmatprep.subr.bf16.mxu0 %v14929_v44  ;;  %v14991_v44 = vld [vmem:[%s16032_s12 + $0xac0] ss:$40 sps:$4 sm:$0xff]  }
 0x44e   : > { %7152 = vmatmul.mubr.f32.vlgmr.msra.gmra.mrb[4].mxu1 %v16535_v49  ;;  %v14943_v49 = vld [vmem:[%s16032_s12 + $0x840] ss:$40 sps:$4 sm:$0xff]  }
 0x44f   : > { %10583 = vmatpush1.bf16.msra.mxu1 %v14928_v46  ;;  %7222 = vmatprep.mubr.f32.mxu1 %v16543_v58  ;;  %v14950_v58 = vld [vmem:[%s16032_s12 + $0x65c] ss:$40 sps:$4 sm:$0xff]   ;;  %v14992_v46 = vld [vmem:[%s16032_s12 + $0x88c] ss:$40 sps:$4 sm:$0xff]  }
 0x450   : > { %11223 = vmatpush1.bf16.msra.mxu0 %v14931_v48  ;;  %10585 = vmatprep.subr.bf16.mxu1 %v14932_v50  ;;  %v14995_v48 = vld [vmem:[%s16032_s12 + $0xb14] ss:$40 sps:$4 sm:$0xff]   ;;  %v14994_v50 = vld [vmem:[%s16032_s12 + $0x888] ss:$40 sps:$4 sm:$0xff]  }
 0x451   : > { %11225 = vmatprep.subr.bf16.mxu0 %v14935_v54  ;;  %v14997_v54 = vld [vmem:[%s16032_s12 + $0xb10] ss:$40 sps:$4 sm:$0xff]  }
 0x453   : > { %10587 = vmatpush1.bf16.msra.mxu1 %v14934_v55  ;;  %v14998_v55 = vld [vmem:[%s16032_s12 + $0x8dc] ss:$40 sps:$4 sm:$0xff]  }
 0x454   : > { %11227 = vmatpush1.bf16.msra.mxu0 %v14937_v56  ;;  %10589 = vmatprep.subr.bf16.mxu1 %v14938_v59  ;;  %v15001_v56 = vld [vmem:[%s16032_s12 + $0xb64] ss:$40 sps:$4 sm:$0xff]   ;;  %v15000_v59 = vld [vmem:[%s16032_s12 + $0x8d8] ss:$40 sps:$4 sm:$0xff]  }
 0x455   : > { %11229 = vmatprep.subr.bf16.mxu0 %v14941_v60  ;;  %v15003_v60 = vld [vmem:[%s16032_s12 + $0xb60] ss:$40 sps:$4 sm:$0xff]  }
 0x457   : > { %10591 = vmatpush1.bf16.msra.mxu1 %v14940_v62  ;;  %v15004_v62 = vld [vmem:[%s16032_s12 + $0x92c] ss:$40 sps:$4 sm:$0xff]  }
 0x458   : > { %11231 = vmatpush1.bf16.msra.mxu0 %v14943_v49  ;;  %10593 = vmatprep.subr.bf16.mxu1 %v14944_v63  ;;  %v15007_v49 = vld [vmem:[%s16032_s12 + $0xbb4] ss:$40 sps:$4 sm:$0xff]   ;;  %v15006_v63 = vld [vmem:[%s16032_s12 + $0x928] ss:$40 sps:$4 sm:$0xff]  }
 0x459   : > { %11233 = vmatprep.subr.bf16.mxu0 %v14947_v0  ;;  %v15009_v0 = vld [vmem:[%s16032_s12 + $0xbb0] ss:$40 sps:$4 sm:$0xff]  }
 0x45b   : > { %10595 = vmatpush1.bf16.msra.mxu1 %v14946_v2  ;;  %v15010_v2 = vld [vmem:[%s16032_s12 + $0x97c] ss:$40 sps:$4 sm:$0xff]  }
 0x45c   : > { %11235 = vmatpush1.bf16.msra.mxu0 %v14949_v6  ;;  %10597 = vmatprep.subr.bf16.mxu1 %v14950_v58  ;;  %v15013_v6 = vld [vmem:[%s16032_s12 + $0xc04] ss:$40 sps:$4 sm:$0xff]   ;;  %v15012_v58 = vld [vmem:[%s16032_s12 + $0x978] ss:$40 sps:$4 sm:$0xff]  }
 0x45d   : > { %11237 = vmatprep.subr.bf16.mxu0 %v14953_v7  ;;  %v15015_v7 = vld [vmem:[%s16032_s12 + $0xc00] ss:$40 sps:$4 sm:$0xff]  }
 0x45f   : > { %10599 = vmatpush1.bf16.msra.mxu1 %v14952_v9  ;;  %v15016_v9 = vld [vmem:[%s16032_s12 + $0x9cc] ss:$40 sps:$4 sm:$0xff]  }
 0x460   : > { %11239 = vmatpush1.bf16.msra.mxu0 %v14955_v11  ;;  %10601 = vmatprep.subr.bf16.mxu1 %v14956_v13  ;;  %v15019_v11 = vld [vmem:[%s16032_s12 + $0xc54] ss:$40 sps:$4 sm:$0xff]   ;;  %v15018_v13 = vld [vmem:[%s16032_s12 + $0x9c8] ss:$40 sps:$4 sm:$0xff]  }
 0x461   : > { %11241 = vmatprep.subr.bf16.mxu0 %v14959_v14  ;;  %v15021_v14 = vld [vmem:[%s16032_s12 + $0xc50] ss:$40 sps:$4 sm:$0xff]  }
 0x463   : > { %10603 = vmatpush1.bf16.msra.mxu1 %v14958_v16  ;;  %v15022_v16 = vld [vmem:[%s16032_s12 + $0xa1c] ss:$40 sps:$4 sm:$0xff]  }
 0x464   : > { %11243 = vmatpush1.bf16.msra.mxu0 %v14961_v1  ;;  %10605 = vmatprep.subr.bf16.mxu1 %v14962_v5  ;;  %v15025_v1 = vld [vmem:[%s16032_s12 + $0xca4] ss:$40 sps:$4 sm:$0xff]   ;;  %v15024_v5 = vld [vmem:[%s16032_s12 + $0xa18] ss:$40 sps:$4 sm:$0xff]  }
 0x465   : > { %11245 = vmatprep.subr.bf16.mxu0 %v14965_v17  ;;  %v15027_v17 = vld [vmem:[%s16032_s12 + $0xca0] ss:$40 sps:$4 sm:$0xff]  }
 0x467   : > { %10607 = vmatpush1.bf16.msra.mxu1 %v14964_v18  ;;  %v15028_v18 = vld [vmem:[%s16032_s12 + $0xa6c] ss:$40 sps:$4 sm:$0xff]  }
 0x468   : > { %11247 = vmatpush1.bf16.msra.mxu0 %v14967_v19  ;;  %10609 = vmatprep.subr.bf16.mxu1 %v14968_v20  ;;  %v15031_v19 = vld [vmem:[%s16032_s12 + $0xcf4] ss:$40 sps:$4 sm:$0xff]   ;;  %v15030_v20 = vld [vmem:[%s16032_s12 + $0xa68] ss:$40 sps:$4 sm:$0xff]  }
 0x469   : > { %11249 = vmatprep.subr.bf16.mxu0 %v14971_v21  ;;  %v15033_v21 = vld [vmem:[%s16032_s12 + $0xcf0] ss:$40 sps:$4 sm:$0xff]  }
 0x46b   : > { %10611 = vmatpush1.bf16.msra.mxu1 %v14970_v22  ;;  %v15034_v22 = vld [vmem:[%s16032_s12 + $0xabc] ss:$40 sps:$4 sm:$0xff]  }
 0x46c   : > { %11251 = vmatpush1.bf16.msra.mxu0 %v14973_v23  ;;  %10613 = vmatprep.subr.bf16.mxu1 %v14974_v25  ;;  %v15037_v23 = vld [vmem:[%s16032_s12 + $0xd44] ss:$40 sps:$4 sm:$0xff]   ;;  %v15036_v25 = vld [vmem:[%s16032_s12 + $0xab8] ss:$40 sps:$4 sm:$0xff]  }
 0x46d   : > { %11253 = vmatprep.subr.bf16.mxu0 %v14977_v27  ;;  %v15040_v27 = vld [vmem:[%s16032_s12 + $0xb0c] ss:$40 sps:$4 sm:$0xff]  }
 0x46f   : > { %7933 = vmatmul.mubr.f32.vlgmr.msra.gmra.mrb[4].mxu0 %v16609_v10  ;;  %10615 = vmatpush1.bf16.msra.mxu1 %v14976_v35  ;;  %v15043_v35 = vld [vmem:[%s16032_s12 + $0xd94] ss:$40 sps:$4 sm:$0xff]  }
 0x470   : > { %11255 = vmatpush1.bf16.msra.mxu0 %v14979_v28  ;;  %10617 = vmatprep.subr.bf16.mxu1 %v14980_v29  ;;  %v15042_v28 = vld [vmem:[%s16032_s12 + $0xb08] ss:$40 sps:$4 sm:$0xff]  }
 0x471   : > { %11257 = vmatprep.subr.bf16.mxu0 %v14983_v30  ;;  %8003 = vmatprep.mubr.f32.mxu0 %v16617_v15  ;;  %v15045_v29 = vld [vmem:[%s16032_s12 + $0xd90] ss:$40 sps:$4 sm:$0xff]   ;;  %v15049_v30 = vld [vmem:[%s16032_s12 + $0xde4] ss:$40 sps:$4 sm:$0xff]  }
 0x473   : > { %10619 = vmatpush1.bf16.msra.mxu1 %v14982_v34  ;;  %v15048_v34 = vld [vmem:[%s16032_s12 + $0xb58] ss:$40 sps:$4 sm:$0xff]  }
 0x474   : > { %11259 = vmatpush1.bf16.msra.mxu0 %v14985_v36  ;;  %10621 = vmatprep.subr.bf16.mxu1 %v14986_v37  ;;  %v15051_v36 = vld [vmem:[%s16032_s12 + $0xde0] ss:$40 sps:$4 sm:$0xff]   ;;  %v15052_v37 = vld [vmem:[%s16032_s12 + $0xbac] ss:$40 sps:$4 sm:$0xff]  }
 0x475   : > { %11261 = vmatprep.subr.bf16.mxu0 %v14989_v39  ;;  %v15055_v39 = vld [vmem:[%s16032_s12 + $0xe34] ss:$40 sps:$4 sm:$0xff]  }
 0x477   : > { %10623 = vmatpush1.bf16.msra.mxu1 %v14988_v42  ;;  %v15054_v42 = vld [vmem:[%s16032_s12 + $0xba8] ss:$40 sps:$4 sm:$0xff]  }
 0x478   : > { %11263 = vmatpush1.bf16.msra.mxu0 %v14991_v44  ;;  %10625 = vmatprep.subr.bf16.mxu1 %v14992_v46  ;;  %v15057_v44 = vld [vmem:[%s16032_s12 + $0xe30] ss:$40 sps:$4 sm:$0xff]   ;;  %v15058_v46 = vld [vmem:[%s16032_s12 + $0xbfc] ss:$40 sps:$4 sm:$0xff]  }
 0x479   : > { %11265 = vmatprep.subr.bf16.mxu0 %v14995_v48  ;;  %v15061_v48 = vld [vmem:[%s16032_s12 + $0xe84] ss:$40 sps:$4 sm:$0xff]  }
 0x47b   : > { %10627 = vmatpush1.bf16.msra.mxu1 %v14994_v50  ;;  %v15060_v50 = vld [vmem:[%s16032_s12 + $0xbf8] ss:$40 sps:$4 sm:$0xff]  }
 0x47c   : > { %11267 = vmatpush1.bf16.msra.mxu0 %v14997_v54  ;;  %10629 = vmatprep.subr.bf16.mxu1 %v14998_v55  ;;  %v15063_v54 = vld [vmem:[%s16032_s12 + $0xe80] ss:$40 sps:$4 sm:$0xff]   ;;  %v15064_v55 = vld [vmem:[%s16032_s12 + $0xc4c] ss:$40 sps:$4 sm:$0xff]  }
 0x47d   : > { %11269 = vmatprep.subr.bf16.mxu0 %v15001_v56  ;;  %v15067_v56 = vld [vmem:[%s16032_s12 + $0xed4] ss:$40 sps:$4 sm:$0xff]  }
 0x47f   : > { %10631 = vmatpush1.bf16.msra.mxu1 %v15000_v59  ;;  %v15066_v59 = vld [vmem:[%s16032_s12 + $0xc48] ss:$40 sps:$4 sm:$0xff]  }
 0x480   : > { %11271 = vmatpush1.bf16.msra.mxu0 %v15003_v60  ;;  %10633 = vmatprep.subr.bf16.mxu1 %v15004_v62  ;;  %v15069_v60 = vld [vmem:[%s16032_s12 + $0xed0] ss:$40 sps:$4 sm:$0xff]   ;;  %v15070_v62 = vld [vmem:[%s16032_s12 + $0xc9c] ss:$40 sps:$4 sm:$0xff]  }
 0x481   : > { %11273 = vmatprep.subr.bf16.mxu0 %v15007_v49  ;;  %v15073_v49 = vld [vmem:[%s16032_s12 + $0xf24] ss:$40 sps:$4 sm:$0xff]  }
 0x483   : > { %10635 = vmatpush1.bf16.msra.mxu1 %v15006_v63  ;;  %v15072_v63 = vld [vmem:[%s16032_s12 + $0xc98] ss:$40 sps:$4 sm:$0xff]  }
 0x484   : > { %11275 = vmatpush1.bf16.msra.mxu0 %v15009_v0  ;;  %10637 = vmatprep.subr.bf16.mxu1 %v15010_v2  ;;  %v15075_v0 = vld [vmem:[%s16032_s12 + $0xf20] ss:$40 sps:$4 sm:$0xff]   ;;  %v15076_v2 = vld [vmem:[%s16032_s12 + $0xcec] ss:$40 sps:$4 sm:$0xff]  }
 0x485   : > { %11277 = vmatprep.subr.bf16.mxu0 %v15013_v6  ;;  %v15079_v6 = vld [vmem:[%s16032_s12 + $0xf74] ss:$40 sps:$4 sm:$0xff]  }
 0x487   : > { %10639 = vmatpush1.bf16.msra.mxu1 %v15012_v58  ;;  %v15078_v58 = vld [vmem:[%s16032_s12 + $0xce8] ss:$40 sps:$4 sm:$0xff]  }
 0x488   : > { %11279 = vmatpush1.bf16.msra.mxu0 %v15015_v7  ;;  %10641 = vmatprep.subr.bf16.mxu1 %v15016_v9  ;;  %v15081_v7 = vld [vmem:[%s16032_s12 + $0xf70] ss:$40 sps:$4 sm:$0xff]   ;;  %v15082_v9 = vld [vmem:[%s16032_s12 + $0xd3c] ss:$40 sps:$4 sm:$0xff]  }
 0x489   : > { %11281 = vmatprep.subr.bf16.mxu0 %v15019_v11  ;;  %v15085_v11 = vld [vmem:[%s16032_s12 + $0xfc4] ss:$40 sps:$4 sm:$0xff]  }
 0x48b   : > { %10643 = vmatpush1.bf16.msra.mxu1 %v15018_v13  ;;  %v15084_v13 = vld [vmem:[%s16032_s12 + $0xd38] ss:$40 sps:$4 sm:$0xff]  }
 0x48c   : > { %11283 = vmatpush1.bf16.msra.mxu0 %v15021_v14  ;;  %10645 = vmatprep.subr.bf16.mxu1 %v15022_v16  ;;  %v15087_v14 = vld [vmem:[%s16032_s12 + $0xfc0] ss:$40 sps:$4 sm:$0xff]   ;;  %v15088_v16 = vld [vmem:[%s16032_s12 + $0xd8c] ss:$40 sps:$4 sm:$0xff]  }
 0x48d   : > { %11285 = vmatprep.subr.bf16.mxu0 %v15025_v1  ;;  %v15091_v1 = vld [vmem:[%s16032_s12 + $0x1014] ss:$40 sps:$4 sm:$0xff]  }
 0x48e   : > { %7223 = vmatmul.mubr.f32.vlgmr.msra.gmra.mrb[4].mxu1 %v16609_v10  ;;  %v15039_v10 = vld [vmem:[%s16032_s12 + $0xd40] ss:$40 sps:$4 sm:$0xff]  }
 0x48f   : > { %10647 = vmatpush1.bf16.msra.mxu1 %v15024_v5  ;;  %7293 = vmatprep.mubr.f32.mxu1 %v16617_v15  ;;  %v15046_v15 = vld [vmem:[%s16032_s12 + $0xb5c] ss:$40 sps:$4 sm:$0xff]   ;;  %v15090_v5 = vld [vmem:[%s16032_s12 + $0xd88] ss:$40 sps:$4 sm:$0xff]  }
 0x490   : > { %11287 = vmatpush1.bf16.msra.mxu0 %v15027_v17  ;;  %10649 = vmatprep.subr.bf16.mxu1 %v15028_v18  ;;  %v15093_v17 = vld [vmem:[%s16032_s12 + $0x1010] ss:$40 sps:$4 sm:$0xff]   ;;  %v15094_v18 = vld [vmem:[%s16032_s12 + $0xddc] ss:$40 sps:$4 sm:$0xff]  }
 0x491   : > { %11289 = vmatprep.subr.bf16.mxu0 %v15031_v19  ;;  %v15097_v19 = vld [vmem:[%s16032_s12 + $0x1064] ss:$40 sps:$4 sm:$0xff]  }
 0x493   : > { %10651 = vmatpush1.bf16.msra.mxu1 %v15030_v20  ;;  %v4925_v20 = vsub.s32 4, %v16742_v31 }
 0x494   : > { %11291 = vmatpush1.bf16.msra.mxu0 %v15033_v21  ;;  %10653 = vmatprep.subr.bf16.mxu1 %v15034_v22  ;;  %v15096_v21 = vld [vmem:[%s16032_s12 + $0xdd8] ss:$40 sps:$4 sm:$0xff]  }
 0x495   : > { %11293 = vmatprep.subr.bf16.mxu0 %v15037_v23  ;;  %v15099_v22 = vld [vmem:[%s16032_s12 + $0x1060] ss:$40 sps:$4 sm:$0xff]   ;;  %v4929_v23 = vsub.s32 5, %v16742_v31 }
 0x497   : > { %10655 = vmatpush1.bf16.msra.mxu1 %v15036_v25  ;;  %v15100_v25 = vld [vmem:[%s16032_s12 + $0xe2c] ss:$40 sps:$4 sm:$0xff]  }
 0x498   : > { %11295 = vmatpush1.bf16.msra.mxu0 %v15039_v10  ;;  %10657 = vmatprep.subr.bf16.mxu1 %v15040_v27  ;;  %v15103_v10 = vld [vmem:[%s16032_s12 + $0x10b4] ss:$40 sps:$4 sm:$0xff]   ;;  %v17390_v27 = vld [vmem:[%s16038_s23] sm:$0xff] }
 0x499   : > { %11297 = vmatprep.subr.bf16.mxu0 %v15043_v35  ;;  %v4926_v35 = vrot.slane %v17390_v27, %v4925_v20  ;;  %v4921_v20 = vsub.s32 3, %v16742_v31 }
 0x49b   : > { %10659 = vmatpush1.bf16.msra.mxu1 %v15042_v28  ;;  %v4930_v28 = vrot.slane %v17390_v27, %v4929_v23 }
 0x49c   : > { %11299 = vmatpush1.bf16.msra.mxu0 %v15045_v29  ;;  %10661 = vmatprep.subr.bf16.mxu1 %v15046_v15  ;;  %v15102_v29 = vld [vmem:[%s16032_s12 + $0xe28] ss:$40 sps:$4 sm:$0xff]  }
 0x49d   : > { %11301 = vmatprep.subr.bf16.mxu0 %v15049_v30  ;;  %v15105_v15 = vld [vmem:[%s16032_s12 + $0x10b0] ss:$40 sps:$4 sm:$0xff]   ;;  %v15106_v30 = vld [vmem:[%s16032_s12 + $0xe7c] ss:$40 sps:$4 sm:$0xff]  }
 0x49f   : > { %10663 = vmatpush1.bf16.msra.mxu1 %v15048_v34  ;;  %v15109_v34 = vld [vmem:[%s16032_s12 + $0x1104] ss:$40 sps:$4 sm:$0xff]  }
 0x4a0   : > { %11303 = vmatpush1.bf16.msra.mxu0 %v15051_v36  ;;  %10665 = vmatprep.subr.bf16.mxu1 %v15052_v37 }
 0x4a1   : > { %11305 = vmatprep.subr.bf16.mxu0 %v15055_v39 }
 0x4a3   : > { %10667 = vmatpush1.bf16.msra.mxu1 %v15054_v42 }
 0x4a4   : > { %11307 = vmatpush1.bf16.msra.mxu0 %v15057_v44  ;;  %10669 = vmatprep.subr.bf16.mxu1 %v15058_v46  ;;  %v15108_v44 = vld [vmem:[%s16032_s12 + $0xe78] ss:$40 sps:$4 sm:$0xff]  }
 0x4a5   : > { %11309 = vmatprep.subr.bf16.mxu0 %v15061_v48  ;;  %v15111_v46 = vld [vmem:[%s16032_s12 + $0x1100] ss:$40 sps:$4 sm:$0xff]  }
 0x4a7   : > { %10671 = vmatpush1.bf16.msra.mxu1 %v15060_v50  ;;  %v15112_v50 = vld [vmem:[%s16032_s12 + $0xecc] ss:$40 sps:$4 sm:$0xff]  }
 0x4a8   : > { %11311 = vmatpush1.bf16.msra.mxu0 %v15063_v54  ;;  %10673 = vmatprep.subr.bf16.mxu1 %v15064_v55  ;;  %v15115_v54 = vld [vmem:[%s16032_s12 + $0x1154] ss:$40 sps:$4 sm:$0xff]  }
 0x4a9   : > { %11313 = vmatprep.subr.bf16.mxu0 %v15067_v56  ;;  %v15114_v56 = vld [vmem:[%s16032_s12 + $0xec8] ss:$40 sps:$4 sm:$0xff]  }
 0x4ab   : > { %10675 = vmatpush1.bf16.msra.mxu1 %v15066_v59  ;;  %v15117_v59 = vld [vmem:[%s16032_s12 + $0x1150] ss:$40 sps:$4 sm:$0xff]  }
 0x4ac   : > { %11315 = vmatpush1.bf16.msra.mxu0 %v15069_v60  ;;  %10677 = vmatprep.subr.bf16.mxu1 %v15070_v62  ;;  %v15118_v60 = vld [vmem:[%s16032_s12 + $0xf1c] ss:$40 sps:$4 sm:$0xff]  }
 0x4ad   : > { %11317 = vmatprep.subr.bf16.mxu0 %v15073_v49  ;;  %v15121_v62 = vld [vmem:[%s16032_s12 + $0x11a4] ss:$40 sps:$4 sm:$0xff]   ;;  %v15120_v49 = vld [vmem:[%s16032_s12 + $0xf18] ss:$40 sps:$4 sm:$0xff]  }
 0x4af   : > { %8004 = vmatmul.mubr.f32.vlgmr.msra.gmra.mrb[4].mxu0 %v16683_v33  ;;  %10679 = vmatpush1.bf16.msra.mxu1 %v15072_v63  ;;  %v15123_v63 = vld [vmem:[%s16032_s12 + $0x11a0] ss:$40 sps:$4 sm:$0xff]  }
 0x4b0   : > { %11319 = vmatpush1.bf16.msra.mxu0 %v15075_v0  ;;  %10681 = vmatprep.subr.bf16.mxu1 %v15076_v2  ;;  %v15124_v0 = vld [vmem:[%s16032_s12 + $0xf6c] ss:$40 sps:$4 sm:$0xff]  }
 0x4b1   : > { %11321 = vmatprep.subr.bf16.mxu0 %v15079_v6  ;;  %8074 = vmatprep.mubr.f32.mxu0 %v16691_v40  ;;  %v15127_v2 = vld [vmem:[%s16032_s12 + $0x11f4] ss:$40 sps:$4 sm:$0xff]   ;;  %v15126_v6 = vld [vmem:[%s16032_s12 + $0xf68] ss:$40 sps:$4 sm:$0xff]  }
 0x4b3   : > { %10683 = vmatpush1.bf16.msra.mxu1 %v15078_v58  ;;  %v15129_v58 = vld [vmem:[%s16032_s12 + $0x11f0] ss:$40 sps:$4 sm:$0xff]  }
 0x4b4   : > { %11323 = vmatpush1.bf16.msra.mxu0 %v15081_v7  ;;  %10685 = vmatprep.subr.bf16.mxu1 %v15082_v9  ;;  %v15130_v7 = vld [vmem:[%s16032_s12 + $0xfbc] ss:$40 sps:$4 sm:$0xff]  }
 0x4b5   : > { %11325 = vmatprep.subr.bf16.mxu0 %v15085_v11  ;;  %v15133_v9 = vld [vmem:[%s16032_s12 + $0x1244] ss:$40 sps:$4 sm:$0xff]   ;;  %v15132_v11 = vld [vmem:[%s16032_s12 + $0xfb8] ss:$40 sps:$4 sm:$0xff]  }
 0x4b7   : > { %10687 = vmatpush1.bf16.msra.mxu1 %v15084_v13  ;;  %v15136_v13 = vld [vmem:[%s16032_s12 + $0x100c] ss:$40 sps:$4 sm:$0xff]  }
 0x4b8   : > { %11327 = vmatpush1.bf16.msra.mxu0 %v15087_v14  ;;  %10689 = vmatprep.subr.bf16.mxu1 %v15088_v16  ;;  %v15139_v14 = vld [vmem:[%s16032_s12 + $0x1294] ss:$40 sps:$4 sm:$0xff]   ;;  %v15138_v16 = vld [vmem:[%s16032_s12 + $0x1008] ss:$40 sps:$4 sm:$0xff]  }
 0x4b9   : > { %11329 = vmatprep.subr.bf16.mxu0 %v15091_v1  ;;  %v15141_v1 = vld [vmem:[%s16032_s12 + $0x1290] ss:$40 sps:$4 sm:$0xff]  }
 0x4bb   : > { %10691 = vmatpush1.bf16.msra.mxu1 %v15090_v5  ;;  %v15145_v5 = vld [vmem:[%s16032_s12 + $0x12e4] ss:$40 sps:$4 sm:$0xff]  }
 0x4bc   : > { %11331 = vmatpush1.bf16.msra.mxu0 %v15093_v17  ;;  %10693 = vmatprep.subr.bf16.mxu1 %v15094_v18  ;;  %v4917_v17 = vsub.s32 2, %v16742_v31  ;;  %v15144_v18 = vld [vmem:[%s16032_s12 + $0x1058] ss:$40 sps:$4 sm:$0xff]  }
 0x4bd   : > { %11333 = vmatprep.subr.bf16.mxu0 %v15097_v19  ;;  %v15147_v19 = vld [vmem:[%s16032_s12 + $0x12e0] ss:$40 sps:$4 sm:$0xff]  }
 0x4be   : > { %v4918_v23 = vrot.slane %v17390_v27, %v4917_v17  ;;  %v15196_v17 = vld [vmem:[%s16032_s12 + $0x132c] ss:$40 sps:$4 sm:$0xff]  }
 0x4bf   : > { %10695 = vmatpush1.bf16.msra.mxu1 %v15096_v21  ;;  %v15148_v21 = vld [vmem:[%s16032_s12 + $0x10ac] ss:$40 sps:$4 sm:$0xff]  }
 0x4c0   : > { %11335 = vmatpush1.bf16.msra.mxu0 %v15099_v22  ;;  %10697 = vmatprep.subr.bf16.mxu1 %v15100_v25  ;;  %v15151_v22 = vld [vmem:[%s16032_s12 + $0x1334] ss:$40 sps:$4 sm:$0xff]   ;;  %v4922_v25 = vrot.slane %v17390_v27, %v4921_v20  ;;  %v15156_v27 = vld [vmem:[%s16032_s12 + $0x10f8] ss:$40 sps:$4 sm:$0xff]  }
 0x4c1   : > { %11337 = vmatprep.subr.bf16.mxu0 %v15103_v10  ;;  %v15150_v10 = vld [vmem:[%s16032_s12 + $0x10a8] ss:$40 sps:$4 sm:$0xff]  }
 0x4c2   : > { %v7082_v36 = vpop.f32.mrb[2].mxu0  ;;  %v15201_v20 = vld [vmem:[%s16032_s12 + $0x15b0] ss:$40 sps:$4 sm:$0xff]  }
 0x4c3   : > { %v17398_v37 = vadd.f32 %v7082_v36, %v4926_v35  ;;  %v7084_v39 = vpop.f32.mrb[3].mxu0  ;;  %10699 = vmatpush1.bf16.msra.mxu1 %v15102_v29  ;;  %v15153_v35 = vld [vmem:[%s16032_s12 + $0x1330] ss:$40 sps:$4 sm:$0xff]   ;;  %v15157_v29 = vld [vmem:[%s16032_s12 + $0x1384] ss:$40 sps:$4 sm:$0xff]  }
 0x4c4   : > { %v17400_v42 = vadd.f32 %v7084_v39, %v4930_v28  ;;  %11339 = vmatpush1.bf16.msra.mxu0 %v15105_v15  ;;  %10701 = vmatprep.subr.bf16.mxu1 %v15106_v30  ;;  %v15154_v28 = vld [vmem:[%s16032_s12 + $0x10fc] ss:$40 sps:$4 sm:$0xff]   ;;  %v15159_v39 = vld [vmem:[%s16032_s12 + $0x1380] ss:$40 sps:$4 sm:$0xff]  }
 0x4c5   : > { %v8511_v48 = vmax.f32 %v17398_v37, 0.0  ;;  %11341 = vmatprep.subr.bf16.mxu0 %v15109_v34 }
 0x4c6   : > { %v8512_v55 = vmax.f32 %v17400_v42, 0.0 }
 0x4c7   : > { %8528 = vst [vmem:[%s16777_s1 + $0x20] sm:$0xff] %v8511_v48  ;;  %8538 = vst [vmem:[%s16050_s24 + $0x20] sm:$0xff] %v8511_v48  ;;  %10703 = vmatpush1.bf16.msra.mxu1 %v15108_v44  ;;  %v15163_v48 = vld [vmem:[%s16032_s12 + $0x13d4] ss:$40 sps:$4 sm:$0xff]  }
 0x4c8   : > { %8529 = vst [vmem:[%s16777_s1 + $0x28] sm:$0xff] %v8512_v55  ;;  %8539 = vst [vmem:[%s16050_s24 + $0x28] sm:$0xff] %v8512_v55  ;;  %11343 = vmatpush1.bf16.msra.mxu0 %v15111_v46  ;;  %10705 = vmatprep.subr.bf16.mxu1 %v15112_v50  ;;  %v15160_v46 = vld [vmem:[%s16032_s12 + $0x114c] ss:$40 sps:$4 sm:$0xff]   ;;  %v15165_v55 = vld [vmem:[%s16032_s12 + $0x13d0] ss:$40 sps:$4 sm:$0xff]  }
 0x4c9   : > { %11345 = vmatprep.subr.bf16.mxu0 %v15115_v54  ;;  %v15162_v54 = vld [vmem:[%s16032_s12 + $0x1148] ss:$40 sps:$4 sm:$0xff]   ;;  %8552 = vst [vmem:[%s16050_s24 + $0x20] sm:$0xff] (!%p8688_p6), %v17398_v37  ;;  %8553 = vst [vmem:[%s16050_s24 + $0x28] sm:$0xff] (!%p8688_p6), %v17400_v42 }
 0x4cb   : > { %10707 = vmatpush1.bf16.msra.mxu1 %v15114_v56  ;;  %v15166_v56 = vld [vmem:[%s16032_s12 + $0x119c] ss:$40 sps:$4 sm:$0xff]  }
 0x4cc   : > { %11347 = vmatpush1.bf16.msra.mxu0 %v15117_v59  ;;  %10709 = vmatprep.subr.bf16.mxu1 %v15118_v60  ;;  %v15169_v59 = vld [vmem:[%s16032_s12 + $0x1424] ss:$40 sps:$4 sm:$0xff]   ;;  %v15168_v60 = vld [vmem:[%s16032_s12 + $0x1198] ss:$40 sps:$4 sm:$0xff]  }
 0x4cd   : > { %11349 = vmatprep.subr.bf16.mxu0 %v15121_v62  ;;  %v15171_v62 = vld [vmem:[%s16032_s12 + $0x1420] ss:$40 sps:$4 sm:$0xff]  }
 0x4ce   : > { %7294 = vmatmul.mubr.f32.vlgmr.msra.gmra.mrb[4].mxu1 %v16683_v33  ;;  %v15135_v33 = vld [vmem:[%s16032_s12 + $0x1240] ss:$40 sps:$4 sm:$0xff]  }
 0x4cf   : > { %10711 = vmatpush1.bf16.msra.mxu1 %v15120_v49  ;;  %7364 = vmatprep.mubr.f32.mxu1 %v16691_v40  ;;  %v15142_v40 = vld [vmem:[%s16032_s12 + $0x105c] ss:$40 sps:$4 sm:$0xff]   ;;  %v15172_v49 = vld [vmem:[%s16032_s12 + $0x11ec] ss:$40 sps:$4 sm:$0xff]  }
 0x4d0   : > { %11351 = vmatpush1.bf16.msra.mxu0 %v15123_v63  ;;  %10713 = vmatprep.subr.bf16.mxu1 %v15124_v0  ;;  %v15175_v63 = vld [vmem:[%s16032_s12 + $0x1474] ss:$40 sps:$4 sm:$0xff]   ;;  %v15174_v0 = vld [vmem:[%s16032_s12 + $0x11e8] ss:$40 sps:$4 sm:$0xff]  }
 0x4d1   : > { %11353 = vmatprep.subr.bf16.mxu0 %v15127_v2  ;;  %v15177_v2 = vld [vmem:[%s16032_s12 + $0x1470] ss:$40 sps:$4 sm:$0xff]  }
 0x4d3   : > { %10715 = vmatpush1.bf16.msra.mxu1 %v15126_v6  ;;  %v15178_v6 = vld [vmem:[%s16032_s12 + $0x123c] ss:$40 sps:$4 sm:$0xff]  }
 0x4d4   : > { %11355 = vmatpush1.bf16.msra.mxu0 %v15129_v58  ;;  %10717 = vmatprep.subr.bf16.mxu1 %v15130_v7  ;;  %v15181_v58 = vld [vmem:[%s16032_s12 + $0x14c4] ss:$40 sps:$4 sm:$0xff]   ;;  %v15180_v7 = vld [vmem:[%s16032_s12 + $0x1238] ss:$40 sps:$4 sm:$0xff]  }
 0x4d5   : > { %11357 = vmatprep.subr.bf16.mxu0 %v15133_v9  ;;  %v15183_v9 = vld [vmem:[%s16032_s12 + $0x14c0] ss:$40 sps:$4 sm:$0xff]  }
 0x4d7   : > { %10719 = vmatpush1.bf16.msra.mxu1 %v15132_v11  ;;  %v15184_v11 = vld [vmem:[%s16032_s12 + $0x128c] ss:$40 sps:$4 sm:$0xff]  }
 0x4d8   : > { %11359 = vmatpush1.bf16.msra.mxu0 %v15135_v33  ;;  %10721 = vmatprep.subr.bf16.mxu1 %v15136_v13  ;;  %v15187_v33 = vld [vmem:[%s16032_s12 + $0x1514] ss:$40 sps:$4 sm:$0xff]   ;;  %v15186_v13 = vld [vmem:[%s16032_s12 + $0x1288] ss:$40 sps:$4 sm:$0xff]  }
 0x4d9   : > { %11361 = vmatprep.subr.bf16.mxu0 %v15139_v14  ;;  %v15189_v14 = vld [vmem:[%s16032_s12 + $0x1510] ss:$40 sps:$4 sm:$0xff]  }
 0x4db   : > { %10723 = vmatpush1.bf16.msra.mxu1 %v15138_v16  ;;  %v15190_v16 = vld [vmem:[%s16032_s12 + $0x12dc] ss:$40 sps:$4 sm:$0xff]  }
 0x4dc   : > { %11363 = vmatpush1.bf16.msra.mxu0 %v15141_v1  ;;  %10725 = vmatprep.subr.bf16.mxu1 %v15142_v40  ;;  %v15193_v1 = vld [vmem:[%s16032_s12 + $0x1564] ss:$40 sps:$4 sm:$0xff]   ;;  %v15192_v40 = vld [vmem:[%s16032_s12 + $0x12d8] ss:$40 sps:$4 sm:$0xff]  }
 0x4dd   : > { %11365 = vmatprep.subr.bf16.mxu0 %v15145_v5  ;;  %v15195_v5 = vld [vmem:[%s16032_s12 + $0x1560] ss:$40 sps:$4 sm:$0xff]  }
 0x4df   : > { %10727 = vmatpush1.bf16.msra.mxu1 %v15144_v18  ;;  %v15199_v18 = vld [vmem:[%s16032_s12 + $0x15b4] ss:$40 sps:$4 sm:$0xff]  }
 0x4e0   : > { %11367 = vmatpush1.bf16.msra.mxu0 %v15147_v19  ;;  %10729 = vmatprep.subr.bf16.mxu1 %v15148_v21  ;;  %v15198_v19 = vld [vmem:[%s16032_s12 + $0x1328] ss:$40 sps:$4 sm:$0xff]   ;;  %v15202_v21 = vld [vmem:[%s16032_s12 + $0x137c] ss:$40 sps:$4 sm:$0xff]  }
 0x4e1   : > { %11369 = vmatprep.subr.bf16.mxu0 %v15151_v22  ;;  %v6372_v15 = vpop.f32.mrb[2].mxu1  ;;  %v15205_v22 = vld [vmem:[%s16032_s12 + $0x1604] ss:$40 sps:$4 sm:$0xff]  }
 0x4e2   : > { %v17446_v30 = vadd.f32 %v6372_v15, %v4918_v23  ;;  %v6374_v34 = vpop.f32.mrb[3].mxu1  ;;  %v15204_v23 = vld [vmem:[%s16032_s12 + $0x1378] ss:$40 sps:$4 sm:$0xff]   ;;  %v15214_v15 = vld [vmem:[%s16032_s12 + $0x141c] ss:$40 sps:$4 sm:$0xff]  }
 0x4e3   : > { %v17448_v36 = vadd.f32 %v6374_v34, %v4922_v25  ;;  %10731 = vmatpush1.bf16.msra.mxu1 %v15150_v10  ;;  %v15207_v25 = vld [vmem:[%s16032_s12 + $0x1600] ss:$40 sps:$4 sm:$0xff]   ;;  %v15208_v10 = vld [vmem:[%s16032_s12 + $0x13cc] ss:$40 sps:$4 sm:$0xff]  }
 0x4e4   : > { %11371 = vmatpush1.bf16.msra.mxu0 %v15153_v35  ;;  %v8509_v44 = vmax.f32 %v17446_v30, 0.0  ;;  %10733 = vmatprep.subr.bf16.mxu1 %v15154_v28  ;;  %v15211_v35 = vld [vmem:[%s16032_s12 + $0x1654] ss:$40 sps:$4 sm:$0xff]   ;;  %v15210_v28 = vld [vmem:[%s16032_s12 + $0x13c8] ss:$40 sps:$4 sm:$0xff]  }
 0x4e5   : > { %11373 = vmatprep.subr.bf16.mxu0 %v15157_v29  ;;  %v8510_v50 = vmax.f32 %v17448_v36, 0.0  ;;  %v15213_v29 = vld [vmem:[%s16032_s12 + $0x1650] ss:$40 sps:$4 sm:$0xff]   ;;  %v15217_v34 = vld [vmem:[%s16032_s12 + $0x16a4] ss:$40 sps:$4 sm:$0xff]  }
 0x4e6   : > { %8526 = vst [vmem:[%s16777_s1 + $0x10] sm:$0xff] %v8509_v44  ;;  %8536 = vst [vmem:[%s16050_s24 + $0x10] sm:$0xff] %v8509_v44  ;;  %v15220_v44 = vld [vmem:[%s16032_s12 + $0x146c] ss:$40 sps:$4 sm:$0xff]  }
 0x4e7   : > { %8527 = vst [vmem:[%s16777_s1 + $0x18] sm:$0xff] %v8510_v50  ;;  %8537 = vst [vmem:[%s16050_s24 + $0x18] sm:$0xff] %v8510_v50  ;;  %10735 = vmatpush1.bf16.msra.mxu1 %v15156_v27  ;;  %v15216_v27 = vld [vmem:[%s16032_s12 + $0x1418] ss:$40 sps:$4 sm:$0xff]  }
 0x4e8   : > { %11375 = vmatpush1.bf16.msra.mxu0 %v15159_v39  ;;  %10737 = vmatprep.subr.bf16.mxu1 %v15160_v46  ;;  %v15219_v39 = vld [vmem:[%s16032_s12 + $0x16a0] ss:$40 sps:$4 sm:$0xff]   ;;  %v15223_v46 = vld [vmem:[%s16032_s12 + $0x16f4] ss:$40 sps:$4 sm:$0xff]   ;;  %v15225_v50 = vld [vmem:[%s16032_s12 + $0x16f0] ss:$40 sps:$4 sm:$0xff]  }
 0x4e9   : > { %11377 = vmatprep.subr.bf16.mxu0 %v15163_v48  ;;  %v15222_v48 = vld [vmem:[%s16032_s12 + $0x1468] ss:$40 sps:$4 sm:$0xff]   ;;  %8550 = vst [vmem:[%s16050_s24 + $0x10] sm:$0xff] (!%p8688_p6), %v17446_v30  ;;  %8551 = vst [vmem:[%s16050_s24 + $0x18] sm:$0xff] (!%p8688_p6), %v17448_v36 }
 0x4eb   : > { %10739 = vmatpush1.bf16.msra.mxu1 %v15162_v54  ;;  %v15226_v54 = vld [vmem:[%s16032_s12 + $0x14bc] ss:$40 sps:$4 sm:$0xff]  }
 0x4ec   : > { %11379 = vmatpush1.bf16.msra.mxu0 %v15165_v55  ;;  %10741 = vmatprep.subr.bf16.mxu1 %v15166_v56  ;;  %v15229_v55 = vld [vmem:[%s16032_s12 + $0x1744] ss:$40 sps:$4 sm:$0xff]   ;;  %v15228_v56 = vld [vmem:[%s16032_s12 + $0x14b8] ss:$40 sps:$4 sm:$0xff]  }
 0x4ed   : > { %11381 = vmatprep.subr.bf16.mxu0 %v15169_v59  ;;  %v15232_v59 = vld [vmem:[%s16032_s12 + $0x150c] ss:$40 sps:$4 sm:$0xff]  }
 0x4ef   : > { %8075 = vmatmul.mubr.f32.vlgmr.msra.gmra.mrb[4].mxu0 %v16410_v51  ;;  %10743 = vmatpush1.bf16.msra.mxu1 %v15168_v60  ;;  %v15235_v60 = vld [vmem:[%s16032_s12 + $0x1794] ss:$40 sps:$4 sm:$0xff]  }
 0x4f0   : > { %11383 = vmatpush1.bf16.msra.mxu0 %v15171_v62  ;;  %10745 = vmatprep.subr.bf16.mxu1 %v15172_v49  ;;  %v15234_v62 = vld [vmem:[%s16032_s12 + $0x1508] ss:$40 sps:$4 sm:$0xff]  }
 0x4f1   : > { %11385 = vmatprep.subr.bf16.mxu0 %v15175_v63  ;;  %8145 = vmatprep.mubr.f32.mxu0 %v16421_v57  ;;  %v15237_v49 = vld [vmem:[%s16032_s12 + $0x1790] ss:$40 sps:$4 sm:$0xff]   ;;  %v15241_v63 = vld [vmem:[%s16032_s12 + $0x17e4] ss:$40 sps:$4 sm:$0xff]  }
 0x4f3   : > { %10747 = vmatpush1.bf16.msra.mxu1 %v15174_v0  ;;  %v15240_v0 = vld [vmem:[%s16032_s12 + $0x1558] ss:$40 sps:$4 sm:$0xff]  }
 0x4f4   : > { %11387 = vmatpush1.bf16.msra.mxu0 %v15177_v2  ;;  %10749 = vmatprep.subr.bf16.mxu1 %v15178_v6  ;;  %v15243_v2 = vld [vmem:[%s16032_s12 + $0x17e0] ss:$40 sps:$4 sm:$0xff]   ;;  %v15244_v6 = vld [vmem:[%s16032_s12 + $0x15ac] ss:$40 sps:$4 sm:$0xff]  }
 0x4f5   : > { %11389 = vmatprep.subr.bf16.mxu0 %v15181_v58  ;;  %v15247_v58 = vld [vmem:[%s16032_s12 + $0x1834] ss:$40 sps:$4 sm:$0xff]  }
 0x4f7   : > { %10751 = vmatpush1.bf16.msra.mxu1 %v15180_v7  ;;  %v15246_v7 = vld [vmem:[%s16032_s12 + $0x15a8] ss:$40 sps:$4 sm:$0xff]  }
 0x4f8   : > { %11391 = vmatpush1.bf16.msra.mxu0 %v15183_v9  ;;  %10753 = vmatprep.subr.bf16.mxu1 %v15184_v11  ;;  %v15249_v9 = vld [vmem:[%s16032_s12 + $0x1830] ss:$40 sps:$4 sm:$0xff]   ;;  %v15250_v11 = vld [vmem:[%s16032_s12 + $0x15fc] ss:$40 sps:$4 sm:$0xff]  }
 0x4f9   : > { %11393 = vmatprep.subr.bf16.mxu0 %v15187_v33  ;;  %v15253_v33 = vld [vmem:[%s16032_s12 + $0x1884] ss:$40 sps:$4 sm:$0xff]  }
 0x4fb   : > { %10755 = vmatpush1.bf16.msra.mxu1 %v15186_v13  ;;  %v15252_v13 = vld [vmem:[%s16032_s12 + $0x15f8] ss:$40 sps:$4 sm:$0xff]  }
 0x4fc   : > { %11395 = vmatpush1.bf16.msra.mxu0 %v15189_v14  ;;  %10757 = vmatprep.subr.bf16.mxu1 %v15190_v16  ;;  %v15255_v14 = vld [vmem:[%s16032_s12 + $0x1880] ss:$40 sps:$4 sm:$0xff]   ;;  %v15256_v16 = vld [vmem:[%s16032_s12 + $0x164c] ss:$40 sps:$4 sm:$0xff]  }
 0x4fd   : > { %11397 = vmatprep.subr.bf16.mxu0 %v15193_v1  ;;  %v15259_v1 = vld [vmem:[%s16032_s12 + $0x18d4] ss:$40 sps:$4 sm:$0xff]  }
 0x4ff   : > { %10759 = vmatpush1.bf16.msra.mxu1 %v15192_v40  ;;  %v15258_v40 = vld [vmem:[%s16032_s12 + $0x1648] ss:$40 sps:$4 sm:$0xff]  }
 0x500   : > { %11399 = vmatpush1.bf16.msra.mxu0 %v15195_v5  ;;  %10761 = vmatprep.subr.bf16.mxu1 %v15196_v17  ;;  %v15261_v5 = vld [vmem:[%s16032_s12 + $0x18d0] ss:$40 sps:$4 sm:$0xff]   ;;  %v15262_v17 = vld [vmem:[%s16032_s12 + $0x169c] ss:$40 sps:$4 sm:$0xff]  }
 0x501   : > { %11401 = vmatprep.subr.bf16.mxu0 %v15199_v18  ;;  %v15265_v18 = vld [vmem:[%s16032_s12 + $0x1924] ss:$40 sps:$4 sm:$0xff]  }
 0x503   : > { %10763 = vmatpush1.bf16.msra.mxu1 %v15198_v19  ;;  %v15264_v19 = vld [vmem:[%s16032_s12 + $0x1698] ss:$40 sps:$4 sm:$0xff]  }
 0x504   : > { %11403 = vmatpush1.bf16.msra.mxu0 %v15201_v20  ;;  %10765 = vmatprep.subr.bf16.mxu1 %v15202_v21  ;;  %v15267_v20 = vld [vmem:[%s16032_s12 + $0x1920] ss:$40 sps:$4 sm:$0xff]   ;;  %v15268_v21 = vld [vmem:[%s16032_s12 + $0x16ec] ss:$40 sps:$4 sm:$0xff]  }
 0x505   : > { %11405 = vmatprep.subr.bf16.mxu0 %v15205_v22  ;;  %v15271_v22 = vld [vmem:[%s16032_s12 + $0x1974] ss:$40 sps:$4 sm:$0xff]  }
 0x507   : > { %10767 = vmatpush1.bf16.msra.mxu1 %v15204_v23  ;;  %v15270_v23 = vld [vmem:[%s16032_s12 + $0x16e8] ss:$40 sps:$4 sm:$0xff]  }
 0x508   : > { %11407 = vmatpush1.bf16.msra.mxu0 %v15207_v25  ;;  %10769 = vmatprep.subr.bf16.mxu1 %v15208_v10  ;;  %v15273_v25 = vld [vmem:[%s16032_s12 + $0x1970] ss:$40 sps:$4 sm:$0xff]   ;;  %v15274_v10 = vld [vmem:[%s16032_s12 + $0x173c] ss:$40 sps:$4 sm:$0xff]  }
 0x509   : > { %11409 = vmatprep.subr.bf16.mxu0 %v15211_v35  ;;  %v15277_v35 = vld [vmem:[%s16032_s12 + $0x19c4] ss:$40 sps:$4 sm:$0xff]  }
 0x50b   : > { %10771 = vmatpush1.bf16.msra.mxu1 %v15210_v28  ;;  %v15276_v28 = vld [vmem:[%s16032_s12 + $0x1738] ss:$40 sps:$4 sm:$0xff]  }
 0x50c   : > { %11411 = vmatpush1.bf16.msra.mxu0 %v15213_v29  ;;  %10773 = vmatprep.subr.bf16.mxu1 %v15214_v15  ;;  %v15279_v29 = vld [vmem:[%s16032_s12 + $0x19c0] ss:$40 sps:$4 sm:$0xff]   ;;  %v15280_v15 = vld [vmem:[%s16032_s12 + $0x178c] ss:$40 sps:$4 sm:$0xff]  }
 0x50d   : > { %11413 = vmatprep.subr.bf16.mxu0 %v15217_v34  ;;  %v15283_v34 = vld [vmem:[%s16032_s12 + $0x1a14] ss:$40 sps:$4 sm:$0xff]  }
 0x50e   : > { %7365 = vmatmul.mubr.f32.vlgmr.msra.gmra.mrb[4].mxu1 %v16410_v51  ;;  %v15231_v51 = vld [vmem:[%s16032_s12 + $0x1740] ss:$40 sps:$4 sm:$0xff]  }
 0x50f   : > { %10775 = vmatpush1.bf16.msra.mxu1 %v15216_v27  ;;  %7435 = vmatprep.mubr.f32.mxu1 %v16421_v57  ;;  %v15238_v57 = vld [vmem:[%s16032_s12 + $0x155c] ss:$40 sps:$4 sm:$0xff]   ;;  %v15282_v27 = vld [vmem:[%s16032_s12 + $0x1788] ss:$40 sps:$4 sm:$0xff]  }
 0x510   : > { %11415 = vmatpush1.bf16.msra.mxu0 %v15219_v39  ;;  %10777 = vmatprep.subr.bf16.mxu1 %v15220_v44  ;;  %v15285_v39 = vld [vmem:[%s16032_s12 + $0x1a10] ss:$40 sps:$4 sm:$0xff]   ;;  %v15286_v44 = vld [vmem:[%s16032_s12 + $0x17dc] ss:$40 sps:$4 sm:$0xff]  }
 0x511   : > { %11417 = vmatprep.subr.bf16.mxu0 %v15223_v46  ;;  %v15289_v46 = vld [vmem:[%s16032_s12 + $0x1a64] ss:$40 sps:$4 sm:$0xff]  }
 0x513   : > { %10779 = vmatpush1.bf16.msra.mxu1 %v15222_v48  ;;  %v15288_v48 = vld [vmem:[%s16032_s12 + $0x17d8] ss:$40 sps:$4 sm:$0xff]  }
 0x514   : > { %11419 = vmatpush1.bf16.msra.mxu0 %v15225_v50  ;;  %10781 = vmatprep.subr.bf16.mxu1 %v15226_v54  ;;  %v15291_v50 = vld [vmem:[%s16032_s12 + $0x1a60] ss:$40 sps:$4 sm:$0xff]   ;;  %v15292_v54 = vld [vmem:[%s16032_s12 + $0x182c] ss:$40 sps:$4 sm:$0xff]  }
 0x515   : > { %11421 = vmatprep.subr.bf16.mxu0 %v15229_v55  ;;  %v15295_v55 = vld [vmem:[%s16032_s12 + $0x1ab4] ss:$40 sps:$4 sm:$0xff]  }
 0x517   : > { %10783 = vmatpush1.bf16.msra.mxu1 %v15228_v56  ;;  %v15294_v56 = vld [vmem:[%s16032_s12 + $0x1828] ss:$40 sps:$4 sm:$0xff]  }
 0x518   : > { %11423 = vmatpush1.bf16.msra.mxu0 %v15231_v51  ;;  %10785 = vmatprep.subr.bf16.mxu1 %v15232_v59  ;;  %v15297_v51 = vld [vmem:[%s16032_s12 + $0x1ab0] ss:$40 sps:$4 sm:$0xff]   ;;  %v15298_v59 = vld [vmem:[%s16032_s12 + $0x187c] ss:$40 sps:$4 sm:$0xff]  }
 0x519   : > { %11425 = vmatprep.subr.bf16.mxu0 %v15235_v60  ;;  %v15301_v60 = vld [vmem:[%s16032_s12 + $0x1b04] ss:$40 sps:$4 sm:$0xff]  }
 0x51b   : > { %10787 = vmatpush1.bf16.msra.mxu1 %v15234_v62  ;;  %v15300_v62 = vld [vmem:[%s16032_s12 + $0x1878] ss:$40 sps:$4 sm:$0xff]  }
 0x51c   : > { %11427 = vmatpush1.bf16.msra.mxu0 %v15237_v49  ;;  %10789 = vmatprep.subr.bf16.mxu1 %v15238_v57  ;;  %v15303_v49 = vld [vmem:[%s16032_s12 + $0x1b00] ss:$40 sps:$4 sm:$0xff]   ;;  %v15304_v57 = vld [vmem:[%s16032_s12 + $0x18cc] ss:$40 sps:$4 sm:$0xff]  }
 0x51d   : > { %11429 = vmatprep.subr.bf16.mxu0 %v15241_v63  ;;  %v15307_v63 = vld [vmem:[%s16032_s12 + $0x1b54] ss:$40 sps:$4 sm:$0xff]  }
 0x51f   : > { %10791 = vmatpush1.bf16.msra.mxu1 %v15240_v0  ;;  %v15306_v0 = vld [vmem:[%s16032_s12 + $0x18c8] ss:$40 sps:$4 sm:$0xff]  }
 0x520   : > { %11431 = vmatpush1.bf16.msra.mxu0 %v15243_v2  ;;  %10793 = vmatprep.subr.bf16.mxu1 %v15244_v6  ;;  %v15309_v2 = vld [vmem:[%s16032_s12 + $0x1b50] ss:$40 sps:$4 sm:$0xff]   ;;  %v15310_v6 = vld [vmem:[%s16032_s12 + $0x191c] ss:$40 sps:$4 sm:$0xff]  }
 0x521   : > { %11433 = vmatprep.subr.bf16.mxu0 %v15247_v58  ;;  %v15313_v58 = vld [vmem:[%s16032_s12 + $0x1ba4] ss:$40 sps:$4 sm:$0xff]  }
 0x523   : > { %10795 = vmatpush1.bf16.msra.mxu1 %v15246_v7  ;;  %v15312_v7 = vld [vmem:[%s16032_s12 + $0x1918] ss:$40 sps:$4 sm:$0xff]  }
 0x524   : > { %11435 = vmatpush1.bf16.msra.mxu0 %v15249_v9  ;;  %10797 = vmatprep.subr.bf16.mxu1 %v15250_v11  ;;  %v15315_v9 = vld [vmem:[%s16032_s12 + $0x1ba0] ss:$40 sps:$4 sm:$0xff]   ;;  %v15316_v11 = vld [vmem:[%s16032_s12 + $0x196c] ss:$40 sps:$4 sm:$0xff]  }
 0x525   : > { %11437 = vmatprep.subr.bf16.mxu0 %v15253_v33  ;;  %v15319_v33 = vld [vmem:[%s16032_s12 + $0x1bf4] ss:$40 sps:$4 sm:$0xff]  }
 0x527   : > { %10799 = vmatpush1.bf16.msra.mxu1 %v15252_v13  ;;  %v15318_v13 = vld [vmem:[%s16032_s12 + $0x1968] ss:$40 sps:$4 sm:$0xff]  }
 0x528   : > { %11439 = vmatpush1.bf16.msra.mxu0 %v15255_v14  ;;  %10801 = vmatprep.subr.bf16.mxu1 %v15256_v16  ;;  %v15321_v14 = vld [vmem:[%s16032_s12 + $0x1bf0] ss:$40 sps:$4 sm:$0xff]   ;;  %v15322_v16 = vld [vmem:[%s16032_s12 + $0x19bc] ss:$40 sps:$4 sm:$0xff]  }
 0x529   : > { %11441 = vmatprep.subr.bf16.mxu0 %v15259_v1  ;;  %v15325_v1 = vld [vmem:[%s16032_s12 + $0x1c44] ss:$40 sps:$4 sm:$0xff]  }
 0x52b   : > { %10803 = vmatpush1.bf16.msra.mxu1 %v15258_v40  ;;  %v15324_v40 = vld [vmem:[%s16032_s12 + $0x19b8] ss:$40 sps:$4 sm:$0xff]  }
 0x52c   : > { %11443 = vmatpush1.bf16.msra.mxu0 %v15261_v5  ;;  %10805 = vmatprep.subr.bf16.mxu1 %v15262_v17  ;;  %v15328_v5 = vld [vmem:[%s16032_s12 + $0x1a0c] ss:$40 sps:$4 sm:$0xff]  }
 0x52d   : > { %11445 = vmatprep.subr.bf16.mxu0 %v15265_v18  ;;  %v15331_v17 = vld [vmem:[%s16032_s12 + $0x1c94] ss:$40 sps:$4 sm:$0xff]   ;;  %v15330_v18 = vld [vmem:[%s16032_s12 + $0x1a08] ss:$40 sps:$4 sm:$0xff]  }
 0x52f   : > { %8146 = vmatmul.mubr.f32.vlgmr.msra.gmra.mrb[4].mxu0 %v16493_v3  ;;  %10807 = vmatpush1.bf16.msra.mxu1 %v15264_v19  ;;  %v15333_v19 = vld [vmem:[%s16032_s12 + $0x1c90] ss:$40 sps:$4 sm:$0xff]  }
 0x530   : > { %11447 = vmatpush1.bf16.msra.mxu0 %v15267_v20  ;;  %10809 = vmatprep.subr.bf16.mxu1 %v15268_v21  ;;  %v15337_v20 = vld [vmem:[%s16032_s12 + $0x1ce4] ss:$40 sps:$4 sm:$0xff]   ;;  %v15336_v21 = vld [vmem:[%s16032_s12 + $0x1a58] ss:$40 sps:$4 sm:$0xff]  }
 0x531   : > { %11449 = vmatprep.subr.bf16.mxu0 %v15271_v22  ;;  %8216 = vmatprep.mubr.f32.mxu0 %v16164_v4  ;;  %v15339_v22 = vld [vmem:[%s16032_s12 + $0x1ce0] ss:$40 sps:$4 sm:$0xff]  }
 0x533   : > { %10811 = vmatpush1.bf16.msra.mxu1 %v15270_v23  ;;  %v15340_v23 = vld [vmem:[%s16032_s12 + $0x1aac] ss:$40 sps:$4 sm:$0xff]  }
 0x534   : > { %11451 = vmatpush1.bf16.msra.mxu0 %v15273_v25  ;;  %10813 = vmatprep.subr.bf16.mxu1 %v15274_v10  ;;  %v15343_v25 = vld [vmem:[%s16032_s12 + $0x1d34] ss:$40 sps:$4 sm:$0xff]   ;;  %v15342_v10 = vld [vmem:[%s16032_s12 + $0x1aa8] ss:$40 sps:$4 sm:$0xff]  }
 0x535   : > { %11453 = vmatprep.subr.bf16.mxu0 %v15277_v35  ;;  %v15345_v35 = vld [vmem:[%s16032_s12 + $0x1d30] ss:$40 sps:$4 sm:$0xff]  }
 0x537   : > { %10815 = vmatpush1.bf16.msra.mxu1 %v15276_v28  ;;  %v15346_v28 = vld [vmem:[%s16032_s12 + $0x1afc] ss:$40 sps:$4 sm:$0xff]  }
 0x538   : > { %11455 = vmatpush1.bf16.msra.mxu0 %v15279_v29  ;;  %10817 = vmatprep.subr.bf16.mxu1 %v15280_v15  ;;  %v15349_v29 = vld [vmem:[%s16032_s12 + $0x1d84] ss:$40 sps:$4 sm:$0xff]   ;;  %v15348_v15 = vld [vmem:[%s16032_s12 + $0x1af8] ss:$40 sps:$4 sm:$0xff]  }
 0x539   : > { %11457 = vmatprep.subr.bf16.mxu0 %v15283_v34  ;;  %v15351_v34 = vld [vmem:[%s16032_s12 + $0x1d80] ss:$40 sps:$4 sm:$0xff]  }
 0x53b   : > { %10819 = vmatpush1.bf16.msra.mxu1 %v15282_v27  ;;  %v15352_v27 = vld [vmem:[%s16032_s12 + $0x1b4c] ss:$40 sps:$4 sm:$0xff]  }
 0x53c   : > { %11459 = vmatpush1.bf16.msra.mxu0 %v15285_v39  ;;  %10821 = vmatprep.subr.bf16.mxu1 %v15286_v44  ;;  %v15355_v39 = vld [vmem:[%s16032_s12 + $0x1dd4] ss:$40 sps:$4 sm:$0xff]   ;;  %v15354_v44 = vld [vmem:[%s16032_s12 + $0x1b48] ss:$40 sps:$4 sm:$0xff]  }
 0x53d   : > { %11461 = vmatprep.subr.bf16.mxu0 %v15289_v46  ;;  %v15357_v46 = vld [vmem:[%s16032_s12 + $0x1dd0] ss:$40 sps:$4 sm:$0xff]  }
 0x53f   : > { %10823 = vmatpush1.bf16.msra.mxu1 %v15288_v48  ;;  %v15358_v48 = vld [vmem:[%s16032_s12 + $0x1b9c] ss:$40 sps:$4 sm:$0xff]  }
 0x540   : > { %11463 = vmatpush1.bf16.msra.mxu0 %v15291_v50  ;;  %10825 = vmatprep.subr.bf16.mxu1 %v15292_v54  ;;  %v15361_v50 = vld [vmem:[%s16032_s12 + $0x1e24] ss:$40 sps:$4 sm:$0xff]   ;;  %v15360_v54 = vld [vmem:[%s16032_s12 + $0x1b98] ss:$40 sps:$4 sm:$0xff]  }
 0x541   : > { %11465 = vmatprep.subr.bf16.mxu0 %v15295_v55  ;;  %v15363_v55 = vld [vmem:[%s16032_s12 + $0x1e20] ss:$40 sps:$4 sm:$0xff]  }
 0x543   : > { %10827 = vmatpush1.bf16.msra.mxu1 %v15294_v56  ;;  %v15364_v56 = vld [vmem:[%s16032_s12 + $0x1bec] ss:$40 sps:$4 sm:$0xff]  }
 0x544   : > { %11467 = vmatpush1.bf16.msra.mxu0 %v15297_v51  ;;  %10829 = vmatprep.subr.bf16.mxu1 %v15298_v59  ;;  %v15367_v51 = vld [vmem:[%s16032_s12 + $0x1e74] ss:$40 sps:$4 sm:$0xff]   ;;  %v15366_v59 = vld [vmem:[%s16032_s12 + $0x1be8] ss:$40 sps:$4 sm:$0xff]  }
 0x545   : > { %11469 = vmatprep.subr.bf16.mxu0 %v15301_v60  ;;  %v15369_v60 = vld [vmem:[%s16032_s12 + $0x1e70] ss:$40 sps:$4 sm:$0xff]  }
 0x547   : > { %10831 = vmatpush1.bf16.msra.mxu1 %v15300_v62  ;;  %v15370_v62 = vld [vmem:[%s16032_s12 + $0x1c3c] ss:$40 sps:$4 sm:$0xff]  }
 0x548   : > { %11471 = vmatpush1.bf16.msra.mxu0 %v15303_v49  ;;  %10833 = vmatprep.subr.bf16.mxu1 %v15304_v57  ;;  %v15373_v49 = vld [vmem:[%s16032_s12 + $0x1ec4] ss:$40 sps:$4 sm:$0xff]   ;;  %v15372_v57 = vld [vmem:[%s16032_s12 + $0x1c38] ss:$40 sps:$4 sm:$0xff]  }
 0x549   : > { %11473 = vmatprep.subr.bf16.mxu0 %v15307_v63  ;;  %v15375_v63 = vld [vmem:[%s16032_s12 + $0x1ec0] ss:$40 sps:$4 sm:$0xff]  }
 0x54b   : > { %10835 = vmatpush1.bf16.msra.mxu1 %v15306_v0  ;;  %v15376_v0 = vld [vmem:[%s16032_s12 + $0x1c8c] ss:$40 sps:$4 sm:$0xff]  }
 0x54c   : > { %11475 = vmatpush1.bf16.msra.mxu0 %v15309_v2  ;;  %10837 = vmatprep.subr.bf16.mxu1 %v15310_v6  ;;  %v15379_v2 = vld [vmem:[%s16032_s12 + $0x1f14] ss:$40 sps:$4 sm:$0xff]   ;;  %v15378_v6 = vld [vmem:[%s16032_s12 + $0x1c88] ss:$40 sps:$4 sm:$0xff]  }
 0x54d   : > { %11477 = vmatprep.subr.bf16.mxu0 %v15313_v58  ;;  %v15381_v58 = vld [vmem:[%s16032_s12 + $0x1f10] ss:$40 sps:$4 sm:$0xff]  }
 0x54e   : > { %7436 = vmatmul.mubr.f32.vlgmr.msra.gmra.mrb[4].mxu1 %v16493_v3  ;;  %v15327_v3 = vld [vmem:[%s16032_s12 + $0x1c40] ss:$40 sps:$4 sm:$0xff]  }
 0x54f   : > { %10839 = vmatpush1.bf16.msra.mxu1 %v15312_v7  ;;  %7506 = vmatprep.mubr.f32.mxu1 %v16164_v4  ;;  %v15334_v4 = vld [vmem:[%s16032_s12 + $0x1a5c] ss:$40 sps:$4 sm:$0xff]  }
 0x550   : > { %11479 = vmatpush1.bf16.msra.mxu0 %v15315_v9  ;;  %10841 = vmatprep.subr.bf16.mxu1 %v15316_v11  ;;  %v15382_v7 = vld [vmem:[%s16032_s12 + $0x1cdc] ss:$40 sps:$4 sm:$0xff]   ;;  %v15384_v11 = vld [vmem:[%s16032_s12 + $0x1cd8] ss:$40 sps:$4 sm:$0xff]  }
 0x551   : > { %11481 = vmatprep.subr.bf16.mxu0 %v15319_v33  ;;  %v15385_v9 = vld [vmem:[%s16032_s12 + $0x1f64] ss:$40 sps:$4 sm:$0xff]   ;;  %v15387_v33 = vld [vmem:[%s16032_s12 + $0x1f60] ss:$40 sps:$4 sm:$0xff]  }
 0x553   : > { %10843 = vmatpush1.bf16.msra.mxu1 %v15318_v13  ;;  %v15388_v13 = vld [vmem:[%s16032_s12 + $0x1d2c] ss:$40 sps:$4 sm:$0xff]  }
 0x554   : > { %11483 = vmatpush1.bf16.msra.mxu0 %v15321_v14  ;;  %10845 = vmatprep.subr.bf16.mxu1 %v15322_v16  ;;  %v15391_v14 = vld [vmem:[%s16032_s12 + $0x1fb4] ss:$40 sps:$4 sm:$0xff]   ;;  %v15390_v16 = vld [vmem:[%s16032_s12 + $0x1d28] ss:$40 sps:$4 sm:$0xff]  }
 0x555   : > { %11485 = vmatprep.subr.bf16.mxu0 %v15325_v1  ;;  %v15393_v1 = vld [vmem:[%s16032_s12 + $0x1fb0] ss:$40 sps:$4 sm:$0xff]  }
 0x557   : > { %10847 = vmatpush1.bf16.msra.mxu1 %v15324_v40  ;;  %v15394_v40 = vld [vmem:[%s16032_s12 + $0x1d7c] ss:$40 sps:$4 sm:$0xff]  }
 0x558   : > { %11487 = vmatpush1.bf16.msra.mxu0 %v15327_v3  ;;  %10849 = vmatprep.subr.bf16.mxu1 %v15328_v5  ;;  %v15397_v3 = vld [vmem:[%s16032_s12 + $0x2004] ss:$40 sps:$4 sm:$0xff]   ;;  %v15396_v5 = vld [vmem:[%s16032_s12 + $0x1d78] ss:$40 sps:$4 sm:$0xff]  }
 0x559   : > { %11489 = vmatprep.subr.bf16.mxu0 %v15331_v17  ;;  %v15399_v17 = vld [vmem:[%s16032_s12 + $0x2000] ss:$40 sps:$4 sm:$0xff]  }
 0x55b   : > { %10851 = vmatpush1.bf16.msra.mxu1 %v15330_v18  ;;  %v15400_v18 = vld [vmem:[%s16032_s12 + $0x1dcc] ss:$40 sps:$4 sm:$0xff]  }
 0x55c   : > { %11491 = vmatpush1.bf16.msra.mxu0 %v15333_v19  ;;  %10853 = vmatprep.subr.bf16.mxu1 %v15334_v4  ;;  %v15403_v19 = vld [vmem:[%s16032_s12 + $0x2054] ss:$40 sps:$4 sm:$0xff]   ;;  %v15402_v4 = vld [vmem:[%s16032_s12 + $0x1dc8] ss:$40 sps:$4 sm:$0xff]  }
 0x55d   : > { %11493 = vmatprep.subr.bf16.mxu0 %v15337_v20  ;;  %v15405_v20 = vld [vmem:[%s16032_s12 + $0x2050] ss:$40 sps:$4 sm:$0xff]  }
 0x55f   : > { %10855 = vmatpush1.bf16.msra.mxu1 %v15336_v21  ;;  %v15406_v21 = vld [vmem:[%s16032_s12 + $0x1e1c] ss:$40 sps:$4 sm:$0xff]  }
 0x560   : > { %11495 = vmatpush1.bf16.msra.mxu0 %v15339_v22  ;;  %10857 = vmatprep.subr.bf16.mxu1 %v15340_v23  ;;  %v15409_v22 = vld [vmem:[%s16032_s12 + $0x20a4] ss:$40 sps:$4 sm:$0xff]   ;;  %v15408_v23 = vld [vmem:[%s16032_s12 + $0x1e18] ss:$40 sps:$4 sm:$0xff]  }
 0x561   : > { %11497 = vmatprep.subr.bf16.mxu0 %v15343_v25  ;;  %v15411_v25 = vld [vmem:[%s16032_s12 + $0x20a0] ss:$40 sps:$4 sm:$0xff]  }
 0x563   : > { %10859 = vmatpush1.bf16.msra.mxu1 %v15342_v10  ;;  %v15412_v10 = vld [vmem:[%s16032_s12 + $0x1e6c] ss:$40 sps:$4 sm:$0xff]  }
 0x564   : > { %11499 = vmatpush1.bf16.msra.mxu0 %v15345_v35  ;;  %10861 = vmatprep.subr.bf16.mxu1 %v15346_v28  ;;  %v15415_v35 = vld [vmem:[%s16032_s12 + $0x20f4] ss:$40 sps:$4 sm:$0xff]   ;;  %v15414_v28 = vld [vmem:[%s16032_s12 + $0x1e68] ss:$40 sps:$4 sm:$0xff]  }
 0x565   : > { %11501 = vmatprep.subr.bf16.mxu0 %v15349_v29  ;;  %v15417_v29 = vld [vmem:[%s16032_s12 + $0x20f0] ss:$40 sps:$4 sm:$0xff]  }
 0x567   : > { %10863 = vmatpush1.bf16.msra.mxu1 %v15348_v15  ;;  %v15418_v15 = vld [vmem:[%s16032_s12 + $0x1ebc] ss:$40 sps:$4 sm:$0xff]  }
 0x568   : > { %11503 = vmatpush1.bf16.msra.mxu0 %v15351_v34  ;;  %10865 = vmatprep.subr.bf16.mxu1 %v15352_v27  ;;  %v15421_v34 = vld [vmem:[%s16032_s12 + $0x2144] ss:$40 sps:$4 sm:$0xff]   ;;  %v15420_v27 = vld [vmem:[%s16032_s12 + $0x1eb8] ss:$40 sps:$4 sm:$0xff]  }
 0x569   : > { %11505 = vmatprep.subr.bf16.mxu0 %v15355_v39  ;;  %v15424_v39 = vld [vmem:[%s16032_s12 + $0x1f0c] ss:$40 sps:$4 sm:$0xff]  }
 0x56b   : > { %10867 = vmatpush1.bf16.msra.mxu1 %v15354_v44  ;;  %v15427_v44 = vld [vmem:[%s16032_s12 + $0x2194] ss:$40 sps:$4 sm:$0xff]  }
 0x56c   : > { %11507 = vmatpush1.bf16.msra.mxu0 %v15357_v46  ;;  %10869 = vmatprep.subr.bf16.mxu1 %v15358_v48  ;;  %v15426_v46 = vld [vmem:[%s16032_s12 + $0x1f08] ss:$40 sps:$4 sm:$0xff]  }
 0x56d   : > { %11509 = vmatprep.subr.bf16.mxu0 %v15361_v50  ;;  %v15429_v48 = vld [vmem:[%s16032_s12 + $0x2190] ss:$40 sps:$4 sm:$0xff]   ;;  %v15433_v50 = vld [vmem:[%s16032_s12 + $0x21e4] ss:$40 sps:$4 sm:$0xff]  }
 0x56f   : > { %8217 = vmatmul.mubr.f32.vlgmr.msra.gmra.mrb[4].mxu0 %v16189_v26  ;;  %10871 = vmatpush1.bf16.msra.mxu1 %v15360_v54  ;;  %v15432_v54 = vld [vmem:[%s16032_s12 + $0x1f58] ss:$40 sps:$4 sm:$0xff]  }
 0x570   : > { %11511 = vmatpush1.bf16.msra.mxu0 %v15363_v55  ;;  %10873 = vmatprep.subr.bf16.mxu1 %v15364_v56  ;;  %v15435_v55 = vld [vmem:[%s16032_s12 + $0x21e0] ss:$40 sps:$4 sm:$0xff]   ;;  %v15436_v56 = vld [vmem:[%s16032_s12 + $0x1fac] ss:$40 sps:$4 sm:$0xff]  }
 0x571   : > { %11513 = vmatprep.subr.bf16.mxu0 %v15367_v51  ;;  %8287 = vmatprep.mubr.f32.mxu0 %v16218_v52  ;;  %v15439_v51 = vld [vmem:[%s16032_s12 + $0x2234] ss:$40 sps:$4 sm:$0xff]  }
 0x573   : > { %10875 = vmatpush1.bf16.msra.mxu1 %v15366_v59  ;;  %v15438_v59 = vld [vmem:[%s16032_s12 + $0x1fa8] ss:$40 sps:$4 sm:$0xff]  }
 0x574   : > { %11515 = vmatpush1.bf16.msra.mxu0 %v15369_v60  ;;  %10877 = vmatprep.subr.bf16.mxu1 %v15370_v62  ;;  %v15441_v60 = vld [vmem:[%s16032_s12 + $0x2230] ss:$40 sps:$4 sm:$0xff]   ;;  %v15442_v62 = vld [vmem:[%s16032_s12 + $0x1ffc] ss:$40 sps:$4 sm:$0xff]  }
 0x575   : > { %11517 = vmatprep.subr.bf16.mxu0 %v15373_v49  ;;  %v15445_v49 = vld [vmem:[%s16032_s12 + $0x2284] ss:$40 sps:$4 sm:$0xff]  }
 0x577   : > { %10879 = vmatpush1.bf16.msra.mxu1 %v15372_v57  ;;  %v15444_v57 = vld [vmem:[%s16032_s12 + $0x1ff8] ss:$40 sps:$4 sm:$0xff]  }
 0x578   : > { %11519 = vmatpush1.bf16.msra.mxu0 %v15375_v63  ;;  %10881 = vmatprep.subr.bf16.mxu1 %v15376_v0  ;;  %v15447_v63 = vld [vmem:[%s16032_s12 + $0x2280] ss:$40 sps:$4 sm:$0xff]   ;;  %v15448_v0 = vld [vmem:[%s16032_s12 + $0x204c] ss:$40 sps:$4 sm:$0xff]  }
 0x579   : > { %11521 = vmatprep.subr.bf16.mxu0 %v15379_v2  ;;  %v15451_v2 = vld [vmem:[%s16032_s12 + $0x22d4] ss:$40 sps:$4 sm:$0xff]  }
 0x57b   : > { %10883 = vmatpush1.bf16.msra.mxu1 %v15378_v6  ;;  %v15450_v6 = vld [vmem:[%s16032_s12 + $0x2048] ss:$40 sps:$4 sm:$0xff]  }
 0x57c   : > { %11523 = vmatpush1.bf16.msra.mxu0 %v15381_v58  ;;  %10885 = vmatprep.subr.bf16.mxu1 %v15382_v7  ;;  %v15453_v58 = vld [vmem:[%s16032_s12 + $0x22d0] ss:$40 sps:$4 sm:$0xff]   ;;  %v15454_v7 = vld [vmem:[%s16032_s12 + $0x209c] ss:$40 sps:$4 sm:$0xff]  }
 0x57d   : > { %11525 = vmatprep.subr.bf16.mxu0 %v15385_v9  ;;  %v15457_v9 = vld [vmem:[%s16032_s12 + $0x2324] ss:$40 sps:$4 sm:$0xff]  }
 0x57f   : > { %10887 = vmatpush1.bf16.msra.mxu1 %v15384_v11  ;;  %v15456_v11 = vld [vmem:[%s16032_s12 + $0x2098] ss:$40 sps:$4 sm:$0xff]  }
 0x580   : > { %11527 = vmatpush1.bf16.msra.mxu0 %v15387_v33  ;;  %10889 = vmatprep.subr.bf16.mxu1 %v15388_v13  ;;  %v15459_v33 = vld [vmem:[%s16032_s12 + $0x2320] ss:$40 sps:$4 sm:$0xff]   ;;  %v15460_v13 = vld [vmem:[%s16032_s12 + $0x20ec] ss:$40 sps:$4 sm:$0xff]  }
 0x581   : > { %11529 = vmatprep.subr.bf16.mxu0 %v15391_v14  ;;  %v15463_v14 = vld [vmem:[%s16032_s12 + $0x2374] ss:$40 sps:$4 sm:$0xff]  }
 0x583   : > { %10891 = vmatpush1.bf16.msra.mxu1 %v15390_v16  ;;  %v15462_v16 = vld [vmem:[%s16032_s12 + $0x20e8] ss:$40 sps:$4 sm:$0xff]  }
 0x584   : > { %11531 = vmatpush1.bf16.msra.mxu0 %v15393_v1  ;;  %10893 = vmatprep.subr.bf16.mxu1 %v15394_v40  ;;  %v15465_v1 = vld [vmem:[%s16032_s12 + $0x2370] ss:$40 sps:$4 sm:$0xff]   ;;  %v15466_v40 = vld [vmem:[%s16032_s12 + $0x213c] ss:$40 sps:$4 sm:$0xff]  }
 0x585   : > { %11533 = vmatprep.subr.bf16.mxu0 %v15397_v3  ;;  %v15469_v3 = vld [vmem:[%s16032_s12 + $0x23c4] ss:$40 sps:$4 sm:$0xff]  }
 0x587   : > { %10895 = vmatpush1.bf16.msra.mxu1 %v15396_v5  ;;  %v15468_v5 = vld [vmem:[%s16032_s12 + $0x2138] ss:$40 sps:$4 sm:$0xff]  }
 0x588   : > { %11535 = vmatpush1.bf16.msra.mxu0 %v15399_v17  ;;  %10897 = vmatprep.subr.bf16.mxu1 %v15400_v18  ;;  %v15471_v17 = vld [vmem:[%s16032_s12 + $0x23c0] ss:$40 sps:$4 sm:$0xff]   ;;  %v15472_v18 = vld [vmem:[%s16032_s12 + $0x218c] ss:$40 sps:$4 sm:$0xff]  }
 0x589   : > { %11537 = vmatprep.subr.bf16.mxu0 %v15403_v19  ;;  %v15475_v19 = vld [vmem:[%s16032_s12 + $0x2414] ss:$40 sps:$4 sm:$0xff]  }
 0x58b   : > { %10899 = vmatpush1.bf16.msra.mxu1 %v15402_v4  ;;  %v15474_v4 = vld [vmem:[%s16032_s12 + $0x2188] ss:$40 sps:$4 sm:$0xff]  }
 0x58c   : > { %11539 = vmatpush1.bf16.msra.mxu0 %v15405_v20  ;;  %10901 = vmatprep.subr.bf16.mxu1 %v15406_v21  ;;  %v15477_v20 = vld [vmem:[%s16032_s12 + $0x2410] ss:$40 sps:$4 sm:$0xff]   ;;  %v15478_v21 = vld [vmem:[%s16032_s12 + $0x21dc] ss:$40 sps:$4 sm:$0xff]  }
 0x58d   : > { %11541 = vmatprep.subr.bf16.mxu0 %v15409_v22  ;;  %v15481_v22 = vld [vmem:[%s16032_s12 + $0x2464] ss:$40 sps:$4 sm:$0xff]  }
 0x58e   : > { %7507 = vmatmul.mubr.f32.vlgmr.msra.gmra.mrb[4].mxu1 %v16189_v26  ;;  %v15423_v26 = vld [vmem:[%s16032_s12 + $0x2140] ss:$40 sps:$4 sm:$0xff]  }
 0x58f   : > { %10903 = vmatpush1.bf16.msra.mxu1 %v15408_v23  ;;  %7577 = vmatprep.mubr.f32.mxu1 %v16218_v52  ;;  %v15430_v52 = vld [vmem:[%s16032_s12 + $0x1f5c] ss:$40 sps:$4 sm:$0xff]   ;;  %v15480_v23 = vld [vmem:[%s16032_s12 + $0x21d8] ss:$40 sps:$4 sm:$0xff]  }
 0x590   : > { %11543 = vmatpush1.bf16.msra.mxu0 %v15411_v25  ;;  %10905 = vmatprep.subr.bf16.mxu1 %v15412_v10  ;;  %v15483_v25 = vld [vmem:[%s16032_s12 + $0x2460] ss:$40 sps:$4 sm:$0xff]   ;;  %v15484_v10 = vld [vmem:[%s16032_s12 + $0x222c] ss:$40 sps:$4 sm:$0xff]  }
 0x591   : > { %11545 = vmatprep.subr.bf16.mxu0 %v15415_v35  ;;  %v15487_v35 = vld [vmem:[%s16032_s12 + $0x24b4] ss:$40 sps:$4 sm:$0xff]  }
 0x593   : > { %10907 = vmatpush1.bf16.msra.mxu1 %v15414_v28  ;;  %v15486_v28 = vld [vmem:[%s16032_s12 + $0x2228] ss:$40 sps:$4 sm:$0xff]  }
 0x594   : > { %11547 = vmatpush1.bf16.msra.mxu0 %v15417_v29  ;;  %10909 = vmatprep.subr.bf16.mxu1 %v15418_v15  ;;  %v15489_v29 = vld [vmem:[%s16032_s12 + $0x24b0] ss:$40 sps:$4 sm:$0xff]   ;;  %v15490_v15 = vld [vmem:[%s16032_s12 + $0x227c] ss:$40 sps:$4 sm:$0xff]  }
 0x595   : > { %11549 = vmatprep.subr.bf16.mxu0 %v15421_v34  ;;  %v15493_v34 = vld [vmem:[%s16032_s12 + $0x2504] ss:$40 sps:$4 sm:$0xff]  }
 0x597   : > { %10911 = vmatpush1.bf16.msra.mxu1 %v15420_v27  ;;  %v15492_v27 = vld [vmem:[%s16032_s12 + $0x2278] ss:$40 sps:$4 sm:$0xff]  }
 0x598   : > { %11551 = vmatpush1.bf16.msra.mxu0 %v15423_v26  ;;  %10913 = vmatprep.subr.bf16.mxu1 %v15424_v39  ;;  %v15495_v26 = vld [vmem:[%s16032_s12 + $0x2500] ss:$40 sps:$4 sm:$0xff]   ;;  %v15496_v39 = vld [vmem:[%s16032_s12 + $0x22cc] ss:$40 sps:$4 sm:$0xff]  }
 0x599   : > { %11553 = vmatprep.subr.bf16.mxu0 %v15427_v44  ;;  %v15499_v44 = vld [vmem:[%s16032_s12 + $0x2554] ss:$40 sps:$4 sm:$0xff]  }
 0x59b   : > { %10915 = vmatpush1.bf16.msra.mxu1 %v15426_v46  ;;  %v15498_v46 = vld [vmem:[%s16032_s12 + $0x22c8] ss:$40 sps:$4 sm:$0xff]  }
 0x59c   : > { %11555 = vmatpush1.bf16.msra.mxu0 %v15429_v48  ;;  %10917 = vmatprep.subr.bf16.mxu1 %v15430_v52  ;;  %v15501_v48 = vld [vmem:[%s16032_s12 + $0x2550] ss:$40 sps:$4 sm:$0xff]   ;;  %v15502_v52 = vld [vmem:[%s16032_s12 + $0x231c] ss:$40 sps:$4 sm:$0xff]  }
 0x59d   : > { %11557 = vmatprep.subr.bf16.mxu0 %v15433_v50  ;;  %v15505_v50 = vld [vmem:[%s16032_s12 + $0x25a4] ss:$40 sps:$4 sm:$0xff]  }
 0x59f   : > { %10919 = vmatpush1.bf16.msra.mxu1 %v15432_v54  ;;  %v15504_v54 = vld [vmem:[%s16032_s12 + $0x2318] ss:$40 sps:$4 sm:$0xff]  }
 0x5a0   : > { %11559 = vmatpush1.bf16.msra.mxu0 %v15435_v55  ;;  %10921 = vmatprep.subr.bf16.mxu1 %v15436_v56  ;;  %v15507_v55 = vld [vmem:[%s16032_s12 + $0x25a0] ss:$40 sps:$4 sm:$0xff]   ;;  %v15508_v56 = vld [vmem:[%s16032_s12 + $0x236c] ss:$40 sps:$4 sm:$0xff]  }
 0x5a1   : > { %11561 = vmatprep.subr.bf16.mxu0 %v15439_v51  ;;  %v15511_v51 = vld [vmem:[%s16032_s12 + $0x25f4] ss:$40 sps:$4 sm:$0xff]  }
 0x5a3   : > { %10923 = vmatpush1.bf16.msra.mxu1 %v15438_v59  ;;  %v15510_v59 = vld [vmem:[%s16032_s12 + $0x2368] ss:$40 sps:$4 sm:$0xff]  }
 0x5a4   : > { %11563 = vmatpush1.bf16.msra.mxu0 %v15441_v60  ;;  %10925 = vmatprep.subr.bf16.mxu1 %v15442_v62  ;;  %v15513_v60 = vld [vmem:[%s16032_s12 + $0x25f0] ss:$40 sps:$4 sm:$0xff]   ;;  %v15514_v62 = vld [vmem:[%s16032_s12 + $0x23bc] ss:$40 sps:$4 sm:$0xff]  }
 0x5a5   : > { %11565 = vmatprep.subr.bf16.mxu0 %v15445_v49  ;;  %v15517_v49 = vld [vmem:[%s16032_s12 + $0x2644] ss:$40 sps:$4 sm:$0xff]  }
 0x5a7   : > { %10927 = vmatpush1.bf16.msra.mxu1 %v15444_v57  ;;  %v15516_v57 = vld [vmem:[%s16032_s12 + $0x23b8] ss:$40 sps:$4 sm:$0xff]  }
 0x5a8   : > { %11567 = vmatpush1.bf16.msra.mxu0 %v15447_v63  ;;  %10929 = vmatprep.subr.bf16.mxu1 %v15448_v0  ;;  %v15520_v63 = vld [vmem:[%s16032_s12 + $0x240c] ss:$40 sps:$4 sm:$0xff]  }
 0x5a9   : > { %11569 = vmatprep.subr.bf16.mxu0 %v15451_v2  ;;  %v15523_v0 = vld [vmem:[%s16032_s12 + $0x2694] ss:$40 sps:$4 sm:$0xff]   ;;  %v15522_v2 = vld [vmem:[%s16032_s12 + $0x2408] ss:$40 sps:$4 sm:$0xff]  }
 0x5ab   : > { %10931 = vmatpush1.bf16.msra.mxu1 %v15450_v6  ;;  %v15525_v6 = vld [vmem:[%s16032_s12 + $0x2690] ss:$40 sps:$4 sm:$0xff]  }
 0x5ac   : > { %11571 = vmatpush1.bf16.msra.mxu0 %v15453_v58  ;;  %10933 = vmatprep.subr.bf16.mxu1 %v15454_v7  ;;  %v15529_v58 = vld [vmem:[%s16032_s12 + $0x26e4] ss:$40 sps:$4 sm:$0xff]   ;;  %v15528_v7 = vld [vmem:[%s16032_s12 + $0x2458] ss:$40 sps:$4 sm:$0xff]  }
 0x5ad   : > { %11573 = vmatprep.subr.bf16.mxu0 %v15457_v9  ;;  %v15531_v9 = vld [vmem:[%s16032_s12 + $0x26e0] ss:$40 sps:$4 sm:$0xff]  }
 0x5af   : > { %8288 = vmatmul.mubr.f32.vlgmr.msra.gmra.mrb[4].mxu0 %v16263_v32  ;;  %10935 = vmatpush1.bf16.msra.mxu1 %v15456_v11  ;;  %v15532_v11 = vld [vmem:[%s16032_s12 + $0x24ac] ss:$40 sps:$4 sm:$0xff]  }
 0x5b0   : > { %11575 = vmatpush1.bf16.msra.mxu0 %v15459_v33  ;;  %10937 = vmatprep.subr.bf16.mxu1 %v15460_v13  ;;  %v15535_v33 = vld [vmem:[%s16032_s12 + $0x2734] ss:$40 sps:$4 sm:$0xff]   ;;  %v15534_v13 = vld [vmem:[%s16032_s12 + $0x24a8] ss:$40 sps:$4 sm:$0xff]  }
 0x5b1   : > { %11577 = vmatprep.subr.bf16.mxu0 %v15463_v14  ;;  %8358 = vmatprep.mubr.f32.mxu0 %v16272_v38  ;;  %v15537_v14 = vld [vmem:[%s16032_s12 + $0x2730] ss:$40 sps:$4 sm:$0xff]  }
 0x5b3   : > { %10939 = vmatpush1.bf16.msra.mxu1 %v15462_v16  ;;  %v15538_v16 = vld [vmem:[%s16032_s12 + $0x24fc] ss:$40 sps:$4 sm:$0xff]  }
 0x5b4   : > { %11579 = vmatpush1.bf16.msra.mxu0 %v15465_v1  ;;  %10941 = vmatprep.subr.bf16.mxu1 %v15466_v40  ;;  %v15541_v1 = vld [vmem:[%s16032_s12 + $0x2784] ss:$40 sps:$4 sm:$0xff]   ;;  %v15540_v40 = vld [vmem:[%s16032_s12 + $0x24f8] ss:$40 sps:$4 sm:$0xff]  }
 0x5b5   : > { %11581 = vmatprep.subr.bf16.mxu0 %v15469_v3  ;;  %v15543_v3 = vld [vmem:[%s16032_s12 + $0x2780] ss:$40 sps:$4 sm:$0xff]  }
 0x5b7   : > { %10943 = vmatpush1.bf16.msra.mxu1 %v15468_v5  ;;  %v15544_v5 = vld [vmem:[%s16032_s12 + $0x254c] ss:$40 sps:$4 sm:$0xff]  }
 0x5b8   : > { %11583 = vmatpush1.bf16.msra.mxu0 %v15471_v17  ;;  %10945 = vmatprep.subr.bf16.mxu1 %v15472_v18  ;;  %v15547_v17 = vld [vmem:[%s16032_s12 + $0x27d4] ss:$40 sps:$4 sm:$0xff]   ;;  %v15546_v18 = vld [vmem:[%s16032_s12 + $0x2548] ss:$40 sps:$4 sm:$0xff]  }
 0x5b9   : > { %11585 = vmatprep.subr.bf16.mxu0 %v15475_v19  ;;  %v15549_v19 = vld [vmem:[%s16032_s12 + $0x27d0] ss:$40 sps:$4 sm:$0xff]  }
 0x5bb   : > { %10947 = vmatpush1.bf16.msra.mxu1 %v15474_v4  ;;  %v15550_v4 = vld [vmem:[%s16032_s12 + $0x259c] ss:$40 sps:$4 sm:$0xff]  }
 0x5bc   : > { %11587 = vmatpush1.bf16.msra.mxu0 %v15477_v20  ;;  %10949 = vmatprep.subr.bf16.mxu1 %v15478_v21  ;;  %v15553_v20 = vld [vmem:[%s16032_s12 + $0x2824] ss:$40 sps:$4 sm:$0xff]   ;;  %v15552_v21 = vld [vmem:[%s16032_s12 + $0x2598] ss:$40 sps:$4 sm:$0xff]  }
 0x5bd   : > { %11589 = vmatprep.subr.bf16.mxu0 %v15481_v22  ;;  %v15555_v22 = vld [vmem:[%s16032_s12 + $0x2820] ss:$40 sps:$4 sm:$0xff]  }
 0x5bf   : > { %10951 = vmatpush1.bf16.msra.mxu1 %v15480_v23  ;;  %v15556_v23 = vld [vmem:[%s16032_s12 + $0x25ec] ss:$40 sps:$4 sm:$0xff]  }
 0x5c0   : > { %11591 = vmatpush1.bf16.msra.mxu0 %v15483_v25  ;;  %10953 = vmatprep.subr.bf16.mxu1 %v15484_v10  ;;  %v15559_v25 = vld [vmem:[%s16032_s12 + $0x2874] ss:$40 sps:$4 sm:$0xff]   ;;  %v15558_v10 = vld [vmem:[%s16032_s12 + $0x25e8] ss:$40 sps:$4 sm:$0xff]  }
 0x5c1   : > { %11593 = vmatprep.subr.bf16.mxu0 %v15487_v35  ;;  %v15561_v35 = vld [vmem:[%s16032_s12 + $0x2870] ss:$40 sps:$4 sm:$0xff]  }
 0x5c3   : > { %10955 = vmatpush1.bf16.msra.mxu1 %v15486_v28  ;;  %v15562_v28 = vld [vmem:[%s16032_s12 + $0x263c] ss:$40 sps:$4 sm:$0xff]  }
 0x5c4   : > { %11595 = vmatpush1.bf16.msra.mxu0 %v15489_v29  ;;  %10957 = vmatprep.subr.bf16.mxu1 %v15490_v15  ;;  %v15565_v29 = vld [vmem:[%s16032_s12 + $0x28c4] ss:$40 sps:$4 sm:$0xff]   ;;  %v15564_v15 = vld [vmem:[%s16032_s12 + $0x2638] ss:$40 sps:$4 sm:$0xff]  }
 0x5c5   : > { %11597 = vmatprep.subr.bf16.mxu0 %v15493_v34  ;;  %v15567_v34 = vld [vmem:[%s16032_s12 + $0x28c0] ss:$40 sps:$4 sm:$0xff]  }
 0x5c7   : > { %10959 = vmatpush1.bf16.msra.mxu1 %v15492_v27  ;;  %v15568_v27 = vld [vmem:[%s16032_s12 + $0x268c] ss:$40 sps:$4 sm:$0xff]  }
 0x5c8   : > { %11599 = vmatpush1.bf16.msra.mxu0 %v15495_v26  ;;  %10961 = vmatprep.subr.bf16.mxu1 %v15496_v39  ;;  %v15571_v26 = vld [vmem:[%s16032_s12 + $0x2914] ss:$40 sps:$4 sm:$0xff]   ;;  %v15570_v39 = vld [vmem:[%s16032_s12 + $0x2688] ss:$40 sps:$4 sm:$0xff]  }
 0x5c9   : > { %11601 = vmatprep.subr.bf16.mxu0 %v15499_v44  ;;  %v15573_v44 = vld [vmem:[%s16032_s12 + $0x2910] ss:$40 sps:$4 sm:$0xff]  }
 0x5cb   : > { %10963 = vmatpush1.bf16.msra.mxu1 %v15498_v46  ;;  %v15574_v46 = vld [vmem:[%s16032_s12 + $0x26dc] ss:$40 sps:$4 sm:$0xff]  }
 0x5cc   : > { %11603 = vmatpush1.bf16.msra.mxu0 %v15501_v48  ;;  %10965 = vmatprep.subr.bf16.mxu1 %v15502_v52  ;;  %v15577_v48 = vld [vmem:[%s16032_s12 + $0x2964] ss:$40 sps:$4 sm:$0xff]   ;;  %v15576_v52 = vld [vmem:[%s16032_s12 + $0x26d8] ss:$40 sps:$4 sm:$0xff]  }
 0x5cd   : > { %11605 = vmatprep.subr.bf16.mxu0 %v15505_v50  ;;  %v15579_v50 = vld [vmem:[%s16032_s12 + $0x2960] ss:$40 sps:$4 sm:$0xff]  }
 0x5ce   : > { %7578 = vmatmul.mubr.f32.vlgmr.msra.gmra.mrb[4].mxu1 %v16263_v32  ;;  %v15519_v32 = vld [vmem:[%s16032_s12 + $0x2640] ss:$40 sps:$4 sm:$0xff]  }
 0x5cf   : > { %10967 = vmatpush1.bf16.msra.mxu1 %v15504_v54  ;;  %7648 = vmatprep.mubr.f32.mxu1 %v16272_v38  ;;  %v15526_v38 = vld [vmem:[%s16032_s12 + $0x245c] ss:$40 sps:$4 sm:$0xff]   ;;  %v15580_v54 = vld [vmem:[%s16032_s12 + $0x272c] ss:$40 sps:$4 sm:$0xff]  }
 0x5d0   : > { %11607 = vmatpush1.bf16.msra.mxu0 %v15507_v55  ;;  %10969 = vmatprep.subr.bf16.mxu1 %v15508_v56  ;;  %v15583_v55 = vld [vmem:[%s16032_s12 + $0x29b4] ss:$40 sps:$4 sm:$0xff]   ;;  %v15582_v56 = vld [vmem:[%s16032_s12 + $0x2728] ss:$40 sps:$4 sm:$0xff]  }
 0x5d1   : > { %11609 = vmatprep.subr.bf16.mxu0 %v15511_v51  ;;  %v15585_v51 = vld [vmem:[%s16032_s12 + $0x29b0] ss:$40 sps:$4 sm:$0xff]  }
 0x5d3   : > { %10971 = vmatpush1.bf16.msra.mxu1 %v15510_v59  ;;  %v15586_v59 = vld [vmem:[%s16032_s12 + $0x277c] ss:$40 sps:$4 sm:$0xff]  }
 0x5d4   : > { %11611 = vmatpush1.bf16.msra.mxu0 %v15513_v60  ;;  %10973 = vmatprep.subr.bf16.mxu1 %v15514_v62  ;;  %v15589_v60 = vld [vmem:[%s16032_s12 + $0x2a04] ss:$40 sps:$4 sm:$0xff]   ;;  %v15588_v62 = vld [vmem:[%s16032_s12 + $0x2778] ss:$40 sps:$4 sm:$0xff]  }
 0x5d5   : > { %11613 = vmatprep.subr.bf16.mxu0 %v15517_v49  ;;  %v15591_v49 = vld [vmem:[%s16032_s12 + $0x2a00] ss:$40 sps:$4 sm:$0xff]  }
 0x5d7   : > { %10975 = vmatpush1.bf16.msra.mxu1 %v15516_v57  ;;  %v15592_v57 = vld [vmem:[%s16032_s12 + $0x27cc] ss:$40 sps:$4 sm:$0xff]  }
 0x5d8   : > { %11615 = vmatpush1.bf16.msra.mxu0 %v15519_v32  ;;  %10977 = vmatprep.subr.bf16.mxu1 %v15520_v63  ;;  %v15595_v32 = vld [vmem:[%s16032_s12 + $0x2a54] ss:$40 sps:$4 sm:$0xff]   ;;  %v15594_v63 = vld [vmem:[%s16032_s12 + $0x27c8] ss:$40 sps:$4 sm:$0xff]  }
 0x5d9   : > { %11617 = vmatprep.subr.bf16.mxu0 %v15523_v0  ;;  %v15597_v0 = vld [vmem:[%s16032_s12 + $0x2a50] ss:$40 sps:$4 sm:$0xff]  }
 0x5db   : > { %10979 = vmatpush1.bf16.msra.mxu1 %v15522_v2  ;;  %v15598_v2 = vld [vmem:[%s16032_s12 + $0x281c] ss:$40 sps:$4 sm:$0xff]  }
 0x5dc   : > { %11619 = vmatpush1.bf16.msra.mxu0 %v15525_v6  ;;  %10981 = vmatprep.subr.bf16.mxu1 %v15526_v38  ;;  %v15601_v6 = vld [vmem:[%s16032_s12 + $0x2aa4] ss:$40 sps:$4 sm:$0xff]   ;;  %v15600_v38 = vld [vmem:[%s16032_s12 + $0x2818] ss:$40 sps:$4 sm:$0xff]  }
 0x5dd   : > { %11621 = vmatprep.subr.bf16.mxu0 %v15529_v58  ;;  %v15603_v58 = vld [vmem:[%s16032_s12 + $0x2aa0] ss:$40 sps:$4 sm:$0xff]  }
 0x5df   : > { %10983 = vmatpush1.bf16.msra.mxu1 %v15528_v7  ;;  %v15604_v7 = vld [vmem:[%s16032_s12 + $0x286c] ss:$40 sps:$4 sm:$0xff]  }
 0x5e0   : > { %11623 = vmatpush1.bf16.msra.mxu0 %v15531_v9  ;;  %10985 = vmatprep.subr.bf16.mxu1 %v15532_v11  ;;  %v15607_v9 = vld [vmem:[%s16032_s12 + $0x2af4] ss:$40 sps:$4 sm:$0xff]   ;;  %v15606_v11 = vld [vmem:[%s16032_s12 + $0x2868] ss:$40 sps:$4 sm:$0xff]  }
 0x5e1   : > { %11625 = vmatprep.subr.bf16.mxu0 %v15535_v33  ;;  %v15609_v33 = vld [vmem:[%s16032_s12 + $0x2af0] ss:$40 sps:$4 sm:$0xff]  }
 0x5e3   : > { %10987 = vmatpush1.bf16.msra.mxu1 %v15534_v13  ;;  %v15610_v13 = vld [vmem:[%s16032_s12 + $0x28bc] ss:$40 sps:$4 sm:$0xff]  }
 0x5e4   : > { %11627 = vmatpush1.bf16.msra.mxu0 %v15537_v14  ;;  %10989 = vmatprep.subr.bf16.mxu1 %v15538_v16  ;;  %v15613_v14 = vld [vmem:[%s16032_s12 + $0x2b44] ss:$40 sps:$4 sm:$0xff]   ;;  %v15612_v16 = vld [vmem:[%s16032_s12 + $0x28b8] ss:$40 sps:$4 sm:$0xff]  }
 0x5e5   : > { %11629 = vmatprep.subr.bf16.mxu0 %v15541_v1  ;;  %v15616_v1 = vld [vmem:[%s16032_s12 + $0x290c] ss:$40 sps:$4 sm:$0xff]  }
 0x5e7   : > { %10991 = vmatpush1.bf16.msra.mxu1 %v15540_v40  ;;  %v15619_v40 = vld [vmem:[%s16032_s12 + $0x2b94] ss:$40 sps:$4 sm:$0xff]  }
 0x5e8   : > { %11631 = vmatpush1.bf16.msra.mxu0 %v15543_v3  ;;  %10993 = vmatprep.subr.bf16.mxu1 %v15544_v5  ;;  %v15618_v3 = vld [vmem:[%s16032_s12 + $0x2908] ss:$40 sps:$4 sm:$0xff]  }
 0x5e9   : > { %11633 = vmatprep.subr.bf16.mxu0 %v15547_v17  ;;  %v15621_v5 = vld [vmem:[%s16032_s12 + $0x2b90] ss:$40 sps:$4 sm:$0xff]   ;;  %v15625_v17 = vld [vmem:[%s16032_s12 + $0x2be4] ss:$40 sps:$4 sm:$0xff]  }
 0x5eb   : > { %10995 = vmatpush1.bf16.msra.mxu1 %v15546_v18  ;;  %v15624_v18 = vld [vmem:[%s16032_s12 + $0x2958] ss:$40 sps:$4 sm:$0xff]  }
 0x5ec   : > { %11635 = vmatpush1.bf16.msra.mxu0 %v15549_v19  ;;  %10997 = vmatprep.subr.bf16.mxu1 %v15550_v4  ;;  %v15627_v19 = vld [vmem:[%s16032_s12 + $0x2be0] ss:$40 sps:$4 sm:$0xff]   ;;  %v15628_v4 = vld [vmem:[%s16032_s12 + $0x29ac] ss:$40 sps:$4 sm:$0xff]  }
 0x5ed   : > { %11637 = vmatprep.subr.bf16.mxu0 %v15553_v20  ;;  %v15631_v20 = vld [vmem:[%s16032_s12 + $0x2c34] ss:$40 sps:$4 sm:$0xff]  }
 0x5ef   : > { %8359 = vmatmul.mubr.f32.vlgmr.msra.gmra.mrb[4].mxu0 %v16337_v41  ;;  %10999 = vmatpush1.bf16.msra.mxu1 %v15552_v21  ;;  %v15630_v21 = vld [vmem:[%s16032_s12 + $0x29a8] ss:$40 sps:$4 sm:$0xff]  }
 0x5f0   : > { %11639 = vmatpush1.bf16.msra.mxu0 %v15555_v22  ;;  %11001 = vmatprep.subr.bf16.mxu1 %v15556_v23  ;;  %v15633_v22 = vld [vmem:[%s16032_s12 + $0x2c30] ss:$40 sps:$4 sm:$0xff]   ;;  %v15634_v23 = vld [vmem:[%s16032_s12 + $0x29fc] ss:$40 sps:$4 sm:$0xff]  }
 0x5f1   : > { %11641 = vmatprep.subr.bf16.mxu0 %v15559_v25  ;;  %8429 = vmatprep.mubr.f32.mxu0 %v16346_v47  ;;  %v15637_v25 = vld [vmem:[%s16032_s12 + $0x2c84] ss:$40 sps:$4 sm:$0xff]  }
 0x5f3   : > { %11003 = vmatpush1.bf16.msra.mxu1 %v15558_v10  ;;  %v15636_v10 = vld [vmem:[%s16032_s12 + $0x29f8] ss:$40 sps:$4 sm:$0xff]  }
 0x5f4   : > { %11643 = vmatpush1.bf16.msra.mxu0 %v15561_v35  ;;  %11005 = vmatprep.subr.bf16.mxu1 %v15562_v28  ;;  %v15639_v35 = vld [vmem:[%s16032_s12 + $0x2c80] ss:$40 sps:$4 sm:$0xff]   ;;  %v15640_v28 = vld [vmem:[%s16032_s12 + $0x2a4c] ss:$40 sps:$4 sm:$0xff]  }
 0x5f5   : > { %11645 = vmatprep.subr.bf16.mxu0 %v15565_v29  ;;  %v15643_v29 = vld [vmem:[%s16032_s12 + $0x2cd4] ss:$40 sps:$4 sm:$0xff]  }
 0x5f7   : > { %11007 = vmatpush1.bf16.msra.mxu1 %v15564_v15  ;;  %v15642_v15 = vld [vmem:[%s16032_s12 + $0x2a48] ss:$40 sps:$4 sm:$0xff]  }
 0x5f8   : > { %11647 = vmatpush1.bf16.msra.mxu0 %v15567_v34  ;;  %11009 = vmatprep.subr.bf16.mxu1 %v15568_v27  ;;  %v15645_v34 = vld [vmem:[%s16032_s12 + $0x2cd0] ss:$40 sps:$4 sm:$0xff]   ;;  %v15646_v27 = vld [vmem:[%s16032_s12 + $0x2a9c] ss:$40 sps:$4 sm:$0xff]  }
 0x5f9   : > { %11649 = vmatprep.subr.bf16.mxu0 %v15571_v26  ;;  %v15649_v26 = vld [vmem:[%s16032_s12 + $0x2d24] ss:$40 sps:$4 sm:$0xff]  }
 0x5fb   : > { %11011 = vmatpush1.bf16.msra.mxu1 %v15570_v39  ;;  %v15648_v39 = vld [vmem:[%s16032_s12 + $0x2a98] ss:$40 sps:$4 sm:$0xff]  }
 0x5fc   : > { %11651 = vmatpush1.bf16.msra.mxu0 %v15573_v44  ;;  %11013 = vmatprep.subr.bf16.mxu1 %v15574_v46  ;;  %v15651_v44 = vld [vmem:[%s16032_s12 + $0x2d20] ss:$40 sps:$4 sm:$0xff]   ;;  %v15652_v46 = vld [vmem:[%s16032_s12 + $0x2aec] ss:$40 sps:$4 sm:$0xff]  }
 0x5fd   : > { %11653 = vmatprep.subr.bf16.mxu0 %v15577_v48  ;;  %v15655_v48 = vld [vmem:[%s16032_s12 + $0x2d74] ss:$40 sps:$4 sm:$0xff]  }
 0x5ff   : > { %11015 = vmatpush1.bf16.msra.mxu1 %v15576_v52  ;;  %v15654_v52 = vld [vmem:[%s16032_s12 + $0x2ae8] ss:$40 sps:$4 sm:$0xff]  }
 0x600   : > { %11655 = vmatpush1.bf16.msra.mxu0 %v15579_v50  ;;  %11017 = vmatprep.subr.bf16.mxu1 %v15580_v54  ;;  %v15657_v50 = vld [vmem:[%s16032_s12 + $0x2d70] ss:$40 sps:$4 sm:$0xff]   ;;  %v15658_v54 = vld [vmem:[%s16032_s12 + $0x2b3c] ss:$40 sps:$4 sm:$0xff]  }
 0x601   : > { %11657 = vmatprep.subr.bf16.mxu0 %v15583_v55  ;;  %v15661_v55 = vld [vmem:[%s16032_s12 + $0x2dc4] ss:$40 sps:$4 sm:$0xff]  }
 0x603   : > { %11019 = vmatpush1.bf16.msra.mxu1 %v15582_v56  ;;  %v15660_v56 = vld [vmem:[%s16032_s12 + $0x2b38] ss:$40 sps:$4 sm:$0xff]  }
 0x604   : > { %11659 = vmatpush1.bf16.msra.mxu0 %v15585_v51  ;;  %11021 = vmatprep.subr.bf16.mxu1 %v15586_v59  ;;  %v15663_v51 = vld [vmem:[%s16032_s12 + $0x2dc0] ss:$40 sps:$4 sm:$0xff]   ;;  %v15664_v59 = vld [vmem:[%s16032_s12 + $0x2b8c] ss:$40 sps:$4 sm:$0xff]  }
 0x605   : > { %11661 = vmatprep.subr.bf16.mxu0 %v15589_v60  ;;  %v15667_v60 = vld [vmem:[%s16032_s12 + $0x2e14] ss:$40 sps:$4 sm:$0xff]  }
 0x607   : > { %11023 = vmatpush1.bf16.msra.mxu1 %v15588_v62  ;;  %v15666_v62 = vld [vmem:[%s16032_s12 + $0x2b88] ss:$40 sps:$4 sm:$0xff]  }
 0x608   : > { %11663 = vmatpush1.bf16.msra.mxu0 %v15591_v49  ;;  %11025 = vmatprep.subr.bf16.mxu1 %v15592_v57  ;;  %v15669_v49 = vld [vmem:[%s16032_s12 + $0x2e10] ss:$40 sps:$4 sm:$0xff]   ;;  %v15670_v57 = vld [vmem:[%s16032_s12 + $0x2bdc] ss:$40 sps:$4 sm:$0xff]  }
 0x609   : > { %11665 = vmatprep.subr.bf16.mxu0 %v15595_v32  ;;  %v15673_v32 = vld [vmem:[%s16032_s12 + $0x2e64] ss:$40 sps:$4 sm:$0xff]  }
 0x60b   : > { %11027 = vmatpush1.bf16.msra.mxu1 %v15594_v63  ;;  %v15672_v63 = vld [vmem:[%s16032_s12 + $0x2bd8] ss:$40 sps:$4 sm:$0xff]  }
 0x60c   : > { %11667 = vmatpush1.bf16.msra.mxu0 %v15597_v0  ;;  %11029 = vmatprep.subr.bf16.mxu1 %v15598_v2  ;;  %v15675_v0 = vld [vmem:[%s16032_s12 + $0x2e60] ss:$40 sps:$4 sm:$0xff]   ;;  %v15676_v2 = vld [vmem:[%s16032_s12 + $0x2c2c] ss:$40 sps:$4 sm:$0xff]  }
 0x60d   : > { %11669 = vmatprep.subr.bf16.mxu0 %v15601_v6  ;;  %v15679_v6 = vld [vmem:[%s16032_s12 + $0x2eb4] ss:$40 sps:$4 sm:$0xff]  }
 0x60e   : > { %7649 = vmatmul.mubr.f32.vlgmr.msra.gmra.mrb[4].mxu1 %v16337_v41  ;;  %v15615_v41 = vld [vmem:[%s16032_s12 + $0x2b40] ss:$40 sps:$4 sm:$0xff]  }
 0x60f   : > { %11031 = vmatpush1.bf16.msra.mxu1 %v15600_v38  ;;  %7719 = vmatprep.mubr.f32.mxu1 %v16346_v47  ;;  %v15622_v47 = vld [vmem:[%s16032_s12 + $0x295c] ss:$40 sps:$4 sm:$0xff]   ;;  %v15678_v38 = vld [vmem:[%s16032_s12 + $0x2c28] ss:$40 sps:$4 sm:$0xff]  }
 0x610   : > { %11671 = vmatpush1.bf16.msra.mxu0 %v15603_v58  ;;  %11033 = vmatprep.subr.bf16.mxu1 %v15604_v7  ;;  %v15681_v58 = vld [vmem:[%s16032_s12 + $0x2eb0] ss:$40 sps:$4 sm:$0xff]   ;;  %v15682_v7 = vld [vmem:[%s16032_s12 + $0x2c7c] ss:$40 sps:$4 sm:$0xff]  }
 0x611   : > { %11673 = vmatprep.subr.bf16.mxu0 %v15607_v9  ;;  %v15685_v9 = vld [vmem:[%s16032_s12 + $0x2f04] ss:$40 sps:$4 sm:$0xff]  }
 0x613   : > { %11035 = vmatpush1.bf16.msra.mxu1 %v15606_v11  ;;  %v15684_v11 = vld [vmem:[%s16032_s12 + $0x2c78] ss:$40 sps:$4 sm:$0xff]  }
 0x614   : > { %11675 = vmatpush1.bf16.msra.mxu0 %v15609_v33  ;;  %11037 = vmatprep.subr.bf16.mxu1 %v15610_v13  ;;  %v15687_v33 = vld [vmem:[%s16032_s12 + $0x2f00] ss:$40 sps:$4 sm:$0xff]   ;;  %v15688_v13 = vld [vmem:[%s16032_s12 + $0x2ccc] ss:$40 sps:$4 sm:$0xff]  }
 0x615   : > { %11677 = vmatprep.subr.bf16.mxu0 %v15613_v14  ;;  %v15691_v14 = vld [vmem:[%s16032_s12 + $0x2f54] ss:$40 sps:$4 sm:$0xff]  }
 0x617   : > { %11039 = vmatpush1.bf16.msra.mxu1 %v15612_v16  ;;  %v15690_v16 = vld [vmem:[%s16032_s12 + $0x2cc8] ss:$40 sps:$4 sm:$0xff]  }
 0x618   : > { %11679 = vmatpush1.bf16.msra.mxu0 %v15615_v41  ;;  %11041 = vmatprep.subr.bf16.mxu1 %v15616_v1  ;;  %v15693_v41 = vld [vmem:[%s16032_s12 + $0x2f50] ss:$40 sps:$4 sm:$0xff]   ;;  %v15694_v1 = vld [vmem:[%s16032_s12 + $0x2d1c] ss:$40 sps:$4 sm:$0xff]  }
 0x619   : > { %11681 = vmatprep.subr.bf16.mxu0 %v15619_v40  ;;  %v15696_v40 = vld [vmem:[%s16032_s12 + $0x2d18] ss:$40 sps:$4 sm:$0xff]  }
 0x61b   : > { %11043 = vmatpush1.bf16.msra.mxu1 %v15618_v3  ;;  %v15697_v3 = vld [vmem:[%s16032_s12 + $0x2d6c] ss:$40 sps:$4 sm:$0xff]  }
 0x61c   : > { %11683 = vmatpush1.bf16.msra.mxu0 %v15621_v5  ;;  %11045 = vmatprep.subr.bf16.mxu1 %v15622_v47  ;;  %v15699_v5 = vld [vmem:[%s16032_s12 + $0x2d68] ss:$40 sps:$4 sm:$0xff]   ;;  %v15700_v47 = vld [vmem:[%s16032_s12 + $0x2dbc] ss:$40 sps:$4 sm:$0xff]  }
 0x61d   : > { %11685 = vmatprep.subr.bf16.mxu0 %v15625_v17  ;;  %v15702_v17 = vld [vmem:[%s16032_s12 + $0x2db8] ss:$40 sps:$4 sm:$0xff]  }
 0x61f   : > { %11047 = vmatpush1.bf16.msra.mxu1 %v15624_v18  ;;  %v15703_v18 = vld [vmem:[%s16032_s12 + $0x2e0c] ss:$40 sps:$4 sm:$0xff]  }
 0x620   : > { %11687 = vmatpush1.bf16.msra.mxu0 %v15627_v19  ;;  %11049 = vmatprep.subr.bf16.mxu1 %v15628_v4  ;;  %v15705_v19 = vld [vmem:[%s16032_s12 + $0x2e08] ss:$40 sps:$4 sm:$0xff]   ;;  %v15708_v4 = vld [vmem:[%s16032_s12 + $0x2e58] ss:$40 sps:$4 sm:$0xff]  }
 0x621   : > { %11689 = vmatprep.subr.bf16.mxu0 %v15631_v20  ;;  %v15711_v20 = vld [vmem:[%s16032_s12 + $0x2ea8] ss:$40 sps:$4 sm:$0xff]  }
 0x623   : > { %11051 = vmatpush1.bf16.msra.mxu1 %v15630_v21  ;;  %v15712_v21 = vld [vmem:[%s16032_s12 + $0x2efc] ss:$40 sps:$4 sm:$0xff]  }
 0x624   : > { %11691 = vmatpush1.bf16.msra.mxu0 %v15633_v22  ;;  %11053 = vmatprep.subr.bf16.mxu1 %v15634_v23  ;;  %v15714_v22 = vld [vmem:[%s16032_s12 + $0x2ef8] ss:$40 sps:$4 sm:$0xff]   ;;  %v15715_v23 = vld [vmem:[%s16032_s12 + $0x2f4c] ss:$40 sps:$4 sm:$0xff]  }
 0x625   : > { %11693 = vmatprep.subr.bf16.mxu0 %v15637_v25  ;;  %v15717_v25 = vld [vmem:[%s16032_s12 + $0x2f48] ss:$40 sps:$4 sm:$0xff]  }
 0x627   : > { %11055 = vmatpush1.bf16.msra.mxu1 %v15636_v10  ;;  %v4904_v10 = vld [vmem:[%s16038_s23 + $0x8] sm:$0x3] }
 0x628   : > { %11695 = vmatpush1.bf16.msra.mxu0 %v15639_v35  ;;  %11057 = vmatprep.subr.bf16.mxu1 %v15640_v28  ;;  %v4942_v35 = vrot.slane %v4904_v10, %v4909_v43  ;;  %v4946_v28 = vrot.slane %v4904_v10, %v4913_v45  ;;  %v4937_v43 = vsub.s32 7, %v16742_v31 }
 0x629   : > { %11697 = vmatprep.subr.bf16.mxu0 %v15643_v29 }
 0x62b   : > { %11059 = vmatpush1.bf16.msra.mxu1 %v15642_v15 }
 0x62c   : > { %11699 = vmatpush1.bf16.msra.mxu0 %v15645_v34  ;;  %11061 = vmatprep.subr.bf16.mxu1 %v15646_v27 }
 0x62d   : > { %11701 = vmatprep.subr.bf16.mxu0 %v15649_v26 }
 0x62f   : > { %8430 = vmatmul.mubr.f32.vlgmr.msra.gmra.mrb[4].mxu0 %v16413_v53  ;;  %11063 = vmatpush1.bf16.msra.mxu1 %v15648_v39 }
 0x630   : > { %11703 = vmatpush1.bf16.msra.mxu0 %v15651_v44  ;;  %11065 = vmatprep.subr.bf16.mxu1 %v15652_v46  ;;  %v15726_v44 = vld [vmem:[%s16038_s23] sm:$0xff] }
 0x631   : > { %11705 = vmatprep.subr.bf16.mxu0 %v15655_v48  ;;  %8500 = vmatprep.mubr.f32.mxu0 %v15864_v61  ;;  %v4938_v46 = vrot.slane %v15726_v44, %v4937_v43 }
 0x633   : > { %11067 = vmatpush1.bf16.msra.mxu1 %v15654_v52 }
 0x634   : > { %11707 = vmatpush1.bf16.msra.mxu0 %v15657_v50  ;;  %11069 = vmatprep.subr.bf16.mxu1 %v15658_v54 }
 0x635   : > { %11709 = vmatprep.subr.bf16.mxu0 %v15661_v55 }
 0x637   : > { %11071 = vmatpush1.bf16.msra.mxu1 %v15660_v56 }
 0x638   : > { %11711 = vmatpush1.bf16.msra.mxu0 %v15663_v51  ;;  %11073 = vmatprep.subr.bf16.mxu1 %v15664_v59 }
 0x639   : > { %11713 = vmatprep.subr.bf16.mxu0 %v15667_v60 }
 0x63b   : > { %11075 = vmatpush1.bf16.msra.mxu1 %v15666_v62 }
 0x63c   : > { %11715 = vmatpush1.bf16.msra.mxu0 %v15669_v49  ;;  %11077 = vmatprep.subr.bf16.mxu1 %v15670_v57 }
 0x63d   : > { %11717 = vmatprep.subr.bf16.mxu0 %v15673_v32 }
 0x63f   : > { %11079 = vmatpush1.bf16.msra.mxu1 %v15672_v63 }
 0x640   : > { %11719 = vmatpush1.bf16.msra.mxu0 %v15675_v0  ;;  %11081 = vmatprep.subr.bf16.mxu1 %v15676_v2 }
 0x641   : > { %11721 = vmatprep.subr.bf16.mxu0 %v15679_v6 }
 0x643   : > { %11083 = vmatpush1.bf16.msra.mxu1 %v15678_v38 }
 0x644   : > { %11723 = vmatpush1.bf16.msra.mxu0 %v15681_v58  ;;  %11085 = vmatprep.subr.bf16.mxu1 %v15682_v7 }
 0x645   : > { %11725 = vmatprep.subr.bf16.mxu0 %v15685_v9 }
 0x647   : > { %11087 = vmatpush1.bf16.msra.mxu1 %v15684_v11 }
 0x648   : > { %11727 = vmatpush1.bf16.msra.mxu0 %v15687_v33  ;;  %11089 = vmatprep.subr.bf16.mxu1 %v15688_v13 }
 0x649   : > { %11729 = vmatprep.subr.bf16.mxu0 %v15691_v14 }
 0x64b   : > { %11091 = vmatpush1.bf16.msra.mxu1 %v15690_v16 }
 0x64c   : > { %11731 = vmatpush1.bf16.msra.mxu0 %v15693_v41  ;;  %11093 = vmatprep.subr.bf16.mxu1 %v15694_v1 }
 0x64e   : > { %7720 = vmatmul.mubr.f32.vlgmr.msra.gmra.mrb[4].mxu1 %v16413_v53  ;;  %v15706_v53 = vld [vmem:[%s16032_s12 + $0x2e5c] ss:$40 sps:$4 sm:$0xff]  }
 0x64f   : > { %8501 = vmatmul.mubr.f32.vlgmr.msra.gmra.mrb[4].mxu0 %v16454_v24  ;;  %11095 = vmatpush1.bf16.msra.mxu1 %v15696_v40 }
 0x650   : > { %7790 = vmatprep.mubr.f32.mxu1 %v15864_v61  ;;  %11097 = vmatprep.subr.bf16.mxu1 %v15697_v3  ;;  %v15709_v61 = vld [vmem:[%s16032_s12 + $0x2eac] ss:$40 sps:$4 sm:$0xff]  }
 0x653   : > { %11099 = vmatpush1.bf16.msra.mxu1 %v15699_v5 }
 0x654   : > { %11101 = vmatprep.subr.bf16.mxu1 %v15700_v47 }
 0x657   : > { %11103 = vmatpush1.bf16.msra.mxu1 %v15702_v17 }
 0x658   : > { %11105 = vmatprep.subr.bf16.mxu1 %v15703_v18 }
 0x65b   : > { %11107 = vmatpush1.bf16.msra.mxu1 %v15705_v19 }
 0x65c   : > { %11109 = vmatprep.subr.bf16.mxu1 %v15706_v53 }
 0x65f   : > { %11111 = vmatpush1.bf16.msra.mxu1 %v15708_v4 }
 0x660   : > { %11113 = vmatprep.subr.bf16.mxu1 %v15709_v61 }
 0x663   : > { %11115 = vmatpush1.bf16.msra.mxu1 %v15711_v20 }
 0x664   : > { %11117 = vmatprep.subr.bf16.mxu1 %v15712_v21 }
 0x667   : > { %11119 = vmatpush1.bf16.msra.mxu1 %v15714_v22 }
 0x668   : > { %11121 = vmatprep.subr.bf16.mxu1 %v15715_v23 }
 0x66b   : > { %11123 = vmatpush1.bf16.msra.mxu1 %v15717_v25 }
 0x66e   : > { %7791 = vmatmul.mubr.f32.vlgmr.msra.gmra.mrb[4].mxu1 %v16454_v24  ;;  %v4933_v24 = vsub.s32 6, %v16742_v31 }
 0x670   : > { %v4934_v45 = vrot.slane %v15726_v44, %v4933_v24 }
 0x722   : > { %v8502_v29 = vpop.f32.mrb[4].mxu0 }
 0x723   : > { %v11742_v15 = vadd.f32 %v8502_v29, %v4942_v35  ;;  %v8504_v34 = vpop.f32.mrb[5].mxu0 }
 0x724   : > { %v11743_v27 = vadd.f32 %v8504_v34, %v4946_v28 }
 0x725   : > { %v8515_v26 = vmax.f32 %v11742_v15, 0.0 }
 0x726   : > { %v8516_v39 = vmax.f32 %v11743_v27, 0.0 }
 0x727   : > { %8532 = vst [vmem:[%s16777_s1 + $0x40] sm:$0xff] %v8515_v26  ;;  %8542 = vst [vmem:[%s16050_s24 + $0x40] sm:$0xff] %v8515_v26 }
 0x728   : > { %8533 = vst [vmem:[%s16777_s1 + $0x48] sm:$0xff] %v8516_v39  ;;  %8543 = vst [vmem:[%s16050_s24 + $0x48] sm:$0xff] %v8516_v39 }
 0x729   : > { %8556 = vst [vmem:[%s16050_s24 + $0x40] sm:$0xff] (!%p8688_p6), %v11742_v15  ;;  %8557 = vst [vmem:[%s16050_s24 + $0x48] sm:$0xff] (!%p8688_p6), %v11743_v27 }
 0x741   : > { %v7792_v48 = vpop.f32.mrb[4].mxu1  ;;  %8547 = sbr.rel (%p8688_p6) target bundleno = 1865 (0x749), region = 48 }
 0x742   : > { %v11740_v52 = vadd.f32 %v7792_v48, %v4934_v45  ;;  %v7794_v50 = vpop.f32.mrb[5].mxu1 }
 0x743   : > { %v11741_v54 = vadd.f32 %v7794_v50, %v4938_v46 }
 0x744   : > { %v8513_v55 = vmax.f32 %v11740_v52, 0.0 }
 0x745   : > { %v8514_v56 = vmax.f32 %v11741_v54, 0.0 }
 0x746   : > { %8530 = vst [vmem:[%s16777_s1 + $0x30] sm:$0xff] %v8513_v55  ;;  %8540 = vst [vmem:[%s16050_s24 + $0x30] sm:$0xff] %v8513_v55 }
 0x747   : > { %8531 = vst [vmem:[%s16777_s1 + $0x38] sm:$0xff] %v8514_v56  ;;  %8541 = vst [vmem:[%s16050_s24 + $0x38] sm:$0xff] %v8514_v56 }
 0x748   : > { %8554 = vst [vmem:[%s16050_s24 + $0x30] sm:$0xff] %v11740_v52  ;;  %8555 = vst [vmem:[%s16050_s24 + $0x38] sm:$0xff] %v11741_v54 }
 0x749 PF: > { %s19_s19 = sadd.s32 1, %s15857_s19   ;;  %s17928_s23 = sld [smem:[#allocation9_spill]] }
 0x74a   : > { %p16_p8 = scmp.ge.s32.totalorder %s19_s19, 8   ;;  %s17929_s22 = sld [smem:[#allocation10_spill]] }
 0x74b   : > { %s17930_s12 = smov %s15833_s13  ;;  %s17931_s13 = smov %s15837_s14 }
 0x74c   : > { %s17932_s14 = smov %s15954_s4  ;;  %s17933_s15 = smov %s15849_s17 }
 0x74d   : > { %s17934_s16 = smov %s15853_s18  ;;  %18 = sbr.rel (!%p16_p8) target bundleno = 9 (0x9), region = 95 }
 0x74f   : > { %s17935_s17 = smov %s17928_s23 }
 0x750   : > { %s17936_s18 = smov %s17929_s22 }
 0x754   :  { %8580 = vsyncpa [#allocation4], 1 }
 0x755   :  { %8582 = vsyncpa [#allocation4 + $0x1], 1 }
 0x756   :  { %8583 = vsyncpa [#allocation6], 1 }
 0x757   :  { %8585 = vsyncpa [#allocation6 + $0x1], 1 }

</bundles_post_ra>
